<compile_context>
chip_gen: v6e
topology: v6e:2x2x1
jax: 0.10.0
libtpu: 0.0.40
codegen_flags: <defaults>
</compile_context>

<pallas_src>
import jax
import jax.numpy as jnp
from jax.experimental import pallas as pl
from jax.experimental.pallas import tpu as pltpu


# --------------------------------------------------------------------------
# kernel
# --------------------------------------------------------------------------
def make_basic_block_kernel(nb, H, W, Cin, Cmid, Cout, has_proj,
                            lane_dense_out):
    """Builds the fused BasicBlock kernel for static shapes (Nb images/step)."""
    M = nb * H * W

    def kernel(*refs):
        if has_proj:
            (x_ref, w1_ref, b1_ref, w2_ref, b2_ref, wsc_ref, bsc_ref,
             o_ref, xpad, h1pad) = refs
        else:
            (x_ref, w1_ref, b1_ref, w2_ref, b2_ref,
             o_ref, xpad, h1pad) = refs

        def stage_padded(dst, value, C):
            # Border re-zeroing every step (cheap thin stores) keeps the
            # kernel correct when the batch axis is sharded across TCs.
            zrow = jnp.zeros((nb, 1, W + 2, C), jnp.bfloat16)
            zcol = jnp.zeros((nb, H, 1, C), jnp.bfloat16)
            dst[:, 0:1, :, :] = zrow
            dst[:, H + 1:H + 2, :, :] = zrow
            dst[:, 1:H + 1, 0:1, :] = zcol
            dst[:, 1:H + 1, W + 1:W + 2, :] = zcol
            dst[:, 1:H + 1, 1:W + 1, :] = value

        def conv3x3(src_ref, C, w_ref):
            # im2col: 9 tap windows read directly from the padded scratch ref,
            # concatenated along K (= 9*C) -> a single MXU matmul per conv.
            cols = []
            for kh in range(3):
                for kw in range(3):
                    cols.append(
                        src_ref[:, kh:kh + H, kw:kw + W, :].reshape(M, C))
            patches = jnp.concatenate(cols, axis=-1)          # (M, 9*C) bf16
            return jnp.dot(patches, w_ref[...],
                           preferred_element_type=jnp.float32)

        # ---- conv1 (3x3, pad=1) + bn1 bias + relu --------------------------
        stage_padded(xpad, x_ref[...], Cin)
        h1 = jnp.maximum(conv3x3(xpad, Cin, w1_ref) + b1_ref[...], 0.0)

        # ---- conv2 (3x3, pad=1) + bn2 bias ---------------------------------
        stage_padded(h1pad, h1.reshape(nb, H, W, Cmid).astype(jnp.bfloat16),
                     Cmid)
        h2 = conv3x3(h1pad, Cmid, w2_ref) + b2_ref[...]        # (M, Cout) f32

        # ---- shortcut (from the resident unpadded input block) -------------
        xin = x_ref[...].reshape(M, Cin)
        if has_proj:
            sc = jnp.dot(xin, wsc_ref[...],
                         preferred_element_type=jnp.float32) + bsc_ref[...]
        else:
            sc = xin.astype(jnp.float32)                       # Cin == Cout

        out = jnp.maximum(h2 + sc, 0.0)                        # f32 epilogue
        if lane_dense_out:
            o_ref[...] = out.reshape(nb, H, W * Cout).astype(jnp.bfloat16)
        else:
            o_ref[...] = out.reshape(nb, H, W, Cout).astype(jnp.bfloat16)

    return kernel


# --------------------------------------------------------------------------
# VMEM budgeting
# --------------------------------------------------------------------------
def _tpu_vmem_capacity_bytes():
    try:
        info = pltpu.get_tpu_info()
        for name in ("vmem_capacity_bytes", "vmem_bytes", "vmem_size_bytes"):
            v = getattr(info, name, None)
            if isinstance(v, int) and v > 0:
                return int(v)
    except Exception:
        pass
    return 64 * 1024 * 1024            # conservative default (v7x physical)


def _per_step_bytes(nb, H, W, Cin, Cmid, Cout, has_proj):
    bf16, f32 = 2, 4
    pad_hw = (H + 2) * (W + 2)
    hw = H * W
    act = nb * (
        pad_hw * (Cin + Cmid) * bf16          # padded staging scratches
        + 2 * hw * Cin * bf16                 # double-buffered input block
        + 2 * hw * Cout * bf16                # double-buffered output block
        + hw * 9 * (Cin + Cmid) * bf16        # im2col patch values
        + hw * (Cmid + 2 * Cout) * f32)       # f32 matmul results / epilogue
    wgt = (9 * Cin * Cmid + 9 * Cmid * Cout) * bf16 + (Cmid + Cout) * f32
    if has_proj:
        wgt += Cin * Cout * bf16 + Cout * f32
    return act + 2 * wgt                      # weights double-buffered (worst)


def _pick_nb(N, H, W, Cin, Cmid, Cout, has_proj, vmem_cap):
    budget = int(vmem_cap * 0.7)              # headroom for compiler temps
    nb = 1
    while nb < N and _per_step_bytes(nb * 2, H, W, Cin, Cmid, Cout,
                                     has_proj) <= budget:
        nb *= 2
    if N >= 2:                                # keep >= 2 grid steps (v7x TCs)
        nb = min(nb, -(-N // 2))
    return max(1, min(nb, N))


def _vmem_limit_bytes(nb, H, W, Cin, Cmid, Cout, has_proj, vmem_cap):
    est = int(_per_step_bytes(nb, H, W, Cin, Cmid, Cout, has_proj) * 1.25)
    lo = 32 * 1024 * 1024
    hi = (vmem_cap * 7) // 8                  # never request full physical
    return min(max(est, lo), hi)


# --------------------------------------------------------------------------
# wrapper
# --------------------------------------------------------------------------
def fold_params(p):
    """Fold eval-mode BN scale into the conv weights (HWIO); bf16 weights,
    f32 biases."""
    Cmid = p["w1"].shape[-1]
    Cout = p["w2"].shape[-1]
    q = {
        "w1": (p["w1"] * p["s1"].reshape(1, 1, 1, Cmid)).astype(jnp.bfloat16),
        "b1": p["b1"].astype(jnp.float32).reshape(1, Cmid),
        "w2": (p["w2"] * p["s2"].reshape(1, 1, 1, Cout)).astype(jnp.bfloat16),
        "b2": p["b2"].astype(jnp.float32).reshape(1, Cout),
    }
    if "wsc" in p:
        q["wsc"] = (p["wsc"] * p["ssc"]).astype(jnp.bfloat16)
        q["bsc"] = p["bsc"].astype(jnp.float32).reshape(1, Cout)
    return q


def _build_and_run(x_nhwc, q, nb, single_buffer_weights, lane_dense_out,
                   vmem_cap):
    N, H, W, Cin = x_nhwc.shape
    Cmid = q["w1"].shape[-1]
    Cout = q["w2"].shape[-1]
    has_proj = "wsc" in q

    n_pad = -(-N // nb) * nb
    x_in = x_nhwc
    if n_pad != N:
        x_in = jnp.pad(x_nhwc, ((0, n_pad - N), (0, 0), (0, 0), (0, 0)))
    grid = (n_pad // nb,)

    # im2col weight layout (kh, kw, cin) flattened -> matches tap concat order
    w1 = q["w1"].reshape(9 * Cin, Cmid)
    w2 = q["w2"].reshape(9 * Cmid, Cout)

    def const_spec(shape):
        idx = lambda b, _s=shape: tuple(0 for _ in _s)
        if single_buffer_weights:
            return pl.BlockSpec(shape, idx, pipeline_mode=pl.Buffered(1))
        return pl.BlockSpec(shape, idx)

    in_specs = [pl.BlockSpec((nb, H, W, Cin), lambda b: (b, 0, 0, 0)),
                const_spec((9 * Cin, Cmid)),
                const_spec((1, Cmid)),
                const_spec((9 * Cmid, Cout)),
                const_spec((1, Cout))]
    inputs = [x_in, w1, q["b1"], w2, q["b2"]]
    if has_proj:
        in_specs += [const_spec((Cin, Cout)), const_spec((1, Cout))]
        inputs += [q["wsc"], q["bsc"]]

    if lane_dense_out:
        out_shape = jax.ShapeDtypeStruct((n_pad, H, W * Cout), jnp.bfloat16)
        out_spec = pl.BlockSpec((nb, H, W * Cout), lambda b: (b, 0, 0))
    else:
        out_shape = jax.ShapeDtypeStruct((n_pad, H, W, Cout), jnp.bfloat16)
        out_spec = pl.BlockSpec((nb, H, W, Cout), lambda b: (b, 0, 0, 0))

    kernel = make_basic_block_kernel(nb, H, W, Cin, Cmid, Cout, has_proj,
                                     lane_dense_out)

    out = pl.pallas_call(
        kernel,
        out_shape=out_shape,
        grid_spec=pltpu.PrefetchScalarGridSpec(
            num_scalar_prefetch=0,
            grid=grid,
            in_specs=in_specs,
            out_specs=out_spec,
            scratch_shapes=[
                pltpu.VMEM((nb, H + 2, W + 2, Cin), jnp.bfloat16),
                pltpu.VMEM((nb, H + 2, W + 2, Cmid), jnp.bfloat16),
            ]),
        compiler_params=pltpu.CompilerParams(
            dimension_semantics=("parallel",),
            vmem_limit_bytes=_vmem_limit_bytes(nb, H, W, Cin, Cmid, Cout,
                                               has_proj, vmem_cap)),
    )(*inputs)

    out = out.reshape(n_pad, H, W, Cout)[:N]   # free: contiguous reshape
    return jax.block_until_ready(out)


def basic_block_pallas(x_nchw, p):
    """BasicBlock forward. x_nchw: (N, Cin, H, W) f32, returns NCHW f32."""
    x = jnp.transpose(x_nchw, (0, 2, 3, 1)).astype(jnp.bfloat16)   # NHWC bf16
    N, H, W, Cin = x.shape
    q = fold_params(p)
    Cmid = q["w1"].shape[-1]
    Cout = q["w2"].shape[-1]
    has_proj = "wsc" in q
    if not has_proj:
        assert Cin == Cout, "identity shortcut requires in_planes == planes"

    vmem_cap = _tpu_vmem_capacity_bytes()
    nb = _pick_nb(N, H, W, Cin, Cmid, Cout, has_proj, vmem_cap)

    # Preferred config first (single-buffered weights, lane-dense output);
    # fall back to more conservative layouts if the compiler rejects them.
    last_err, out = None, None
    for single_buf_w, lane_dense in ((True, True), (False, True),
                                     (False, False)):
        try:
            out = _build_and_run(x, q, nb, single_buf_w, lane_dense, vmem_cap)
            break
        except Exception as e:      # noqa: BLE001 - retry with safer config
            last_err = e
            out = None
    if out is None:
        raise last_err
    # For stacked BasicBlocks keep activations bf16 NHWC and drop this
    # transpose/cast; it is only done here to match the NCHW f32 interface.
    return jnp.transpose(out, (0, 3, 1, 2)).astype(jnp.float32)


# --------------------------------------------------------------------------
# pure-JAX reference (mirrors the kernel's precision policy)
# --------------------------------------------------------------------------
def ref_basic_block(x_nchw, p):
    q = fold_params(p)
    x = jnp.transpose(x_nchw, (0, 2, 3, 1)).astype(jnp.bfloat16)   # NHWC bf16

    def conv3x3(a, w):
        return jax.lax.conv_general_dilated(
            a, w, (1, 1), ((1, 1), (1, 1)),
            dimension_numbers=("NHWC", "HWIO", "NHWC"),
            preferred_element_type=jnp.float32)

    h1 = jnp.maximum(conv3x3(x, q["w1"]) + q["b1"], 0.0).astype(jnp.bfloat16)
    h2 = conv3x3(h1, q["w2"]) + q["b2"]
    if "wsc" in q:
        sc = jnp.einsum("nhwc,cd->nhwd", x, q["wsc"],
                        preferred_element_type=jnp.float32) + q["bsc"]
    else:
        sc = x.astype(jnp.float32)
    out = jnp.maximum(h2 + sc, 0.0)
    return jnp.transpose(out, (0, 3, 1, 2))


# --------------------------------------------------------------------------
# param helpers
# --------------------------------------------------------------------------
def fold_bn(gamma, beta, mean, var, eps=1e-5):
    s = gamma / jnp.sqrt(var + eps)
    b = beta - mean * s
    return s.reshape(1, -1), b.reshape(1, -1)


def make_params(key, cin, cmid, cout, proj):
    kk = jax.random.split(key, 16)

    def bn_params(k0, k1, k2, k3, c):
        return fold_bn(
            jax.random.uniform(kk[k0], (c,), minval=0.5, maxval=1.5),
            jax.random.normal(kk[k1], (c,)) * 0.1,
            jax.random.normal(kk[k2], (c,)) * 0.1,
            jax.random.uniform(kk[k3], (c,), minval=0.5, maxval=1.5))

    p = {}
    p["w1"] = jax.random.normal(kk[0], (3, 3, cin, cmid), jnp.float32) * 0.2
    p["s1"], p["b1"] = bn_params(1, 2, 3, 4, cmid)
    p["w2"] = jax.random.normal(kk[5], (3, 3, cmid, cout), jnp.float32) * 0.2
    p["s2"], p["b2"] = bn_params(6, 7, 8, 9, cout)
    if proj:
        p["wsc"] = jax.random.normal(kk[10], (cin, cout), jnp.float32) * 0.2
        p["ssc"], p["bsc"] = bn_params(11, 12, 13, 14, cout)
    return p


def _check(out, ref, shape, atol=3e-2, rtol=3e-2):
    assert out.shape == shape, (out.shape, shape)
    o = out.astype(jnp.float32)
    err = float(jnp.max(jnp.abs(o - ref)))
    assert jnp.allclose(o, ref, atol=atol, rtol=rtol), err


if __name__ == "__main__":
    key = jax.random.PRNGKey(0)
    ks = jax.random.split(key, 8)

    # Case 1: in_planes == planes, stride=1 -> identity shortcut
    N, Cin, H, W = 2, 4, 16, 16
    x = jax.random.normal(ks[0], (N, Cin, H, W), jnp.float32)
    p_id = make_params(ks[1], Cin, Cin, Cin, proj=False)
    out_id = basic_block_pallas(x, p_id)
    _check(out_id, ref_basic_block(x, p_id), (N, Cin, H, W))

    # Case 2: in_planes != planes, stride=1 -> 1x1 conv + BN projection
    planes = 8
    p_pr = make_params(ks[2], Cin, planes, planes, proj=True)
    out_pr = basic_block_pallas(x, p_pr)
    _check(out_pr, ref_basic_block(x, p_pr), (N, planes, H, W))

    # Case 3: larger channel count (exercises BN folding / im2col at
    # more realistic widths; lane-dense output W*Cout = 1024)
    Cin3, planes3 = 32, 64
    x3 = jax.random.normal(ks[3], (2, Cin3, H, W), jnp.float32)
    p3 = make_params(ks[4], Cin3, planes3, planes3, proj=True)
    out3 = basic_block_pallas(x3, p3)
    _check(out3, ref_basic_block(x3, p3), (2, planes3, H, W))

    print("KERNEL_OK")
</pallas_src>

<mosaic_0001>
module attributes {stable_mosaic.version = 11 : i64} {
  func.func @kernel(%arg0: i32, %arg1: memref<1x16x16x4xbf16, #tpu.memory_space<vmem>>, %arg2: memref<36x4xbf16, #tpu.memory_space<vmem>>, %arg3: memref<1x4xf32, #tpu.memory_space<vmem>>, %arg4: memref<36x4xbf16, #tpu.memory_space<vmem>>, %arg5: memref<1x4xf32, #tpu.memory_space<vmem>>, %arg6: memref<1x16x64xbf16, #tpu.memory_space<vmem>>, %arg7: memref<1x18x18x4xbf16, #tpu.memory_space<vmem>>, %arg8: memref<1x18x18x4xbf16, #tpu.memory_space<vmem>>) attributes {dimension_semantics = [#tpu.dimension_semantics<parallel>], iteration_bounds = array<i64: 2>, scalar_prefetch = 0 : i64, scratch_operands = 2 : i64, tpu.core_type = #tpu.core_type<tc>, window_params = [{transform_indices = @transform_0, window_bounds = array<i64: 1, 16, 16, 4>}, {pipeline_mode = #tpu.pipeline_mode<synchronous>, transform_indices = @transform_1, window_bounds = array<i64: 36, 4>}, {pipeline_mode = #tpu.pipeline_mode<synchronous>, transform_indices = @transform_2, window_bounds = array<i64: 1, 4>}, {pipeline_mode = #tpu.pipeline_mode<synchronous>, transform_indices = @transform_3, window_bounds = array<i64: 36, 4>}, {pipeline_mode = #tpu.pipeline_mode<synchronous>, transform_indices = @transform_4, window_bounds = array<i64: 1, 4>}, {transform_indices = @transform_5, window_bounds = array<i64: 1, 16, 64>}]} {
    %c0 = arith.constant 0 : index
    %c0_0 = arith.constant 0 : index
    %c0_1 = arith.constant 0 : index
    %c0_2 = arith.constant 0 : index
    %0 = vector.load %arg1[%c0, %c0_0, %c0_1, %c0_2] : memref<1x16x16x4xbf16, #tpu.memory_space<vmem>>, vector<1x16x16x4xbf16>
    %cst = arith.constant 0.000000e+00 : bf16
    %1 = vector.broadcast %cst : bf16 to vector<1x1x18x4xbf16>
    %cst_3 = arith.constant 0.000000e+00 : bf16
    %2 = vector.broadcast %cst_3 : bf16 to vector<1x16x1x4xbf16>
    %c0_4 = arith.constant 0 : index
    %c0_5 = arith.constant 0 : index
    %c0_6 = arith.constant 0 : index
    %c0_7 = arith.constant 0 : index
    %3 = vector.load %arg7[%c0_4, %c0_5, %c0_6, %c0_7] : memref<1x18x18x4xbf16, #tpu.memory_space<vmem>>, vector<1x1x18x4xbf16>
    tpu.vector_store %arg7[%c0_4, %c0_5, %c0_6, %c0_7], %1 {strides = array<i32>} : memref<1x18x18x4xbf16, #tpu.memory_space<vmem>>, vector<1x1x18x4xbf16>,
    %c0_8 = arith.constant 0 : index
    %c17 = arith.constant 17 : index
    %c0_9 = arith.constant 0 : index
    %c0_10 = arith.constant 0 : index
    %4 = vector.load %arg7[%c0_8, %c17, %c0_9, %c0_10] : memref<1x18x18x4xbf16, #tpu.memory_space<vmem>>, vector<1x1x18x4xbf16>
    tpu.vector_store %arg7[%c0_8, %c17, %c0_9, %c0_10], %1 {strides = array<i32>} : memref<1x18x18x4xbf16, #tpu.memory_space<vmem>>, vector<1x1x18x4xbf16>,
    %c0_11 = arith.constant 0 : index
    %c1 = arith.constant 1 : index
    %c0_12 = arith.constant 0 : index
    %c0_13 = arith.constant 0 : index
    %5 = vector.load %arg7[%c0_11, %c1, %c0_12, %c0_13] : memref<1x18x18x4xbf16, #tpu.memory_space<vmem>>, vector<1x16x1x4xbf16>
    tpu.vector_store %arg7[%c0_11, %c1, %c0_12, %c0_13], %2 {strides = array<i32>} : memref<1x18x18x4xbf16, #tpu.memory_space<vmem>>, vector<1x16x1x4xbf16>,
    %c0_14 = arith.constant 0 : index
    %c1_15 = arith.constant 1 : index
    %c17_16 = arith.constant 17 : index
    %c0_17 = arith.constant 0 : index
    %6 = vector.load %arg7[%c0_14, %c1_15, %c17_16, %c0_17] : memref<1x18x18x4xbf16, #tpu.memory_space<vmem>>, vector<1x16x1x4xbf16>
    tpu.vector_store %arg7[%c0_14, %c1_15, %c17_16, %c0_17], %2 {strides = array<i32>} : memref<1x18x18x4xbf16, #tpu.memory_space<vmem>>, vector<1x16x1x4xbf16>,
    %c0_18 = arith.constant 0 : index
    %c1_19 = arith.constant 1 : index
    %c1_20 = arith.constant 1 : index
    %c0_21 = arith.constant 0 : index
    %7 = vector.load %arg7[%c0_18, %c1_19, %c1_20, %c0_21] : memref<1x18x18x4xbf16, #tpu.memory_space<vmem>>, vector<1x16x16x4xbf16>
    tpu.vector_store %arg7[%c0_18, %c1_19, %c1_20, %c0_21], %0 {strides = array<i32>} : memref<1x18x18x4xbf16, #tpu.memory_space<vmem>>, vector<1x16x16x4xbf16>,
    %c0_22 = arith.constant 0 : index
    %c0_23 = arith.constant 0 : index
    %c0_24 = arith.constant 0 : index
    %c0_25 = arith.constant 0 : index
    %8 = vector.load %arg7[%c0_22, %c0_23, %c0_24, %c0_25] : memref<1x18x18x4xbf16, #tpu.memory_space<vmem>>, vector<1x16x16x4xbf16>
    %9 = vector.shape_cast %8 : vector<1x16x16x4xbf16> to vector<256x4xbf16>
    %c0_26 = arith.constant 0 : index
    %c0_27 = arith.constant 0 : index
    %c1_28 = arith.constant 1 : index
    %c0_29 = arith.constant 0 : index
    %10 = vector.load %arg7[%c0_26, %c0_27, %c1_28, %c0_29] : memref<1x18x18x4xbf16, #tpu.memory_space<vmem>>, vector<1x16x16x4xbf16>
    %11 = vector.shape_cast %10 : vector<1x16x16x4xbf16> to vector<256x4xbf16>
    %c0_30 = arith.constant 0 : index
    %c0_31 = arith.constant 0 : index
    %c2 = arith.constant 2 : index
    %c0_32 = arith.constant 0 : index
    %12 = vector.load %arg7[%c0_30, %c0_31, %c2, %c0_32] : memref<1x18x18x4xbf16, #tpu.memory_space<vmem>>, vector<1x16x16x4xbf16>
    %13 = vector.shape_cast %12 : vector<1x16x16x4xbf16> to vector<256x4xbf16>
    %c0_33 = arith.constant 0 : index
    %c1_34 = arith.constant 1 : index
    %c0_35 = arith.constant 0 : index
    %c0_36 = arith.constant 0 : index
    %14 = vector.load %arg7[%c0_33, %c1_34, %c0_35, %c0_36] : memref<1x18x18x4xbf16, #tpu.memory_space<vmem>>, vector<1x16x16x4xbf16>
    %15 = vector.shape_cast %14 : vector<1x16x16x4xbf16> to vector<256x4xbf16>
    %c0_37 = arith.constant 0 : index
    %c1_38 = arith.constant 1 : index
    %c1_39 = arith.constant 1 : index
    %c0_40 = arith.constant 0 : index
    %16 = vector.load %arg7[%c0_37, %c1_38, %c1_39, %c0_40] : memref<1x18x18x4xbf16, #tpu.memory_space<vmem>>, vector<1x16x16x4xbf16>
    %17 = vector.shape_cast %16 : vector<1x16x16x4xbf16> to vector<256x4xbf16>
    %c0_41 = arith.constant 0 : index
    %c1_42 = arith.constant 1 : index
    %c2_43 = arith.constant 2 : index
    %c0_44 = arith.constant 0 : index
    %18 = vector.load %arg7[%c0_41, %c1_42, %c2_43, %c0_44] : memref<1x18x18x4xbf16, #tpu.memory_space<vmem>>, vector<1x16x16x4xbf16>
    %19 = vector.shape_cast %18 : vector<1x16x16x4xbf16> to vector<256x4xbf16>
    %c0_45 = arith.constant 0 : index
    %c2_46 = arith.constant 2 : index
    %c0_47 = arith.constant 0 : index
    %c0_48 = arith.constant 0 : index
    %20 = vector.load %arg7[%c0_45, %c2_46, %c0_47, %c0_48] : memref<1x18x18x4xbf16, #tpu.memory_space<vmem>>, vector<1x16x16x4xbf16>
    %21 = vector.shape_cast %20 : vector<1x16x16x4xbf16> to vector<256x4xbf16>
    %c0_49 = arith.constant 0 : index
    %c2_50 = arith.constant 2 : index
    %c1_51 = arith.constant 1 : index
    %c0_52 = arith.constant 0 : index
    %22 = vector.load %arg7[%c0_49, %c2_50, %c1_51, %c0_52] : memref<1x18x18x4xbf16, #tpu.memory_space<vmem>>, vector<1x16x16x4xbf16>
    %23 = vector.shape_cast %22 : vector<1x16x16x4xbf16> to vector<256x4xbf16>
    %c0_53 = arith.constant 0 : index
    %c2_54 = arith.constant 2 : index
    %c2_55 = arith.constant 2 : index
    %c0_56 = arith.constant 0 : index
    %24 = vector.load %arg7[%c0_53, %c2_54, %c2_55, %c0_56] : memref<1x18x18x4xbf16, #tpu.memory_space<vmem>>, vector<1x16x16x4xbf16>
    %25 = vector.shape_cast %24 : vector<1x16x16x4xbf16> to vector<256x4xbf16>
    %26 = tpu.concatenate %9, %11, %13, %15, %17, %19, %21, %23, %25 in 1 : vector<256x4xbf16>, vector<256x4xbf16>, vector<256x4xbf16>, vector<256x4xbf16>, vector<256x4xbf16>, vector<256x4xbf16>, vector<256x4xbf16>, vector<256x4xbf16>, vector<256x4xbf16> -> vector<256x36xbf16>
    %c0_57 = arith.constant 0 : index
    %c0_58 = arith.constant 0 : index
    %27 = vector.load %arg2[%c0_57, %c0_58] : memref<36x4xbf16, #tpu.memory_space<vmem>>, vector<36x4xbf16>
    %cst_59 = arith.constant dense<0.000000e+00> : vector<256x4xf32>
    %28 = tpu.matmul %26, %27, %cst_59 {dimension_numbers = #tpu.dot_dimension_numbers<[1], [0], [0], [1], [0, 0, 1, 1], [], []>} : vector<256x36xbf16>, vector<36x4xbf16>, vector<256x4xf32> -> vector<256x4xf32>
    %c0_60 = arith.constant 0 : index
    %c0_61 = arith.constant 0 : index
    %29 = vector.load %arg3[%c0_60, %c0_61] : memref<1x4xf32, #tpu.memory_space<vmem>>, vector<1x4xf32>
    %30 = vector.broadcast %29 : vector<1x4xf32> to vector<256x4xf32>
    %31 = arith.addf %28, %30 : vector<256x4xf32>
    %cst_62 = arith.constant 0.000000e+00 : f32
    %32 = vector.broadcast %cst_62 : f32 to vector<256x4xf32>
    %33 = arith.maximumf %31, %32 : vector<256x4xf32>
    %34 = vector.shape_cast %33 : vector<256x4xf32> to vector<1x16x16x4xf32>
    %35 = arith.truncf %34 : vector<1x16x16x4xf32> to vector<1x16x16x4xbf16>
    %cst_63 = arith.constant 0.000000e+00 : bf16
    %36 = vector.broadcast %cst_63 : bf16 to vector<1x1x18x4xbf16>
    %cst_64 = arith.constant 0.000000e+00 : bf16
    %37 = vector.broadcast %cst_64 : bf16 to vector<1x16x1x4xbf16>
    %c0_65 = arith.constant 0 : index
    %c0_66 = arith.constant 0 : index
    %c0_67 = arith.constant 0 : index
    %c0_68 = arith.constant 0 : index
    %38 = vector.load %arg8[%c0_65, %c0_66, %c0_67, %c0_68] : memref<1x18x18x4xbf16, #tpu.memory_space<vmem>>, vector<1x1x18x4xbf16>
    tpu.vector_store %arg8[%c0_65, %c0_66, %c0_67, %c0_68], %36 {strides = array<i32>} : memref<1x18x18x4xbf16, #tpu.memory_space<vmem>>, vector<1x1x18x4xbf16>,
    %c0_69 = arith.constant 0 : index
    %c17_70 = arith.constant 17 : index
    %c0_71 = arith.constant 0 : index
    %c0_72 = arith.constant 0 : index
    %39 = vector.load %arg8[%c0_69, %c17_70, %c0_71, %c0_72] : memref<1x18x18x4xbf16, #tpu.memory_space<vmem>>, vector<1x1x18x4xbf16>
    tpu.vector_store %arg8[%c0_69, %c17_70, %c0_71, %c0_72], %36 {strides = array<i32>} : memref<1x18x18x4xbf16, #tpu.memory_space<vmem>>, vector<1x1x18x4xbf16>,
    %c0_73 = arith.constant 0 : index
    %c1_74 = arith.constant 1 : index
    %c0_75 = arith.constant 0 : index
    %c0_76 = arith.constant 0 : index
    %40 = vector.load %arg8[%c0_73, %c1_74, %c0_75, %c0_76] : memref<1x18x18x4xbf16, #tpu.memory_space<vmem>>, vector<1x16x1x4xbf16>
    tpu.vector_store %arg8[%c0_73, %c1_74, %c0_75, %c0_76], %37 {strides = array<i32>} : memref<1x18x18x4xbf16, #tpu.memory_space<vmem>>, vector<1x16x1x4xbf16>,
    %c0_77 = arith.constant 0 : index
    %c1_78 = arith.constant 1 : index
    %c17_79 = arith.constant 17 : index
    %c0_80 = arith.constant 0 : index
    %41 = vector.load %arg8[%c0_77, %c1_78, %c17_79, %c0_80] : memref<1x18x18x4xbf16, #tpu.memory_space<vmem>>, vector<1x16x1x4xbf16>
    tpu.vector_store %arg8[%c0_77, %c1_78, %c17_79, %c0_80], %37 {strides = array<i32>} : memref<1x18x18x4xbf16, #tpu.memory_space<vmem>>, vector<1x16x1x4xbf16>,
    %c0_81 = arith.constant 0 : index
    %c1_82 = arith.constant 1 : index
    %c1_83 = arith.constant 1 : index
    %c0_84 = arith.constant 0 : index
    %42 = vector.load %arg8[%c0_81, %c1_82, %c1_83, %c0_84] : memref<1x18x18x4xbf16, #tpu.memory_space<vmem>>, vector<1x16x16x4xbf16>
    tpu.vector_store %arg8[%c0_81, %c1_82, %c1_83, %c0_84], %35 {strides = array<i32>} : memref<1x18x18x4xbf16, #tpu.memory_space<vmem>>, vector<1x16x16x4xbf16>,
    %c0_85 = arith.constant 0 : index
    %c0_86 = arith.constant 0 : index
    %c0_87 = arith.constant 0 : index
    %c0_88 = arith.constant 0 : index
    %43 = vector.load %arg8[%c0_85, %c0_86, %c0_87, %c0_88] : memref<1x18x18x4xbf16, #tpu.memory_space<vmem>>, vector<1x16x16x4xbf16>
    %44 = vector.shape_cast %43 : vector<1x16x16x4xbf16> to vector<256x4xbf16>
    %c0_89 = arith.constant 0 : index
    %c0_90 = arith.constant 0 : index
    %c1_91 = arith.constant 1 : index
    %c0_92 = arith.constant 0 : index
    %45 = vector.load %arg8[%c0_89, %c0_90, %c1_91, %c0_92] : memref<1x18x18x4xbf16, #tpu.memory_space<vmem>>, vector<1x16x16x4xbf16>
    %46 = vector.shape_cast %45 : vector<1x16x16x4xbf16> to vector<256x4xbf16>
    %c0_93 = arith.constant 0 : index
    %c0_94 = arith.constant 0 : index
    %c2_95 = arith.constant 2 : index
    %c0_96 = arith.constant 0 : index
    %47 = vector.load %arg8[%c0_93, %c0_94, %c2_95, %c0_96] : memref<1x18x18x4xbf16, #tpu.memory_space<vmem>>, vector<1x16x16x4xbf16>
    %48 = vector.shape_cast %47 : vector<1x16x16x4xbf16> to vector<256x4xbf16>
    %c0_97 = arith.constant 0 : index
    %c1_98 = arith.constant 1 : index
    %c0_99 = arith.constant 0 : index
    %c0_100 = arith.constant 0 : index
    %49 = vector.load %arg8[%c0_97, %c1_98, %c0_99, %c0_100] : memref<1x18x18x4xbf16, #tpu.memory_space<vmem>>, vector<1x16x16x4xbf16>
    %50 = vector.shape_cast %49 : vector<1x16x16x4xbf16> to vector<256x4xbf16>
    %c0_101 = arith.constant 0 : index
    %c1_102 = arith.constant 1 : index
    %c1_103 = arith.constant 1 : index
    %c0_104 = arith.constant 0 : index
    %51 = vector.load %arg8[%c0_101, %c1_102, %c1_103, %c0_104] : memref<1x18x18x4xbf16, #tpu.memory_space<vmem>>, vector<1x16x16x4xbf16>
    %52 = vector.shape_cast %51 : vector<1x16x16x4xbf16> to vector<256x4xbf16>
    %c0_105 = arith.constant 0 : index
    %c1_106 = arith.constant 1 : index
    %c2_107 = arith.constant 2 : index
    %c0_108 = arith.constant 0 : index
    %53 = vector.load %arg8[%c0_105, %c1_106, %c2_107, %c0_108] : memref<1x18x18x4xbf16, #tpu.memory_space<vmem>>, vector<1x16x16x4xbf16>
    %54 = vector.shape_cast %53 : vector<1x16x16x4xbf16> to vector<256x4xbf16>
    %c0_109 = arith.constant 0 : index
    %c2_110 = arith.constant 2 : index
    %c0_111 = arith.constant 0 : index
    %c0_112 = arith.constant 0 : index
    %55 = vector.load %arg8[%c0_109, %c2_110, %c0_111, %c0_112] : memref<1x18x18x4xbf16, #tpu.memory_space<vmem>>, vector<1x16x16x4xbf16>
    %56 = vector.shape_cast %55 : vector<1x16x16x4xbf16> to vector<256x4xbf16>
    %c0_113 = arith.constant 0 : index
    %c2_114 = arith.constant 2 : index
    %c1_115 = arith.constant 1 : index
    %c0_116 = arith.constant 0 : index
    %57 = vector.load %arg8[%c0_113, %c2_114, %c1_115, %c0_116] : memref<1x18x18x4xbf16, #tpu.memory_space<vmem>>, vector<1x16x16x4xbf16>
    %58 = vector.shape_cast %57 : vector<1x16x16x4xbf16> to vector<256x4xbf16>
    %c0_117 = arith.constant 0 : index
    %c2_118 = arith.constant 2 : index
    %c2_119 = arith.constant 2 : index
    %c0_120 = arith.constant 0 : index
    %59 = vector.load %arg8[%c0_117, %c2_118, %c2_119, %c0_120] : memref<1x18x18x4xbf16, #tpu.memory_space<vmem>>, vector<1x16x16x4xbf16>
    %60 = vector.shape_cast %59 : vector<1x16x16x4xbf16> to vector<256x4xbf16>
    %61 = tpu.concatenate %44, %46, %48, %50, %52, %54, %56, %58, %60 in 1 : vector<256x4xbf16>, vector<256x4xbf16>, vector<256x4xbf16>, vector<256x4xbf16>, vector<256x4xbf16>, vector<256x4xbf16>, vector<256x4xbf16>, vector<256x4xbf16>, vector<256x4xbf16> -> vector<256x36xbf16>
    %c0_121 = arith.constant 0 : index
    %c0_122 = arith.constant 0 : index
    %62 = vector.load %arg4[%c0_121, %c0_122] : memref<36x4xbf16, #tpu.memory_space<vmem>>, vector<36x4xbf16>
    %cst_123 = arith.constant dense<0.000000e+00> : vector<256x4xf32>
    %63 = tpu.matmul %61, %62, %cst_123 {dimension_numbers = #tpu.dot_dimension_numbers<[1], [0], [0], [1], [0, 0, 1, 1], [], []>} : vector<256x36xbf16>, vector<36x4xbf16>, vector<256x4xf32> -> vector<256x4xf32>
    %c0_124 = arith.constant 0 : index
    %c0_125 = arith.constant 0 : index
    %64 = vector.load %arg5[%c0_124, %c0_125] : memref<1x4xf32, #tpu.memory_space<vmem>>, vector<1x4xf32>
    %65 = vector.broadcast %64 : vector<1x4xf32> to vector<256x4xf32>
    %66 = arith.addf %63, %65 : vector<256x4xf32>
    %c0_126 = arith.constant 0 : index
    %c0_127 = arith.constant 0 : index
    %c0_128 = arith.constant 0 : index
    %c0_129 = arith.constant 0 : index
    %67 = vector.load %arg1[%c0_126, %c0_127, %c0_128, %c0_129] : memref<1x16x16x4xbf16, #tpu.memory_space<vmem>>, vector<1x16x16x4xbf16>
    %68 = vector.shape_cast %67 : vector<1x16x16x4xbf16> to vector<256x4xbf16>
    %69 = arith.extf %68 : vector<256x4xbf16> to vector<256x4xf32>
    %70 = arith.addf %66, %69 : vector<256x4xf32>
    %cst_130 = arith.constant 0.000000e+00 : f32
    %71 = vector.broadcast %cst_130 : f32 to vector<256x4xf32>
    %72 = arith.maximumf %70, %71 : vector<256x4xf32>
    %73 = vector.shape_cast %72 : vector<256x4xf32> to vector<1x16x64xf32>
    %74 = arith.truncf %73 : vector<1x16x64xf32> to vector<1x16x64xbf16>
    %c0_131 = arith.constant 0 : index
    %c0_132 = arith.constant 0 : index
    %c0_133 = arith.constant 0 : index
    %75 = vector.load %arg6[%c0_131, %c0_132, %c0_133] : memref<1x16x64xbf16, #tpu.memory_space<vmem>>, vector<1x16x64xbf16>
    tpu.vector_store %arg6[%c0_131, %c0_132, %c0_133], %74 {strides = array<i32>} : memref<1x16x64xbf16, #tpu.memory_space<vmem>>, vector<1x16x64xbf16>,
    return
  }
  func.func @transform_0(%arg0: i32) -> (i32, i32, i32, i32) {
    %c0_i32 = arith.constant 0 : i32
    %c0_i32_0 = arith.constant 0 : i32
    %c0_i32_1 = arith.constant 0 : i32
    %c0_i32_2 = arith.constant 0 : i32
    return %arg0, %c0_i32, %c0_i32_0, %c0_i32_1 : i32, i32, i32, i32
  }
  func.func @transform_1(%arg0: i32) -> (i32, i32) {
    %c0_i32 = arith.constant 0 : i32
    %c0_i32_0 = arith.constant 0 : i32
    %c0_i32_1 = arith.constant 0 : i32
    return %c0_i32, %c0_i32_0 : i32, i32
  }
  func.func @transform_2(%arg0: i32) -> (i32, i32) {
    %c0_i32 = arith.constant 0 : i32
    %c0_i32_0 = arith.constant 0 : i32
    %c0_i32_1 = arith.constant 0 : i32
    return %c0_i32, %c0_i32_0 : i32, i32
  }
  func.func @transform_3(%arg0: i32) -> (i32, i32) {
    %c0_i32 = arith.constant 0 : i32
    %c0_i32_0 = arith.constant 0 : i32
    %c0_i32_1 = arith.constant 0 : i32
    return %c0_i32, %c0_i32_0 : i32, i32
  }
  func.func @transform_4(%arg0: i32) -> (i32, i32) {
    %c0_i32 = arith.constant 0 : i32
    %c0_i32_0 = arith.constant 0 : i32
    %c0_i32_1 = arith.constant 0 : i32
    return %c0_i32, %c0_i32_0 : i32, i32
  }
  func.func @transform_5(%arg0: i32) -> (i32, i32, i32) {
    %c0_i32 = arith.constant 0 : i32
    %c0_i32_0 = arith.constant 0 : i32
    %c0_i32_1 = arith.constant 0 : i32
    return %arg0, %c0_i32, %c0_i32_0 : i32, i32, i32
  }
}

module attributes {stable_mosaic.version = 11 : i64} {
  func.func @kernel(%arg0: i32, %arg1: memref<1x16x16x4xbf16, #tpu.memory_space<vmem>>, %arg2: memref<36x4xbf16, #tpu.memory_space<vmem>>, %arg3: memref<1x4xf32, #tpu.memory_space<vmem>>, %arg4: memref<36x4xbf16, #tpu.memory_space<vmem>>, %arg5: memref<1x4xf32, #tpu.memory_space<vmem>>, %arg6: memref<1x16x64xbf16, #tpu.memory_space<vmem>>, %arg7: memref<1x18x18x4xbf16, #tpu.memory_space<vmem>>, %arg8: memref<1x18x18x4xbf16, #tpu.memory_space<vmem>>) attributes {dimension_semantics = [#tpu.dimension_semantics<parallel>], iteration_bounds = array<i64: 2>, scalar_prefetch = 0 : i64, scratch_operands = 2 : i64, tpu.core_type = #tpu.core_type<tc>, window_params = [{transform_indices = @transform_0, window_bounds = array<i64: 1, 16, 16, 4>}, {pipeline_mode = #tpu.pipeline_mode<synchronous>, transform_indices = @transform_1, window_bounds = array<i64: 36, 4>}, {pipeline_mode = #tpu.pipeline_mode<synchronous>, transform_indices = @transform_2, window_bounds = array<i64: 1, 4>}, {pipeline_mode = #tpu.pipeline_mode<synchronous>, transform_indices = @transform_3, window_bounds = array<i64: 36, 4>}, {pipeline_mode = #tpu.pipeline_mode<synchronous>, transform_indices = @transform_4, window_bounds = array<i64: 1, 4>}, {transform_indices = @transform_5, window_bounds = array<i64: 1, 16, 64>}]} {
    %c0 = arith.constant 0 : index
    %c0_0 = arith.constant 0 : index
    %c0_1 = arith.constant 0 : index
    %c0_2 = arith.constant 0 : index
    %0 = vector.load %arg1[%c0, %c0_0, %c0_1, %c0_2] : memref<1x16x16x4xbf16, #tpu.memory_space<vmem>>, vector<1x16x16x4xbf16>
    %cst = arith.constant 0.000000e+00 : bf16
    %1 = vector.broadcast %cst : bf16 to vector<1x1x18x4xbf16>
    %cst_3 = arith.constant 0.000000e+00 : bf16
    %2 = vector.broadcast %cst_3 : bf16 to vector<1x16x1x4xbf16>
    %c0_4 = arith.constant 0 : index
    %c0_5 = arith.constant 0 : index
    %c0_6 = arith.constant 0 : index
    %c0_7 = arith.constant 0 : index
    %3 = vector.load %arg7[%c0_4, %c0_5, %c0_6, %c0_7] : memref<1x18x18x4xbf16, #tpu.memory_space<vmem>>, vector<1x1x18x4xbf16>
    tpu.vector_store %arg7[%c0_4, %c0_5, %c0_6, %c0_7], %1 {strides = array<i32>} : memref<1x18x18x4xbf16, #tpu.memory_space<vmem>>, vector<1x1x18x4xbf16>,
    %c0_8 = arith.constant 0 : index
    %c17 = arith.constant 17 : index
    %c0_9 = arith.constant 0 : index
    %c0_10 = arith.constant 0 : index
    %4 = vector.load %arg7[%c0_8, %c17, %c0_9, %c0_10] : memref<1x18x18x4xbf16, #tpu.memory_space<vmem>>, vector<1x1x18x4xbf16>
    tpu.vector_store %arg7[%c0_8, %c17, %c0_9, %c0_10], %1 {strides = array<i32>} : memref<1x18x18x4xbf16, #tpu.memory_space<vmem>>, vector<1x1x18x4xbf16>,
    %c0_11 = arith.constant 0 : index
    %c1 = arith.constant 1 : index
    %c0_12 = arith.constant 0 : index
    %c0_13 = arith.constant 0 : index
    %5 = vector.load %arg7[%c0_11, %c1, %c0_12, %c0_13] : memref<1x18x18x4xbf16, #tpu.memory_space<vmem>>, vector<1x16x1x4xbf16>
    tpu.vector_store %arg7[%c0_11, %c1, %c0_12, %c0_13], %2 {strides = array<i32>} : memref<1x18x18x4xbf16, #tpu.memory_space<vmem>>, vector<1x16x1x4xbf16>,
    %c0_14 = arith.constant 0 : index
    %c1_15 = arith.constant 1 : index
    %c17_16 = arith.constant 17 : index
    %c0_17 = arith.constant 0 : index
    %6 = vector.load %arg7[%c0_14, %c1_15, %c17_16, %c0_17] : memref<1x18x18x4xbf16, #tpu.memory_space<vmem>>, vector<1x16x1x4xbf16>
    tpu.vector_store %arg7[%c0_14, %c1_15, %c17_16, %c0_17], %2 {strides = array<i32>} : memref<1x18x18x4xbf16, #tpu.memory_space<vmem>>, vector<1x16x1x4xbf16>,
    %c0_18 = arith.constant 0 : index
    %c1_19 = arith.constant 1 : index
    %c1_20 = arith.constant 1 : index
    %c0_21 = arith.constant 0 : index
    %7 = vector.load %arg7[%c0_18, %c1_19, %c1_20, %c0_21] : memref<1x18x18x4xbf16, #tpu.memory_space<vmem>>, vector<1x16x16x4xbf16>
    tpu.vector_store %arg7[%c0_18, %c1_19, %c1_20, %c0_21], %0 {strides = array<i32>} : memref<1x18x18x4xbf16, #tpu.memory_space<vmem>>, vector<1x16x16x4xbf16>,
    %c0_22 = arith.constant 0 : index
    %c0_23 = arith.constant 0 : index
    %c0_24 = arith.constant 0 : index
    %c0_25 = arith.constant 0 : index
    %8 = vector.load %arg7[%c0_22, %c0_23, %c0_24, %c0_25] : memref<1x18x18x4xbf16, #tpu.memory_space<vmem>>, vector<1x16x16x4xbf16>
    %9 = vector.shape_cast %8 : vector<1x16x16x4xbf16> to vector<256x4xbf16>
    %c0_26 = arith.constant 0 : index
    %c0_27 = arith.constant 0 : index
    %c1_28 = arith.constant 1 : index
    %c0_29 = arith.constant 0 : index
    %10 = vector.load %arg7[%c0_26, %c0_27, %c1_28, %c0_29] : memref<1x18x18x4xbf16, #tpu.memory_space<vmem>>, vector<1x16x16x4xbf16>
    %11 = vector.shape_cast %10 : vector<1x16x16x4xbf16> to vector<256x4xbf16>
    %c0_30 = arith.constant 0 : index
    %c0_31 = arith.constant 0 : index
    %c2 = arith.constant 2 : index
    %c0_32 = arith.constant 0 : index
    %12 = vector.load %arg7[%c0_30, %c0_31, %c2, %c0_32] : memref<1x18x18x4xbf16, #tpu.memory_space<vmem>>, vector<1x16x16x4xbf16>
    %13 = vector.shape_cast %12 : vector<1x16x16x4xbf16> to vector<256x4xbf16>
    %c0_33 = arith.constant 0 : index
    %c1_34 = arith.constant 1 : index
    %c0_35 = arith.constant 0 : index
    %c0_36 = arith.constant 0 : index
    %14 = vector.load %arg7[%c0_33, %c1_34, %c0_35, %c0_36] : memref<1x18x18x4xbf16, #tpu.memory_space<vmem>>, vector<1x16x16x4xbf16>
    %15 = vector.shape_cast %14 : vector<1x16x16x4xbf16> to vector<256x4xbf16>
    %c0_37 = arith.constant 0 : index
    %c1_38 = arith.constant 1 : index
    %c1_39 = arith.constant 1 : index
    %c0_40 = arith.constant 0 : index
    %16 = vector.load %arg7[%c0_37, %c1_38, %c1_39, %c0_40] : memref<1x18x18x4xbf16, #tpu.memory_space<vmem>>, vector<1x16x16x4xbf16>
    %17 = vector.shape_cast %16 : vector<1x16x16x4xbf16> to vector<256x4xbf16>
    %c0_41 = arith.constant 0 : index
    %c1_42 = arith.constant 1 : index
    %c2_43 = arith.constant 2 : index
    %c0_44 = arith.constant 0 : index
    %18 = vector.load %arg7[%c0_41, %c1_42, %c2_43, %c0_44] : memref<1x18x18x4xbf16, #tpu.memory_space<vmem>>, vector<1x16x16x4xbf16>
    %19 = vector.shape_cast %18 : vector<1x16x16x4xbf16> to vector<256x4xbf16>
    %c0_45 = arith.constant 0 : index
    %c2_46 = arith.constant 2 : index
    %c0_47 = arith.constant 0 : index
    %c0_48 = arith.constant 0 : index
    %20 = vector.load %arg7[%c0_45, %c2_46, %c0_47, %c0_48] : memref<1x18x18x4xbf16, #tpu.memory_space<vmem>>, vector<1x16x16x4xbf16>
    %21 = vector.shape_cast %20 : vector<1x16x16x4xbf16> to vector<256x4xbf16>
    %c0_49 = arith.constant 0 : index
    %c2_50 = arith.constant 2 : index
    %c1_51 = arith.constant 1 : index
    %c0_52 = arith.constant 0 : index
    %22 = vector.load %arg7[%c0_49, %c2_50, %c1_51, %c0_52] : memref<1x18x18x4xbf16, #tpu.memory_space<vmem>>, vector<1x16x16x4xbf16>
    %23 = vector.shape_cast %22 : vector<1x16x16x4xbf16> to vector<256x4xbf16>
    %c0_53 = arith.constant 0 : index
    %c2_54 = arith.constant 2 : index
    %c2_55 = arith.constant 2 : index
    %c0_56 = arith.constant 0 : index
    %24 = vector.load %arg7[%c0_53, %c2_54, %c2_55, %c0_56] : memref<1x18x18x4xbf16, #tpu.memory_space<vmem>>, vector<1x16x16x4xbf16>
    %25 = vector.shape_cast %24 : vector<1x16x16x4xbf16> to vector<256x4xbf16>
    %26 = tpu.concatenate %9, %11, %13, %15, %17, %19, %21, %23, %25 in 1 : vector<256x4xbf16>, vector<256x4xbf16>, vector<256x4xbf16>, vector<256x4xbf16>, vector<256x4xbf16>, vector<256x4xbf16>, vector<256x4xbf16>, vector<256x4xbf16>, vector<256x4xbf16> -> vector<256x36xbf16>
    %c0_57 = arith.constant 0 : index
    %c0_58 = arith.constant 0 : index
    %27 = vector.load %arg2[%c0_57, %c0_58] : memref<36x4xbf16, #tpu.memory_space<vmem>>, vector<36x4xbf16>
    %cst_59 = arith.constant dense<0.000000e+00> : vector<256x4xf32>
    %28 = tpu.matmul %26, %27, %cst_59 {dimension_numbers = #tpu.dot_dimension_numbers<[1], [0], [0], [1], [0, 0, 1, 1], [], []>} : vector<256x36xbf16>, vector<36x4xbf16>, vector<256x4xf32> -> vector<256x4xf32>
    %c0_60 = arith.constant 0 : index
    %c0_61 = arith.constant 0 : index
    %29 = vector.load %arg3[%c0_60, %c0_61] : memref<1x4xf32, #tpu.memory_space<vmem>>, vector<1x4xf32>
    %30 = vector.broadcast %29 : vector<1x4xf32> to vector<256x4xf32>
    %31 = arith.addf %28, %30 : vector<256x4xf32>
    %cst_62 = arith.constant 0.000000e+00 : f32
    %32 = vector.broadcast %cst_62 : f32 to vector<256x4xf32>
    %33 = arith.maximumf %31, %32 : vector<256x4xf32>
    %34 = vector.shape_cast %33 : vector<256x4xf32> to vector<1x16x16x4xf32>
    %35 = arith.truncf %34 : vector<1x16x16x4xf32> to vector<1x16x16x4xbf16>
    %cst_63 = arith.constant 0.000000e+00 : bf16
    %36 = vector.broadcast %cst_63 : bf16 to vector<1x1x18x4xbf16>
    %cst_64 = arith.constant 0.000000e+00 : bf16
    %37 = vector.broadcast %cst_64 : bf16 to vector<1x16x1x4xbf16>
    %c0_65 = arith.constant 0 : index
    %c0_66 = arith.constant 0 : index
    %c0_67 = arith.constant 0 : index
    %c0_68 = arith.constant 0 : index
    %38 = vector.load %arg8[%c0_65, %c0_66, %c0_67, %c0_68] : memref<1x18x18x4xbf16, #tpu.memory_space<vmem>>, vector<1x1x18x4xbf16>
    tpu.vector_store %arg8[%c0_65, %c0_66, %c0_67, %c0_68], %36 {strides = array<i32>} : memref<1x18x18x4xbf16, #tpu.memory_space<vmem>>, vector<1x1x18x4xbf16>,
    %c0_69 = arith.constant 0 : index
    %c17_70 = arith.constant 17 : index
    %c0_71 = arith.constant 0 : index
    %c0_72 = arith.constant 0 : index
    %39 = vector.load %arg8[%c0_69, %c17_70, %c0_71, %c0_72] : memref<1x18x18x4xbf16, #tpu.memory_space<vmem>>, vector<1x1x18x4xbf16>
    tpu.vector_store %arg8[%c0_69, %c17_70, %c0_71, %c0_72], %36 {strides = array<i32>} : memref<1x18x18x4xbf16, #tpu.memory_space<vmem>>, vector<1x1x18x4xbf16>,
    %c0_73 = arith.constant 0 : index
    %c1_74 = arith.constant 1 : index
    %c0_75 = arith.constant 0 : index
    %c0_76 = arith.constant 0 : index
    %40 = vector.load %arg8[%c0_73, %c1_74, %c0_75, %c0_76] : memref<1x18x18x4xbf16, #tpu.memory_space<vmem>>, vector<1x16x1x4xbf16>
    tpu.vector_store %arg8[%c0_73, %c1_74, %c0_75, %c0_76], %37 {strides = array<i32>} : memref<1x18x18x4xbf16, #tpu.memory_space<vmem>>, vector<1x16x1x4xbf16>,
    %c0_77 = arith.constant 0 : index
    %c1_78 = arith.constant 1 : index
    %c17_79 = arith.constant 17 : index
    %c0_80 = arith.constant 0 : index
    %41 = vector.load %arg8[%c0_77, %c1_78, %c17_79, %c0_80] : memref<1x18x18x4xbf16, #tpu.memory_space<vmem>>, vector<1x16x1x4xbf16>
    tpu.vector_store %arg8[%c0_77, %c1_78, %c17_79, %c0_80], %37 {strides = array<i32>} : memref<1x18x18x4xbf16, #tpu.memory_space<vmem>>, vector<1x16x1x4xbf16>,
    %c0_81 = arith.constant 0 : index
    %c1_82 = arith.constant 1 : index
    %c1_83 = arith.constant 1 : index
    %c0_84 = arith.constant 0 : index
    %42 = vector.load %arg8[%c0_81, %c1_82, %c1_83, %c0_84] : memref<1x18x18x4xbf16, #tpu.memory_space<vmem>>, vector<1x16x16x4xbf16>
    tpu.vector_store %arg8[%c0_81, %c1_82, %c1_83, %c0_84], %35 {strides = array<i32>} : memref<1x18x18x4xbf16, #tpu.memory_space<vmem>>, vector<1x16x16x4xbf16>,
    %c0_85 = arith.constant 0 : index
    %c0_86 = arith.constant 0 : index
    %c0_87 = arith.constant 0 : index
    %c0_88 = arith.constant 0 : index
    %43 = vector.load %arg8[%c0_85, %c0_86, %c0_87, %c0_88] : memref<1x18x18x4xbf16, #tpu.memory_space<vmem>>, vector<1x16x16x4xbf16>
    %44 = vector.shape_cast %43 : vector<1x16x16x4xbf16> to vector<256x4xbf16>
    %c0_89 = arith.constant 0 : index
    %c0_90 = arith.constant 0 : index
    %c1_91 = arith.constant 1 : index
    %c0_92 = arith.constant 0 : index
    %45 = vector.load %arg8[%c0_89, %c0_90, %c1_91, %c0_92] : memref<1x18x18x4xbf16, #tpu.memory_space<vmem>>, vector<1x16x16x4xbf16>
    %46 = vector.shape_cast %45 : vector<1x16x16x4xbf16> to vector<256x4xbf16>
    %c0_93 = arith.constant 0 : index
    %c0_94 = arith.constant 0 : index
    %c2_95 = arith.constant 2 : index
    %c0_96 = arith.constant 0 : index
    %47 = vector.load %arg8[%c0_93, %c0_94, %c2_95, %c0_96] : memref<1x18x18x4xbf16, #tpu.memory_space<vmem>>, vector<1x16x16x4xbf16>
    %48 = vector.shape_cast %47 : vector<1x16x16x4xbf16> to vector<256x4xbf16>
    %c0_97 = arith.constant 0 : index
    %c1_98 = arith.constant 1 : index
    %c0_99 = arith.constant 0 : index
    %c0_100 = arith.constant 0 : index
    %49 = vector.load %arg8[%c0_97, %c1_98, %c0_99, %c0_100] : memref<1x18x18x4xbf16, #tpu.memory_space<vmem>>, vector<1x16x16x4xbf16>
    %50 = vector.shape_cast %49 : vector<1x16x16x4xbf16> to vector<256x4xbf16>
    %c0_101 = arith.constant 0 : index
    %c1_102 = arith.constant 1 : index
    %c1_103 = arith.constant 1 : index
    %c0_104 = arith.constant 0 : index
    %51 = vector.load %arg8[%c0_101, %c1_102, %c1_103, %c0_104] : memref<1x18x18x4xbf16, #tpu.memory_space<vmem>>, vector<1x16x16x4xbf16>
    %52 = vector.shape_cast %51 : vector<1x16x16x4xbf16> to vector<256x4xbf16>
    %c0_105 = arith.constant 0 : index
    %c1_106 = arith.constant 1 : index
    %c2_107 = arith.constant 2 : index
    %c0_108 = arith.constant 0 : index
    %53 = vector.load %arg8[%c0_105, %c1_106, %c2_107, %c0_108] : memref<1x18x18x4xbf16, #tpu.memory_space<vmem>>, vector<1x16x16x4xbf16>
    %54 = vector.shape_cast %53 : vector<1x16x16x4xbf16> to vector<256x4xbf16>
    %c0_109 = arith.constant 0 : index
    %c2_110 = arith.constant 2 : index
    %c0_111 = arith.constant 0 : index
    %c0_112 = arith.constant 0 : index
    %55 = vector.load %arg8[%c0_109, %c2_110, %c0_111, %c0_112] : memref<1x18x18x4xbf16, #tpu.memory_space<vmem>>, vector<1x16x16x4xbf16>
    %56 = vector.shape_cast %55 : vector<1x16x16x4xbf16> to vector<256x4xbf16>
    %c0_113 = arith.constant 0 : index
    %c2_114 = arith.constant 2 : index
    %c1_115 = arith.constant 1 : index
    %c0_116 = arith.constant 0 : index
    %57 = vector.load %arg8[%c0_113, %c2_114, %c1_115, %c0_116] : memref<1x18x18x4xbf16, #tpu.memory_space<vmem>>, vector<1x16x16x4xbf16>
    %58 = vector.shape_cast %57 : vector<1x16x16x4xbf16> to vector<256x4xbf16>
    %c0_117 = arith.constant 0 : index
    %c2_118 = arith.constant 2 : index
    %c2_119 = arith.constant 2 : index
    %c0_120 = arith.constant 0 : index
    %59 = vector.load %arg8[%c0_117, %c2_118, %c2_119, %c0_120] : memref<1x18x18x4xbf16, #tpu.memory_space<vmem>>, vector<1x16x16x4xbf16>
    %60 = vector.shape_cast %59 : vector<1x16x16x4xbf16> to vector<256x4xbf16>
    %61 = tpu.concatenate %44, %46, %48, %50, %52, %54, %56, %58, %60 in 1 : vector<256x4xbf16>, vector<256x4xbf16>, vector<256x4xbf16>, vector<256x4xbf16>, vector<256x4xbf16>, vector<256x4xbf16>, vector<256x4xbf16>, vector<256x4xbf16>, vector<256x4xbf16> -> vector<256x36xbf16>
    %c0_121 = arith.constant 0 : index
    %c0_122 = arith.constant 0 : index
    %62 = vector.load %arg4[%c0_121, %c0_122] : memref<36x4xbf16, #tpu.memory_space<vmem>>, vector<36x4xbf16>
    %cst_123 = arith.constant dense<0.000000e+00> : vector<256x4xf32>
    %63 = tpu.matmul %61, %62, %cst_123 {dimension_numbers = #tpu.dot_dimension_numbers<[1], [0], [0], [1], [0, 0, 1, 1], [], []>} : vector<256x36xbf16>, vector<36x4xbf16>, vector<256x4xf32> -> vector<256x4xf32>
    %c0_124 = arith.constant 0 : index
    %c0_125 = arith.constant 0 : index
    %64 = vector.load %arg5[%c0_124, %c0_125] : memref<1x4xf32, #tpu.memory_space<vmem>>, vector<1x4xf32>
    %65 = vector.broadcast %64 : vector<1x4xf32> to vector<256x4xf32>
    %66 = arith.addf %63, %65 : vector<256x4xf32>
    %c0_126 = arith.constant 0 : index
    %c0_127 = arith.constant 0 : index
    %c0_128 = arith.constant 0 : index
    %c0_129 = arith.constant 0 : index
    %67 = vector.load %arg1[%c0_126, %c0_127, %c0_128, %c0_129] : memref<1x16x16x4xbf16, #tpu.memory_space<vmem>>, vector<1x16x16x4xbf16>
    %68 = vector.shape_cast %67 : vector<1x16x16x4xbf16> to vector<256x4xbf16>
    %69 = arith.extf %68 : vector<256x4xbf16> to vector<256x4xf32>
    %70 = arith.addf %66, %69 : vector<256x4xf32>
    %cst_130 = arith.constant 0.000000e+00 : f32
    %71 = vector.broadcast %cst_130 : f32 to vector<256x4xf32>
    %72 = arith.maximumf %70, %71 : vector<256x4xf32>
    %73 = vector.shape_cast %72 : vector<256x4xf32> to vector<1x16x64xf32>
    %74 = arith.truncf %73 : vector<1x16x64xf32> to vector<1x16x64xbf16>
    %c0_131 = arith.constant 0 : index
    %c0_132 = arith.constant 0 : index
    %c0_133 = arith.constant 0 : index
    %75 = vector.load %arg6[%c0_131, %c0_132, %c0_133] : memref<1x16x64xbf16, #tpu.memory_space<vmem>>, vector<1x16x64xbf16>
    tpu.vector_store %arg6[%c0_131, %c0_132, %c0_133], %74 {strides = array<i32>} : memref<1x16x64xbf16, #tpu.memory_space<vmem>>, vector<1x16x64xbf16>,
    return
  }
  func.func @transform_0(%arg0: i32) -> (i32, i32, i32, i32) {
    %c0_i32 = arith.constant 0 : i32
    %c0_i32_0 = arith.constant 0 : i32
    %c0_i32_1 = arith.constant 0 : i32
    %c0_i32_2 = arith.constant 0 : i32
    return %arg0, %c0_i32, %c0_i32_0, %c0_i32_1 : i32, i32, i32, i32
  }
  func.func @transform_1(%arg0: i32) -> (i32, i32) {
    %c0_i32 = arith.constant 0 : i32
    %c0_i32_0 = arith.constant 0 : i32
    %c0_i32_1 = arith.constant 0 : i32
    return %c0_i32, %c0_i32_0 : i32, i32
  }
  func.func @transform_2(%arg0: i32) -> (i32, i32) {
    %c0_i32 = arith.constant 0 : i32
    %c0_i32_0 = arith.constant 0 : i32
    %c0_i32_1 = arith.constant 0 : i32
    return %c0_i32, %c0_i32_0 : i32, i32
  }
  func.func @transform_3(%arg0: i32) -> (i32, i32) {
    %c0_i32 = arith.constant 0 : i32
    %c0_i32_0 = arith.constant 0 : i32
    %c0_i32_1 = arith.constant 0 : i32
    return %c0_i32, %c0_i32_0 : i32, i32
  }
  func.func @transform_4(%arg0: i32) -> (i32, i32) {
    %c0_i32 = arith.constant 0 : i32
    %c0_i32_0 = arith.constant 0 : i32
    %c0_i32_1 = arith.constant 0 : i32
    return %c0_i32, %c0_i32_0 : i32, i32
  }
  func.func @transform_5(%arg0: i32) -> (i32, i32, i32) {
    %c0_i32 = arith.constant 0 : i32
    %c0_i32_0 = arith.constant 0 : i32
    %c0_i32_1 = arith.constant 0 : i32
    return %arg0, %c0_i32, %c0_i32_0 : i32, i32, i32
  }
}

module attributes {stable_mosaic.version = 11 : i64} {
  func.func @kernel(%arg0: i32, %arg1: memref<1x16x16x4xbf16, #tpu.memory_space<vmem>>, %arg2: memref<36x4xbf16, #tpu.memory_space<vmem>>, %arg3: memref<1x4xf32, #tpu.memory_space<vmem>>, %arg4: memref<36x4xbf16, #tpu.memory_space<vmem>>, %arg5: memref<1x4xf32, #tpu.memory_space<vmem>>, %arg6: memref<1x16x16x4xbf16, #tpu.memory_space<vmem>>, %arg7: memref<1x18x18x4xbf16, #tpu.memory_space<vmem>>, %arg8: memref<1x18x18x4xbf16, #tpu.memory_space<vmem>>) attributes {dimension_semantics = [#tpu.dimension_semantics<parallel>], iteration_bounds = array<i64: 2>, scalar_prefetch = 0 : i64, scratch_operands = 2 : i64, tpu.core_type = #tpu.core_type<tc>, window_params = [{transform_indices = @transform_0, window_bounds = array<i64: 1, 16, 16, 4>}, {pipeline_mode = #tpu.pipeline_mode<synchronous>, transform_indices = @transform_1, window_bounds = array<i64: 36, 4>}, {pipeline_mode = #tpu.pipeline_mode<synchronous>, transform_indices = @transform_2, window_bounds = array<i64: 1, 4>}, {pipeline_mode = #tpu.pipeline_mode<synchronous>, transform_indices = @transform_3, window_bounds = array<i64: 36, 4>}, {pipeline_mode = #tpu.pipeline_mode<synchronous>, transform_indices = @transform_4, window_bounds = array<i64: 1, 4>}, {transform_indices = @transform_5, window_bounds = array<i64: 1, 16, 16, 4>}]} {
    %c0 = arith.constant 0 : index
    %c0_0 = arith.constant 0 : index
    %c0_1 = arith.constant 0 : index
    %c0_2 = arith.constant 0 : index
    %0 = vector.load %arg1[%c0, %c0_0, %c0_1, %c0_2] : memref<1x16x16x4xbf16, #tpu.memory_space<vmem>>, vector<1x16x16x4xbf16>
    %cst = arith.constant 0.000000e+00 : bf16
    %1 = vector.broadcast %cst : bf16 to vector<1x1x18x4xbf16>
    %cst_3 = arith.constant 0.000000e+00 : bf16
    %2 = vector.broadcast %cst_3 : bf16 to vector<1x16x1x4xbf16>
    %c0_4 = arith.constant 0 : index
    %c0_5 = arith.constant 0 : index
    %c0_6 = arith.constant 0 : index
    %c0_7 = arith.constant 0 : index
    %3 = vector.load %arg7[%c0_4, %c0_5, %c0_6, %c0_7] : memref<1x18x18x4xbf16, #tpu.memory_space<vmem>>, vector<1x1x18x4xbf16>
    tpu.vector_store %arg7[%c0_4, %c0_5, %c0_6, %c0_7], %1 {strides = array<i32>} : memref<1x18x18x4xbf16, #tpu.memory_space<vmem>>, vector<1x1x18x4xbf16>,
    %c0_8 = arith.constant 0 : index
    %c17 = arith.constant 17 : index
    %c0_9 = arith.constant 0 : index
    %c0_10 = arith.constant 0 : index
    %4 = vector.load %arg7[%c0_8, %c17, %c0_9, %c0_10] : memref<1x18x18x4xbf16, #tpu.memory_space<vmem>>, vector<1x1x18x4xbf16>
    tpu.vector_store %arg7[%c0_8, %c17, %c0_9, %c0_10], %1 {strides = array<i32>} : memref<1x18x18x4xbf16, #tpu.memory_space<vmem>>, vector<1x1x18x4xbf16>,
    %c0_11 = arith.constant 0 : index
    %c1 = arith.constant 1 : index
    %c0_12 = arith.constant 0 : index
    %c0_13 = arith.constant 0 : index
    %5 = vector.load %arg7[%c0_11, %c1, %c0_12, %c0_13] : memref<1x18x18x4xbf16, #tpu.memory_space<vmem>>, vector<1x16x1x4xbf16>
    tpu.vector_store %arg7[%c0_11, %c1, %c0_12, %c0_13], %2 {strides = array<i32>} : memref<1x18x18x4xbf16, #tpu.memory_space<vmem>>, vector<1x16x1x4xbf16>,
    %c0_14 = arith.constant 0 : index
    %c1_15 = arith.constant 1 : index
    %c17_16 = arith.constant 17 : index
    %c0_17 = arith.constant 0 : index
    %6 = vector.load %arg7[%c0_14, %c1_15, %c17_16, %c0_17] : memref<1x18x18x4xbf16, #tpu.memory_space<vmem>>, vector<1x16x1x4xbf16>
    tpu.vector_store %arg7[%c0_14, %c1_15, %c17_16, %c0_17], %2 {strides = array<i32>} : memref<1x18x18x4xbf16, #tpu.memory_space<vmem>>, vector<1x16x1x4xbf16>,
    %c0_18 = arith.constant 0 : index
    %c1_19 = arith.constant 1 : index
    %c1_20 = arith.constant 1 : index
    %c0_21 = arith.constant 0 : index
    %7 = vector.load %arg7[%c0_18, %c1_19, %c1_20, %c0_21] : memref<1x18x18x4xbf16, #tpu.memory_space<vmem>>, vector<1x16x16x4xbf16>
    tpu.vector_store %arg7[%c0_18, %c1_19, %c1_20, %c0_21], %0 {strides = array<i32>} : memref<1x18x18x4xbf16, #tpu.memory_space<vmem>>, vector<1x16x16x4xbf16>,
    %c0_22 = arith.constant 0 : index
    %c0_23 = arith.constant 0 : index
    %c0_24 = arith.constant 0 : index
    %c0_25 = arith.constant 0 : index
    %8 = vector.load %arg7[%c0_22, %c0_23, %c0_24, %c0_25] : memref<1x18x18x4xbf16, #tpu.memory_space<vmem>>, vector<1x16x16x4xbf16>
    %9 = vector.shape_cast %8 : vector<1x16x16x4xbf16> to vector<256x4xbf16>
    %c0_26 = arith.constant 0 : index
    %c0_27 = arith.constant 0 : index
    %c1_28 = arith.constant 1 : index
    %c0_29 = arith.constant 0 : index
    %10 = vector.load %arg7[%c0_26, %c0_27, %c1_28, %c0_29] : memref<1x18x18x4xbf16, #tpu.memory_space<vmem>>, vector<1x16x16x4xbf16>
    %11 = vector.shape_cast %10 : vector<1x16x16x4xbf16> to vector<256x4xbf16>
    %c0_30 = arith.constant 0 : index
    %c0_31 = arith.constant 0 : index
    %c2 = arith.constant 2 : index
    %c0_32 = arith.constant 0 : index
    %12 = vector.load %arg7[%c0_30, %c0_31, %c2, %c0_32] : memref<1x18x18x4xbf16, #tpu.memory_space<vmem>>, vector<1x16x16x4xbf16>
    %13 = vector.shape_cast %12 : vector<1x16x16x4xbf16> to vector<256x4xbf16>
    %c0_33 = arith.constant 0 : index
    %c1_34 = arith.constant 1 : index
    %c0_35 = arith.constant 0 : index
    %c0_36 = arith.constant 0 : index
    %14 = vector.load %arg7[%c0_33, %c1_34, %c0_35, %c0_36] : memref<1x18x18x4xbf16, #tpu.memory_space<vmem>>, vector<1x16x16x4xbf16>
    %15 = vector.shape_cast %14 : vector<1x16x16x4xbf16> to vector<256x4xbf16>
    %c0_37 = arith.constant 0 : index
    %c1_38 = arith.constant 1 : index
    %c1_39 = arith.constant 1 : index
    %c0_40 = arith.constant 0 : index
    %16 = vector.load %arg7[%c0_37, %c1_38, %c1_39, %c0_40] : memref<1x18x18x4xbf16, #tpu.memory_space<vmem>>, vector<1x16x16x4xbf16>
    %17 = vector.shape_cast %16 : vector<1x16x16x4xbf16> to vector<256x4xbf16>
    %c0_41 = arith.constant 0 : index
    %c1_42 = arith.constant 1 : index
    %c2_43 = arith.constant 2 : index
    %c0_44 = arith.constant 0 : index
    %18 = vector.load %arg7[%c0_41, %c1_42, %c2_43, %c0_44] : memref<1x18x18x4xbf16, #tpu.memory_space<vmem>>, vector<1x16x16x4xbf16>
    %19 = vector.shape_cast %18 : vector<1x16x16x4xbf16> to vector<256x4xbf16>
    %c0_45 = arith.constant 0 : index
    %c2_46 = arith.constant 2 : index
    %c0_47 = arith.constant 0 : index
    %c0_48 = arith.constant 0 : index
    %20 = vector.load %arg7[%c0_45, %c2_46, %c0_47, %c0_48] : memref<1x18x18x4xbf16, #tpu.memory_space<vmem>>, vector<1x16x16x4xbf16>
    %21 = vector.shape_cast %20 : vector<1x16x16x4xbf16> to vector<256x4xbf16>
    %c0_49 = arith.constant 0 : index
    %c2_50 = arith.constant 2 : index
    %c1_51 = arith.constant 1 : index
    %c0_52 = arith.constant 0 : index
    %22 = vector.load %arg7[%c0_49, %c2_50, %c1_51, %c0_52] : memref<1x18x18x4xbf16, #tpu.memory_space<vmem>>, vector<1x16x16x4xbf16>
    %23 = vector.shape_cast %22 : vector<1x16x16x4xbf16> to vector<256x4xbf16>
    %c0_53 = arith.constant 0 : index
    %c2_54 = arith.constant 2 : index
    %c2_55 = arith.constant 2 : index
    %c0_56 = arith.constant 0 : index
    %24 = vector.load %arg7[%c0_53, %c2_54, %c2_55, %c0_56] : memref<1x18x18x4xbf16, #tpu.memory_space<vmem>>, vector<1x16x16x4xbf16>
    %25 = vector.shape_cast %24 : vector<1x16x16x4xbf16> to vector<256x4xbf16>
    %26 = tpu.concatenate %9, %11, %13, %15, %17, %19, %21, %23, %25 in 1 : vector<256x4xbf16>, vector<256x4xbf16>, vector<256x4xbf16>, vector<256x4xbf16>, vector<256x4xbf16>, vector<256x4xbf16>, vector<256x4xbf16>, vector<256x4xbf16>, vector<256x4xbf16> -> vector<256x36xbf16>
    %c0_57 = arith.constant 0 : index
    %c0_58 = arith.constant 0 : index
    %27 = vector.load %arg2[%c0_57, %c0_58] : memref<36x4xbf16, #tpu.memory_space<vmem>>, vector<36x4xbf16>
    %cst_59 = arith.constant dense<0.000000e+00> : vector<256x4xf32>
    %28 = tpu.matmul %26, %27, %cst_59 {dimension_numbers = #tpu.dot_dimension_numbers<[1], [0], [0], [1], [0, 0, 1, 1], [], []>} : vector<256x36xbf16>, vector<36x4xbf16>, vector<256x4xf32> -> vector<256x4xf32>
    %c0_60 = arith.constant 0 : index
    %c0_61 = arith.constant 0 : index
    %29 = vector.load %arg3[%c0_60, %c0_61] : memref<1x4xf32, #tpu.memory_space<vmem>>, vector<1x4xf32>
    %30 = vector.broadcast %29 : vector<1x4xf32> to vector<256x4xf32>
    %31 = arith.addf %28, %30 : vector<256x4xf32>
    %cst_62 = arith.constant 0.000000e+00 : f32
    %32 = vector.broadcast %cst_62 : f32 to vector<256x4xf32>
    %33 = arith.maximumf %31, %32 : vector<256x4xf32>
    %34 = vector.shape_cast %33 : vector<256x4xf32> to vector<1x16x16x4xf32>
    %35 = arith.truncf %34 : vector<1x16x16x4xf32> to vector<1x16x16x4xbf16>
    %cst_63 = arith.constant 0.000000e+00 : bf16
    %36 = vector.broadcast %cst_63 : bf16 to vector<1x1x18x4xbf16>
    %cst_64 = arith.constant 0.000000e+00 : bf16
    %37 = vector.broadcast %cst_64 : bf16 to vector<1x16x1x4xbf16>
    %c0_65 = arith.constant 0 : index
    %c0_66 = arith.constant 0 : index
    %c0_67 = arith.constant 0 : index
    %c0_68 = arith.constant 0 : index
    %38 = vector.load %arg8[%c0_65, %c0_66, %c0_67, %c0_68] : memref<1x18x18x4xbf16, #tpu.memory_space<vmem>>, vector<1x1x18x4xbf16>
    tpu.vector_store %arg8[%c0_65, %c0_66, %c0_67, %c0_68], %36 {strides = array<i32>} : memref<1x18x18x4xbf16, #tpu.memory_space<vmem>>, vector<1x1x18x4xbf16>,
    %c0_69 = arith.constant 0 : index
    %c17_70 = arith.constant 17 : index
    %c0_71 = arith.constant 0 : index
    %c0_72 = arith.constant 0 : index
    %39 = vector.load %arg8[%c0_69, %c17_70, %c0_71, %c0_72] : memref<1x18x18x4xbf16, #tpu.memory_space<vmem>>, vector<1x1x18x4xbf16>
    tpu.vector_store %arg8[%c0_69, %c17_70, %c0_71, %c0_72], %36 {strides = array<i32>} : memref<1x18x18x4xbf16, #tpu.memory_space<vmem>>, vector<1x1x18x4xbf16>,
    %c0_73 = arith.constant 0 : index
    %c1_74 = arith.constant 1 : index
    %c0_75 = arith.constant 0 : index
    %c0_76 = arith.constant 0 : index
    %40 = vector.load %arg8[%c0_73, %c1_74, %c0_75, %c0_76] : memref<1x18x18x4xbf16, #tpu.memory_space<vmem>>, vector<1x16x1x4xbf16>
    tpu.vector_store %arg8[%c0_73, %c1_74, %c0_75, %c0_76], %37 {strides = array<i32>} : memref<1x18x18x4xbf16, #tpu.memory_space<vmem>>, vector<1x16x1x4xbf16>,
    %c0_77 = arith.constant 0 : index
    %c1_78 = arith.constant 1 : index
    %c17_79 = arith.constant 17 : index
    %c0_80 = arith.constant 0 : index
    %41 = vector.load %arg8[%c0_77, %c1_78, %c17_79, %c0_80] : memref<1x18x18x4xbf16, #tpu.memory_space<vmem>>, vector<1x16x1x4xbf16>
    tpu.vector_store %arg8[%c0_77, %c1_78, %c17_79, %c0_80], %37 {strides = array<i32>} : memref<1x18x18x4xbf16, #tpu.memory_space<vmem>>, vector<1x16x1x4xbf16>,
    %c0_81 = arith.constant 0 : index
    %c1_82 = arith.constant 1 : index
    %c1_83 = arith.constant 1 : index
    %c0_84 = arith.constant 0 : index
    %42 = vector.load %arg8[%c0_81, %c1_82, %c1_83, %c0_84] : memref<1x18x18x4xbf16, #tpu.memory_space<vmem>>, vector<1x16x16x4xbf16>
    tpu.vector_store %arg8[%c0_81, %c1_82, %c1_83, %c0_84], %35 {strides = array<i32>} : memref<1x18x18x4xbf16, #tpu.memory_space<vmem>>, vector<1x16x16x4xbf16>,
    %c0_85 = arith.constant 0 : index
    %c0_86 = arith.constant 0 : index
    %c0_87 = arith.constant 0 : index
    %c0_88 = arith.constant 0 : index
    %43 = vector.load %arg8[%c0_85, %c0_86, %c0_87, %c0_88] : memref<1x18x18x4xbf16, #tpu.memory_space<vmem>>, vector<1x16x16x4xbf16>
    %44 = vector.shape_cast %43 : vector<1x16x16x4xbf16> to vector<256x4xbf16>
    %c0_89 = arith.constant 0 : index
    %c0_90 = arith.constant 0 : index
    %c1_91 = arith.constant 1 : index
    %c0_92 = arith.constant 0 : index
    %45 = vector.load %arg8[%c0_89, %c0_90, %c1_91, %c0_92] : memref<1x18x18x4xbf16, #tpu.memory_space<vmem>>, vector<1x16x16x4xbf16>
    %46 = vector.shape_cast %45 : vector<1x16x16x4xbf16> to vector<256x4xbf16>
    %c0_93 = arith.constant 0 : index
    %c0_94 = arith.constant 0 : index
    %c2_95 = arith.constant 2 : index
    %c0_96 = arith.constant 0 : index
    %47 = vector.load %arg8[%c0_93, %c0_94, %c2_95, %c0_96] : memref<1x18x18x4xbf16, #tpu.memory_space<vmem>>, vector<1x16x16x4xbf16>
    %48 = vector.shape_cast %47 : vector<1x16x16x4xbf16> to vector<256x4xbf16>
    %c0_97 = arith.constant 0 : index
    %c1_98 = arith.constant 1 : index
    %c0_99 = arith.constant 0 : index
    %c0_100 = arith.constant 0 : index
    %49 = vector.load %arg8[%c0_97, %c1_98, %c0_99, %c0_100] : memref<1x18x18x4xbf16, #tpu.memory_space<vmem>>, vector<1x16x16x4xbf16>
    %50 = vector.shape_cast %49 : vector<1x16x16x4xbf16> to vector<256x4xbf16>
    %c0_101 = arith.constant 0 : index
    %c1_102 = arith.constant 1 : index
    %c1_103 = arith.constant 1 : index
    %c0_104 = arith.constant 0 : index
    %51 = vector.load %arg8[%c0_101, %c1_102, %c1_103, %c0_104] : memref<1x18x18x4xbf16, #tpu.memory_space<vmem>>, vector<1x16x16x4xbf16>
    %52 = vector.shape_cast %51 : vector<1x16x16x4xbf16> to vector<256x4xbf16>
    %c0_105 = arith.constant 0 : index
    %c1_106 = arith.constant 1 : index
    %c2_107 = arith.constant 2 : index
    %c0_108 = arith.constant 0 : index
    %53 = vector.load %arg8[%c0_105, %c1_106, %c2_107, %c0_108] : memref<1x18x18x4xbf16, #tpu.memory_space<vmem>>, vector<1x16x16x4xbf16>
    %54 = vector.shape_cast %53 : vector<1x16x16x4xbf16> to vector<256x4xbf16>
    %c0_109 = arith.constant 0 : index
    %c2_110 = arith.constant 2 : index
    %c0_111 = arith.constant 0 : index
    %c0_112 = arith.constant 0 : index
    %55 = vector.load %arg8[%c0_109, %c2_110, %c0_111, %c0_112] : memref<1x18x18x4xbf16, #tpu.memory_space<vmem>>, vector<1x16x16x4xbf16>
    %56 = vector.shape_cast %55 : vector<1x16x16x4xbf16> to vector<256x4xbf16>
    %c0_113 = arith.constant 0 : index
    %c2_114 = arith.constant 2 : index
    %c1_115 = arith.constant 1 : index
    %c0_116 = arith.constant 0 : index
    %57 = vector.load %arg8[%c0_113, %c2_114, %c1_115, %c0_116] : memref<1x18x18x4xbf16, #tpu.memory_space<vmem>>, vector<1x16x16x4xbf16>
    %58 = vector.shape_cast %57 : vector<1x16x16x4xbf16> to vector<256x4xbf16>
    %c0_117 = arith.constant 0 : index
    %c2_118 = arith.constant 2 : index
    %c2_119 = arith.constant 2 : index
    %c0_120 = arith.constant 0 : index
    %59 = vector.load %arg8[%c0_117, %c2_118, %c2_119, %c0_120] : memref<1x18x18x4xbf16, #tpu.memory_space<vmem>>, vector<1x16x16x4xbf16>
    %60 = vector.shape_cast %59 : vector<1x16x16x4xbf16> to vector<256x4xbf16>
    %61 = tpu.concatenate %44, %46, %48, %50, %52, %54, %56, %58, %60 in 1 : vector<256x4xbf16>, vector<256x4xbf16>, vector<256x4xbf16>, vector<256x4xbf16>, vector<256x4xbf16>, vector<256x4xbf16>, vector<256x4xbf16>, vector<256x4xbf16>, vector<256x4xbf16> -> vector<256x36xbf16>
    %c0_121 = arith.constant 0 : index
    %c0_122 = arith.constant 0 : index
    %62 = vector.load %arg4[%c0_121, %c0_122] : memref<36x4xbf16, #tpu.memory_space<vmem>>, vector<36x4xbf16>
    %cst_123 = arith.constant dense<0.000000e+00> : vector<256x4xf32>
    %63 = tpu.matmul %61, %62, %cst_123 {dimension_numbers = #tpu.dot_dimension_numbers<[1], [0], [0], [1], [0, 0, 1, 1], [], []>} : vector<256x36xbf16>, vector<36x4xbf16>, vector<256x4xf32> -> vector<256x4xf32>
    %c0_124 = arith.constant 0 : index
    %c0_125 = arith.constant 0 : index
    %64 = vector.load %arg5[%c0_124, %c0_125] : memref<1x4xf32, #tpu.memory_space<vmem>>, vector<1x4xf32>
    %65 = vector.broadcast %64 : vector<1x4xf32> to vector<256x4xf32>
    %66 = arith.addf %63, %65 : vector<256x4xf32>
    %c0_126 = arith.constant 0 : index
    %c0_127 = arith.constant 0 : index
    %c0_128 = arith.constant 0 : index
    %c0_129 = arith.constant 0 : index
    %67 = vector.load %arg1[%c0_126, %c0_127, %c0_128, %c0_129] : memref<1x16x16x4xbf16, #tpu.memory_space<vmem>>, vector<1x16x16x4xbf16>
    %68 = vector.shape_cast %67 : vector<1x16x16x4xbf16> to vector<256x4xbf16>
    %69 = arith.extf %68 : vector<256x4xbf16> to vector<256x4xf32>
    %70 = arith.addf %66, %69 : vector<256x4xf32>
    %cst_130 = arith.constant 0.000000e+00 : f32
    %71 = vector.broadcast %cst_130 : f32 to vector<256x4xf32>
    %72 = arith.maximumf %70, %71 : vector<256x4xf32>
    %73 = vector.shape_cast %72 : vector<256x4xf32> to vector<1x16x16x4xf32>
    %74 = arith.truncf %73 : vector<1x16x16x4xf32> to vector<1x16x16x4xbf16>
    %c0_131 = arith.constant 0 : index
    %c0_132 = arith.constant 0 : index
    %c0_133 = arith.constant 0 : index
    %c0_134 = arith.constant 0 : index
    %75 = vector.load %arg6[%c0_131, %c0_132, %c0_133, %c0_134] : memref<1x16x16x4xbf16, #tpu.memory_space<vmem>>, vector<1x16x16x4xbf16>
    tpu.vector_store %arg6[%c0_131, %c0_132, %c0_133, %c0_134], %74 {strides = array<i32>} : memref<1x16x16x4xbf16, #tpu.memory_space<vmem>>, vector<1x16x16x4xbf16>,
    return
  }
  func.func @transform_0(%arg0: i32) -> (i32, i32, i32, i32) {
    %c0_i32 = arith.constant 0 : i32
    %c0_i32_0 = arith.constant 0 : i32
    %c0_i32_1 = arith.constant 0 : i32
    %c0_i32_2 = arith.constant 0 : i32
    return %arg0, %c0_i32, %c0_i32_0, %c0_i32_1 : i32, i32, i32, i32
  }
  func.func @transform_1(%arg0: i32) -> (i32, i32) {
    %c0_i32 = arith.constant 0 : i32
    %c0_i32_0 = arith.constant 0 : i32
    %c0_i32_1 = arith.constant 0 : i32
    return %c0_i32, %c0_i32_0 : i32, i32
  }
  func.func @transform_2(%arg0: i32) -> (i32, i32) {
    %c0_i32 = arith.constant 0 : i32
    %c0_i32_0 = arith.constant 0 : i32
    %c0_i32_1 = arith.constant 0 : i32
    return %c0_i32, %c0_i32_0 : i32, i32
  }
  func.func @transform_3(%arg0: i32) -> (i32, i32) {
    %c0_i32 = arith.constant 0 : i32
    %c0_i32_0 = arith.constant 0 : i32
    %c0_i32_1 = arith.constant 0 : i32
    return %c0_i32, %c0_i32_0 : i32, i32
  }
  func.func @transform_4(%arg0: i32) -> (i32, i32) {
    %c0_i32 = arith.constant 0 : i32
    %c0_i32_0 = arith.constant 0 : i32
    %c0_i32_1 = arith.constant 0 : i32
    return %c0_i32, %c0_i32_0 : i32, i32
  }
  func.func @transform_5(%arg0: i32) -> (i32, i32, i32, i32) {
    %c0_i32 = arith.constant 0 : i32
    %c0_i32_0 = arith.constant 0 : i32
    %c0_i32_1 = arith.constant 0 : i32
    %c0_i32_2 = arith.constant 0 : i32
    return %arg0, %c0_i32, %c0_i32_0, %c0_i32_1 : i32, i32, i32, i32
  }
}

</mosaic_0001>

<bundles_post_ra>
// kernel: tpu_custom_call.1
= control target key start
LH: loop header
LB: loop body
LE: loop exit
PB: predicated region body
PF: predicated region fallthrough
CT: control target
= control target key end

     0   :  { %s8892_s18 = smov 0   ;;  %s12836_s0 = inlined_call_operand.vmem [shape: bf16[2,16,16,4], index: 0, kind: input, shape index: {}]   ;;  %s12837_s1 = inlined_call_operand.vmem [shape: bf16[36,4], index: 1, kind: input, shape index: {}]   ;;  %s12838_s2 = inlined_call_operand.vmem [shape: f32[1,4], index: 2, kind: input, shape index: {}]   ;;  %s12839_s3 = inlined_call_operand.vmem [shape: bf16[36,4], index: 3, kind: input, shape index: {}]   ;;  %s12840_s4 = inlined_call_operand.vmem [shape: f32[1,4], index: 4, kind: input, shape index: {}]   ;;  %s12841_s5 = inlined_call_operand.vmem [shape: bf16[2,16,16,4], index: 5, kind: output, shape index: {}]  }
   0x1 LB: > { %s7940_s19 = sadd.s32 4294967295, %s8851_s18   ;;  %p7944_p0 = scmp.ge.s32.totalorder %s8851_s18, 1  ;;  %s8851_s18 = sphi %s8892_s18, %s15_s18  }
   0x2   : > { %p187_p1 = scmp.lt.s32.totalorder %s8851_s18, 3 }
   0x4   : > { %p188_p2 = pnand %p7944_p0, %p187_p1 }
   0x6   : > { %191 = sbr.rel (%p188_p2) target bundleno = 1190 (0x4a6), region = 40 }
   0xb   : > { %vm258_vm0 = vcmask 27648   ;;  %vm261_vm1 = vcmask 24576   ;;  %vm269_vm2 = vsmask.f32 256  ;;  %v8853_v0 = vmov 0   ;;  %p215_p3 = scmp.lt.s32.totalorder %s7940_s19, 1 }
   0xc   : > { %259 = vst.msk [vmem:[#allocation2] sm:$0xf] %vm258_vm0, %v8853_v0  ;;  %260 = vst.msk [vmem:[#allocation2 + $0x4] sm:$0xf] %vm258_vm0, %v8853_v0  ;;  %vm319_vm4 = vsmask.f32 7938 }
   0xd   : > { %262 = vst.msk [vmem:[#allocation2 + $0x8] sm:$0x1] %vm261_vm1, %v8853_v0  ;;  %vm8905_vm3 = vmand %vm261_vm1, %vm269_vm2  ;;  %v274_v3 = vld [vmem:[#allocation2 + $0x18] sm:$0x1]  ;;  %vm1304_vm6 = vcmask 1042432   ;;  %vm1305_vm7 = vcmask 1046532  }
   0xe   : > { %264 = vst.msk [vmem:[#allocation2 + $0xcc] sm:$0xf] %vm258_vm0, %v8853_v0  ;;  %265 = vst.msk [vmem:[#allocation2 + $0xd0] sm:$0xf] %vm258_vm0, %v8853_v0  ;;  %v275_v4 = vsel %vm8905_vm3, 0, %v274_v3  ;;  %s12912_s19 = smov (!%p215_p3, %s7940_s19), 1 }
   0xf   : > { %266 = vst.msk [vmem:[#allocation2 + $0xd4] sm:$0x1] %vm261_vm1, %v8853_v0  ;;  %3927 = vst.msk [vmem:[#allocation3 + $0x8] sm:$0x1] %vm261_vm1, %v8853_v0  ;;  %v271_v5 = vld [vmem:[#allocation2 + $0xc] sm:$0x1] }
  0x10   : > { %3925 = vst.msk [vmem:[#allocation3] sm:$0xf] %vm258_vm0, %v8853_v0  ;;  %3926 = vst.msk [vmem:[#allocation3 + $0x4] sm:$0xf] %vm258_vm0, %v8853_v0  ;;  %v272_v6 = vsel %vm8905_vm3, 0, %v271_v5  ;;  %s8439_s20 = sshll.u32 %s12912_s19, 7 }
  0x11   : > { %3929 = vst.msk [vmem:[#allocation3 + $0xcc] sm:$0xf] %vm258_vm0, %v8853_v0  ;;  %3930 = vst.msk [vmem:[#allocation3 + $0xd0] sm:$0xf] %vm258_vm0, %v8853_v0  ;;  %v277_v7 = vld [vmem:[#allocation2 + $0x24] sm:$0x1]  ;;  %s8952_s23 = scalar_lea.vmem %s12836_s0, %s8439_s20 }
  0x12   : > { %3931 = vst.msk [vmem:[#allocation3 + $0xd4] sm:$0x1] %vm261_vm1, %v8853_v0  ;;  %vm8920_vm5 = vmand %vm261_vm1, %vm319_vm4  ;;  %v321_v8 = vld [vmem:[#allocation2 + $0x14] sm:$0x1]  ;;  %v278_v9 = vsel %vm8905_vm3, 0, %v277_v7  ;;  %s8854_s24 = smov 8  }
  0x13   : > { %276 = vst [vmem:[#allocation2 + $0x18] sm:$0x1] %v275_v4  ;;  %273 = vst [vmem:[#allocation2 + $0xc] sm:$0x1] %v272_v6  ;;  %v322_v10 = vsel %vm8920_vm5, 0, %v321_v8  ;;  %s8855_s25 = smov 4  }
  0x14   : > { %v324_v11 = vld [vmem:[#allocation2 + $0x20] sm:$0x1]  ;;  %vm853_vm8 = vsmask.f32 3328  ;;  %279 = vst [vmem:[#allocation2 + $0x24] sm:$0x1] %v278_v9  ;;  %vm8943_vm9 = vmor %vm1304_vm6, %vm1305_vm7 }
  0x15   : > { %323 = vst [vmem:[#allocation2 + $0x14] sm:$0x1] %v322_v10  ;;  %v325_v12 = vsel %vm8920_vm5, 0, %v324_v11  ;;  %v327_v13 = vld [vmem:[#allocation2 + $0x2c] sm:$0x1]  ;;  %vm8965_vm12 = vmand %vm258_vm0, %vm319_vm4  ;;  %s8856_s26 = smov 12  }
  0x16   : > { %vm854_vm10 = vsmask.f32 7440  ;;  %vm369_vm11 = vsmask.f32 4368  ;;  %326 = vst [vmem:[#allocation2 + $0x20] sm:$0x1] %v325_v12 }
  0x17   : > { %v328_v15 = vsel %vm8920_vm5, 0, %v327_v13  ;;  %v806_v16 = vld [vmem:[#allocation2 + $0x4] sm:$0xf]  ;;  %v837_v17 = vld [vmem:[#allocation2 + $0x8] sm:$0x1]  ;;  %vm8972_vm13 = vmor %vm853_vm8, %vm854_vm10  ;;  %s8857_s27 = smov 24  }
  0x18   : > { %v1240_v18 = vld [vmem:[#allocation2] sm:$0xe]  ;;  %329 = vst [vmem:[#allocation2 + $0x2c] sm:$0x1] %v328_v15  ;;  %v1309_v20 = vrot.slane %v806_v16, 5  ;;  %v1312_v21 = vrot.slane %v837_v17, 5  ;;  %vm8979_vm14 = vmor %vm269_vm2, %vm369_vm11 }
  0x19   : > { %v7949_v19 = vrot.slane %v1240_v18, 9  ;;  %v805_v22 = vld [vmem:[#allocation2] sm:$0xf]  ;;  %v866_v23 = vshll.u32 %v806_v16, 16  ;;  %v870_v26 = vshrl.u32 %v806_v16, 16  ;;  %v876_v27 = vshll.u32 %v837_v17, 16 }
  0x1a   : > { %v857_v24 = vshrl.u32 %v805_v22, 16  ;;  %v860_v25 = vshll.u32 %v805_v22, 16  ;;  %v228_v28 = vld [vmem:[%s8952_s23 + $0x8] sm:$0xf]  ;;  %v1311_v30 = vrot.slane %v1309_v20, 4  ;;  %s8858_s28 = smov 20  }
  0x1b   : > { %v1310_v29 = vsel %vm8943_vm9, %v7949_v19, %v1309_v20  ;;  %v868_v31 = vrot.slane %v866_v23, 5  ;;  %v229_v32 = vld [vmem:[%s8952_s23 + $0xc] sm:$0xf]  ;;  %v389_v33 = vshrl.u32 %v228_v28, 16  ;;  %v872_v36 = vrot.slane %v870_v26, 4  ;;  %s8859_s29 = smov 32  }
  0x1c   : > { %v859_v34 = vrot.slane %v857_v24, 4  ;;  %v862_v35 = vrot.slane %v860_v25, 5  ;;  %v878_v37 = vrot.slane %v876_v27, 5  ;;  %v1313_v38 = vsel %vm8943_vm9, %v1311_v30, %v1312_v21  ;;  %v226_v42 = vld [vmem:[%s8952_s23] sm:$0xf]  ;;  %s8860_s30 = smov 16  }
  0x1d   : > { %v391_v39 = vrot.slane %v389_v33, 7  ;;  %v392_v40 = vshll.u32 %v228_v28, 16  ;;  %v397_v41 = vshrl.u32 %v229_v32, 16  ;;  %v8029_v43 = vcombine.low %v1310_v29, %v1313_v38  ;;  %v700_v48 = vld [vmem:[#allocation2 + $0x18] sm:$0xf]  ;;  %s8861_s6 = smov 28  }
  0x1e   : > { %v863_v44 = vor.u32 %v862_v35, %v859_v34  ;;  %v873_v45 = vor.u32 %v872_v36, %v868_v31  ;;  %v400_v46 = vshll.u32 %v229_v32, 16  ;;  %v227_v49 = vld [vmem:[%s8952_s23 + $0x4] sm:$0xf]  ;;  %v372_v54 = vshrl.u32 %v226_v42, 16  ;;  %v693_v0 = vld [vmem:[#allocation2 + $0xc] sm:$0xf] }
  0x1f   : > { %v394_v51 = vor.u32 %v392_v40, %v391_v39  ;;  %v395_v52 = vrot.slane %v391_v39, 4  ;;  %v399_v53 = vrot.slane %v397_v41, 7  ;;  %2828 = vrot.lane.b32.xlu1 %v8029_v43, %s8854_s24  ;;  %v375_v58 = vshll.u32 %v226_v42, 16  ;;  %v230_v3 = vld [vmem:[%s8952_s23 + $0x10] sm:$0xf] }
  0x20   : > { %v864_v55 = vrot.slane %v863_v44, 4  ;;  %v874_v56 = vrot.slane %v873_v45, 4  ;;  %v380_v59 = vshrl.u32 %v227_v49, 16  ;;  %v374_v63 = vrot.slane %v372_v54, 7  ;;  %v231_v8 = vld [vmem:[%s8952_s23 + $0x14] sm:$0xf] }
  0x21   : > { %v402_v60 = vor.u32 %v400_v46, %v399_v53  ;;  %v404_v61 = vrot.slane %v399_v53, 4  ;;  %v701_v62 = vsel %vm8965_vm12, %v394_v51, %v700_v48  ;;  %v383_v7 = vshll.u32 %v227_v49, 16  ;;  %v704_v9 = vld [vmem:[#allocation2 + $0x20] sm:$0x1]  ;;  %v697_v15 = vld [vmem:[#allocation2 + $0x14] sm:$0x1] }
  0x22   : > { %v869_v4 = vsel %vm8972_vm13, %v864_v55, %v868_v31  ;;  %v879_v5 = vsel %vm8972_vm13, %v874_v56, %v878_v37  ;;  %702 = vst [vmem:[#allocation2 + $0x18] sm:$0xf] %v701_v62  ;;  %v382_v6 = vrot.slane %v380_v59, 7  ;;  %v377_v12 = vor.u32 %v375_v58, %v374_v63  ;;  %v280_v16 = vld [vmem:[#allocation2 + $0x30] sm:$0x1] }
  0x23   : > { %v8013_v10 = vcombine.low %v869_v4, %v879_v5  ;;  %v403_v11 = vsel %vm8979_vm14, %v395_v52, %v402_v60  ;;  %v378_v13 = vrot.slane %v374_v63, 4  ;;  %v406_v19 = vshrl.u32 %v230_v3, 16  ;;  %v8995_v21 = vld [vmem:[%s8952_s23 + $0x18] sm:$0xf]  ;;  %v9003_v26 = vld [vmem:[%s8952_s23 + $0x1c] sm:$0xf] }
  0x24   : > { %703 = vst.msk [vmem:[#allocation2 + $0x1c] sm:$0xf] %vm258_vm0, %v403_v11  ;;  %v385_v17 = vor.u32 %v383_v7, %v382_v6  ;;  %v387_v18 = vrot.slane %v382_v6, 4  ;;  %v409_v20 = vshll.u32 %v230_v3, 16  ;;  %v694_v22 = vsel %vm8965_vm12, %v377_v12, %v693_v0  ;;  %v330_v27 = vld [vmem:[#allocation2 + $0x38] sm:$0x1] }
  0x25   : > { %2748 = vrot.lane.b32.xlu0 %v8013_v10, %s8855_s25  ;;  %v414_v23 = vshrl.u32 %v231_v8, 16  ;;  %v417_v24 = vshll.u32 %v231_v8, 16  ;;  %v705_v25 = vsel %vm8905_vm3, %v404_v61, %v704_v9  ;;  %695 = vst [vmem:[#allocation2 + $0xc] sm:$0xf] %v694_v22  ;;  %v408_v29 = vrot.slane %v406_v19, 7 }
  0x26   : > { %v386_v28 = vsel %vm8979_vm14, %v378_v13, %v385_v17  ;;  %v698_v30 = vsel %vm8905_vm3, %v387_v18, %v697_v15  ;;  %706 = vst [vmem:[#allocation2 + $0x20] sm:$0x1] %v705_v25  ;;  %v281_v31 = vsel %vm8905_vm3, 0, %v280_v16  ;;  %v707_v33 = vld [vmem:[#allocation2 + $0x24] sm:$0xf]  ;;  %v423_v34 = vshrl.u32 %v8995_v21, 16 }
  0x27   : > { %696 = vst.msk [vmem:[#allocation2 + $0x10] sm:$0xf] %vm258_vm0, %v386_v28  ;;  %v416_v32 = vrot.slane %v414_v23, 7  ;;  %699 = vst [vmem:[#allocation2 + $0x14] sm:$0x1] %v698_v30  ;;  %v426_v35 = vshll.u32 %v8995_v21, 16  ;;  %v411_v36 = vor.u32 %v409_v20, %v408_v29 }
  0x28   : > { %282 = vst [vmem:[#allocation2 + $0x30] sm:$0x1] %v281_v31  ;;  %v412_v37 = vrot.slane %v408_v29, 4  ;;  %v711_v38 = vld [vmem:[#allocation2 + $0x2c] sm:$0x1]  ;;  %v431_v39 = vshrl.u32 %v9003_v26, 16 }
  0x29   : > { %v331_v40 = vsel %vm8920_vm5, 0, %v330_v27  ;;  %v1421_v41 = vld [vmem:[#allocation2 + $0x18] sm:$0xf]  ;;  %v419_v42 = vor.u32 %v417_v24, %v416_v32  ;;  %v421_v43 = vrot.slane %v416_v32, 4  ;;  %v434_v45 = vshll.u32 %v9003_v26, 16 }
  0x2a   : > { %v9017_v44 = vld [vmem:[#allocation2 + $0x18] sm:$0xf]  ;;  %332 = vst [vmem:[#allocation2 + $0x38] sm:$0x1] %v331_v40  ;;  %v1492_v46 = vshrl.u32 %v1421_v41, 16  ;;  %v1495_v48 = vshll.u32 %v1421_v41, 16  ;;  %v708_v49 = vsel %vm8965_vm12, %v411_v36, %v707_v33 }
  0x2b   : > { %v2077_v51 = vshrl.u32 %v9017_v44, 16  ;;  %v2460_v52 = vld [vmem:[#allocation2 + $0x18] sm:$0xe]  ;;  %v9023_v53 = vld [vmem:[#allocation2 + $0x1c] sm:$0xf]  ;;  %v420_v54 = vsel %vm8979_vm14, %v412_v37, %v419_v42  ;;  %v2080_v56 = vshll.u32 %v9017_v44, 16  ;;  %v712_v58 = vsel %vm8905_vm3, %v421_v43, %v711_v38 }
  0x2c   : > { %709 = vst [vmem:[#allocation2 + $0x24] sm:$0xf] %v708_v49  ;;  %v9027_v55 = vld [vmem:[#allocation2 + $0x1c] sm:$0xf]  ;;  %v9032_v59 = vrot.slane %v423_v34, 7  ;;  %v8046_v60 = vcombine.low %v1421_v41, %v9023_v53  ;;  %v9035_v61 = vrot.slane %v1492_v46, 4 }
  0x2d   : > { %v9037_v62 = vrot.slane %v1495_v48, 5  ;;  %710 = vst.msk [vmem:[#allocation2 + $0x28] sm:$0xf] %vm258_vm0, %v420_v54  ;;  %v7981_v63 = vrot.slane %v2460_v52, 9  ;;  %713 = vst [vmem:[#allocation2 + $0x2c] sm:$0x1] %v712_v58  ;;  %v8093_v10 = vcombine.low %v9017_v44, %v9027_v55 }
  0x2e   : > { %v1505_v0 = vshrl.u32 %v9023_v53, 16  ;;  %v1419_v3 = vld [vmem:[#allocation2 + $0xc] sm:$0xf]  ;;  %v9041_v4 = vrot.slane %v2077_v51, 4  ;;  %v9043_v5 = vrot.slane %v2080_v56, 5  ;;  %v2090_v6 = vshrl.u32 %v9027_v55, 16  ;;  %2926 = vrot.lane.b32.xlu1 %v8046_v60, %s8856_s26 }
  0x2f   : > { %v9047_v7 = vld [vmem:[#allocation2 + $0x10] sm:$0xf]  ;;  %v1468_v8 = vshrl.u32 %v1419_v3, 16  ;;  %v1471_v9 = vshll.u32 %v1419_v3, 16  ;;  %v9051_v11 = vld [vmem:[#allocation2 + $0x14] sm:$0x1]  ;;  %v1498_v12 = vor.u32 %v9037_v62, %v9035_v61  ;;  %v9073_v31 = vor.u32 %v426_v35, %v9032_v59 }
  0x30   : > { %v1481_v13 = vshrl.u32 %v9047_v7, 16  ;;  %v8045_v15 = vcombine.low %v1419_v3, %v9047_v7  ;;  %v1851_v16 = vld [vmem:[#allocation2 + $0xc] sm:$0xe]  ;;  %v1917_v17 = vrot.slane %v9047_v7, 5  ;;  %v1920_v18 = vrot.slane %v9051_v11, 5 }
  0x31   : > { %v9059_v19 = vrot.slane %v1468_v8, 4  ;;  %v9061_v20 = vrot.slane %v1471_v9, 5  ;;  %v7965_v21 = vrot.slane %v1851_v16, 9  ;;  %v9063_v22 = vld [vmem:[#allocation2 + $0x10] sm:$0xf]  ;;  %v2526_v23 = vrot.slane %v9027_v55, 5 }
  0x32   : > { %2924 = vrot.lane.b32.xlu0 %v8045_v15, %s8856_s26  ;;  %v1919_v24 = vrot.slane %v1917_v17, 4  ;;  %v9067_v25 = vld [vmem:[#allocation2 + $0x14] sm:$0x1]  ;;  %v1241_v27 = vld [vmem:[#allocation2 + $0xc] sm:$0xe]  ;;  %v1316_v28 = vrot.slane %v9063_v22, 5  ;;  %v2083_v30 = vor.u32 %v9043_v5, %v9041_v4 }
  0x33   : > { %v1852_v29 = vld [vmem:[#allocation2 + $0x18] sm:$0xe]  ;;  %v2030_v32 = vld [vmem:[#allocation2 + $0x24] sm:$0xf]  ;;  %v1918_v33 = vsel %vm8943_vm9, %v7965_v21, %v1917_v17  ;;  %v7950_v34 = vrot.slane %v1241_v27, 9  ;;  %v1319_v36 = vrot.slane %v9067_v25, 5  ;;  %v2527_v38 = vsel %vm8943_vm9, %v7981_v63, %v2526_v23 }
  0x34   : > { %v9078_v37 = vld [vmem:[#allocation2 + $0x20] sm:$0x1]  ;;  %v2031_v40 = vld [vmem:[#allocation2 + $0x28] sm:$0xf]  ;;  %v2101_v41 = vshrl.u32 %v2030_v32, 16  ;;  %v2104_v42 = vshll.u32 %v2030_v32, 16  ;;  %v1921_v43 = vsel %vm8943_vm9, %v1919_v24, %v1920_v18 }
  0x35   : > { %v1318_v35 = vrot.slane %v1316_v28, 4  ;;  %v2114_v44 = vshrl.u32 %v2031_v40, 16  ;;  %v8094_v46 = vcombine.low %v2030_v32, %v2031_v40  ;;  %v8077_v48 = vcombine.low %v1918_v33, %v1921_v43  ;;  %v1452_v51 = vld [vmem:[#allocation2 + $0x20] sm:$0x1]  ;;  %v2061_v52 = vld [vmem:[#allocation2 + $0x2c] sm:$0x1] }
  0x36   : > { %v1317_v49 = vsel %vm8943_vm9, %v7950_v34, %v1316_v28  ;;  %v2103_v54 = vrot.slane %v2101_v41, 4  ;;  %v2106_v56 = vrot.slane %v2104_v42, 5  ;;  %3180 = vrot.lane.b32.xlu0 %v8093_v10, %s8857_s27  ;;  %v2528_v60 = vrot.slane %v2526_v23, 4  ;;  %v2461_v61 = vld [vmem:[#allocation2 + $0x24] sm:$0xe] }
  0x37   : > { %v1320_v58 = vsel %vm8943_vm9, %v1318_v35, %v1319_v36  ;;  %3182 = vrot.lane.b32.xlu1 %v8094_v46, %s8857_s27  ;;  %v2529_v63 = vrot.slane %v9078_v37, 5  ;;  %v7966_v3 = vrot.slane %v1852_v29, 9  ;;  %v1924_v8 = vrot.slane %v9023_v53, 5  ;;  %v9107_v43 = vld [vmem:[#allocation2 + $0xc] sm:$0xf] }
  0x38   : > { %v8030_v62 = vcombine.low %v1317_v49, %v1320_v58  ;;  %v1927_v9 = vrot.slane %v1452_v51, 5  ;;  %v7982_v15 = vrot.slane %v2461_v61, 9  ;;  %v2533_v16 = vrot.slane %v2031_v40, 5 }
  0x39   : > { %v2536_v17 = vrot.slane %v2061_v52, 5  ;;  %v2530_v10 = vsel %vm8943_vm9, %v2528_v60, %v2529_v63  ;;  %v1925_v18 = vsel %vm8943_vm9, %v7966_v3, %v1924_v8  ;;  %v1926_v21 = vrot.slane %v1924_v8, 4 }
  0x3a   : > { %v1499_v23 = vrot.slane %v1498_v12, 4  ;;  %3084 = vrot.lane.b32.xlu0 %v8077_v48, %s8858_s28  ;;  %v8125_v24 = vcombine.low %v2527_v38, %v2530_v10  ;;  %v2534_v27 = vsel %vm8943_vm9, %v7982_v15, %v2533_v16  ;;  %v2535_v28 = vrot.slane %v2533_v16, 4  ;;  %v9119_v16 = vld [vmem:[#allocation2 + $0x1c] sm:$0xf] }
  0x3b   : > { %v1501_v29 = vshll.u32 %v9023_v53, 16  ;;  %2830 = vrot.lane.b32.xlu1 %v8030_v62, %s8854_s24  ;;  %v1928_v32 = vsel %vm8943_vm9, %v1926_v21, %v1927_v9  ;;  %v1507_v33 = vrot.slane %v1505_v0, 4  ;;  %v1511_v34 = vshll.u32 %v1452_v51, 16 }
  0x3c   : > { %v2107_v12 = vor.u32 %v2106_v56, %v2103_v54  ;;  %v8078_v36 = vcombine.low %v1925_v18, %v1928_v32  ;;  %v2537_v38 = vsel %vm8943_vm9, %v2535_v28, %v2536_v17  ;;  %v2110_v42 = vshll.u32 %v2031_v40, 16  ;;  %v9125_v28 = vld [vmem:[#allocation2 + $0x20] sm:$0x1] }
  0x3d   : > { %v1503_v41 = vrot.slane %v1501_v29, 5  ;;  %v8126_v35 = vcombine.low %v2534_v27, %v2537_v38  ;;  %v1513_v46 = vrot.slane %v1511_v34, 5  ;;  %v2116_v49 = vrot.slane %v2114_v44, 4  ;;  %v809_v44 = vld [vmem:[#allocation2 + $0x18] sm:$0xf] }
  0x3e   : > { %v2108_v48 = vrot.slane %v2107_v12, 4  ;;  %3340 = vrot.lane.b32.xlu0 %v8125_v24, %s8859_s29  ;;  %v2112_v51 = vrot.slane %v2110_v42, 5  ;;  %v2120_v54 = vshll.u32 %v2061_v52, 16  ;;  %v881_v56 = vshrl.u32 %v9107_v43, 16 }
  0x3f   : > { %v1504_v53 = vsel %vm8972_vm13, %v1499_v23, %v1503_v41  ;;  %v1508_v0 = vor.u32 %v1507_v33, %v1503_v41  ;;  %3086 = vrot.lane.b32.xlu1 %v8078_v36, %s8858_s28  ;;  %v884_v40 = vshll.u32 %v9107_v43, 16  ;;  %v890_v58 = vshll.u32 %v9063_v22, 16 }
  0x40   : > { %v894_v60 = vshrl.u32 %v9063_v22, 16  ;;  %v2113_v62 = vsel %vm8972_vm13, %v2108_v48, %v2112_v51  ;;  %v2117_v63 = vor.u32 %v2116_v49, %v2112_v51  ;;  %v2122_v3 = vrot.slane %v2120_v54, 5  ;;  %v811_v54 = vld [vmem:[#allocation2 + $0x24] sm:$0xf] }
  0x41   : > { %v1509_v61 = vrot.slane %v1508_v0, 4  ;;  %v883_v8 = vrot.slane %v881_v56, 4  ;;  %v886_v9 = vrot.slane %v884_v40, 5  ;;  %v892_v52 = vrot.slane %v890_v58, 5  ;;  %v812_v56 = vld [vmem:[#allocation2 + $0x28] sm:$0xf] }
  0x42   : > { %v896_v15 = vrot.slane %v894_v60, 4  ;;  %3342 = vrot.lane.b32.xlu0 %v8126_v35, %s8859_s29  ;;  %v2118_v10 = vrot.slane %v2117_v63, 4  ;;  %v900_v18 = vshll.u32 %v9067_v25, 16  ;;  %v905_v21 = vshrl.u32 %v809_v44, 16 }
  0x43   : > { %v1514_v17 = vsel %vm8972_vm13, %v1509_v61, %v1513_v46  ;;  %v887_v24 = vor.u32 %v886_v9, %v883_v8  ;;  %v908_v29 = vshll.u32 %v809_v44, 16  ;;  %v914_v12 = vshll.u32 %v9119_v16, 16 }
  0x44   : > { %v8062_v23 = vcombine.low %v1504_v53, %v1514_v17  ;;  %v897_v27 = vor.u32 %v896_v15, %v892_v52  ;;  %v2123_v32 = vsel %vm8972_vm13, %v2118_v10, %v2122_v3  ;;  %v902_v33 = vrot.slane %v900_v18, 5  ;;  %v840_v3 = vld [vmem:[#allocation2 + $0x2c] sm:$0x1] }
  0x45   : > { %v907_v34 = vrot.slane %v905_v21, 4  ;;  %v8110_v36 = vcombine.low %v2113_v62, %v2123_v32  ;;  %v888_v38 = vrot.slane %v887_v24, 4  ;;  %v910_v41 = vrot.slane %v908_v29, 5 }
  0x46   : > { %3006 = vrot.lane.b32.xlu1 %v8062_v23, %s8860_s30  ;;  %v898_v25 = vrot.slane %v897_v27, 4  ;;  %v916_v42 = vrot.slane %v914_v12, 5  ;;  %v918_v35 = vshrl.u32 %v9119_v16, 16  ;;  %v924_v46 = vshll.u32 %v9125_v28, 16 }
  0x47   : > { %v1474_v48 = vor.u32 %v9061_v20, %v9059_v19  ;;  %v893_v49 = vsel %vm8972_vm13, %v888_v38, %v892_v52  ;;  %v911_v0 = vor.u32 %v910_v41, %v907_v34  ;;  %v1477_v51 = vshll.u32 %v9047_v7, 16  ;;  %v1242_v38 = vld [vmem:[#allocation2 + $0x18] sm:$0xe] }
  0x48   : > { %v903_v53 = vsel %vm8972_vm13, %v898_v25, %v902_v33  ;;  %v920_v58 = vrot.slane %v918_v35, 4  ;;  %v926_v60 = vrot.slane %v924_v46, 5  ;;  %v1483_v20 = vrot.slane %v1481_v13, 4 }
  0x49   : > { %v8014_v40 = vcombine.low %v893_v49, %v903_v53  ;;  %v1475_v44 = vrot.slane %v1474_v48, 4  ;;  %v912_v61 = vrot.slane %v911_v0, 4  ;;  %v1479_v19 = vrot.slane %v1477_v51, 5 }
  0x4a   : > { %3262 = vrot.lane.b32.xlu1 %v8110_v36, %s8861_s6  ;;  %v1487_v62 = vshll.u32 %v9051_v11, 16  ;;  %v921_v63 = vor.u32 %v920_v58, %v916_v42  ;;  %v929_v8 = vshrl.u32 %v811_v54, 16  ;;  %v932_v9 = vshll.u32 %v811_v54, 16  ;;  %v1243_v11 = vld [vmem:[#allocation2 + $0x24] sm:$0xe] }
  0x4b   : > { %2750 = vrot.lane.b32.xlu0 %v8014_v40, %s8855_s25  ;;  %v938_v52 = vshll.u32 %v812_v56, 16  ;;  %v917_v15 = vsel %vm8972_vm13, %v912_v61, %v916_v42  ;;  %v1480_v17 = vsel %vm8972_vm13, %v1475_v44, %v1479_v19  ;;  %v1484_v10 = vor.u32 %v1483_v20, %v1479_v19  ;;  %v714_v40 = vld [vmem:[#allocation2 + $0x30] sm:$0xf] }
  0x4c   : > { %v1489_v18 = vrot.slane %v1487_v62, 5  ;;  %v922_v21 = vrot.slane %v921_v63, 4  ;;  %v931_v7 = vrot.slane %v929_v8, 4  ;;  %v934_v13 = vrot.slane %v932_v9, 5  ;;  %v1423_v9 = vld [vmem:[#allocation2 + $0x24] sm:$0xf] }
  0x4d   : > { %v940_v23 = vrot.slane %v938_v52, 5  ;;  %v1485_v24 = vrot.slane %v1484_v10, 4  ;;  %v942_v27 = vshrl.u32 %v812_v56, 16  ;;  %v948_v29 = vshll.u32 %v840_v3, 16  ;;  %v1424_v52 = vld [vmem:[#allocation2 + $0x28] sm:$0xf] }
  0x4e   : > { %v2084_v32 = vrot.slane %v2083_v30, 4  ;;  %v927_v33 = vsel %vm8972_vm13, %v922_v21, %v926_v60  ;;  %v935_v34 = vor.u32 %v934_v13, %v931_v7  ;;  %v2086_v12 = vshll.u32 %v9027_v55, 16  ;;  %v1453_v21 = vld [vmem:[#allocation2 + $0x2c] sm:$0x1] }
  0x4f   : > { %v2092_v36 = vrot.slane %v2090_v6, 4  ;;  %v8015_v25 = vcombine.low %v917_v15, %v927_v33  ;;  %v1490_v41 = vsel %vm8972_vm13, %v1485_v24, %v1489_v18  ;;  %v944_v42 = vrot.slane %v942_v27, 4  ;;  %v718_v15 = vld [vmem:[#allocation2 + $0x38] sm:$0x1] }
  0x50   : > { %v950_v35 = vrot.slane %v948_v29, 5  ;;  %v8061_v46 = vcombine.low %v1480_v17, %v1490_v41  ;;  %v936_v48 = vrot.slane %v935_v34, 4  ;;  %v2088_v4 = vrot.slane %v2086_v12, 5  ;;  %v234_v29 = vld [vmem:[%s8952_s23 + $0x20] sm:$0xf] }
  0x51   : > { %v2096_v5 = vshll.u32 %v9078_v37, 16  ;;  %2752 = vrot.lane.b32.xlu1 %v8015_v25, %s8855_s25  ;;  %v945_v30 = vor.u32 %v944_v42, %v940_v23  ;;  %v7952_v49 = vrot.slane %v1243_v11, 9  ;;  %v1330_v53 = vrot.slane %v812_v56, 5  ;;  %v1853_v11 = vld [vmem:[#allocation2 + $0x24] sm:$0xe] }
  0x52   : > { %v1333_v0 = vrot.slane %v840_v3, 5  ;;  %3004 = vrot.lane.b32.xlu0 %v8061_v46, %s8860_s30  ;;  %v941_v55 = vsel %vm8972_vm13, %v936_v48, %v940_v23  ;;  %v2089_v6 = vsel %vm8972_vm13, %v2084_v32, %v2088_v4  ;;  %v2093_v51 = vor.u32 %v2092_v36, %v2088_v4  ;;  %v283_v32 = vld [vmem:[#allocation2 + $0x3c] sm:$0x1] }
  0x53   : > { %v2098_v54 = vrot.slane %v2096_v5, 5  ;;  %v946_v58 = vrot.slane %v945_v30, 4  ;;  %v1331_v37 = vsel %vm8943_vm9, %v7952_v49, %v1330_v53  ;;  %v1332_v60 = vrot.slane %v1330_v53, 4 }
  0x54   : > { %v7951_v44 = vrot.slane %v1242_v38, 9  ;;  %v2094_v61 = vrot.slane %v2093_v51, 4  ;;  %v1323_v56 = vrot.slane %v9119_v16, 5  ;;  %v1326_v19 = vrot.slane %v9125_v28, 5 }
  0x55   : > { %v429_v20 = vrot.slane %v9032_v59, 4  ;;  %v951_v62 = vsel %vm8972_vm13, %v946_v58, %v950_v35  ;;  %v1334_v63 = vsel %vm8943_vm9, %v1332_v60, %v1333_v0  ;;  %v433_v3 = vrot.slane %v431_v39, 7  ;;  %v235_v58 = vld [vmem:[%s8952_s23 + $0x24] sm:$0xf] }
  0x56   : > { %v715_v8 = vsel %vm8965_vm12, %v9073_v31, %v714_v40  ;;  %v8016_v16 = vcombine.low %v941_v55, %v951_v62  ;;  %v2099_v28 = vsel %vm8972_vm13, %v2094_v61, %v2098_v54  ;;  %v1324_v59 = vsel %vm8943_vm9, %v7951_v44, %v1323_v56 }
  0x57   : > { %716 = vst [vmem:[#allocation2 + $0x30] sm:$0xf] %v715_v8  ;;  %v8109_v17 = vcombine.low %v2089_v6, %v2099_v28  ;;  %v1325_v10 = vrot.slane %v1323_v56, 4  ;;  %v436_v39 = vor.u32 %v434_v45, %v433_v3  ;;  %v438_v18 = vrot.slane %v433_v3, 4 }
  0x58   : > { %2754 = vrot.lane.b32.xlu1 %v8016_v16, %s8855_s25  ;;  %v8032_v31 = vcombine.low %v1331_v37, %v1334_v63  ;;  %v1516_v7 = vshrl.u32 %v1423_v9, 16  ;;  %v1519_v13 = vshll.u32 %v1423_v9, 16  ;;  %v1529_v23 = vshrl.u32 %v1424_v52, 16 }
  0x59   : > { %3260 = vrot.lane.b32.xlu0 %v8109_v17, %s8861_s6  ;;  %v1327_v24 = vsel %vm8943_vm9, %v1325_v10, %v1326_v19  ;;  %v437_v27 = vsel %vm8979_vm14, %v429_v20, %v436_v39  ;;  %v719_v26 = vsel %vm8905_vm3, %v438_v18, %v718_v15  ;;  %v1525_v45 = vshll.u32 %v1424_v52, 16 }
  0x5a   : > { %v8031_v33 = vcombine.low %v1324_v59, %v1327_v24  ;;  %717 = vst.msk [vmem:[#allocation2 + $0x34] sm:$0xf] %vm258_vm0, %v437_v27  ;;  %v1518_v34 = vrot.slane %v1516_v7, 4  ;;  %v1521_v12 = vrot.slane %v1519_v13, 5  ;;  %720 = vst [vmem:[#allocation2 + $0x38] sm:$0x1] %v719_v26  ;;  %v8047_v30 = vcombine.low %v1423_v9, %v1424_v52 }
  0x5b   : > { %v1531_v36 = vrot.slane %v1529_v23, 4  ;;  %v1527_v38 = vrot.slane %v1525_v45, 5  ;;  %v1535_v25 = vshll.u32 %v1453_v21, 16  ;;  %v7967_v41 = vrot.slane %v1853_v11, 9 }
  0x5c   : > { %v1931_v42 = vrot.slane %v1424_v52, 5  ;;  %2834 = vrot.lane.b32.xlu1 %v8032_v31, %s8854_s24  ;;  %v1522_v35 = vor.u32 %v1521_v12, %v1518_v34  ;;  %v1934_v46 = vrot.slane %v1453_v21, 5  ;;  %v284_v48 = vsel %vm8905_vm3, 0, %v283_v32 }
  0x5d   : > { %v440_v4 = vshrl.u32 %v234_v29, 16  ;;  %2832 = vrot.lane.b32.xlu0 %v8031_v33, %s8854_s24  ;;  %v1532_v49 = vor.u32 %v1531_v36, %v1527_v38  ;;  %v1537_v53 = vrot.slane %v1535_v25, 5  ;;  %285 = vst [vmem:[#allocation2 + $0x3c] sm:$0x1] %v284_v48  ;;  %v443_v61 = vshll.u32 %v234_v29, 16 }
  0x5e   : > { %v1425_v5 = vld [vmem:[#allocation2 + $0x30] sm:$0xf]  ;;  %v1933_v55 = vrot.slane %v1931_v42, 4  ;;  %v1523_v54 = vrot.slane %v1522_v35, 4  ;;  %v1932_v40 = vsel %vm8943_vm9, %v7967_v41, %v1931_v42  ;;  %v448_v16 = vshrl.u32 %v235_v58, 16 }
  0x5f   : > { %v1854_v0 = vld [vmem:[#allocation2 + $0x30] sm:$0xe]  ;;  %v1540_v6 = vshrl.u32 %v1425_v5, 16  ;;  %v1543_v51 = vshll.u32 %v1425_v5, 16  ;;  %v1533_v37 = vrot.slane %v1532_v49, 4  ;;  %v442_v44 = vrot.slane %v440_v4, 7 }
  0x60   : > { %v1935_v60 = vsel %vm8943_vm9, %v1933_v55, %v1934_v46  ;;  %v1528_v20 = vsel %vm8972_vm13, %v1523_v54, %v1527_v38  ;;  %v7968_v62 = vrot.slane %v1854_v0, 9  ;;  %v2032_v31 = vld [vmem:[#allocation2 + $0x30] sm:$0xf]  ;;  %v9211_v11 = vrot.slane %v448_v16, 7  ;;  %v333_v38 = vld [vmem:[#allocation2 + $0x44] sm:$0x1] }
  0x61   : > { %v1542_v56 = vrot.slane %v1540_v6, 4  ;;  %v1545_v19 = vrot.slane %v1543_v51, 5  ;;  %v1426_v63 = vld [vmem:[#allocation2 + $0x34] sm:$0xf]  ;;  %2928 = vrot.lane.b32.xlu0 %v8047_v30, %s8856_s26  ;;  %v1454_v3 = vld [vmem:[#allocation2 + $0x38] sm:$0x1]  ;;  %v1538_v8 = vsel %vm8972_vm13, %v1533_v37, %v1537_v53  ;;  %v8079_v9 = vcombine.low %v1932_v40, %v1935_v60 }
  0x62   : > { %v445_v52 = vor.u32 %v443_v61, %v442_v44  ;;  %v1553_v28 = vshrl.u32 %v1426_v63, 16  ;;  %v8048_v59 = vcombine.low %v1425_v5, %v1426_v63  ;;  %v1549_v17 = vshll.u32 %v1426_v63, 16  ;;  %v9214_v32 = vld [vmem:[#allocation2 + $0x34] sm:$0xf]  ;;  %v9224_v46 = vld [vmem:[#allocation2 + $0x38] sm:$0x1] }
  0x63   : > { %v1546_v15 = vor.u32 %v1545_v19, %v1542_v56  ;;  %v1559_v10 = vshll.u32 %v1454_v3, 16  ;;  %v8063_v39 = vcombine.low %v1528_v20, %v1538_v8  ;;  %v1938_v18 = vrot.slane %v1426_v63, 5  ;;  %v813_v49 = vld [vmem:[#allocation2 + $0x30] sm:$0xf]  ;;  %v9235_v51 = vld [vmem:[#allocation2 + $0x34] sm:$0xf] }
  0x64   : > { %v1941_v21 = vrot.slane %v1454_v3, 5  ;;  %2930 = vrot.lane.b32.xlu1 %v8048_v59, %s8856_s26  ;;  %v1551_v13 = vrot.slane %v1549_v17, 5  ;;  %v1555_v23 = vrot.slane %v1553_v28, 4  ;;  %v721_v24 = vld [vmem:[#allocation2 + $0x3c] sm:$0xf]  ;;  %v446_v45 = vrot.slane %v442_v44, 4 }
  0x65   : > { %v1547_v7 = vrot.slane %v1546_v15, 4  ;;  %v1561_v27 = vrot.slane %v1559_v10, 5  ;;  %3008 = vrot.lane.b32.xlu0 %v8063_v39, %s8860_s30  ;;  %v1940_v26 = vrot.slane %v1938_v18, 4  ;;  %v451_v29 = vshll.u32 %v235_v58, 16  ;;  %v9242_v60 = vld [vmem:[#allocation2 + $0x38] sm:$0x1] }
  0x66   : > { %v1556_v34 = vor.u32 %v1555_v23, %v1551_v13  ;;  %v1939_v12 = vsel %vm8943_vm9, %v7968_v62, %v1938_v18  ;;  %v722_v36 = vsel %vm8965_vm12, %v445_v52, %v721_v24  ;;  %v455_v41 = vrot.slane %v9211_v11, 4  ;;  %v2462_v8 = vld [vmem:[#allocation2 + $0x30] sm:$0xe] }
  0x67   : > { %v1552_v33 = vsel %vm8972_vm13, %v1547_v7, %v1551_v13  ;;  %v453_v25 = vor.u32 %v451_v29, %v9211_v11  ;;  %723 = vst [vmem:[#allocation2 + $0x3c] sm:$0xf] %v722_v36  ;;  %v2125_v42 = vshrl.u32 %v2032_v31, 16  ;;  %v2128_v35 = vshll.u32 %v2032_v31, 16 }
  0x68   : > { %v1557_v48 = vrot.slane %v1556_v34, 4  ;;  %v1942_v4 = vsel %vm8943_vm9, %v1940_v26, %v1941_v21  ;;  %v2138_v5 = vshrl.u32 %v9214_v32, 16  ;;  %v8095_v30 = vcombine.low %v2032_v31, %v9214_v32 }
  0x69   : > { %3088 = vrot.lane.b32.xlu0 %v8079_v9, %s8858_s28  ;;  %v454_v53 = vsel %vm8979_vm14, %v446_v45, %v453_v25  ;;  %v2127_v0 = vrot.slane %v2125_v42, 4  ;;  %v2130_v55 = vrot.slane %v2128_v35, 5  ;;  %v334_v6 = vsel %vm8920_vm5, 0, %v333_v38 }
  0x6a   : > { %v1562_v54 = vsel %vm8972_vm13, %v1557_v48, %v1561_v27  ;;  %724 = vst.msk [vmem:[#allocation2 + $0x40] sm:$0xf] %vm258_vm0, %v454_v53  ;;  %335 = vst [vmem:[#allocation2 + $0x44] sm:$0x1] %v334_v6  ;;  %v2134_v40 = vshll.u32 %v9214_v32, 16  ;;  %v2140_v58 = vrot.slane %v2138_v5, 4  ;;  %v8080_v20 = vcombine.low %v1939_v12, %v1942_v4 }
  0x6b   : > { %v2144_v37 = vshll.u32 %v9224_v46, 16  ;;  %v8064_v44 = vcombine.low %v1552_v33, %v1562_v54  ;;  %v2131_v61 = vor.u32 %v2130_v55, %v2127_v0  ;;  %v953_v56 = vshrl.u32 %v813_v49, 16 }
  0x6c   : > { %v956_v19 = vshll.u32 %v813_v49, 16  ;;  %v2136_v62 = vrot.slane %v2134_v40, 5  ;;  %v962_v63 = vshll.u32 %v9235_v51, 16  ;;  %v966_v3 = vshrl.u32 %v9235_v51, 16 }
  0x6d   : > { %3010 = vrot.lane.b32.xlu1 %v8064_v44, %s8860_s30  ;;  %3184 = vrot.lane.b32.xlu0 %v8095_v30, %s8857_s27  ;;  %v2132_v9 = vrot.slane %v2131_v61, 4  ;;  %v955_v52 = vrot.slane %v953_v56, 4  ;;  %v972_v28 = vshll.u32 %v9242_v60, 16  ;;  %v2146_v17 = vrot.slane %v2144_v37, 5 }
  0x6e   : > { %v958_v16 = vrot.slane %v956_v19, 5  ;;  %v2034_v59 = vld [vmem:[#allocation2 + $0x3c] sm:$0xf]  ;;  %v2141_v15 = vor.u32 %v2140_v58, %v2136_v62  ;;  %v964_v10 = vrot.slane %v962_v63, 5  ;;  %v968_v39 = vrot.slane %v966_v3, 4 }
  0x6f   : > { %v2149_v18 = vshrl.u32 %v2034_v59, 16  ;;  %v2152_v21 = vshll.u32 %v2034_v59, 16  ;;  %v7983_v7 = vrot.slane %v2462_v8, 9  ;;  %v974_v11 = vrot.slane %v972_v28, 5  ;;  %v815_v4 = vld [vmem:[#allocation2 + $0x3c] sm:$0xf] }
  0x70   : > { %v959_v31 = vor.u32 %v958_v16, %v955_v52  ;;  %v2142_v13 = vrot.slane %v2141_v15, 4  ;;  %v969_v23 = vor.u32 %v968_v39, %v964_v10  ;;  %v2540_v24 = vrot.slane %v9214_v32, 5  ;;  %v2463_v6 = vld [vmem:[#allocation2 + $0x3c] sm:$0xe] }
  0x71   : > { %3090 = vrot.lane.b32.xlu1 %v8080_v20, %s8858_s28  ;;  %v2035_v27 = vld [vmem:[#allocation2 + $0x40] sm:$0xf]  ;;  %v2151_v26 = vrot.slane %v2149_v18, 4  ;;  %v2154_v45 = vrot.slane %v2152_v21, 5  ;;  %v725_v29 = vld [vmem:[#allocation2 + $0x44] sm:$0x1]  ;;  %v2137_v33 = vsel %vm8972_vm13, %v2132_v9, %v2136_v62  ;;  %v7998_v34 = vcombine.low %v9107_v43, %v9063_v22 }
  0x72   : > { %v2162_v12 = vshrl.u32 %v2035_v27, 16  ;;  %v8096_v36 = vcombine.low %v2034_v59, %v2035_v27  ;;  %v726_v38 = vsel %vm8905_vm3, %v455_v41, %v725_v29  ;;  %v2158_v25 = vshll.u32 %v2035_v27, 16  ;;  %v816_v53 = vld [vmem:[#allocation2 + $0x40] sm:$0xf]  ;;  %v1245_v20 = vld [vmem:[#allocation2 + $0x3c] sm:$0xe] }
  0x73   : > { %727 = vst [vmem:[#allocation2 + $0x44] sm:$0x1] %v726_v38  ;;  %v2155_v32 = vor.u32 %v2154_v45, %v2151_v26  ;;  %v2147_v42 = vsel %vm8972_vm13, %v2142_v13, %v2146_v17  ;;  %v960_v35 = vrot.slane %v959_v31, 4  ;;  %v970_v48 = vrot.slane %v969_v23, 4  ;;  %v1244_v13 = vld [vmem:[#allocation2 + $0x30] sm:$0xe] }
  0x74   : > { %v2160_v5 = vrot.slane %v2158_v25, 5  ;;  %v2164_v30 = vrot.slane %v2162_v12, 4  ;;  %v8111_v49 = vcombine.low %v2137_v33, %v2147_v42  ;;  %v2541_v55 = vsel %vm8943_vm9, %v7983_v7, %v2540_v24  ;;  %v9275_v45 = vld [vmem:[#allocation2 + $0x3c] sm:$0xf]  ;;  %v286_v42 = vld [vmem:[#allocation2 + $0x48] sm:$0x1] }
  0x75   : > { %3186 = vrot.lane.b32.xlu1 %v8096_v36, %s8857_s27  ;;  %v2156_v0 = vrot.slane %v2155_v32, 4  ;;  %v2542_v41 = vrot.slane %v2540_v24, 4  ;;  %v965_v40 = vsel %vm8972_vm13, %v960_v35, %v964_v10  ;;  %v2543_v58 = vrot.slane %v9224_v46, 5  ;;  %v9277_v36 = vld [vmem:[#allocation2 + $0x40] sm:$0xf] }
  0x76   : > { %v2165_v54 = vor.u32 %v2164_v30, %v2160_v5  ;;  %3264 = vrot.lane.b32.xlu0 %v8111_v49, %s8861_s6  ;;  %v977_v37 = vshrl.u32 %v815_v4, 16  ;;  %v975_v44 = vsel %vm8972_vm13, %v970_v48, %v974_v11  ;;  %v980_v61 = vshll.u32 %v815_v4, 16  ;;  %v236_v49 = vld [vmem:[%s8952_s23 + $0x28] sm:$0xf] }
  0x77   : > { %v986_v56 = vshll.u32 %v816_v53, 16  ;;  %v990_v19 = vshrl.u32 %v816_v53, 16  ;;  %v2544_v63 = vsel %vm8943_vm9, %v2542_v41, %v2543_v58  ;;  %v7984_v8 = vrot.slane %v2463_v6, 9 }
  0x78   : > { %v2166_v62 = vrot.slane %v2165_v54, 4  ;;  %v979_v3 = vrot.slane %v977_v37, 4  ;;  %v8127_v9 = vcombine.low %v2541_v55, %v2544_v63  ;;  %v982_v52 = vrot.slane %v980_v61, 5 }
  0x79   : > { %v988_v16 = vrot.slane %v986_v56, 5  ;;  %v992_v28 = vrot.slane %v990_v19, 4  ;;  %v2161_v46 = vsel %vm8972_vm13, %v2156_v0, %v2160_v5  ;;  %v8017_v15 = vcombine.low %v965_v40, %v975_v44  ;;  %v336_v44 = vld [vmem:[#allocation2 + $0x50] sm:$0x1] }
  0x7a   : > { %v2063_v59 = vld [vmem:[#allocation2 + $0x44] sm:$0x1]  ;;  %v2547_v10 = vrot.slane %v2035_v27, 5  ;;  %v7954_v39 = vrot.slane %v1245_v20, 9  ;;  %3344 = vrot.lane.b32.xlu0 %v8127_v9, %s8859_s29  ;;  %v983_v21 = vor.u32 %v982_v52, %v979_v3  ;;  %v1344_v26 = vrot.slane %v816_v53, 5 }
  0x7b   : > { %v842_v17 = vld [vmem:[#allocation2 + $0x44] sm:$0x1]  ;;  %v2168_v18 = vshll.u32 %v2063_v59, 16  ;;  %v993_v31 = vor.u32 %v992_v28, %v988_v16  ;;  %v2550_v24 = vrot.slane %v2063_v59, 5  ;;  %v8049_v35 = vcombine.low %v9275_v45, %v9277_v36  ;;  %v237_v53 = vld [vmem:[%s8952_s23 + $0x2c] sm:$0xf] }
  0x7c   : > { %v996_v7 = vshll.u32 %v842_v17, 16  ;;  %v2548_v23 = vsel %vm8943_vm9, %v7984_v8, %v2547_v10  ;;  %v2549_v11 = vrot.slane %v2547_v10, 4  ;;  %v984_v27 = vrot.slane %v983_v21, 4 }
  0x7d   : > { %v2170_v29 = vrot.slane %v2168_v18, 5  ;;  %v994_v33 = vrot.slane %v993_v31, 4  ;;  %v1346_v25 = vrot.slane %v1344_v26, 4  ;;  %v1347_v32 = vrot.slane %v842_v17, 5  ;;  %v1455_v17 = vld [vmem:[#allocation2 + $0x44] sm:$0x1] }
  0x7e   : > { %v998_v12 = vrot.slane %v996_v7, 5  ;;  %v2551_v38 = vsel %vm8943_vm9, %v2549_v11, %v2550_v24  ;;  %v989_v4 = vsel %vm8972_vm13, %v984_v27, %v988_v16  ;;  %v9293_v41 = vsel %vm8943_vm9, %v7954_v39, %v1344_v26  ;;  %v1855_v16 = vld [vmem:[#allocation2 + $0x3c] sm:$0xe]  ;;  %v238_v7 = vld [vmem:[%s8952_s23 + $0x30] sm:$0xf] }
  0x7f   : > { %v2171_v48 = vsel %vm8972_vm13, %v2166_v62, %v2170_v29  ;;  %v8128_v30 = vcombine.low %v2548_v23, %v2551_v38  ;;  %v7953_v6 = vrot.slane %v1244_v13, 9  ;;  %v9298_v54 = vsel %vm8943_vm9, %v1346_v25, %v1347_v32  ;;  %v289_v13 = vld [vmem:[#allocation2 + $0x54] sm:$0x1]  ;;  %v339_v38 = vld [vmem:[#allocation2 + $0x5c] sm:$0x1] }
  0x80   : > { %v999_v5 = vsel %vm8972_vm13, %v994_v33, %v998_v12  ;;  %v8112_v0 = vcombine.low %v2161_v46, %v2171_v48  ;;  %v1337_v40 = vrot.slane %v9235_v51, 5  ;;  %v1340_v58 = vrot.slane %v9242_v60, 5  ;;  %v239_v29 = vld [vmem:[%s8952_s23 + $0x34] sm:$0xf] }
  0x81   : > { %v8018_v55 = vcombine.low %v989_v4, %v999_v5  ;;  %3346 = vrot.lane.b32.xlu0 %v8128_v30, %s8859_s29  ;;  %v287_v37 = vsel %vm8905_vm3, 0, %v286_v42  ;;  %v457_v61 = vshrl.u32 %v236_v49, 16  ;;  %v460_v56 = vshll.u32 %v236_v49, 16 }
  0x82   : > { %3266 = vrot.lane.b32.xlu1 %v8112_v0, %s8861_s6  ;;  %288 = vst [vmem:[#allocation2 + $0x48] sm:$0x1] %v287_v37  ;;  %v465_v19 = vshrl.u32 %v237_v53, 16  ;;  %v468_v20 = vshll.u32 %v237_v53, 16  ;;  %v1338_v62 = vsel %vm8943_vm9, %v7953_v6, %v1337_v40  ;;  %v1339_v63 = vrot.slane %v1337_v40, 4 }
  0x83   : > { %v1564_v3 = vshrl.u32 %v9275_v45, 16  ;;  %v1567_v51 = vshll.u32 %v9275_v45, 16  ;;  %v459_v60 = vrot.slane %v457_v61, 7  ;;  %v1577_v9 = vshrl.u32 %v9277_v36, 16  ;;  %v240_v0 = vld [vmem:[%s8952_s23 + $0x38] sm:$0xf] }
  0x84   : > { %v467_v8 = vrot.slane %v465_v19, 7  ;;  %v337_v52 = vsel %vm8920_vm5, 0, %v336_v44  ;;  %v1341_v28 = vsel %vm8943_vm9, %v1339_v63, %v1340_v58  ;;  %v1573_v10 = vshll.u32 %v9277_v36, 16  ;;  %v9332_v6 = vld [vmem:[%s8952_s23 + $0x3c] sm:$0xf] }
  0x85   : > { %v1566_v59 = vrot.slane %v1564_v3, 4  ;;  %v1569_v46 = vrot.slane %v1567_v51, 5  ;;  %338 = vst [vmem:[#allocation2 + $0x50] sm:$0x1] %v337_v52  ;;  %v8033_v39 = vcombine.low %v1338_v62, %v1341_v28  ;;  %v462_v18 = vor.u32 %v460_v56, %v459_v60 }
  0x86   : > { %2756 = vrot.lane.b32.xlu1 %v8017_v15, %s8855_s25  ;;  %v463_v21 = vrot.slane %v459_v60, 4  ;;  %v470_v31 = vor.u32 %v468_v20, %v467_v8  ;;  %v472_v23 = vrot.slane %v467_v8, 4  ;;  %v1575_v24 = vrot.slane %v1573_v10, 5 }
  0x87   : > { %v1570_v11 = vor.u32 %v1569_v46, %v1566_v59  ;;  %v1579_v26 = vrot.slane %v1577_v9, 4  ;;  %2836 = vrot.lane.b32.xlu0 %v8033_v39, %s8854_s24  ;;  %v1583_v33 = vshll.u32 %v1455_v17, 16  ;;  %v7969_v12 = vrot.slane %v1855_v16, 9 }
  0x88   : > { %v471_v27 = vsel %vm8979_vm14, %v463_v21, %v470_v31  ;;  %v1945_v15 = vrot.slane %v9277_v36, 5  ;;  %v1948_v48 = vrot.slane %v1455_v17, 5  ;;  %v290_v4 = vsel %vm8905_vm3, 0, %v289_v13 }
  0x89   : > { %v728_v25 = vld [vmem:[#allocation2 + $0x48] sm:$0xf]  ;;  %731 = vst.msk [vmem:[#allocation2 + $0x4c] sm:$0xf] %vm258_vm0, %v471_v27  ;;  %v1571_v32 = vrot.slane %v1570_v11, 4  ;;  %v1580_v42 = vor.u32 %v1579_v26, %v1575_v24  ;;  %v8034_v5 = vcombine.low %v9293_v41, %v9298_v54  ;;  %v1585_v49 = vrot.slane %v1583_v33, 5 }
  0x8a   : > { %2758 = vrot.lane.b32.xlu1 %v8018_v55, %s8855_s25  ;;  %v729_v30 = vsel %vm8965_vm12, %v462_v18, %v728_v25  ;;  %v1947_v53 = vrot.slane %v1945_v15, 4  ;;  %291 = vst [vmem:[#allocation2 + $0x54] sm:$0x1] %v290_v4  ;;  %v474_v37 = vshrl.u32 %v238_v7, 16  ;;  %v477_v44 = vshll.u32 %v238_v7, 16 }
  0x8b   : > { %730 = vst [vmem:[#allocation2 + $0x48] sm:$0xf] %v729_v30  ;;  %v1576_v40 = vsel %vm8972_vm13, %v1571_v32, %v1575_v24  ;;  %v1581_v58 = vrot.slane %v1580_v42, 4  ;;  %v292_v55 = vld [vmem:[#allocation2 + $0x60] sm:$0x1]  ;;  %2932 = vrot.lane.b32.xlu0 %v8049_v35, %s8856_s26  ;;  %v1946_v54 = vsel %vm8943_vm9, %v7969_v12, %v1945_v15  ;;  %v482_v61 = vshrl.u32 %v239_v29, 16 }
  0x8c   : > { %v732_v41 = vld [vmem:[#allocation2 + $0x50] sm:$0x1]  ;;  %v485_v56 = vshll.u32 %v239_v29, 16  ;;  %v340_v19 = vsel %vm8920_vm5, 0, %v339_v38  ;;  %v1949_v63 = vsel %vm8943_vm9, %v1947_v53, %v1948_v48  ;;  %v476_v45 = vrot.slane %v474_v37, 7 }
  0x8d   : > { %v733_v20 = vsel %vm8905_vm3, %v472_v23, %v732_v41  ;;  %v1586_v62 = vsel %vm8972_vm13, %v1581_v58, %v1585_v49  ;;  %341 = vst [vmem:[#allocation2 + $0x5c] sm:$0x1] %v340_v19  ;;  %v484_v35 = vrot.slane %v482_v61, 7  ;;  %v293_v3 = vsel %vm8905_vm3, 0, %v292_v55  ;;  %v9365_v27 = vld [vmem:[#allocation2 + $0x4] sm:$0xf] }
  0x8e   : > { %2838 = vrot.lane.b32.xlu1 %v8034_v5, %s8854_s24  ;;  %734 = vst [vmem:[#allocation2 + $0x50] sm:$0x1] %v733_v20  ;;  %v8065_v36 = vcombine.low %v1576_v40, %v1586_v62  ;;  %v491_v51 = vshrl.u32 %v240_v0, 16  ;;  %v479_v60 = vor.u32 %v477_v44, %v476_v45  ;;  %v480_v8 = vrot.slane %v476_v45, 4  ;;  %294 = vst [vmem:[#allocation2 + $0x60] sm:$0x1] %v293_v3 }
  0x8f   : > { %v494_v9 = vshll.u32 %v240_v0, 16  ;;  %v499_v52 = vshrl.u32 %v9332_v6, 16  ;;  %v8081_v28 = vcombine.low %v1946_v54, %v1949_v63  ;;  %v487_v59 = vor.u32 %v485_v56, %v484_v35  ;;  %v9367_v33 = vld [vmem:[#allocation2] sm:$0xf] }
  0x90   : > { %v1430_v16 = vld [vmem:[#allocation2 + $0x4c] sm:$0xf]  ;;  %3012 = vrot.lane.b32.xlu0 %v8065_v36, %s8860_s30  ;;  %v489_v46 = vrot.slane %v484_v35, 4  ;;  %v9357_v10 = vrot.slane %v491_v51, 7  ;;  %v7997_v12 = vcombine.low %v9367_v33, %v9365_v27  ;;  %vm3372_vm15 = vcmask 31744  }
  0x91   : > { %v9355_v17 = vld [vmem:[#allocation2 + $0x4c] sm:$0xf]  ;;  %v1601_v39 = vshrl.u32 %v1430_v16, 16  ;;  %v1597_v18 = vshll.u32 %v1430_v16, 16  ;;  %v1952_v21 = vrot.slane %v1430_v16, 5  ;;  %v488_v11 = vsel %vm8979_vm14, %v480_v8, %v487_v59 }
  0x92   : > { %v735_v31 = vld [vmem:[#allocation2 + $0x54] sm:$0xf]  ;;  %v2186_v7 = vshrl.u32 %v9355_v17, 16  ;;  %v1429_v13 = vld [vmem:[#allocation2 + $0x48] sm:$0xf]  ;;  %v496_v29 = vor.u32 %v494_v9, %v9357_v10  ;;  %v2182_v36 = vshll.u32 %v9355_v17, 16 }
  0x93   : > { %v1856_v23 = vld [vmem:[#allocation2 + $0x48] sm:$0xe]  ;;  %v736_v24 = vsel %vm8965_vm12, %v479_v60, %v735_v31  ;;  %v1588_v15 = vshrl.u32 %v1429_v13, 16  ;;  %v1591_v38 = vshll.u32 %v1429_v13, 16  ;;  %v8050_v25 = vcombine.low %v1429_v13, %v1430_v16  ;;  %738 = vst.msk [vmem:[#allocation2 + $0x58] sm:$0xf] %vm258_vm0, %v488_v11 }
  0x94   : > { %v2036_v26 = vld [vmem:[#allocation2 + $0x48] sm:$0xf]  ;;  %v1599_v32 = vrot.slane %v1597_v18, 5  ;;  %737 = vst [vmem:[#allocation2 + $0x54] sm:$0xf] %v736_v24  ;;  %v1603_v42 = vrot.slane %v1601_v39, 4  ;;  %3092 = vrot.lane.b32.xlu0 %v8081_v28, %s8858_s28 }
  0x95   : > { %v7970_v48 = vrot.slane %v1856_v23, 9  ;;  %v1954_v4 = vrot.slane %v1952_v21, 4  ;;  %v2173_v5 = vshrl.u32 %v2036_v26, 16  ;;  %v739_v30 = vld [vmem:[#allocation2 + $0x5c] sm:$0x1]  ;;  %v1590_v49 = vrot.slane %v1588_v15, 4  ;;  %2934 = vrot.lane.b32.xlu1 %v8050_v25, %s8856_s26 }
  0x96   : > { %v1593_v53 = vrot.slane %v1591_v38, 5  ;;  %v1456_v0 = vld [vmem:[#allocation2 + $0x50] sm:$0x1]  ;;  %v2176_v40 = vshll.u32 %v2036_v26, 16  ;;  %v8097_v58 = vcombine.low %v2036_v26, %v9355_v17  ;;  %v1604_v37 = vor.u32 %v1603_v42, %v1599_v32  ;;  %v742_v8 = vld [vmem:[#allocation2 + $0x60] sm:$0xf] }
  0x97   : > { %v1607_v44 = vshll.u32 %v1456_v0, 16  ;;  %v1953_v55 = vsel %vm8943_vm9, %v7970_v48, %v1952_v21  ;;  %v1955_v41 = vrot.slane %v1456_v0, 5  ;;  %v2175_v61 = vrot.slane %v2173_v5, 4  ;;  %v9379_v20 = vld [vmem:[#allocation2 + $0x50] sm:$0x1] }
  0x98   : > { %v1594_v54 = vor.u32 %v1593_v53, %v1590_v49  ;;  %v2178_v56 = vrot.slane %v2176_v40, 5  ;;  %v740_v19 = vsel %vm8905_vm3, %v489_v46, %v739_v30  ;;  %v1605_v62 = vrot.slane %v1604_v37, 4  ;;  %3188 = vrot.lane.b32.xlu0 %v8097_v58, %s8857_s27  ;;  %v817_v13 = vld [vmem:[#allocation2 + $0x48] sm:$0xf]  ;;  %v9402_v15 = vld [vmem:[#allocation2 + $0x4c] sm:$0xf]  ;;  %v9409_v49 = vpop.permute.xlu0 %2748 }
  0x99   : > { %v1609_v63 = vrot.slane %v1607_v44, 5  ;;  %v1956_v45 = vsel %vm8943_vm9, %v1954_v4, %v1955_v41  ;;  %741 = vst [vmem:[#allocation2 + $0x5c] sm:$0x1] %v740_v19  ;;  %v2188_v60 = vrot.slane %v2186_v7, 4  ;;  %v2184_v59 = vrot.slane %v2182_v36, 5 }
  0x9a   : > { %v1595_v35 = vrot.slane %v1594_v54, 4  ;;  %v8082_v3 = vcombine.low %v1953_v55, %v1956_v45  ;;  %v2179_v51 = vor.u32 %v2178_v56, %v2175_v61  ;;  %v9389_v28 = vld [vmem:[#allocation2 + $0x58] sm:$0xf]  ;;  %v2192_v46 = vshll.u32 %v9379_v20, 16  ;;  %v9407_v5 = vld [vmem:[#allocation2 + $0x50] sm:$0x1]  ;;  %v9416_v56 = vpop.permute.xlu1 %2828 }
  0x9b   : > { %v1610_v9 = vsel %vm8972_vm13, %v1605_v62, %v1609_v63  ;;  %v9387_v16 = vld [vmem:[#allocation2 + $0x54] sm:$0xf]  ;;  %v743_v39 = vsel %vm8965_vm12, %v496_v29, %v742_v8  ;;  %v2210_v7 = vshrl.u32 %v9389_v28, 16  ;;  %v2206_v24 = vshll.u32 %v9389_v28, 16  ;;  %v2464_v61 = vld [vmem:[#allocation2 + $0x48] sm:$0xe] }
  0x9c   : > { %v1600_v18 = vsel %vm8972_vm13, %v1595_v35, %v1599_v32  ;;  %v2197_v21 = vshrl.u32 %v9387_v16, 16  ;;  %v2200_v31 = vshll.u32 %v9387_v16, 16  ;;  %744 = vst [vmem:[#allocation2 + $0x60] sm:$0xf] %v743_v39  ;;  %v8098_v11 = vcombine.low %v9387_v16, %v9389_v28  ;;  %v819_v8 = vld [vmem:[#allocation2 + $0x54] sm:$0xf] }
  0x9d   : > { %v8066_v23 = vcombine.low %v1600_v18, %v1610_v9  ;;  %v2180_v26 = vrot.slane %v2179_v51, 4  ;;  %v2212_v25 = vrot.slane %v2210_v7, 4  ;;  %v2189_v32 = vor.u32 %v2188_v60, %v2184_v59 }
  0x9e   : > { %v2199_v29 = vrot.slane %v2197_v21, 4  ;;  %v2202_v38 = vrot.slane %v2200_v31, 5  ;;  %v2208_v42 = vrot.slane %v2206_v24, 5  ;;  %v2194_v4 = vrot.slane %v2192_v46, 5  ;;  %v820_v31 = vld [vmem:[#allocation2 + $0x58] sm:$0xf] }
  0x9f   : > { %3014 = vrot.lane.b32.xlu1 %v8066_v23, %s8860_s30  ;;  %v2185_v48 = vsel %vm8972_vm13, %v2180_v26, %v2184_v59  ;;  %v1001_v30 = vshrl.u32 %v817_v13, 16  ;;  %v2190_v40 = vrot.slane %v2189_v32, 4  ;;  %v1004_v58 = vshll.u32 %v817_v13, 16 }
  0xa0   : > { %v9411_v53 = vld [vmem:[#allocation2 + $0x5c] sm:$0x1]  ;;  %v2203_v0 = vor.u32 %v2202_v38, %v2199_v29  ;;  %v1010_v37 = vshll.u32 %v9402_v15, 16  ;;  %v2213_v44 = vor.u32 %v2212_v25, %v2208_v42  ;;  %v1014_v54 = vshrl.u32 %v9402_v15, 16 }
  0xa1   : > { %v2216_v55 = vshll.u32 %v9411_v53, 16  ;;  %v1003_v41 = vrot.slane %v1001_v30, 4  ;;  %v2195_v62 = vsel %vm8972_vm13, %v2190_v40, %v2194_v4  ;;  %v1006_v63 = vrot.slane %v1004_v58, 5  ;;  %v844_v26 = vld [vmem:[#allocation2 + $0x5c] sm:$0x1] }
  0xa2   : > { %v2204_v19 = vrot.slane %v2203_v0, 4  ;;  %v1012_v45 = vrot.slane %v1010_v37, 5  ;;  %v2214_v36 = vrot.slane %v2213_v44, 4  ;;  %v8113_v51 = vcombine.low %v2185_v48, %v2195_v62  ;;  %v9434_v48 = vpop.permute.xlu1 %2926  ;;  %v2465_v0 = vld [vmem:[#allocation2 + $0x54] sm:$0xe] }
  0xa3   : > { %3094 = vrot.lane.b32.xlu1 %v8082_v3, %s8858_s28  ;;  %v2218_v35 = vrot.slane %v2216_v55, 5  ;;  %v1016_v60 = vrot.slane %v1014_v54, 4  ;;  %v1007_v16 = vor.u32 %v1006_v63, %v1003_v41  ;;  %v1020_v59 = vshll.u32 %v9407_v5, 16  ;;  %v1247_v44 = vld [vmem:[#allocation2 + $0x54] sm:$0xe] }
  0xa4   : > { %v2209_v9 = vsel %vm8972_vm13, %v2204_v19, %v2208_v42  ;;  %v7985_v46 = vrot.slane %v2464_v61, 9  ;;  %3268 = vrot.lane.b32.xlu0 %v8113_v51, %s8861_s6  ;;  %v2554_v3 = vrot.slane %v9355_v17, 5  ;;  %v2557_v21 = vrot.slane %v9379_v20, 5  ;;  %v9429_v7 = vpop.permute.xlu0 %2924 }
  0xa5   : > { %v2219_v39 = vsel %vm8972_vm13, %v2214_v36, %v2218_v35  ;;  %v1017_v18 = vor.u32 %v1016_v60, %v1012_v45  ;;  %v1008_v23 = vrot.slane %v1007_v16, 4  ;;  %v1022_v24 = vrot.slane %v1020_v59, 5  ;;  %v1246_v35 = vld [vmem:[#allocation2 + $0x48] sm:$0xe] }
  0xa6   : > { %v8114_v13 = vcombine.low %v2209_v9, %v2219_v39  ;;  %v1025_v29 = vshrl.u32 %v819_v8, 16  ;;  %v2555_v25 = vsel %vm8943_vm9, %v7985_v46, %v2554_v3  ;;  %v2556_v32 = vrot.slane %v2554_v3, 4 }
  0xa7   : > { %3190 = vrot.lane.b32.xlu1 %v8098_v11, %s8857_s27  ;;  %v1018_v38 = vrot.slane %v1017_v18, 4  ;;  %v1028_v42 = vshll.u32 %v819_v8, 16  ;;  %v1013_v17 = vsel %vm8972_vm13, %v1008_v23, %v1012_v45  ;;  %v1034_v4 = vshll.u32 %v820_v31, 16 }
  0xa8   : > { %v1027_v20 = vrot.slane %v1025_v29, 4  ;;  %v1038_v30 = vshrl.u32 %v820_v31, 16  ;;  %v2558_v11 = vsel %vm8943_vm9, %v2556_v32, %v2557_v21  ;;  %v1044_v37 = vshll.u32 %v844_v26, 16  ;;  %v9442_v55 = vpop.permute.xlu0 %3180  ;;  %v9463_v29 = vld [vmem:[#allocation2 + $0x60] sm:$0xf] }
  0xa9   : > { %v1023_v40 = vsel %vm8972_vm13, %v1018_v38, %v1022_v24  ;;  %v1030_v58 = vrot.slane %v1028_v42, 5  ;;  %v8129_v54 = vcombine.low %v2555_v25, %v2558_v11  ;;  %v1036_v61 = vrot.slane %v1034_v4, 5  ;;  %v9450_v18 = vpop.permute.xlu1 %3182 }
  0xaa   : > { %v8019_v41 = vcombine.low %v1013_v17, %v1023_v40  ;;  %v1040_v19 = vrot.slane %v1038_v30, 4  ;;  %v1046_v63 = vrot.slane %v1044_v37, 5  ;;  %v7986_v45 = vrot.slane %v2465_v0, 9  ;;  %v1431_v17 = vld [vmem:[#allocation2 + $0x54] sm:$0xf] }
  0xab   : > { %3270 = vrot.lane.b32.xlu1 %v8114_v13, %s8861_s6  ;;  %v1031_v62 = vor.u32 %v1030_v58, %v1027_v20  ;;  %v2561_v36 = vrot.slane %v9389_v28, 5  ;;  %3348 = vrot.lane.b32.xlu0 %v8129_v54, %s8859_s29  ;;  %v2564_v60 = vrot.slane %v9411_v53, 5  ;;  %v7956_v8 = vrot.slane %v1247_v44, 9  ;;  %v9470_v20 = vld [vmem:[#allocation2 + $0x58] sm:$0xf] }
  0xac   : > { %v1041_v51 = vor.u32 %v1040_v19, %v1036_v61  ;;  %v1358_v9 = vrot.slane %v820_v31, 5  ;;  %v1361_v39 = vrot.slane %v844_v26, 5  ;;  %v9452_v3 = vpop.permute.xlu0 %3084  ;;  %v7955_v23 = vrot.slane %v1246_v35, 9  ;;  %v342_v54 = vld [vmem:[#allocation2 + $0x68] sm:$0x1] }
  0xad   : > { %v1032_v16 = vrot.slane %v1031_v62, 4  ;;  %v2562_v59 = vsel %vm8943_vm9, %v7986_v45, %v2561_v36  ;;  %v2563_v46 = vrot.slane %v2561_v36, 4  ;;  %v1351_v24 = vrot.slane %v9402_v15, 5  ;;  %v9491_v45 = vld [vmem:[#allocation2 + $0x18] sm:$0xf] }
  0xae   : > { %v1042_v21 = vrot.slane %v1041_v51, 4  ;;  %v1359_v28 = vsel %vm8943_vm9, %v7956_v8, %v1358_v9  ;;  %v1360_v13 = vrot.slane %v1358_v9, 4  ;;  %v1354_v26 = vrot.slane %v9407_v5, 5  ;;  %v9493_v36 = vld [vmem:[#allocation2 + $0x1c] sm:$0xf] }
  0xaf   : > { %2760 = vrot.lane.b32.xlu1 %v8019_v41, %s8855_s25  ;;  %v1037_v53 = vsel %vm8972_vm13, %v1032_v16, %v1036_v61  ;;  %v2565_v31 = vsel %vm8943_vm9, %v2563_v46, %v2564_v60  ;;  %v497_v42 = vrot.slane %v9357_v10, 4  ;;  %v1352_v15 = vsel %vm8943_vm9, %v7955_v23, %v1351_v24  ;;  %v9486_v61 = vpop.permute.xlu1 %2830  ;;  %v1857_v16 = vld [vmem:[#allocation2 + $0x54] sm:$0xe] }
  0xb0   : > { %v1047_v38 = vsel %vm8972_vm13, %v1042_v21, %v1046_v63  ;;  %v8130_v25 = vcombine.low %v2562_v59, %v2565_v31  ;;  %v1362_v32 = vsel %vm8943_vm9, %v1360_v13, %v1361_v39  ;;  %v1353_v5 = vrot.slane %v1351_v24, 4  ;;  %v1457_v63 = vld [vmem:[#allocation2 + $0x5c] sm:$0x1]  ;;  %v242_v31 = vld [vmem:[%s8952_s23 + $0x40] sm:$0xf] }
  0xb1   : > { %v8020_v4 = vcombine.low %v1037_v53, %v1047_v38  ;;  %v8036_v30 = vcombine.low %v1359_v28, %v1362_v32  ;;  %v9477_v0 = vrot.slane %v499_v52, 7  ;;  %v502_v40 = vshll.u32 %v9332_v6, 16  ;;  %v9488_v52 = vpop.permute.xlu0 %3340  ;;  %v9504_v28 = vld [vmem:[#allocation2 + $0x60] sm:$0xe]  ;;  %v9509_v24 = vld [vmem:[#allocation2 + $0x24] sm:$0xf] }
  0xb2   : > { %3350 = vrot.lane.b32.xlu0 %v8130_v25, %s8859_s29  ;;  %v1636_v11 = vshrl.u32 %v9463_v29, 16  ;;  %v1639_v10 = vshll.u32 %v9463_v29, 16  ;;  %v1355_v58 = vsel %vm8943_vm9, %v1353_v5, %v1354_v26  ;;  %v1612_v37 = vshrl.u32 %v1431_v17, 16  ;;  %v9511_v26 = vld [vmem:[#allocation2 + $0x28] sm:$0xf] }
  0xb3   : > { %2762 = vrot.lane.b32.xlu1 %v8020_v4, %s8855_s25  ;;  %v1615_v44 = vshll.u32 %v1431_v17, 16  ;;  %v1625_v41 = vshrl.u32 %v9470_v20, 16  ;;  %v8035_v19 = vcombine.low %v1352_v15, %v1355_v58  ;;  %v504_v6 = vor.u32 %v502_v40, %v9477_v0  ;;  %v295_v4 = vld [vmem:[#allocation2 + $0x6c] sm:$0x1]  ;;  %v243_v40 = vld [vmem:[%s8952_s23 + $0x44] sm:$0xf] }
  0xb4   : > { %v1638_v62 = vrot.slane %v1636_v11, 4  ;;  %v7999_v35 = vcombine.low %v9491_v45, %v9493_v36  ;;  %v1641_v51 = vrot.slane %v1639_v10, 5  ;;  %v1614_v60 = vrot.slane %v1612_v37, 4  ;;  %v9519_v11 = vpop.permute.xlu1 %3086 }
  0xb5   : > { %v1617_v8 = vrot.slane %v1615_v44, 5  ;;  %v8051_v9 = vcombine.low %v1431_v17, %v9470_v20  ;;  %v505_v59 = vsel %vm8979_vm14, %v497_v42, %v504_v6  ;;  %v343_v46 = vsel %vm8920_vm5, 0, %v342_v54  ;;  %v9521_v10 = vpop.permute.xlu0 %3342 }
  0xb6   : > { %2840 = vrot.lane.b32.xlu0 %v8035_v19, %s8854_s24  ;;  %v1621_v39 = vshll.u32 %v9470_v20, 16  ;;  %v1627_v21 = vrot.slane %v1625_v41, 4  ;;  %745 = vst.msk [vmem:[#allocation2 + $0x64] sm:$0xf] %vm258_vm0, %v505_v59  ;;  %344 = vst [vmem:[#allocation2 + $0x68] sm:$0x1] %v343_v46  ;;  %v1642_v13 = vor.u32 %v1641_v51, %v1638_v62  ;;  %v8000_v38 = vcombine.low %v9509_v24, %v9511_v26 }
  0xb7   : > { %2842 = vrot.lane.b32.xlu1 %v8036_v30, %s8854_s24  ;;  %v1618_v23 = vor.u32 %v1617_v8, %v1614_v60  ;;  %v1631_v53 = vshll.u32 %v1457_v63, 16  ;;  %v7971_v32 = vrot.slane %v1857_v16, 9  ;;  %v1959_v42 = vrot.slane %v9470_v20, 5  ;;  %v9526_v41 = vld [vmem:[#allocation2 + $0x60] sm:$0xf] }
  0xb8   : > { %v1623_v25 = vrot.slane %v1621_v39, 5  ;;  %v1962_v17 = vrot.slane %v1457_v63, 5  ;;  %v506_v30 = vrot.slane %v9477_v0, 4  ;;  %v7972_v5 = vrot.slane %v9504_v28, 9 }
  0xb9   : > { %v1619_v15 = vrot.slane %v1618_v23, 4  ;;  %v9524_v58 = vrot.slane %v1642_v13, 4  ;;  %v1633_v44 = vrot.slane %v1631_v53, 5  ;;  %v1961_v20 = vrot.slane %v1959_v42, 4  ;;  %v9550_v53 = vpop.permute.xlu1 %3006 }
  0xba   : > { %2936 = vrot.lane.b32.xlu0 %v8051_v9, %s8856_s26  ;;  %v1628_v37 = vor.u32 %v1627_v21, %v1623_v25  ;;  %v1960_v0 = vsel %vm8943_vm9, %v7971_v32, %v1959_v42  ;;  %v3375_v54 = vsel %vm3372_vm15, %v7997_v12, %v9409_v49  ;;  %v296_v19 = vsel %vm8905_vm3, 0, %v295_v4 }
  0xbb   : > { %v508_v6 = vshrl.u32 %v242_v31, 16  ;;  %v1963_v63 = vsel %vm8943_vm9, %v1961_v20, %v1962_v17  ;;  %297 = vst [vmem:[#allocation2 + $0x6c] sm:$0x1] %v296_v19  ;;  %v511_v51 = vshll.u32 %v242_v31, 16  ;;  %v516_v60 = vshrl.u32 %v243_v40, 16 }
  0xbc   : > { %v1629_v62 = vrot.slane %v1628_v37, 4  ;;  %v1624_v8 = vsel %vm8972_vm13, %v1619_v15, %v1623_v25  ;;  %v519_v16 = vshll.u32 %v243_v40, 16  ;;  %v2221_v27 = vshrl.u32 %v9526_v41, 16  ;;  %v345_v20 = vld [vmem:[#allocation2 + $0x74] sm:$0x1] }
  0xbd   : > { %v510_v9 = vrot.slane %v508_v6, 7  ;;  %v1434_v33 = vld [vmem:[#allocation2 + $0x64] sm:$0xf]  ;;  %v746_v12 = vld [vmem:[#allocation2 + $0x68] sm:$0x1]  ;;  %v8083_v59 = vcombine.low %v1960_v0, %v1963_v63  ;;  %v9544_v46 = vrot.slane %v516_v60, 7  ;;  %v2751_v31 = vpop.permute.xlu0 %2750 }
  0xbe   : > { %v1634_v49 = vsel %vm8972_vm13, %v1629_v62, %v1633_v44  ;;  %v2224_v39 = vshll.u32 %v9526_v41, 16  ;;  %v1649_v21 = vshrl.u32 %v1434_v33, 16  ;;  %v8052_v28 = vcombine.low %v9463_v29, %v1434_v33  ;;  %v9552_v4 = vld [vmem:[#allocation2 + $0x64] sm:$0xf]  ;;  %v821_v60 = vld [vmem:[#allocation2 + $0x60] sm:$0xf] }
  0xbf   : > { %v747_v13 = vsel %vm8905_vm3, %v506_v30, %v746_v12  ;;  %v1645_v23 = vshll.u32 %v1434_v33, 16  ;;  %v8067_v25 = vcombine.low %v1624_v8, %v1634_v49  ;;  %v1966_v32 = vrot.slane %v1434_v33, 5  ;;  %v9577_v43 = vld [vmem:[#allocation2 + $0x64] sm:$0xf]  ;;  %v9583_v33 = vpop.permute.xlu1 %3262 }
  0xc0   : > { %748 = vst [vmem:[#allocation2 + $0x68] sm:$0x1] %v747_v13  ;;  %v513_v42 = vor.u32 %v511_v51, %v510_v9  ;;  %v514_v17 = vrot.slane %v510_v9, 4  ;;  %2938 = vrot.lane.b32.xlu1 %v8052_v28, %s8856_s26  ;;  %v1651_v40 = vrot.slane %v1649_v21, 4  ;;  %v521_v29 = vor.u32 %v519_v16, %v9544_v46 }
  0xc1   : > { %v9555_v15 = vrot.slane %v1645_v23, 5  ;;  %vm3421_vm1 = vcmask 64512   ;;  %3016 = vrot.lane.b32.xlu0 %v8067_v25, %s8860_s30  ;;  %v523_v30 = vrot.slane %v9544_v46, 4  ;;  %v2223_v37 = vrot.slane %v2221_v27, 4 }
  0xc2   : > { %v2226_v44 = vrot.slane %v2224_v39, 5  ;;  %v3378_v0 = vsel %vm3372_vm15, %v7998_v34, %v2751_v31  ;;  %v9567_v6 = vsel %vm8943_vm9, %v7972_v5, %v1966_v32  ;;  %v522_v62 = vsel %vm8979_vm14, %v514_v17, %v521_v29  ;;  %v749_v63 = vld [vmem:[#allocation2 + $0x6c] sm:$0xf] }
  0xc3   : > { %v1652_v19 = vor.u32 %v1651_v40, %v9555_v15  ;;  %v2234_v51 = vshrl.u32 %v9552_v4, 16  ;;  %v1968_v8 = vrot.slane %v1966_v32, 4  ;;  %v750_v9 = vsel %vm8965_vm12, %v513_v42, %v749_v63  ;;  %752 = vst.msk [vmem:[#allocation2 + $0x70] sm:$0xf] %vm258_vm0, %v522_v62 }
  0xc4   : > { %v8099_v22 = vcombine.low %v9526_v41, %v9552_v4  ;;  %vm3454_vm2 = vcmask 97280   ;;  %751 = vst [vmem:[#allocation2 + $0x6c] sm:$0xf] %v750_v9  ;;  %v3423_v5 = vsel %vm3421_vm1, %v3375_v54, %v9416_v56  ;;  %v346_v16 = vsel %vm8920_vm5, 0, %v345_v20  ;;  %v9587_v21 = vpop.permute.xlu0 %3004 }
  0xc5   : > { %v1653_v34 = vrot.slane %v1652_v19, 4  ;;  %v2227_v27 = vor.u32 %v2226_v44, %v2223_v37  ;;  %3096 = vrot.lane.b32.xlu0 %v8083_v59, %s8858_s28  ;;  %347 = vst [vmem:[#allocation2 + $0x74] sm:$0x1] %v346_v16  ;;  %v2230_v12 = vshll.u32 %v9552_v4, 16  ;;  %v2236_v41 = vrot.slane %v2234_v51, 4 }
  0xc6   : > { %v1049_v49 = vshrl.u32 %v821_v60, 16  ;;  %v1052_v39 = vshll.u32 %v821_v60, 16  ;;  %v1648_v56 = vsel %vm8972_vm13, %v9524_v58, %v9555_v15  ;;  %v9595_v54 = vsel %vm3454_vm2, %v3423_v5, %v9429_v7  ;;  %v2466_v60 = vld [vmem:[#allocation2 + $0x60] sm:$0xe] }
  0xc7   : > { %v1458_v28 = vld [vmem:[#allocation2 + $0x68] sm:$0x1]  ;;  %v2228_v59 = vrot.slane %v2227_v27, 4  ;;  %v1058_v23 = vshll.u32 %v9577_v43, 16  ;;  %v2232_v32 = vrot.slane %v2230_v12, 5  ;;  %v1062_v29 = vshrl.u32 %v9577_v43, 16 }
  0xc8   : > { %v9597_v13 = vld [vmem:[#allocation2 + $0x68] sm:$0x1]  ;;  %v1655_v31 = vshll.u32 %v1458_v28, 16  ;;  %v1969_v25 = vrot.slane %v1458_v28, 5  ;;  %v1051_v17 = vrot.slane %v1049_v49, 4  ;;  %v1054_v40 = vrot.slane %v1052_v39, 5 }
  0xc9   : > { %v2240_v42 = vshll.u32 %v9597_v13, 16  ;;  %v9604_v58 = vsel %vm3421_vm1, %v3378_v0, %v9486_v61  ;;  %3192 = vrot.lane.b32.xlu0 %v8099_v22, %s8857_s27  ;;  %v2237_v37 = vor.u32 %v2236_v41, %v2232_v32  ;;  %v9609_v44 = vrot.slane %v1058_v23, 5  ;;  %v2753_v61 = vpop.permute.xlu1 %2752  ;;  %v9621_v39 = vld [vmem:[#allocation2 + $0x68] sm:$0x1] }
  0xca   : > { %v1657_v7 = vrot.slane %v1655_v31, 5  ;;  %v1970_v15 = vsel %vm8943_vm9, %v1968_v8, %v1969_v25  ;;  %v9611_v20 = vld [vmem:[#allocation2 + $0x70] sm:$0xf]  ;;  %v2233_v19 = vsel %vm8972_vm13, %v2228_v59, %v2232_v32  ;;  %v1055_v63 = vor.u32 %v1054_v40, %v1051_v17 }
  0xcb   : > { %v2242_v62 = vrot.slane %v2240_v42, 5  ;;  %v1064_v51 = vrot.slane %v1062_v29, 4  ;;  %v2042_v9 = vld [vmem:[#allocation2 + $0x6c] sm:$0xf]  ;;  %v2258_v8 = vshrl.u32 %v9611_v20, 16  ;;  %v2254_v22 = vshll.u32 %v9611_v20, 16  ;;  %v9619_v16 = vpop.permute.xlu0 %3260 }
  0xcc   : > { %v1658_v0 = vsel %vm8972_vm13, %v1653_v34, %v1657_v7  ;;  %v2238_v5 = vrot.slane %v2237_v37, 4  ;;  %v2245_v12 = vshrl.u32 %v2042_v9, 16  ;;  %v2248_v41 = vshll.u32 %v2042_v9, 16  ;;  %v753_v49 = vld [vmem:[#allocation2 + $0x74] sm:$0x1] }
  0xcd   : > { %v8068_v27 = vcombine.low %v1648_v56, %v1658_v0  ;;  %v9627_v28 = vsel %vm3372_vm15, %v7999_v35, %v2753_v61  ;;  %v754_v34 = vsel %vm8905_vm3, %v523_v30, %v753_v49  ;;  %v9633_v59 = vrot.slane %v2254_v22, 5  ;;  %v823_v35 = vld [vmem:[#allocation2 + $0x6c] sm:$0xf]  ;;  %v9651_v37 = vpop.permute.xlu1 %2754 }
  0xce   : > { %v2260_v23 = vrot.slane %v2258_v8, 4  ;;  %v2243_v56 = vsel %vm8972_vm13, %v2238_v5, %v2242_v62  ;;  %v8084_v31 = vcombine.low %v9567_v6, %v1970_v15  ;;  %v2247_v25 = vrot.slane %v2245_v12, 4  ;;  %755 = vst [vmem:[#allocation2 + $0x74] sm:$0x1] %v754_v34  ;;  %v9649_v15 = vld [vmem:[#allocation2 + $0x70] sm:$0xf] }
  0xcf   : > { %3018 = vrot.lane.b32.xlu1 %v8068_v27, %s8860_s30  ;;  %v2250_v45 = vrot.slane %v2248_v41, 5  ;;  %v8115_v36 = vcombine.low %v2233_v19, %v2243_v56  ;;  %v9639_v32 = vrot.slane %v1055_v63, 4  ;;  %v1065_v46 = vor.u32 %v1064_v51, %v9609_v44  ;;  %v9643_v17 = vpop.permute.xlu0 %2832  ;;  %v2467_v5 = vld [vmem:[#allocation2 + $0x6c] sm:$0xe] }
  0xd0   : > { %v1068_v30 = vshll.u32 %v9621_v39, 16  ;;  %v7987_v42 = vrot.slane %v2466_v60, 9  ;;  %v2261_v29 = vor.u32 %v2260_v23, %v9633_v59  ;;  %v2568_v6 = vrot.slane %v9552_v4, 5  ;;  %v1249_v23 = vld [vmem:[#allocation2 + $0x6c] sm:$0xe] }
  0xd1   : > { %v2251_v40 = vor.u32 %v2250_v45, %v2247_v25  ;;  %3272 = vrot.lane.b32.xlu0 %v8115_v36, %s8861_s6  ;;  %v2571_v7 = vrot.slane %v9597_v13, 5  ;;  %v8100_v19 = vcombine.low %v2042_v9, %v9611_v20  ;;  %v1066_v62 = vrot.slane %v1065_v46, 4 }
  0xd2   : > { %v1070_v63 = vrot.slane %v1068_v30, 5  ;;  %v1073_v51 = vshrl.u32 %v823_v35, 16  ;;  %v2569_v61 = vsel %vm8943_vm9, %v7987_v42, %v2568_v6  ;;  %v2570_v0 = vrot.slane %v2568_v6, 4  ;;  %v9675_v42 = vpop.permute.xlu1 %2834 }
  0xd3   : > { %3098 = vrot.lane.b32.xlu1 %v8084_v31, %s8858_s28  ;;  %v2252_v60 = vrot.slane %v2251_v40, 4  ;;  %v1076_v8 = vshll.u32 %v823_v35, 16  ;;  %v1061_v4 = vsel %vm8972_vm13, %v9639_v32, %v9609_v44  ;;  %v1082_v22 = vshll.u32 %v9649_v15, 16  ;;  %v9663_v27 = vpop.permute.xlu0 %2928 }
  0xd4   : > { %v1075_v13 = vrot.slane %v1073_v51, 4  ;;  %v1086_v9 = vshrl.u32 %v9649_v15, 16  ;;  %v2262_v12 = vrot.slane %v2261_v29, 4  ;;  %v1071_v41 = vsel %vm8972_vm13, %v1066_v62, %v1070_v63 }
  0xd5   : > { %v2572_v49 = vsel %vm8943_vm9, %v2570_v0, %v2571_v7  ;;  %v1078_v34 = vrot.slane %v1076_v8, 5  ;;  %v2067_v56 = vld [vmem:[#allocation2 + $0x74] sm:$0x1]  ;;  %v2257_v44 = vsel %vm8972_vm13, %v2252_v60, %v9633_v59  ;;  %v9672_v45 = vrot.slane %v1082_v22, 5  ;;  %v1248_v7 = vld [vmem:[#allocation2 + $0x60] sm:$0xe] }
  0xd6   : > { %v8131_v31 = vcombine.low %v2569_v61, %v2572_v49  ;;  %v846_v25 = vld [vmem:[#allocation2 + $0x74] sm:$0x1]  ;;  %v1088_v36 = vrot.slane %v1086_v9, 4  ;;  %v2264_v35 = vshll.u32 %v2067_v56, 16  ;;  %v7988_v30 = vrot.slane %v2467_v5, 9 }
  0xd7   : > { %3194 = vrot.lane.b32.xlu1 %v8100_v19, %s8857_s27  ;;  %v1079_v32 = vor.u32 %v1078_v34, %v1075_v13  ;;  %v1092_v46 = vshll.u32 %v846_v25, 16  ;;  %v2575_v29 = vrot.slane %v9611_v20, 5  ;;  %v2578_v59 = vrot.slane %v2067_v56, 5  ;;  %v9680_v62 = vpop.permute.xlu0 %3008  ;;  %v9683_v61 = vld [vmem:[#allocation2 + $0x6c] sm:$0xf] }
  0xd8   : > { %3352 = vrot.lane.b32.xlu0 %v8131_v31, %s8859_s29  ;;  %v1089_v40 = vor.u32 %v1088_v36, %v9672_v45  ;;  %v7958_v6 = vrot.slane %v1249_v23, 9  ;;  %v2266_v63 = vrot.slane %v2264_v35, 5  ;;  %v1372_v60 = vrot.slane %v9649_v15, 5  ;;  %v9687_v22 = vld [vmem:[#allocation2 + $0x70] sm:$0xf] }
  0xd9   : > { %v1080_v19 = vrot.slane %v1079_v32, 4  ;;  %v1094_v51 = vrot.slane %v1092_v46, 5  ;;  %v2576_v8 = vsel %vm8943_vm9, %v7988_v30, %v2575_v29  ;;  %v2577_v13 = vrot.slane %v2575_v29, 4  ;;  %v244_v34 = vld [vmem:[%s8952_s23 + $0x48] sm:$0xf] }
  0xda   : > { %v1090_v0 = vrot.slane %v1089_v40, 4  ;;  %v1375_v20 = vrot.slane %v846_v25, 5  ;;  %v2267_v9 = vsel %vm8972_vm13, %v2262_v12, %v2266_v63  ;;  %v8021_v5 = vcombine.low %v1061_v4, %v1071_v41  ;;  %v298_v23 = vld [vmem:[#allocation2 + $0x78] sm:$0x1]  ;;  %v245_v35 = vld [vmem:[%s8952_s23 + $0x4c] sm:$0xf] }
  0xdb   : > { %v1374_v49 = vrot.slane %v1372_v60, 4  ;;  %v8053_v15 = vcombine.low %v9683_v61, %v9687_v22  ;;  %v8116_v56 = vcombine.low %v2257_v44, %v2267_v9  ;;  %v1085_v31 = vsel %vm8972_vm13, %v1080_v19, %v9672_v45  ;;  %v9707_v44 = vpop.permute.xlu1 %2930  ;;  %v9709_v46 = vpop.permute.xlu0 %3088 }
  0xdc   : > { %v2579_v25 = vsel %vm8943_vm9, %v2577_v13, %v2578_v59  ;;  %v7957_v36 = vrot.slane %v1248_v7, 9  ;;  %v1095_v12 = vsel %vm8972_vm13, %v1090_v0, %v1094_v51  ;;  %v9704_v41 = vsel %vm8943_vm9, %v7958_v6, %v1372_v60 }
  0xdd   : > { %v8132_v4 = vcombine.low %v2576_v8, %v2579_v25  ;;  %v1365_v32 = vrot.slane %v9577_v43, 5  ;;  %3274 = vrot.lane.b32.xlu1 %v8116_v56, %s8861_s6  ;;  %v9714_v45 = vsel %vm8943_vm9, %v1374_v49, %v1375_v20  ;;  %v1368_v30 = vrot.slane %v9621_v39, 5  ;;  %v8735_v43 = vld [vmem:[%s12837_s1 + $0x10] ss:$0 sps:$4 sm:$0x33]   ;;  %v8736_v56 = vld [vmem:[%s12837_s1 + $0x8] sm:$0xff]  }
  0xde   : > { %v299_v40 = vsel %vm8905_vm3, 0, %v298_v23  ;;  %v525_v29 = vshrl.u32 %v244_v34, 16  ;;  %v528_v7 = vshll.u32 %v244_v34, 16  ;;  %v533_v63 = vshrl.u32 %v245_v35, 16  ;;  %v348_v20 = vld [vmem:[#allocation2 + $0x80] sm:$0x1] }
  0xdf   : > { %3354 = vrot.lane.b32.xlu0 %v8132_v4, %s8859_s29  ;;  %v1366_v59 = vsel %vm8943_vm9, %v7957_v36, %v1365_v32  ;;  %v1367_v6 = vrot.slane %v1365_v32, 4  ;;  %300 = vst [vmem:[#allocation2 + $0x78] sm:$0x1] %v299_v40  ;;  %v536_v51 = vshll.u32 %v245_v35, 16  ;;  %v1660_v39 = vshrl.u32 %v9683_v61, 16  ;;  %v9738_v32 = vpop.permute.xlu1 %3010 }
  0xe0   : > { %v527_v19 = vrot.slane %v525_v29, 7  ;;  %v1663_v60 = vshll.u32 %v9683_v61, 16  ;;  %v9729_v8 = vrot.slane %v533_v63, 7  ;;  %v1673_v13 = vshrl.u32 %v9687_v22, 16  ;;  %v1459_v4 = vld [vmem:[#allocation2 + $0x74] sm:$0x1] }
  0xe1   : > { %v1369_v0 = vsel %vm8943_vm9, %v1367_v6, %v1368_v30  ;;  %vm12842_vm4 = vcmask 1041408   ;;  %2764 = vrot.lane.b32.xlu1 %v8021_v5, %s8855_s25  ;;  %v8022_v9 = vcombine.low %v1085_v31, %v1095_v12  ;;  %v1662_v23 = vrot.slane %v1660_v39, 4  ;;  %v9740_v30 = vpop.permute.xlu0 %3184  ;;  %v1859_v29 = vld [vmem:[#allocation2 + $0x6c] sm:$0xe] }
  0xe2   : > { %v8037_v49 = vcombine.low %v1366_v59, %v1369_v0  ;;  %v531_v34 = vrot.slane %v527_v19, 4  ;;  %8698 = vmatprep.subr.msk.bf16.mxu0 %vm12842_vm4, %v8735_v43  ;;  %v530_v25 = vor.u32 %v528_v7, %v527_v19  ;;  %v538_v36 = vor.u32 %v536_v51, %v9729_v8  ;;  %v301_v0 = vld [vmem:[#allocation2 + $0x84] sm:$0x1] }
  0xe3   : > { %v1665_v35 = vrot.slane %v1663_v60, 5  ;;  %vm3487_vm6 = vcmask 130048   ;;  %v8038_v5 = vcombine.low %v9704_v41, %v9714_v45  ;;  %v3714_v31 = vsel %vm12842_vm4, %v8735_v43, 0  ;;  %v9780_v61 = vpop.permute.xlu1 %3090 }
  0xe4   : > { %2844 = vrot.lane.b32.xlu0 %v8037_v49, %s8854_s24  ;;  %v349_v12 = vsel %vm8920_vm5, 0, %v348_v20  ;;  %v1669_v40 = vshll.u32 %v9687_v22, 16  ;;  %v539_v59 = vsel %vm8979_vm14, %v531_v34, %v538_v36  ;;  %v3458_v6 = vsel %vm3454_vm2, %v9604_v58, %v9434_v48  ;;  %8623 = vmatpush3.bf16.msra.mxu0 %v3714_v31  ;;  %v8737_v48 = vld [vmem:[%s12837_s1] sm:$0xff]  }
  0xe5   : > { %350 = vst [vmem:[#allocation2 + $0x80] sm:$0x1] %v349_v12  ;;  %v1666_v41 = vor.u32 %v1665_v35, %v1662_v23  ;;  %v1675_v45 = vrot.slane %v1673_v13, 4  ;;  %2766 = vrot.lane.b32.xlu1 %v8022_v9, %s8855_s25  ;;  %759 = vst.msk [vmem:[#allocation2 + $0x7c] sm:$0xf] %vm258_vm0, %v539_v59  ;;  %v1679_v63 = vshll.u32 %v1459_v4, 16  ;;  %8624 = vmatprep.subr.bf16.mxu0 %v8736_v56 }
  0xe6   : > { %v756_v43 = vld [vmem:[#allocation2 + $0x78] sm:$0xf]  ;;  %v1671_v7 = vrot.slane %v1669_v40, 5  ;;  %vm3520_vm7 = vcmask 162816   ;;  %v3489_v19 = vsel %vm3487_vm6, %v9595_v54, %v9587_v21  ;;  %v7973_v60 = vrot.slane %v1859_v29, 9 }
  0xe7   : > { %v757_v58 = vsel %vm8965_vm12, %v530_v25, %v756_v43  ;;  %v1667_v51 = vrot.slane %v1666_v41, 4  ;;  %v3522_v39 = vsel %vm3520_vm7, %v3489_v19, %v9452_v3  ;;  %v1681_v54 = vrot.slane %v1679_v63, 5  ;;  %v246_v9 = vld [vmem:[%s8952_s23 + $0x50] sm:$0xf]  ;;  %v247_v23 = vld [vmem:[%s8952_s23 + $0x54] sm:$0xf] }
  0xe8   : > { %758 = vst [vmem:[#allocation2 + $0x78] sm:$0xf] %v757_v58  ;;  %2940 = vrot.lane.b32.xlu0 %v8053_v15, %s8856_s26  ;;  %v1676_v21 = vor.u32 %v1675_v45, %v1671_v7  ;;  %v1973_v13 = vrot.slane %v9687_v22, 5  ;;  %v1976_v20 = vrot.slane %v1459_v4, 5  ;;  %v540_v49 = vrot.slane %v9729_v8, 4  ;;  %8625 = vmatpush3.bf16.msra.mxu0 %v8736_v56  ;;  %v9782_v15 = vpop.permute.xlu0 %3264 }
  0xe9   : > { %v9775_v34 = vsel %vm3487_vm6, %v3458_v6, %v9550_v53  ;;  %v1672_v3 = vsel %vm8972_vm13, %v1667_v51, %v1671_v7  ;;  %vm3553_vm8 = vcmask 195584   ;;  %2846 = vrot.lane.b32.xlu1 %v8038_v5, %s8854_s24  ;;  %8626 = vmatprep.subr.bf16.mxu0 %v8737_v48  ;;  %v3384_v53 = vsel %vm3372_vm15, %v8000_v38, %v9651_v37  ;;  %v9809_v51 = vpop.permute.xlu1 %3186 }
  0xea   : > { %v1677_v22 = vrot.slane %v1676_v21, 4  ;;  %v1975_v25 = vrot.slane %v1973_v13, 4  ;;  %vm3586_vm10 = vcmask 228352   ;;  %v3555_v8 = vsel %vm3553_vm8, %v3522_v39, %v9442_v55 }
  0xeb   : > { %v302_v56 = vsel %vm8905_vm3, 0, %v301_v0  ;;  %v542_v36 = vshrl.u32 %v246_v9, 16  ;;  %v545_v35 = vshll.u32 %v246_v9, 16  ;;  %v1974_v31 = vsel %vm8943_vm9, %v7973_v60, %v1973_v13 }
  0xec   : > { %v760_v4 = vld [vmem:[#allocation2 + $0x80] sm:$0x1]  ;;  %v1682_v5 = vsel %vm8972_vm13, %v1677_v22, %v1681_v54  ;;  %v1977_v24 = vsel %vm8943_vm9, %v1975_v25, %v1976_v20  ;;  %303 = vst [vmem:[#allocation2 + $0x84] sm:$0x1] %v302_v56  ;;  %v550_v26 = vshrl.u32 %v247_v23, 16  ;;  %8627 = vmatpush3.bf16.msra.mxu0 %v8737_v48  ;;  %v553_v40 = vshll.u32 %v247_v23, 16  ;;  %v9811_v39 = vpop.permute.xlu0 %3344 }
  0xed   : > { %v1438_v38 = vld [vmem:[#allocation2 + $0x7c] sm:$0xf]  ;;  %v761_v55 = vsel %vm8905_vm3, %v540_v49, %v760_v4  ;;  %v8069_v37 = vcombine.low %v1672_v3, %v1682_v5  ;;  %v544_v12 = vrot.slane %v542_v36, 7  ;;  %v3588_v6 = vsel %vm3586_vm10, %v3555_v8, %v9619_v16 }
  0xee   : > { %v1697_v29 = vshrl.u32 %v1438_v38, 16  ;;  %762 = vst [vmem:[#allocation2 + $0x80] sm:$0x1] %v761_v55  ;;  %v1693_v59 = vshll.u32 %v1438_v38, 16  ;;  %v9804_v41 = vrot.slane %v550_v26, 7  ;;  %v1980_v63 = vrot.slane %v1438_v38, 5 }
  0xef   : > { %v9806_v45 = vld [vmem:[#allocation2 + $0x7c] sm:$0xf]  ;;  %v1437_v43 = vld [vmem:[#allocation2 + $0x78] sm:$0xf]  ;;  %3020 = vrot.lane.b32.xlu0 %v8069_v37, %s8860_s30  ;;  %v8085_v19 = vcombine.low %v1974_v31, %v1977_v24  ;;  %v547_v58 = vor.u32 %v545_v35, %v544_v12  ;;  %v548_v48 = vrot.slane %v544_v12, 4  ;;  %v9817_v49 = vsel %vm3421_vm1, %v3384_v53, %v9675_v42 }
  0xf0   : > { %v1860_v7 = vld [vmem:[#allocation2 + $0x78] sm:$0xe]  ;;  %v1684_v60 = vshrl.u32 %v1437_v43, 16  ;;  %v1687_v0 = vshll.u32 %v1437_v43, 16  ;;  %v8054_v21 = vcombine.low %v1437_v43, %v1438_v38  ;;  %v1695_v16 = vrot.slane %v1693_v59, 5 }
  0xf1   : > { %v2044_v54 = vld [vmem:[#allocation2 + $0x78] sm:$0xf]  ;;  %v1699_v13 = vrot.slane %v1697_v29, 4  ;;  %v555_v20 = vor.u32 %v553_v40, %v9804_v41  ;;  %v2282_v9 = vshrl.u32 %v9806_v45, 16  ;;  %v7974_v22 = vrot.slane %v1860_v7, 9 }
  0xf2   : > { %v1686_v3 = vrot.slane %v1684_v60, 4  ;;  %v1689_v23 = vrot.slane %v1687_v0, 5  ;;  %2942 = vrot.lane.b32.xlu1 %v8054_v21, %s8856_s26  ;;  %v2269_v25 = vshrl.u32 %v2044_v54, 16  ;;  %v1982_v56 = vrot.slane %v1980_v63, 4  ;;  %v351_v24 = vld [vmem:[#allocation2 + $0x8c] sm:$0x1] }
  0xf3   : > { %v1700_v8 = vor.u32 %v1699_v13, %v1695_v16  ;;  %3100 = vrot.lane.b32.xlu0 %v8085_v19, %s8858_s28  ;;  %v556_v36 = vsel %vm8979_vm14, %v548_v48, %v555_v20  ;;  %v763_v35 = vld [vmem:[#allocation2 + $0x84] sm:$0xf]  ;;  %v2272_v4 = vshll.u32 %v2044_v54, 16  ;;  %v8101_v31 = vcombine.low %v2044_v54, %v9806_v45  ;;  %v9829_v12 = vpop.permute.xlu0 %3346  ;;  %v825_v13 = vld [vmem:[#allocation2 + $0x78] sm:$0xf] }
  0xf4   : > { %v1690_v5 = vor.u32 %v1689_v23, %v1686_v3  ;;  %v764_v42 = vsel %vm8965_vm12, %v547_v58, %v763_v35  ;;  %766 = vst.msk [vmem:[#allocation2 + $0x88] sm:$0xf] %vm258_vm0, %v556_v36  ;;  %v2271_v53 = vrot.slane %v2269_v25, 4  ;;  %vm3619_vm11 = vcmask 261120   ;;  %v9827_v37 = vpop.permute.xlu1 %3266 }
  0xf5   : > { %v1460_v26 = vld [vmem:[#allocation2 + $0x80] sm:$0x1]  ;;  %v1701_v38 = vrot.slane %v1700_v8, 4  ;;  %765 = vst [vmem:[#allocation2 + $0x84] sm:$0xf] %v764_v42  ;;  %v2274_v55 = vrot.slane %v2272_v4, 5  ;;  %v3621_v43 = vsel %vm3619_vm11, %v3588_v6, %v9488_v52  ;;  %v1981_v7 = vsel %vm8943_vm9, %v7974_v22, %v1980_v63 }
  0xf6   : > { %vm12843_vm4 = vcmask 293888   ;;  %v1691_v40 = vrot.slane %v1690_v5, 4  ;;  %v1703_v29 = vshll.u32 %v1460_v26, 16  ;;  %v1983_v59 = vrot.slane %v1460_v26, 5  ;;  %v9842_v48 = vld [vmem:[#allocation2 + $0x80] sm:$0x1] }
  0xf7   : > { %3196 = vrot.lane.b32.xlu0 %v8101_v31, %s8857_s27  ;;  %8628 = vmatprep.mubr.msk.bf16.mxu0 %vm12843_vm4, %v3621_v43  ;;  %v3524_v19 = vsel %vm3520_vm7, %v9775_v34, %v9519_v11  ;;  %v352_v58 = vsel %vm8920_vm5, 0, %v351_v24  ;;  %v2275_v60 = vor.u32 %v2274_v55, %v2271_v53  ;;  %v557_v21 = vrot.slane %v9804_v41, 4  ;;  %v9865_v8 = vld [vmem:[#allocation2 + $0x7c] sm:$0xf]  ;;  %v2468_v31 = vld [vmem:[#allocation2 + $0x78] sm:$0xe] }
  0xf8   : > { %v1696_v52 = vsel %vm8972_vm13, %v1691_v40, %v1695_v16  ;;  %v1705_v6 = vrot.slane %v1703_v29, 5  ;;  %v1984_v63 = vsel %vm8943_vm9, %v1982_v56, %v1983_v59  ;;  %v3557_v0 = vsel %vm3553_vm8, %v3524_v19, %v9450_v18  ;;  %353 = vst [vmem:[#allocation2 + $0x8c] sm:$0x1] %v352_v58  ;;  %v9867_v56 = vpop.permute.xlu1 %2756  ;;  %v9879_v55 = vld [vmem:[#allocation2 + $0x80] sm:$0x1] }
  0xf9   : > { %v3590_v11 = vsel %vm3586_vm10, %v3557_v0, %v9583_v33  ;;  %v2276_v34 = vrot.slane %v2275_v60, 4  ;;  %v2278_v54 = vshll.u32 %v9806_v45, 16  ;;  %v2284_v3 = vrot.slane %v2282_v9, 4  ;;  %v9869_v36 = vpop.permute.xlu0 %2836 }
  0xfa   : > { %v1706_v16 = vsel %vm8972_vm13, %v1701_v38, %v1705_v6  ;;  %v3623_v20 = vsel %vm3619_vm11, %v3590_v11, %v9521_v10  ;;  %v2288_v23 = vshll.u32 %v9842_v48, 16  ;;  %v8086_v22 = vcombine.low %v1981_v7, %v1984_v63 }
  0xfb   : > { %v8070_v18 = vcombine.low %v1696_v52, %v1706_v16  ;;  %v9859_v25 = vld [vmem:[#allocation2 + $0x88] sm:$0xf]  ;;  %8629 = vmatmul.mubr.msk.bf16.vlgmr.msra.gmra.mxu0 %vm12843_vm4, %v3623_v20  ;;  %v3427_v33 = vsel %vm3421_vm1, %v9627_v28, %v9643_v17  ;;  %v2280_v41 = vrot.slane %v2278_v54, 5  ;;  %v1097_v5 = vshrl.u32 %v825_v13, 16 }
  0xfc   : > { %v2046_v10 = vld [vmem:[#allocation2 + $0x84] sm:$0xf]  ;;  %v2306_v9 = vshrl.u32 %v9859_v25, 16  ;;  %v2302_v35 = vshll.u32 %v9859_v25, 16  ;;  %v2290_v4 = vrot.slane %v2288_v23, 5  ;;  %v1100_v7 = vshll.u32 %v825_v13, 16  ;;  %v9888_v54 = vpop.permute.xlu1 %2758 }
  0xfd   : > { %3022 = vrot.lane.b32.xlu1 %v8070_v18, %s8860_s30  ;;  %v2293_v42 = vshrl.u32 %v2046_v10, 16  ;;  %v2296_v53 = vshll.u32 %v2046_v10, 16  ;;  %v8102_v28 = vcombine.low %v2046_v10, %v9859_v25  ;;  %v2281_v17 = vsel %vm8972_vm13, %v2276_v34, %v2280_v41  ;;  %v9890_v13 = vpop.permute.xlu0 %2932  ;;  %v827_v23 = vld [vmem:[#allocation2 + $0x84] sm:$0xf] }
  0xfe   : > { %v9877_v24 = vrot.slane %v2302_v35, 5  ;;  %v2308_v26 = vrot.slane %v2306_v9, 4  ;;  %v2285_v38 = vor.u32 %v2284_v3, %v2280_v41  ;;  %v1099_v40 = vrot.slane %v1097_v5, 4 }
  0xff   : > { %v2295_v29 = vrot.slane %v2293_v42, 4  ;;  %v2298_v59 = vrot.slane %v2296_v53, 5  ;;  %v767_v43 = vld [vmem:[#allocation2 + $0x8c] sm:$0x1]  ;;  %v1106_v19 = vshll.u32 %v9865_v8, 16  ;;  %v1110_v6 = vshrl.u32 %v9865_v8, 16 }
 0x100   : > { %v768_v58 = vsel %vm8905_vm3, %v557_v21, %v767_v43  ;;  %v2309_v60 = vor.u32 %v2308_v26, %v9877_v24  ;;  %v2286_v52 = vrot.slane %v2285_v38, 4  ;;  %v1102_v0 = vrot.slane %v1100_v7, 5 }
 0x101   : > { %3102 = vrot.lane.b32.xlu1 %v8086_v22, %s8858_s28  ;;  %769 = vst [vmem:[#allocation2 + $0x8c] sm:$0x1] %v768_v58  ;;  %v2299_v63 = vor.u32 %v2298_v59, %v2295_v29  ;;  %v1108_v11 = vrot.slane %v1106_v19, 5  ;;  %v1116_v34 = vshll.u32 %v9879_v55, 16  ;;  %v3462_v16 = vsel %vm3454_vm2, %v9817_v49, %v9707_v44  ;;  %v9913_v29 = vpop.permute.xlu1 %2838 }
 0x102   : > { %v2291_v21 = vsel %vm8972_vm13, %v2286_v52, %v2290_v4  ;;  %v1112_v20 = vrot.slane %v1110_v6, 4  ;;  %v7989_v3 = vrot.slane %v2468_v31, 9  ;;  %v2310_v18 = vrot.slane %v2309_v60, 4  ;;  %v9901_v4 = vld [vmem:[#allocation2 + $0x88] sm:$0xf]  ;;  %v9915_v59 = vpop.permute.xlu0 %3012 }
 0x103   : > { %v8117_v22 = vcombine.low %v2281_v17, %v2291_v21  ;;  %v3460_v41 = vsel %vm3454_vm2, %v3427_v33, %v9663_v27  ;;  %v1103_v10 = vor.u32 %v1102_v0, %v1099_v40  ;;  %v1118_v35 = vrot.slane %v1116_v34, 5  ;;  %v2469_v27 = vld [vmem:[#allocation2 + $0x84] sm:$0xe] }
 0x104   : > { %v1113_v9 = vor.u32 %v1112_v20, %v1108_v11  ;;  %v2582_v5 = vrot.slane %v9806_v45, 5  ;;  %v2585_v42 = vrot.slane %v9842_v48, 5  ;;  %v2300_v44 = vrot.slane %v2299_v63, 4  ;;  %v1251_v20 = vld [vmem:[#allocation2 + $0x84] sm:$0xe] }
 0x105   : > { %3198 = vrot.lane.b32.xlu1 %v8102_v28, %s8857_s27  ;;  %3276 = vrot.lane.b32.xlu0 %v8117_v22, %s8861_s6  ;;  %v1104_v49 = vrot.slane %v1103_v10, 4  ;;  %v3495_v53 = vsel %vm3487_vm6, %v3462_v16, %v9738_v32  ;;  %v1121_v17 = vshrl.u32 %v827_v23, 16  ;;  %v1124_v26 = vshll.u32 %v827_v23, 16 }
 0x106   : > { %v1114_v33 = vrot.slane %v1113_v9, 4  ;;  %v2583_v31 = vsel %vm8943_vm9, %v7989_v3, %v2582_v5  ;;  %v2584_v45 = vrot.slane %v2582_v5, 4  ;;  %v1130_v28 = vshll.u32 %v9901_v4, 16 }
 0x107   : > { %v1109_v48 = vsel %vm8972_vm13, %v1104_v49, %v1108_v11  ;;  %v1123_v38 = vrot.slane %v1121_v17, 4  ;;  %v1134_v40 = vshrl.u32 %v9901_v4, 16  ;;  %v1126_v58 = vrot.slane %v1124_v26, 5 }
 0x108   : > { %v2069_v32 = vld [vmem:[#allocation2 + $0x8c] sm:$0x1]  ;;  %v1119_v43 = vsel %vm8972_vm13, %v1114_v33, %v1118_v35  ;;  %v2586_v7 = vsel %vm8943_vm9, %v2584_v45, %v2585_v42  ;;  %v7990_v60 = vrot.slane %v2469_v27, 9  ;;  %v2305_v52 = vsel %vm8972_vm13, %v2300_v44, %v9877_v24  ;;  %v1250_v42 = vld [vmem:[#allocation2 + $0x78] sm:$0xe]  ;;  %v9933_v27 = vpop.permute.xlu1 %2934  ;;  %v9935_v33 = vpop.permute.xlu0 %3092 }
 0x109   : > { %v848_v19 = vld [vmem:[#allocation2 + $0x8c] sm:$0x1]  ;;  %v2312_v6 = vshll.u32 %v2069_v32, 16  ;;  %v8133_v63 = vcombine.low %v2583_v31, %v2586_v7  ;;  %v1132_v0 = vrot.slane %v1130_v28, 5  ;;  %v1127_v11 = vor.u32 %v1126_v58, %v1123_v38  ;;  %v304_v38 = vld [vmem:[#allocation2 + $0x90] sm:$0x1] }
 0x10a   : > { %v1136_v34 = vrot.slane %v1134_v40, 4  ;;  %v1140_v21 = vshll.u32 %v848_v19, 16  ;;  %v2589_v16 = vrot.slane %v9859_v25, 5  ;;  %v8023_v23 = vcombine.low %v1109_v48, %v1119_v43  ;;  %v248_v7 = vld [vmem:[%s8952_s23 + $0x58] sm:$0xf] }
 0x10b   : > { %v2314_v3 = vrot.slane %v2312_v6, 5  ;;  %3356 = vrot.lane.b32.xlu0 %v8133_v63, %s8859_s29  ;;  %v3493_v22 = vsel %vm3487_vm6, %v3460_v41, %v9680_v62  ;;  %v2592_v10 = vrot.slane %v2069_v32, 5  ;;  %v1128_v9 = vrot.slane %v1127_v11, 4  ;;  %v9960_v6 = vld [vmem:[#allocation2 + $0x88] sm:$0xf] }
 0x10c   : > { %v1137_v35 = vor.u32 %v1136_v34, %v1132_v0  ;;  %v1142_v24 = vrot.slane %v1140_v21, 5  ;;  %v2590_v5 = vsel %vm8943_vm9, %v7990_v60, %v2589_v16  ;;  %v2591_v25 = vrot.slane %v2589_v16, 4 }
 0x10d   : > { %v2315_v44 = vsel %vm8972_vm13, %v2310_v18, %v2314_v3  ;;  %v7960_v49 = vrot.slane %v1251_v20, 9  ;;  %v1386_v17 = vrot.slane %v9901_v4, 5  ;;  %v1133_v41 = vsel %vm8972_vm13, %v1128_v9, %v1132_v0  ;;  %v9971_v20 = vpop.permute.xlu0 %3188 }
 0x10e   : > { %v8118_v62 = vcombine.low %v2305_v52, %v2315_v44  ;;  %v1138_v31 = vrot.slane %v1137_v35, 4  ;;  %v1389_v45 = vrot.slane %v848_v19, 5  ;;  %v2593_v26 = vsel %vm8943_vm9, %v2591_v25, %v2592_v10  ;;  %v249_v19 = vld [vmem:[%s8952_s23 + $0x5c] sm:$0xf]  ;;  %v1439_v52 = vld [vmem:[#allocation2 + $0x84] sm:$0xf] }
 0x10f   : > { %v3528_v18 = vsel %vm3520_vm7, %v3495_v53, %v9780_v61  ;;  %v1388_v48 = vrot.slane %v1386_v17, 4  ;;  %v7959_v4 = vrot.slane %v1250_v42, 9  ;;  %v8134_v40 = vcombine.low %v2590_v5, %v2593_v26  ;;  %v354_v42 = vld [vmem:[#allocation2 + $0x98] sm:$0x1] }
 0x110   : > { %3278 = vrot.lane.b32.xlu1 %v8118_v62, %s8861_s6  ;;  %v1143_v28 = vsel %vm8972_vm13, %v1138_v31, %v1142_v24  ;;  %v1379_v32 = vrot.slane %v9865_v8, 5  ;;  %v1382_v43 = vrot.slane %v9879_v55, 5  ;;  %v3526_v60 = vsel %vm3520_vm7, %v3493_v22, %v9709_v46 }
 0x111   : > { %v8024_v58 = vcombine.low %v1133_v41, %v1143_v28  ;;  %v9954_v61 = vsel %vm8943_vm9, %v7960_v49, %v1386_v17  ;;  %v9958_v53 = vsel %vm8943_vm9, %v1388_v48, %v1389_v45  ;;  %3358 = vrot.lane.b32.xlu0 %v8134_v40, %s8859_s29  ;;  %v3561_v46 = vsel %vm3553_vm8, %v3528_v18, %v9809_v51  ;;  %v9969_v16 = vpop.permute.xlu1 %3014  ;;  %v9984_v17 = vld [vmem:[#allocation2 + $0x8c] sm:$0x1]  ;;  %v8797_v40 = vld [vmem:[#allocation2 + $0x30] sm:$0xf] }
 0x112   : > { %v1380_v8 = vsel %vm8943_vm9, %v7959_v4, %v1379_v32  ;;  %v1381_v55 = vrot.slane %v1379_v32, 4  ;;  %v305_v63 = vsel %vm8905_vm3, 0, %v304_v38  ;;  %v559_v0 = vshrl.u32 %v248_v7, 16  ;;  %v1861_v4 = vld [vmem:[#allocation2 + $0x84] sm:$0xe] }
 0x113   : > { %306 = vst [vmem:[#allocation2 + $0x90] sm:$0x1] %v305_v63  ;;  %v562_v11 = vshll.u32 %v248_v7, 16  ;;  %v567_v34 = vshrl.u32 %v249_v19, 16  ;;  %v570_v21 = vshll.u32 %v249_v19, 16  ;;  %v1708_v22 = vshrl.u32 %v1439_v52, 16 }
 0x114   : > { %2768 = vrot.lane.b32.xlu1 %v8023_v23, %s8855_s25  ;;  %v1383_v3 = vsel %vm8943_vm9, %v1381_v55, %v1382_v43  ;;  %v1711_v10 = vshll.u32 %v1439_v52, 16  ;;  %v1721_v51 = vshrl.u32 %v9960_v6, 16  ;;  %v3559_v35 = vsel %vm3553_vm8, %v3526_v60, %v9740_v30  ;;  %v8798_v32 = vld [vmem:[#allocation2 + $0x34] sm:$0xf]  ;;  %v250_v7 = vld [vmem:[%s8952_s23 + $0x60] sm:$0xf] }
 0x115   : > { %v8039_v9 = vcombine.low %v1380_v8, %v1383_v3  ;;  %v561_v24 = vrot.slane %v559_v0, 7  ;;  %v9979_v5 = vrot.slane %v567_v34, 7  ;;  %v8040_v44 = vcombine.low %v9954_v61, %v9958_v53  ;;  %v307_v19 = vld [vmem:[#allocation2 + $0x9c] sm:$0x1]  ;;  %v251_v34 = vld [vmem:[%s8952_s23 + $0x64] sm:$0xf] }
 0x116   : > { %v1710_v25 = vrot.slane %v1708_v22, 4  ;;  %v1713_v23 = vrot.slane %v1711_v10, 5  ;;  %v8055_v49 = vcombine.low %v1439_v52, %v9960_v6  ;;  %v3592_v31 = vsel %vm3586_vm10, %v3559_v35, %v9782_v15  ;;  %v10002_v60 = vpop.permute.xlu0 %3268  ;;  %v8799_v3 = vld [vmem:[#allocation2 + $0x3c] sm:$0xf]  ;;  %v8800_v22 = vld [vmem:[#allocation2 + $0x40] sm:$0xf] }
 0x117   : > { %2848 = vrot.lane.b32.xlu0 %v8039_v9, %s8854_s24  ;;  %v564_v62 = vor.u32 %v562_v11, %v561_v24  ;;  %v565_v41 = vrot.slane %v561_v24, 4  ;;  %v572_v30 = vor.u32 %v570_v21, %v9979_v5  ;;  %v355_v45 = vsel %vm8920_vm5, 0, %v354_v42 }
 0x118   : > { %2770 = vrot.lane.b32.xlu1 %v8024_v58, %s8855_s25  ;;  %v1714_v26 = vor.u32 %v1713_v23, %v1710_v25  ;;  %v1717_v18 = vshll.u32 %v9960_v6, 16  ;;  %v1723_v48 = vrot.slane %v1721_v51, 4  ;;  %356 = vst [vmem:[#allocation2 + $0x98] sm:$0x1] %v355_v45  ;;  %v1727_v28 = vshll.u32 %v9984_v17, 16  ;;  %v10000_v58 = vpop.permute.xlu1 %3094 }
 0x119   : > { %v573_v38 = vsel %vm8979_vm14, %v565_v41, %v572_v30  ;;  %v8001_v43 = vcombine.low %v8797_v40, %v8798_v32  ;;  %v3625_v15 = vsel %vm3619_vm11, %v3592_v31, %v9811_v39  ;;  %v3594_v53 = vsel %vm3586_vm10, %v3561_v46, %v9827_v37 }
 0x11a   : > { %v770_v61 = vld [vmem:[#allocation2 + $0x90] sm:$0xf]  ;;  %773 = vst.msk [vmem:[#allocation2 + $0x94] sm:$0xf] %vm258_vm0, %v573_v38  ;;  %v1715_v52 = vrot.slane %v1714_v26, 4  ;;  %v1719_v8 = vrot.slane %v1717_v18, 5  ;;  %8632 = vmatprep.mubr.msk.bf16.mxu0 %vm12843_vm4, %v3625_v15  ;;  %v8002_v10 = vcombine.low %v8799_v3, %v8800_v22  ;;  %v3627_v51 = vsel %vm3619_vm11, %v3594_v53, %v9829_v12 }
 0x11b   : > { %v1987_v55 = vrot.slane %v9960_v6, 5  ;;  %v574_v39 = vrot.slane %v9979_v5, 4  ;;  %v771_v63 = vsel %vm8965_vm12, %v564_v62, %v770_v61  ;;  %2944 = vrot.lane.b32.xlu0 %v8055_v49, %s8856_s26  ;;  %v1729_v0 = vrot.slane %v1727_v28, 5  ;;  %8633 = vmatmul.mubr.msk.bf16.gmra.mxu0 %vm12843_vm4, %v3627_v51 }
 0x11c   : > { %v7975_v11 = vrot.slane %v1861_v4, 9  ;;  %2850 = vrot.lane.b32.xlu1 %v8040_v44, %s8854_s24  ;;  %772 = vst [vmem:[#allocation2 + $0x90] sm:$0xf] %v771_v63  ;;  %v1724_v37 = vor.u32 %v1723_v48, %v1719_v8  ;;  %v3387_v46 = vsel %vm3372_vm15, %v8001_v43, %v9867_v56  ;;  %v1990_v21 = vrot.slane %v9984_v17, 5  ;;  %v10029_v49 = vpop.permute.xlu1 %3190 }
 0x11d   : > { %v1989_v6 = vrot.slane %v1987_v55, 4  ;;  %v308_v9 = vsel %vm8905_vm3, 0, %v307_v19  ;;  %v576_v35 = vshrl.u32 %v250_v7, 16  ;;  %v1720_v24 = vsel %vm8972_vm13, %v1715_v52, %v1719_v8  ;;  %v10031_v17 = vpop.permute.xlu0 %3348 }
 0x11e   : > { %v1725_v5 = vrot.slane %v1724_v37, 4  ;;  %309 = vst [vmem:[#allocation2 + $0x9c] sm:$0x1] %v308_v9  ;;  %v579_v42 = vshll.u32 %v250_v7, 16  ;;  %v584_v56 = vshrl.u32 %v251_v34, 16  ;;  %v1988_v44 = vsel %vm8943_vm9, %v7975_v11, %v1987_v55 }
 0x11f   : > { %v3390_v25 = vsel %vm3372_vm15, %v8002_v10, %v9888_v54  ;;  %v578_v12 = vrot.slane %v576_v35, 7  ;;  %v587_v23 = vshll.u32 %v251_v34, 16  ;;  %v774_v62 = vld [vmem:[#allocation2 + $0x98] sm:$0x1]  ;;  %v1991_v30 = vsel %vm8943_vm9, %v1989_v6, %v1990_v21  ;;  %v357_v6 = vld [vmem:[#allocation2 + $0xa4] sm:$0x1] }
 0x120   : > { %v1730_v41 = vsel %vm8972_vm13, %v1725_v5, %v1729_v0  ;;  %v10037_v31 = vrot.slane %v584_v56, 7  ;;  %v3433_v45 = vsel %vm3421_vm1, %v3390_v25, %v9913_v29  ;;  %v775_v54 = vsel %vm8905_vm3, %v574_v39, %v774_v62  ;;  %v10055_v3 = vpop.permute.xlu1 %3270 }
 0x121   : > { %v1442_v26 = vld [vmem:[#allocation2 + $0x94] sm:$0xf]  ;;  %v8071_v18 = vcombine.low %v1720_v24, %v1730_v41  ;;  %v581_v48 = vor.u32 %v579_v42, %v578_v12  ;;  %v582_v4 = vrot.slane %v578_v12, 4  ;;  %776 = vst [vmem:[#allocation2 + $0x98] sm:$0x1] %v775_v54  ;;  %v8087_v29 = vcombine.low %v1988_v44, %v1991_v30 }
 0x122   : > { %v10043_v38 = vld [vmem:[#allocation2 + $0x94] sm:$0xf]  ;;  %v1745_v28 = vshrl.u32 %v1442_v26, 16  ;;  %v1741_v40 = vshll.u32 %v1442_v26, 16  ;;  %v1994_v32 = vrot.slane %v1442_v26, 5  ;;  %v589_v43 = vor.u32 %v587_v23, %v10037_v31 }
 0x123   : > { %v1441_v15 = vld [vmem:[#allocation2 + $0x90] sm:$0xf]  ;;  %3024 = vrot.lane.b32.xlu0 %v8071_v18, %s8860_s30  ;;  %v591_v19 = vrot.slane %v10037_v31, 4  ;;  %v2330_v61 = vshrl.u32 %v10043_v38, 16  ;;  %v3431_v53 = vsel %vm3421_vm1, %v3387_v46, %v9869_v36  ;;  %v3466_v21 = vsel %vm3454_vm2, %v3433_v45, %v9933_v27 }
 0x124   : > { %v1862_v7 = vld [vmem:[#allocation2 + $0x90] sm:$0xe]  ;;  %v1732_v52 = vshrl.u32 %v1441_v15, 16  ;;  %v1735_v8 = vshll.u32 %v1441_v15, 16  ;;  %v8056_v55 = vcombine.low %v1441_v15, %v1442_v26  ;;  %v1743_v39 = vrot.slane %v1741_v40, 5  ;;  %v10057_v22 = vpop.permute.xlu0 %3350 }
 0x125   : > { %v2048_v63 = vld [vmem:[#allocation2 + $0x90] sm:$0xf]  ;;  %v1747_v0 = vrot.slane %v1745_v28, 4  ;;  %v7976_v11 = vrot.slane %v1862_v7, 9  ;;  %v590_v34 = vsel %vm8979_vm14, %v582_v4, %v589_v43  ;;  %v777_v37 = vld [vmem:[#allocation2 + $0x9c] sm:$0xf]  ;;  %v3464_v45 = vsel %vm3454_vm2, %v3431_v53, %v9890_v13 }
 0x126   : > { %v1734_v36 = vrot.slane %v1732_v52, 4  ;;  %v1737_v46 = vrot.slane %v1735_v8, 5  ;;  %2946 = vrot.lane.b32.xlu1 %v8056_v55, %s8856_s26  ;;  %v778_v10 = vsel %vm8965_vm12, %v581_v48, %v777_v37  ;;  %780 = vst.msk [vmem:[#allocation2 + $0xa0] sm:$0xf] %vm258_vm0, %v590_v34  ;;  %v2317_v51 = vshrl.u32 %v2048_v63, 16 }
 0x127   : > { %v1748_v9 = vor.u32 %v1747_v0, %v1743_v39  ;;  %v1996_v35 = vrot.slane %v1994_v32, 4  ;;  %3104 = vrot.lane.b32.xlu0 %v8087_v29, %s8858_s28  ;;  %779 = vst [vmem:[#allocation2 + $0x9c] sm:$0xf] %v778_v10  ;;  %v2320_v27 = vshll.u32 %v2048_v63, 16  ;;  %v8103_v24 = vcombine.low %v2048_v63, %v10043_v38  ;;  %v829_v25 = vld [vmem:[#allocation2 + $0x90] sm:$0xf] }
 0x128   : > { %v1738_v5 = vor.u32 %v1737_v46, %v1734_v36  ;;  %v2319_v42 = vrot.slane %v2317_v51, 4  ;;  %v358_v56 = vsel %vm8920_vm5, 0, %v357_v6  ;;  %v2326_v44 = vshll.u32 %v10043_v38, 16  ;;  %v1462_v12 = vld [vmem:[#allocation2 + $0x98] sm:$0x1]  ;;  %v10080_v15 = vpop.permute.xlu0 %2840 }
 0x129   : > { %v1749_v23 = vrot.slane %v1748_v9, 4  ;;  %v10070_v62 = vsel %vm8943_vm9, %v7976_v11, %v1994_v32  ;;  %v2322_v41 = vrot.slane %v2320_v27, 5  ;;  %359 = vst [vmem:[#allocation2 + $0xa4] sm:$0x1] %v358_v56  ;;  %v10072_v30 = vld [vmem:[#allocation2 + $0x98] sm:$0x1]  ;;  %v10078_v32 = vpop.permute.xlu1 %2760  ;;  %v10088_v53 = vsel %vm3487_vm6, %v3466_v21, %v9969_v16 }
 0x12a   : > { %v1739_v26 = vrot.slane %v1738_v5, 4  ;;  %v1751_v54 = vshll.u32 %v1462_v12, 16  ;;  %v1997_v18 = vrot.slane %v1462_v12, 5  ;;  %v2328_v48 = vrot.slane %v2326_v44, 5  ;;  %v10093_v63 = vld [vmem:[#allocation2 + $0x94] sm:$0xf] }
 0x12b   : > { %3200 = vrot.lane.b32.xlu0 %v8103_v24, %s8857_s27  ;;  %v2323_v4 = vor.u32 %v2322_v41, %v2319_v42  ;;  %v2332_v28 = vrot.slane %v2330_v61, 4  ;;  %v2336_v40 = vshll.u32 %v10072_v30, 16  ;;  %v1145_v43 = vshrl.u32 %v829_v25, 16  ;;  %v10099_v46 = vld [vmem:[#allocation2 + $0x98] sm:$0x1] }
 0x12c   : > { %v1744_v7 = vsel %vm8972_vm13, %v1739_v26, %v1743_v39  ;;  %v1753_v29 = vrot.slane %v1751_v54, 5  ;;  %v1998_v13 = vsel %vm8943_vm9, %v1996_v35, %v1997_v18  ;;  %v1148_v0 = vshll.u32 %v829_v25, 16  ;;  %v10112_v12 = vpop.permute.xlu0 %2936  ;;  %v2470_v54 = vld [vmem:[#allocation2 + $0x90] sm:$0xe] }
 0x12d   : > { %v8088_v61 = vcombine.low %v10070_v62, %v1998_v13  ;;  %v10091_v52 = vld [vmem:[#allocation2 + $0xa0] sm:$0xf]  ;;  %v2324_v8 = vrot.slane %v2323_v4, 4  ;;  %v2333_v55 = vor.u32 %v2332_v28, %v2328_v48  ;;  %v2338_v6 = vrot.slane %v2336_v40, 5  ;;  %v10110_v25 = vpop.permute.xlu1 %2762 }
 0x12e   : > { %v1754_v39 = vsel %vm8972_vm13, %v1749_v23, %v1753_v29  ;;  %v2050_v11 = vld [vmem:[#allocation2 + $0x9c] sm:$0xf]  ;;  %v2354_v34 = vshrl.u32 %v10091_v52, 16  ;;  %v2350_v37 = vshll.u32 %v10091_v52, 16  ;;  %v1147_v10 = vrot.slane %v1145_v43, 4 }
 0x12f   : > { %v8072_v16 = vcombine.low %v1744_v7, %v1754_v39  ;;  %v2341_v21 = vshrl.u32 %v2050_v11, 16  ;;  %v2344_v36 = vshll.u32 %v2050_v11, 16  ;;  %v2329_v27 = vsel %vm8972_vm13, %v2324_v8, %v2328_v48  ;;  %v831_v4 = vld [vmem:[#allocation2 + $0x9c] sm:$0xf]  ;;  %v10125_v29 = vld [vmem:[#allocation2 + $0xa0] sm:$0xf] }
 0x130   : > { %v781_v51 = vld [vmem:[#allocation2 + $0xa4] sm:$0x1]  ;;  %v10101_v9 = vrot.slane %v2350_v37, 5  ;;  %v2356_v35 = vrot.slane %v2354_v34, 4  ;;  %v2334_v24 = vrot.slane %v2333_v55, 4  ;;  %v1150_v44 = vrot.slane %v1148_v0, 5 }
 0x131   : > { %3026 = vrot.lane.b32.xlu1 %v8072_v16, %s8860_s30  ;;  %v2343_v5 = vrot.slane %v2341_v21, 4  ;;  %v2346_v42 = vrot.slane %v2344_v36, 5  ;;  %v782_v56 = vsel %vm8905_vm3, %v591_v19, %v781_v51  ;;  %v1154_v41 = vshll.u32 %v10093_v63, 16 }
 0x132   : > { %783 = vst [vmem:[#allocation2 + $0xa4] sm:$0x1] %v782_v56  ;;  %v2357_v23 = vor.u32 %v2356_v35, %v10101_v9  ;;  %v2339_v62 = vsel %vm8972_vm13, %v2334_v24, %v2338_v6  ;;  %v1158_v26 = vshrl.u32 %v10093_v63, 16  ;;  %v1151_v48 = vor.u32 %v1150_v44, %v1147_v10 }
 0x133   : > { %v2347_v31 = vor.u32 %v2346_v42, %v2343_v5  ;;  %v8119_v18 = vcombine.low %v2329_v27, %v2339_v62  ;;  %v1164_v19 = vshll.u32 %v10099_v46, 16  ;;  %v8104_v28 = vcombine.low %v2050_v11, %v10091_v52  ;;  %v10136_v21 = vpop.permute.xlu0 %3016 }
 0x134   : > { %v10121_v40 = vrot.slane %v1154_v41, 5  ;;  %v1160_v43 = vrot.slane %v1158_v26, 4  ;;  %v3497_v7 = vsel %vm3487_vm6, %v3464_v45, %v9915_v59  ;;  %v2358_v8 = vrot.slane %v2357_v23, 4 }
 0x135   : > { %3106 = vrot.lane.b32.xlu1 %v8088_v61, %s8858_s28  ;;  %v2348_v13 = vrot.slane %v2347_v31, 4  ;;  %3280 = vrot.lane.b32.xlu0 %v8119_v18, %s8861_s6  ;;  %v1152_v55 = vrot.slane %v1151_v48, 4  ;;  %v7991_v0 = vrot.slane %v2470_v54, 9  ;;  %v2596_v11 = vrot.slane %v10043_v38, 5  ;;  %v10134_v61 = vpop.permute.xlu1 %2842  ;;  %v2471_v38 = vld [vmem:[#allocation2 + $0x9c] sm:$0xe] }
 0x136   : > { %v1161_v39 = vor.u32 %v1160_v43, %v10121_v40  ;;  %v2599_v34 = vrot.slane %v10072_v30, 5  ;;  %v1169_v37 = vshrl.u32 %v831_v4, 16  ;;  %v1166_v6 = vrot.slane %v1164_v19, 5  ;;  %v1253_v18 = vld [vmem:[#allocation2 + $0x9c] sm:$0xe] }
 0x137   : > { %v1396_v59 = vrot.slane %v10099_v46, 5  ;;  %v1172_v45 = vshll.u32 %v831_v4, 16  ;;  %v1178_v16 = vshll.u32 %v10125_v29, 16  ;;  %v2597_v10 = vsel %vm8943_vm9, %v7991_v0, %v2596_v11  ;;  %v10161_v0 = vpop.permute.xlu0 %3096 }
 0x138   : > { %v1162_v36 = vrot.slane %v1161_v39, 4  ;;  %v2598_v51 = vrot.slane %v2596_v11, 4  ;;  %v1171_v35 = vrot.slane %v1169_v37, 4  ;;  %v2353_v27 = vsel %vm8972_vm13, %v2348_v13, %v10101_v9 }
 0x139   : > { %3202 = vrot.lane.b32.xlu1 %v8104_v28, %s8857_s27  ;;  %v2071_v30 = vld [vmem:[#allocation2 + $0xa4] sm:$0x1]  ;;  %v1157_v24 = vsel %vm8972_vm13, %v1152_v55, %v10121_v40  ;;  %v1174_v42 = vrot.slane %v1172_v45, 5  ;;  %v1180_v56 = vrot.slane %v1178_v16, 5  ;;  %v1182_v62 = vshrl.u32 %v10125_v29, 16  ;;  %v10159_v55 = vpop.permute.xlu1 %2938 }
 0x13a   : > { %v850_v5 = vld [vmem:[#allocation2 + $0xa4] sm:$0x1]  ;;  %v2360_v44 = vshll.u32 %v2071_v30, 16  ;;  %v2600_v23 = vsel %vm8943_vm9, %v2598_v51, %v2599_v34  ;;  %v3532_v41 = vsel %vm3520_vm7, %v10088_v53, %v10000_v58  ;;  %v3530_v31 = vsel %vm3520_vm7, %v3497_v7, %v9935_v33  ;;  %v1252_v53 = vld [vmem:[#allocation2 + $0x90] sm:$0xe] }
 0x13b   : > { %v8135_v26 = vcombine.low %v2597_v10, %v2600_v23  ;;  %v1175_v54 = vor.u32 %v1174_v42, %v1171_v35  ;;  %v1188_v9 = vshll.u32 %v850_v5, 16  ;;  %v1167_v19 = vsel %vm8972_vm13, %v1162_v36, %v1166_v6  ;;  %v310_v45 = vld [vmem:[#allocation2 + $0xa8] sm:$0x1]  ;;  %v10186_v23 = vld [vmem:[#allocation2 + $0xa0] sm:$0xf] }
 0x13c   : > { %v2362_v48 = vrot.slane %v2360_v44, 5  ;;  %v1184_v4 = vrot.slane %v1182_v62, 4  ;;  %v7992_v28 = vrot.slane %v2471_v38, 9  ;;  %v2603_v13 = vrot.slane %v10091_v52, 5  ;;  %v1443_v44 = vld [vmem:[#allocation2 + $0x9c] sm:$0xf] }
 0x13d   : > { %3360 = vrot.lane.b32.xlu0 %v8135_v26, %s8859_s29  ;;  %v1176_v40 = vrot.slane %v1175_v54, 4  ;;  %v1190_v43 = vrot.slane %v1188_v9, 5  ;;  %v2606_v58 = vrot.slane %v2071_v30, 5  ;;  %v7962_v39 = vrot.slane %v1253_v18, 9  ;;  %v252_v30 = vld [vmem:[%s8952_s23 + $0x68] sm:$0xf]  ;;  %v10194_v18 = vpop.permute.xlu0 %3192 }
 0x13e   : > { %v2363_v33 = vsel %vm8972_vm13, %v2358_v8, %v2362_v48  ;;  %v1185_v7 = vor.u32 %v1184_v4, %v1180_v56  ;;  %v1400_v11 = vrot.slane %v10125_v29, 5  ;;  %v1403_v37 = vrot.slane %v850_v5, 5 }
 0x13f   : > { %v8120_v34 = vcombine.low %v2353_v27, %v2363_v33  ;;  %v2604_v52 = vsel %vm8943_vm9, %v7992_v28, %v2603_v13  ;;  %v2605_v6 = vrot.slane %v2603_v13, 4  ;;  %v1181_v16 = vsel %vm8972_vm13, %v1176_v40, %v1180_v56  ;;  %v253_v27 = vld [vmem:[%s8952_s23 + $0x6c] sm:$0xf] }
 0x140   : > { %v1186_v36 = vrot.slane %v1185_v7, 4  ;;  %v1402_v10 = vrot.slane %v1400_v11, 4  ;;  %v7961_v51 = vrot.slane %v1252_v53, 9  ;;  %v8025_v8 = vcombine.low %v1157_v24, %v1167_v19  ;;  %v360_v7 = vld [vmem:[#allocation2 + $0xb0] sm:$0x1] }
 0x141   : > { %3282 = vrot.lane.b32.xlu1 %v8120_v34, %s8861_s6  ;;  %v2607_v29 = vsel %vm8943_vm9, %v2605_v6, %v2606_v58  ;;  %v10175_v35 = vsel %vm8943_vm9, %v7962_v39, %v1400_v11  ;;  %v1393_v38 = vrot.slane %v10093_v63, 5  ;;  %v3565_v56 = vsel %vm3553_vm8, %v3532_v41, %v10029_v49  ;;  %v10192_v9 = vpop.permute.xlu1 %3018 }
 0x142   : > { %v1191_v5 = vsel %vm8972_vm13, %v1186_v36, %v1190_v43  ;;  %v8136_v42 = vcombine.low %v2604_v52, %v2607_v29  ;;  %v311_v24 = vsel %vm8905_vm3, 0, %v310_v45  ;;  %v1404_v26 = vsel %vm8943_vm9, %v1402_v10, %v1403_v37  ;;  %v10209_v37 = vld [vmem:[#allocation2 + $0xa4] sm:$0x1]  ;;  %v1863_v10 = vld [vmem:[#allocation2 + $0x9c] sm:$0xe] }
 0x143   : > { %v8026_v62 = vcombine.low %v1181_v16, %v1191_v5  ;;  %v1394_v63 = vsel %vm8943_vm9, %v7961_v51, %v1393_v38  ;;  %v1395_v54 = vrot.slane %v1393_v38, 4  ;;  %312 = vst [vmem:[#allocation2 + $0xa8] sm:$0x1] %v311_v24  ;;  %v593_v49 = vshrl.u32 %v252_v30, 16 }
 0x144   : > { %3362 = vrot.lane.b32.xlu0 %v8136_v42, %s8859_s29  ;;  %v596_v41 = vshll.u32 %v252_v30, 16  ;;  %v601_v48 = vshrl.u32 %v253_v27, 16  ;;  %v604_v19 = vshll.u32 %v253_v27, 16  ;;  %v1756_v28 = vshrl.u32 %v1443_v44, 16  ;;  %v313_v27 = vld [vmem:[#allocation2 + $0xb4] sm:$0x1] }
 0x145   : > { %2772 = vrot.lane.b32.xlu1 %v8025_v8, %s8855_s25  ;;  %v1397_v4 = vsel %vm8943_vm9, %v1395_v54, %v1396_v59  ;;  %v1759_v40 = vshll.u32 %v1443_v44, 16  ;;  %v1769_v43 = vshrl.u32 %v10186_v23, 16  ;;  %v3563_v58 = vsel %vm3553_vm8, %v3530_v31, %v9971_v20  ;;  %v10219_v51 = vpop.permute.xlu1 %3098  ;;  %v10221_v8 = vpop.permute.xlu0 %3272 }
 0x146   : > { %v8041_v13 = vcombine.low %v1394_v63, %v1397_v4  ;;  %v595_v53 = vrot.slane %v593_v49, 7  ;;  %v10205_v33 = vrot.slane %v601_v48, 7  ;;  %v8042_v39 = vcombine.low %v10175_v35, %v1404_v26  ;;  %v255_v49 = vld [vmem:[%s8952_s23 + $0x74] sm:$0xf]  ;;  %v8804_v4 = vld [vmem:[#allocation2 + $0x58] sm:$0xf] }
 0x147   : > { %v1758_v11 = vrot.slane %v1756_v28, 4  ;;  %v1761_v34 = vrot.slane %v1759_v40, 5  ;;  %v8057_v46 = vcombine.low %v1443_v44, %v10186_v23  ;;  %v3596_v20 = vsel %vm3586_vm10, %v3563_v58, %v10002_v60 }
 0x148   : > { %2852 = vrot.lane.b32.xlu0 %v8041_v13, %s8854_s24  ;;  %v598_v59 = vor.u32 %v596_v41, %v595_v53  ;;  %v599_v52 = vrot.slane %v595_v53, 4  ;;  %v606_v6 = vor.u32 %v604_v19, %v10205_v33  ;;  %v361_v31 = vsel %vm8920_vm5, 0, %v360_v7  ;;  %v8803_v19 = vld [vmem:[#allocation2 + $0x54] sm:$0xf] }
 0x149   : > { %2774 = vrot.lane.b32.xlu1 %v8026_v62, %s8855_s25  ;;  %v1762_v45 = vor.u32 %v1761_v34, %v1758_v11  ;;  %v1765_v16 = vshll.u32 %v10186_v23, 16  ;;  %v1771_v36 = vrot.slane %v1769_v43, 4  ;;  %v3598_v60 = vsel %vm3586_vm10, %v3565_v56, %v10055_v3  ;;  %362 = vst [vmem:[#allocation2 + $0xb0] sm:$0x1] %v361_v31  ;;  %v254_v3 = vld [vmem:[%s8952_s23 + $0x70] sm:$0xf]  ;;  %v10250_v11 = vpop.permute.xlu1 %3194 }
 0x14a   : > { %v607_v29 = vsel %vm8979_vm14, %v599_v52, %v606_v6  ;;  %v784_v35 = vld [vmem:[#allocation2 + $0xa8] sm:$0xf]  ;;  %v1775_v38 = vshll.u32 %v10209_v37, 16  ;;  %v3629_v30 = vsel %vm3619_vm11, %v3596_v20, %v10031_v17  ;;  %v608_v5 = vrot.slane %v10205_v33, 4  ;;  %v8802_v17 = vld [vmem:[#allocation2 + $0x4c] sm:$0xf] }
 0x14b   : > { %v785_v42 = vsel %vm8965_vm12, %v598_v59, %v784_v35  ;;  %787 = vst.msk [vmem:[#allocation2 + $0xac] sm:$0xf] %vm258_vm0, %v607_v29  ;;  %v1763_v24 = vrot.slane %v1762_v45, 4  ;;  %v1767_v44 = vrot.slane %v1765_v16, 5  ;;  %8636 = vmatprep.mubr.msk.bf16.mxu0 %vm12843_vm4, %v3629_v30  ;;  %v8801_v62 = vld [vmem:[#allocation2 + $0x48] sm:$0xf]  ;;  %v8004_v28 = vcombine.low %v8803_v19, %v8804_v4 }
 0x14c   : > { %786 = vst [vmem:[#allocation2 + $0xa8] sm:$0xf] %v785_v42  ;;  %2948 = vrot.lane.b32.xlu0 %v8057_v46, %s8856_s26  ;;  %v1777_v56 = vrot.slane %v1775_v38, 5  ;;  %v8003_v26 = vcombine.low %v8801_v62, %v8802_v17  ;;  %v7977_v63 = vrot.slane %v1863_v10, 9  ;;  %v2001_v54 = vrot.slane %v10186_v23, 5 }
 0x14d   : > { %2854 = vrot.lane.b32.xlu1 %v8042_v39, %s8854_s24  ;;  %v1772_v41 = vor.u32 %v1771_v36, %v1767_v44  ;;  %v2004_v48 = vrot.slane %v10209_v37, 5  ;;  %v3631_v40 = vsel %vm3619_vm11, %v3598_v60, %v10057_v22  ;;  %v1768_v43 = vsel %vm8972_vm13, %v1763_v24, %v1767_v44  ;;  %v10252_v22 = vpop.permute.xlu0 %3352 }
 0x14e   : > { %v2003_v13 = vrot.slane %v2001_v54, 4  ;;  %v314_v58 = vsel %vm8905_vm3, 0, %v313_v27  ;;  %v610_v23 = vshrl.u32 %v254_v3, 16  ;;  %8637 = vmatmul.mubr.msk.bf16.gmra.mxu0 %vm12843_vm4, %v3631_v40  ;;  %v3396_v33 = vsel %vm3372_vm15, %v8004_v28, %v10110_v25 }
 0x14f   : > { %v1773_v53 = vrot.slane %v1772_v41, 4  ;;  %315 = vst [vmem:[#allocation2 + $0xb4] sm:$0x1] %v314_v58  ;;  %v613_v7 = vshll.u32 %v254_v3, 16  ;;  %v618_v39 = vshrl.u32 %v255_v49, 16  ;;  %v3393_v34 = vsel %vm3372_vm15, %v8003_v26, %v10078_v32 }
 0x150   : > { %v612_v46 = vrot.slane %v610_v23, 7  ;;  %v621_v37 = vshll.u32 %v255_v49, 16  ;;  %v788_v59 = vld [vmem:[#allocation2 + $0xb0] sm:$0x1]  ;;  %v2002_v6 = vsel %vm8943_vm9, %v7977_v63, %v2001_v54  ;;  %v2005_v25 = vsel %vm8943_vm9, %v2003_v13, %v2004_v48  ;;  %v363_v3 = vld [vmem:[#allocation2 + $0xbc] sm:$0x1]  ;;  %v10280_v63 = vpop.permute.xlu1 %3274 }
 0x151   : > { %v1778_v52 = vsel %vm8972_vm13, %v1773_v53, %v1777_v56  ;;  %v10262_v20 = vrot.slane %v618_v39, 7  ;;  %v789_v45 = vsel %vm8905_vm3, %v608_v5, %v788_v59  ;;  %v3437_v36 = vsel %vm3421_vm1, %v3396_v33, %v10134_v61  ;;  %v10282_v54 = vpop.permute.xlu0 %3354 }
 0x152   : > { %v10264_v31 = vld [vmem:[#allocation2 + $0xac] sm:$0xf]  ;;  %v8073_v32 = vcombine.low %v1768_v43, %v1778_v52  ;;  %v616_v16 = vrot.slane %v612_v46, 4  ;;  %790 = vst [vmem:[#allocation2 + $0xb0] sm:$0x1] %v789_v45  ;;  %v615_v38 = vor.u32 %v613_v7, %v612_v46  ;;  %v8089_v5 = vcombine.low %v2002_v6, %v2005_v25 }
 0x153   : > { %v1445_v10 = vld [vmem:[#allocation2 + $0xa8] sm:$0xf]  ;;  %v1793_v29 = vshrl.u32 %v10264_v31, 16  ;;  %v1789_v35 = vshll.u32 %v10264_v31, 16  ;;  %v623_v30 = vor.u32 %v621_v37, %v10262_v20  ;;  %v2008_v62 = vrot.slane %v10264_v31, 5 }
 0x154   : > { %v1864_v60 = vld [vmem:[#allocation2 + $0xa8] sm:$0xe]  ;;  %v1780_v27 = vshrl.u32 %v1445_v10, 16  ;;  %v1783_v42 = vshll.u32 %v1445_v10, 16  ;;  %v8058_v24 = vcombine.low %v1445_v10, %v10264_v31  ;;  %3028 = vrot.lane.b32.xlu0 %v8073_v32, %s8860_s30  ;;  %v10278_v26 = vld [vmem:[#allocation2 + $0xac] sm:$0xf]  ;;  %v10303_v45 = vsel %vm3454_vm2, %v3437_v36, %v10159_v55 }
 0x155   : > { %v2052_v44 = vld [vmem:[#allocation2 + $0xa8] sm:$0xf]  ;;  %v1791_v61 = vrot.slane %v1789_v35, 5  ;;  %v1795_v56 = vrot.slane %v1793_v29, 4  ;;  %v624_v17 = vsel %vm8979_vm14, %v616_v16, %v623_v30  ;;  %v7978_v48 = vrot.slane %v1864_v60, 9  ;;  %v10305_v35 = vpop.permute.xlu1 %2764 }
 0x156   : > { %v1782_v49 = vrot.slane %v1780_v27, 4  ;;  %v1785_v41 = vrot.slane %v1783_v42, 5  ;;  %2950 = vrot.lane.b32.xlu1 %v8058_v24, %s8856_s26  ;;  %v791_v19 = vld [vmem:[#allocation2 + $0xb4] sm:$0xf]  ;;  %794 = vst.msk [vmem:[#allocation2 + $0xb8] sm:$0xf] %vm258_vm0, %v624_v17  ;;  %v8105_v39 = vcombine.low %v2052_v44, %v10278_v26  ;;  %v10307_v60 = vpop.permute.xlu0 %2844 }
 0x157   : > { %v2365_v4 = vshrl.u32 %v2052_v44, 16  ;;  %v1796_v28 = vor.u32 %v1795_v56, %v1791_v61  ;;  %v2010_v40 = vrot.slane %v2008_v62, 4  ;;  %v625_v43 = vrot.slane %v10262_v20, 4  ;;  %v10295_v59 = vld [vmem:[#allocation2 + $0xa8] sm:$0xf] }
 0x158   : > { %v792_v13 = vsel %vm8965_vm12, %v615_v38, %v791_v19  ;;  %v1786_v58 = vor.u32 %v1785_v41, %v1782_v49  ;;  %3108 = vrot.lane.b32.xlu0 %v8089_v5, %s8858_s28  ;;  %v2368_v53 = vshll.u32 %v2052_v44, 16  ;;  %v2378_v33 = vshrl.u32 %v10278_v26, 16 }
 0x159   : > { %793 = vst [vmem:[#allocation2 + $0xb4] sm:$0xf] %v792_v13  ;;  %v2367_v23 = vrot.slane %v2365_v4, 4  ;;  %v1797_v7 = vrot.slane %v1796_v28, 4  ;;  %v364_v46 = vsel %vm8920_vm5, 0, %v363_v3  ;;  %v2374_v37 = vshll.u32 %v10278_v26, 16 }
 0x15a   : > { %v1464_v52 = vld [vmem:[#allocation2 + $0xb0] sm:$0x1]  ;;  %v1787_v6 = vrot.slane %v1786_v58, 4  ;;  %v2370_v25 = vrot.slane %v2368_v53, 5  ;;  %v3435_v20 = vsel %vm3421_vm1, %v3393_v34, %v10080_v15  ;;  %365 = vst [vmem:[#allocation2 + $0xbc] sm:$0x1] %v364_v46  ;;  %v2009_v38 = vsel %vm8943_vm9, %v7978_v48, %v2008_v62  ;;  %v10335_v46 = vpop.permute.xlu0 %2940 }
 0x15b   : > { %v10299_v31 = vld [vmem:[#allocation2 + $0xb0] sm:$0x1]  ;;  %v1799_v32 = vshll.u32 %v1464_v52, 16  ;;  %v2011_v16 = vrot.slane %v1464_v52, 5  ;;  %v2376_v10 = vrot.slane %v2374_v37, 5  ;;  %v2380_v29 = vrot.slane %v2378_v33, 4 }
 0x15c   : > { %3204 = vrot.lane.b32.xlu0 %v8105_v39, %s8857_s27  ;;  %v2371_v15 = vor.u32 %v2370_v25, %v2367_v23  ;;  %v2384_v34 = vshll.u32 %v10299_v31, 16  ;;  %v1193_v30 = vshrl.u32 %v10295_v59, 16  ;;  %v1792_v55 = vsel %vm8972_vm13, %v1787_v6, %v1791_v61  ;;  %v10325_v28 = vld [vmem:[#allocation2 + $0xac] sm:$0xf]  ;;  %v10333_v39 = vpop.permute.xlu1 %2766 }
 0x15d   : > { %v1801_v36 = vrot.slane %v1799_v32, 5  ;;  %v2012_v27 = vsel %vm8943_vm9, %v2010_v40, %v2011_v16  ;;  %v10318_v42 = vld [vmem:[#allocation2 + $0xb8] sm:$0xf]  ;;  %v2381_v24 = vor.u32 %v2380_v29, %v2376_v10  ;;  %v1196_v56 = vshll.u32 %v10295_v59, 16  ;;  %v10340_v32 = vld [vmem:[#allocation2 + $0xb0] sm:$0x1] }
 0x15e   : > { %v2402_v5 = vshrl.u32 %v10318_v42, 16  ;;  %v2398_v44 = vshll.u32 %v10318_v42, 16  ;;  %v2372_v3 = vrot.slane %v2371_v15, 4  ;;  %v8090_v17 = vcombine.low %v2009_v38, %v2012_v27 }
 0x15f   : > { %v1802_v62 = vsel %vm8972_vm13, %v1797_v7, %v1801_v36  ;;  %v2382_v61 = vrot.slane %v2381_v24, 4  ;;  %v2386_v41 = vrot.slane %v2384_v34, 5  ;;  %v1195_v40 = vrot.slane %v1193_v30, 4  ;;  %v2472_v7 = vld [vmem:[#allocation2 + $0xa8] sm:$0xe] }
 0x160   : > { %v2054_v49 = vld [vmem:[#allocation2 + $0xb4] sm:$0xf]  ;;  %v8074_v48 = vcombine.low %v1792_v55, %v1802_v62  ;;  %v10327_v58 = vrot.slane %v2398_v44, 5  ;;  %v2404_v23 = vrot.slane %v2402_v5, 4  ;;  %v2377_v53 = vsel %vm8972_vm13, %v2372_v3, %v2376_v10  ;;  %v10349_v55 = vld [vmem:[#allocation2 + $0xb8] sm:$0xf] }
 0x161   : > { %v2389_v19 = vshrl.u32 %v2054_v49, 16  ;;  %v2392_v4 = vshll.u32 %v2054_v49, 16  ;;  %v795_v13 = vld [vmem:[#allocation2 + $0xbc] sm:$0x1]  ;;  %v2387_v33 = vsel %vm8972_vm13, %v2382_v61, %v2386_v41  ;;  %v1198_v10 = vrot.slane %v1196_v56, 5 }
 0x162   : > { %3030 = vrot.lane.b32.xlu1 %v8074_v48, %s8860_s30  ;;  %v796_v6 = vsel %vm8905_vm3, %v625_v43, %v795_v13  ;;  %v8121_v25 = vcombine.low %v2377_v53, %v2387_v33  ;;  %v2405_v16 = vor.u32 %v2404_v23, %v10327_v58  ;;  %v1202_v29 = vshll.u32 %v10325_v28, 16  ;;  %v10354_v44 = vld [vmem:[#allocation2 + $0xb4] sm:$0xf]  ;;  %v10365_v48 = vpop.permute.xlu1 %2846 }
 0x163   : > { %v2391_v37 = vrot.slane %v2389_v19, 4  ;;  %v2394_v52 = vrot.slane %v2392_v4, 5  ;;  %797 = vst [vmem:[#allocation2 + $0xbc] sm:$0x1] %v796_v6  ;;  %v1206_v38 = vshrl.u32 %v10325_v28, 16  ;;  %v3468_v34 = vsel %vm3454_vm2, %v3435_v20, %v10112_v12  ;;  %v10367_v19 = vpop.permute.xlu0 %3020 }
 0x164   : > { %3284 = vrot.lane.b32.xlu0 %v8121_v25, %s8861_s6  ;;  %v7993_v30 = vrot.slane %v2472_v7, 9  ;;  %v2610_v43 = vrot.slane %v10278_v26, 5  ;;  %v1199_v36 = vor.u32 %v1198_v10, %v1195_v40  ;;  %v10351_v27 = vrot.slane %v1202_v29, 5  ;;  %v2473_v53 = vld [vmem:[#allocation2 + $0xb4] sm:$0xe] }
 0x165   : > { %v2395_v15 = vor.u32 %v2394_v52, %v2391_v37  ;;  %v1208_v24 = vrot.slane %v1206_v38, 4  ;;  %v1212_v5 = vshll.u32 %v10340_v32, 16  ;;  %v8106_v3 = vcombine.low %v2054_v49, %v10318_v42  ;;  %v1255_v38 = vld [vmem:[#allocation2 + $0xb4] sm:$0xe] }
 0x166   : > { %3110 = vrot.lane.b32.xlu1 %v8090_v17, %s8858_s28  ;;  %v2406_v56 = vrot.slane %v2405_v16, 4  ;;  %v2612_v62 = vrot.slane %v2610_v43, 4  ;;  %v3503_v12 = vsel %vm3487_vm6, %v10303_v45, %v10192_v9  ;;  %v2611_v61 = vsel %vm8943_vm9, %v7993_v30, %v2610_v43 }
 0x167   : > { %v2396_v26 = vrot.slane %v2395_v15, 4  ;;  %v1209_v20 = vor.u32 %v1208_v24, %v10351_v27  ;;  %v2613_v41 = vrot.slane %v10299_v31, 5  ;;  %v1200_v17 = vrot.slane %v1199_v36, 4 }
 0x168   : > { %v1217_v49 = vshrl.u32 %v10354_v44, 16  ;;  %v1220_v4 = vshll.u32 %v10354_v44, 16  ;;  %v1226_v40 = vshll.u32 %v10349_v55, 16  ;;  %v1214_v45 = vrot.slane %v1212_v5, 5 }
 0x169   : > { %v1210_v9 = vrot.slane %v1209_v20, 4  ;;  %v2614_v13 = vsel %vm8943_vm9, %v2612_v62, %v2613_v41  ;;  %v1230_v23 = vshrl.u32 %v10349_v55, 16  ;;  %v3501_v7 = vsel %vm3487_vm6, %v3468_v34, %v10136_v21 }
 0x16a   : > { %3206 = vrot.lane.b32.xlu1 %v8106_v3, %s8857_s27  ;;  %v2073_v31 = vld [vmem:[#allocation2 + $0xbc] sm:$0x1]  ;;  %v8137_v33 = vcombine.low %v2611_v61, %v2614_v13  ;;  %v1219_v52 = vrot.slane %v1217_v49, 4  ;;  %v1222_v6 = vrot.slane %v1220_v4, 5  ;;  %v2401_v25 = vsel %vm8972_vm13, %v2396_v26, %v10327_v58  ;;  %v10386_v3 = vpop.permute.xlu1 %2942  ;;  %v10388_v58 = vpop.permute.xlu0 %3100  ;;  %v1254_v61 = vld [vmem:[#allocation2 + $0xa8] sm:$0xe] }
 0x16b   : > { %v852_v37 = vld [vmem:[#allocation2 + $0xbc] sm:$0x1]  ;;  %v2408_v16 = vshll.u32 %v2073_v31, 16  ;;  %v1228_v10 = vrot.slane %v1226_v40, 5  ;;  %v1232_v29 = vrot.slane %v1230_v23, 4  ;;  %v1205_v15 = vsel %vm8972_vm13, %v1200_v17, %v10351_v27 }
 0x16c   : > { %3364 = vrot.lane.b32.xlu0 %v8137_v33, %s8859_s29  ;;  %v1223_v30 = vor.u32 %v1222_v6, %v1219_v52  ;;  %v1236_v43 = vshll.u32 %v852_v37, 16  ;;  %v7994_v21 = vrot.slane %v2473_v53, 9  ;;  %v2617_v24 = vrot.slane %v10318_v42, 5  ;;  %v316_v33 = vld [vmem:[#allocation2 + $0xc0] sm:$0x1] }
 0x16d   : > { %v2410_v34 = vrot.slane %v2408_v16, 5  ;;  %v1233_v36 = vor.u32 %v1232_v29, %v1228_v10  ;;  %v2620_v5 = vrot.slane %v2073_v31, 5  ;;  %v1215_v62 = vsel %vm8972_vm13, %v1210_v9, %v1214_v45  ;;  %v256_v31 = vld [vmem:[%s8952_s23 + $0x78] sm:$0xf] }
 0x16e   : > { %v1224_v26 = vrot.slane %v1223_v30, 4  ;;  %v1238_v27 = vrot.slane %v1236_v43, 5  ;;  %v7964_v20 = vrot.slane %v1255_v38, 9  ;;  %v2618_v42 = vsel %vm8943_vm9, %v7994_v21, %v2617_v24  ;;  %v1447_v43 = vld [vmem:[#allocation2 + $0xb4] sm:$0xf] }
 0x16f   : > { %v2411_v41 = vsel %vm8972_vm13, %v2406_v56, %v2410_v34  ;;  %v1234_v17 = vrot.slane %v1233_v36, 4  ;;  %v2619_v49 = vrot.slane %v2617_v24, 4  ;;  %v1414_v9 = vrot.slane %v10349_v55, 5  ;;  %v10414_v21 = vpop.permute.xlu1 %3022  ;;  %v10416_v34 = vpop.permute.xlu0 %3196 }
 0x170   : > { %v8122_v4 = vcombine.low %v2401_v25, %v2411_v41  ;;  %v1229_v40 = vsel %vm8972_vm13, %v1224_v26, %v1228_v10  ;;  %v1417_v45 = vrot.slane %v852_v37, 5  ;;  %v7963_v56 = vrot.slane %v1254_v61, 9  ;;  %v257_v37 = vld [vmem:[%s8952_s23 + $0x7c] sm:$0xf]  ;;  %v366_v61 = vld [vmem:[#allocation2 + $0xc8] sm:$0x1] }
 0x171   : > { %v1239_v13 = vsel %vm8972_vm13, %v1234_v17, %v1238_v27  ;;  %v2621_v23 = vsel %vm8943_vm9, %v2619_v49, %v2620_v5  ;;  %v1407_v53 = vrot.slane %v10325_v28, 5  ;;  %v8027_v52 = vcombine.low %v1205_v15, %v1215_v62 }
 0x172   : > { %3286 = vrot.lane.b32.xlu1 %v8122_v4, %s8861_s6  ;;  %v8138_v6 = vcombine.low %v2618_v42, %v2621_v23  ;;  %v3536_v25 = vsel %vm3520_vm7, %v3503_v12, %v10219_v51  ;;  %v1416_v16 = vrot.slane %v1414_v9, 4  ;;  %v3534_v10 = vsel %vm3520_vm7, %v3501_v7, %v10161_v0  ;;  %v10423_v7 = vld [vmem:[#allocation2 + $0xb8] sm:$0xf]  ;;  %v1465_v4 = vld [vmem:[#allocation2 + $0xbc] sm:$0x1] }
 0x173   : > { %v1408_v29 = vsel %vm8943_vm9, %v7963_v56, %v1407_v53  ;;  %v1409_v38 = vrot.slane %v1407_v53, 4  ;;  %v1410_v30 = vrot.slane %v10340_v32, 5  ;;  %v8028_v15 = vcombine.low %v1229_v40, %v1239_v13 }
 0x174   : > { %3366 = vrot.lane.b32.xlu0 %v8138_v6, %s8859_s29  ;;  %v1415_v51 = vsel %vm8943_vm9, %v7964_v20, %v1414_v9  ;;  %v317_v0 = vsel %vm8905_vm3, 0, %v316_v33  ;;  %v627_v12 = vshrl.u32 %v256_v31, 16  ;;  %v1418_v32 = vsel %vm8943_vm9, %v1416_v16, %v1417_v45 }
 0x175   : > { %v1411_v36 = vsel %vm8943_vm9, %v1409_v38, %v1410_v30  ;;  %318 = vst [vmem:[#allocation2 + $0xc0] sm:$0x1] %v317_v0  ;;  %v630_v24 = vshll.u32 %v256_v31, 16  ;;  %v635_v5 = vshrl.u32 %v257_v37, 16  ;;  %v638_v27 = vshll.u32 %v257_v37, 16  ;;  %v10440_v31 = vpop.permute.xlu1 %3102 }
 0x176   : > { %2776 = vrot.lane.b32.xlu1 %v8027_v52, %s8855_s25  ;;  %v8043_v62 = vcombine.low %v1408_v29, %v1411_v36  ;;  %v629_v26 = vrot.slane %v627_v12, 7  ;;  %v1804_v20 = vshrl.u32 %v1447_v43, 16  ;;  %v3567_v41 = vsel %vm3553_vm8, %v3534_v10, %v10194_v18  ;;  %v1865_v10 = vld [vmem:[#allocation2 + $0xb4] sm:$0xe]  ;;  %v8805_v0 = vld [vmem:[#allocation2 + $0x60] sm:$0xf] }
 0x177   : > { %v10432_v17 = vrot.slane %v635_v5, 7  ;;  %v1807_v42 = vshll.u32 %v1447_v43, 16  ;;  %v1817_v49 = vshrl.u32 %v10423_v7, 16  ;;  %v8044_v40 = vcombine.low %v1415_v51, %v1418_v32  ;;  %v10442_v33 = vpop.permute.xlu0 %3276  ;;  %v8806_v12 = vld [vmem:[#allocation2 + $0x64] sm:$0xf] }
 0x178   : > { %2856 = vrot.lane.b32.xlu0 %v8043_v62, %s8854_s24  ;;  %v633_v9 = vrot.slane %v629_v26, 4  ;;  %v1806_v45 = vrot.slane %v1804_v20, 4  ;;  %v8059_v13 = vcombine.low %v1447_v43, %v10423_v7  ;;  %v632_v23 = vor.u32 %v630_v24, %v629_v26  ;;  %v10460_v32 = vld [vmem:[#allocation2 + $0xcc] sm:$0xf]  ;;  %v8808_v20 = vld [vmem:[#allocation2 + $0x70] sm:$0xf] }
 0x179   : > { %v640_v56 = vor.u32 %v638_v27, %v10432_v17  ;;  %v1809_v53 = vrot.slane %v1807_v42, 5  ;;  %v3600_v18 = vsel %vm3586_vm10, %v3567_v41, %v10221_v8  ;;  %v367_v52 = vsel %vm8920_vm5, 0, %v366_v61  ;;  %v8807_v27 = vld [vmem:[#allocation2 + $0x6c] sm:$0xf] }
 0x17a   : > { %2778 = vrot.lane.b32.xlu1 %v8028_v15, %s8855_s25  ;;  %v1813_v6 = vshll.u32 %v10423_v7, 16  ;;  %v1819_v16 = vrot.slane %v1817_v49, 4  ;;  %v1823_v37 = vshll.u32 %v1465_v4, 16  ;;  %v3569_v29 = vsel %vm3553_vm8, %v3536_v25, %v10250_v11  ;;  %368 = vst [vmem:[#allocation2 + $0xc8] sm:$0x1] %v367_v52 }
 0x17b   : > { %v641_v8 = vsel %vm8979_vm14, %v633_v9, %v640_v56  ;;  %v1810_v38 = vor.u32 %v1809_v53, %v1806_v45  ;;  %v3633_v30 = vsel %vm3619_vm11, %v3600_v18, %v10252_v22  ;;  %v3602_v15 = vsel %vm3586_vm10, %v3569_v29, %v10280_v63  ;;  %v10470_v9 = vpop.permute.xlu1 %3198 }
 0x17c   : > { %v798_v43 = vld [vmem:[#allocation2 + $0xc0] sm:$0xf]  ;;  %801 = vst.msk [vmem:[#allocation2 + $0xc4] sm:$0xf] %vm258_vm0, %v641_v8  ;;  %2952 = vrot.lane.b32.xlu0 %v8059_v13, %s8856_s26  ;;  %v1815_v51 = vrot.slane %v1813_v6, 5  ;;  %v8005_v11 = vcombine.low %v8805_v0, %v8806_v12  ;;  %v2015_v25 = vrot.slane %v10423_v7, 5  ;;  %8640 = vmatprep.mubr.msk.bf16.mxu0 %vm12843_vm4, %v3633_v30  ;;  %v8006_v61 = vcombine.low %v8807_v27, %v8808_v20 }
 0x17d   : > { %v799_v22 = vsel %vm8965_vm12, %v632_v23, %v798_v43  ;;  %v1811_v36 = vrot.slane %v1810_v38, 4  ;;  %v7979_v24 = vrot.slane %v1865_v10, 9  ;;  %v2018_v5 = vrot.slane %v1465_v4, 5  ;;  %v10472_v4 = vpop.permute.xlu0 %3356  ;;  %v10481_v13 = vld [vmem:[#allocation2 + $0xd0] sm:$0xf] }
 0x17e   : > { %2858 = vrot.lane.b32.xlu1 %v8044_v40, %s8854_s24  ;;  %800 = vst [vmem:[#allocation2 + $0xc0] sm:$0xf] %v799_v22  ;;  %v1820_v63 = vor.u32 %v1819_v16, %v1815_v51  ;;  %v1825_v62 = vrot.slane %v1823_v37, 5  ;;  %v2017_v26 = vrot.slane %v2015_v25, 4  ;;  %v642_v7 = vrot.slane %v10432_v17, 4 }
 0x17f   : > { %v3635_v41 = vsel %vm3619_vm11, %v3602_v15, %v10282_v54  ;;  %v2437_v42 = vshrl.u32 %v10460_v32, 16  ;;  %v2440_v49 = vshll.u32 %v10460_v32, 16  ;;  %v1816_v40 = vsel %vm8972_vm13, %v1811_v36, %v1815_v51 }
 0x180   : > { %v1821_v45 = vrot.slane %v1820_v63, 4  ;;  %8641 = vmatmul.mubr.msk.bf16.gmra.mxu0 %vm12843_vm4, %v3635_v41  ;;  %v2016_v17 = vsel %vm8943_vm9, %v7979_v24, %v2015_v25  ;;  %v2019_v54 = vsel %vm8943_vm9, %v2017_v26, %v2018_v5  ;;  %v3399_v53 = vsel %vm3372_vm15, %v8005_v11, %v10305_v35  ;;  %v10512_v26 = vld [vmem:[#allocation2 + $0xd4] sm:$0x1] }
 0x181   : > { %v802_v23 = vld [vmem:[#allocation2 + $0xc8] sm:$0x1]  ;;  %v3402_v18 = vsel %vm3372_vm15, %v8006_v61, %v10333_v39  ;;  %v2439_v37 = vrot.slane %v2437_v42, 4  ;;  %v2442_v10 = vrot.slane %v2440_v49, 5  ;;  %v8091_v38 = vcombine.low %v2016_v17, %v2019_v54 }
 0x182   : > { %v1826_v56 = vsel %vm8972_vm13, %v1821_v45, %v1825_v62  ;;  %v803_v6 = vsel %vm8905_vm3, %v642_v7, %v802_v23  ;;  %v2450_v30 = vshrl.u32 %v10481_v13, 16  ;;  %v8108_v39 = vcombine.low %v10460_v32, %v10481_v13  ;;  %v10504_v12 = vpop.permute.xlu1 %3278 }
 0x183   : > { %v10489_v52 = vld [vmem:[#allocation2 + $0xc4] sm:$0xf]  ;;  %v8075_v16 = vcombine.low %v1816_v40, %v1826_v56  ;;  %804 = vst [vmem:[#allocation2 + $0xc8] sm:$0x1] %v803_v6  ;;  %v3441_v15 = vsel %vm3421_vm1, %v3402_v18, %v10365_v48  ;;  %v3439_v51 = vsel %vm3421_vm1, %v3399_v53, %v10307_v60  ;;  %v2446_v0 = vshll.u32 %v10481_v13, 16  ;;  %v10506_v11 = vpop.permute.xlu0 %3358 }
 0x184   : > { %v1841_v29 = vshrl.u32 %v10489_v52, 16  ;;  %v1837_v8 = vshll.u32 %v10489_v52, 16  ;;  %v10509_v5 = vld [vmem:[#allocation2 + $0xc4] sm:$0xf]  ;;  %v2022_v62 = vrot.slane %v10489_v52, 5  ;;  %v2443_v60 = vor.u32 %v2442_v10, %v2439_v37 }
 0x185   : > { %v1449_v35 = vld [vmem:[#allocation2 + $0xc0] sm:$0xf]  ;;  %3032 = vrot.lane.b32.xlu0 %v8075_v16, %s8860_s30  ;;  %v2452_v41 = vrot.slane %v2450_v30, 4  ;;  %v2426_v40 = vshrl.u32 %v10509_v5, 16  ;;  %v10518_v23 = vrot.slane %v2446_v0, 5  ;;  %v3474_v56 = vsel %vm3454_vm2, %v3441_v15, %v10386_v3 }
 0x186   : > { %v2056_v43 = vld [vmem:[#allocation2 + $0xc0] sm:$0xf]  ;;  %v1828_v25 = vshrl.u32 %v1449_v35, 16  ;;  %v1831_v22 = vshll.u32 %v1449_v35, 16  ;;  %v8060_v36 = vcombine.low %v1449_v35, %v10489_v52  ;;  %v1839_v24 = vrot.slane %v1837_v8, 5  ;;  %v10524_v37 = vpop.permute.xlu1 %2768 }
 0x187   : > { %v1843_v63 = vrot.slane %v1841_v29, 4  ;;  %v2413_v48 = vshrl.u32 %v2056_v43, 16  ;;  %v1866_v61 = vld [vmem:[#allocation2 + $0xc0] sm:$0xe]  ;;  %v2416_v7 = vshll.u32 %v2056_v43, 16  ;;  %v8107_v45 = vcombine.low %v2056_v43, %v10509_v5 }
 0x188   : > { %v1830_v27 = vrot.slane %v1828_v25, 4  ;;  %v1833_v20 = vrot.slane %v1831_v22, 5  ;;  %2954 = vrot.lane.b32.xlu1 %v8060_v36, %s8856_s26  ;;  %v7980_v18 = vrot.slane %v1866_v61, 9  ;;  %v2024_v52 = vrot.slane %v2022_v62, 4 }
 0x189   : > { %v1844_v42 = vor.u32 %v1843_v63, %v1839_v24  ;;  %3112 = vrot.lane.b32.xlu0 %v8091_v38, %s8858_s28  ;;  %v2415_v49 = vrot.slane %v2413_v48, 4  ;;  %v2418_v54 = vrot.slane %v2416_v7, 5  ;;  %v2456_v6 = vshll.u32 %v10512_v26, 16  ;;  %v10526_v10 = vpop.permute.xlu0 %2848 }
 0x18a   : > { %v1834_v17 = vor.u32 %v1833_v20, %v1830_v27  ;;  %v1466_v53 = vld [vmem:[#allocation2 + $0xc8] sm:$0x1]  ;;  %v2422_v16 = vshll.u32 %v10509_v5, 16  ;;  %v2453_v3 = vor.u32 %v2452_v41, %v10518_v23  ;;  %v3472_v0 = vsel %vm3454_vm2, %v3439_v51, %v10335_v46  ;;  %v2474_v51 = vld [vmem:[#allocation2 + $0xc0] sm:$0xe] }
 0x18b   : > { %v1845_v8 = vrot.slane %v1844_v42, 4  ;;  %v1847_v38 = vshll.u32 %v1466_v53, 16  ;;  %v2025_v30 = vrot.slane %v1466_v53, 5  ;;  %v2074_v35 = vld [vmem:[#allocation2 + $0xc8] sm:$0x1]  ;;  %v2419_v43 = vor.u32 %v2418_v54, %v2415_v49 }
 0x18c   : > { %v1835_v29 = vrot.slane %v1834_v17, 4  ;;  %v2424_v15 = vrot.slane %v2422_v16, 5  ;;  %v2444_v36 = vrot.slane %v2443_v60, 4  ;;  %v2428_v63 = vrot.slane %v2426_v40, 4  ;;  %v10544_v40 = vpop.permute.xlu1 %2770 }
 0x18d   : > { %3208 = vrot.lane.b32.xlu0 %v8107_v45, %s8857_s27  ;;  %v1849_v22 = vrot.slane %v1847_v38, 5  ;;  %v2023_v48 = vsel %vm8943_vm9, %v7980_v18, %v2022_v62  ;;  %v2458_v27 = vrot.slane %v2456_v6, 5  ;;  %v2420_v20 = vrot.slane %v2419_v43, 4  ;;  %v2475_v45 = vld [vmem:[#allocation2 + $0xcc] sm:$0xe]  ;;  %v10546_v17 = vpop.permute.xlu0 %2944 }
 0x18e   : > { %v1840_v25 = vsel %vm8972_vm13, %v1835_v29, %v1839_v24  ;;  %v2432_v61 = vshll.u32 %v2074_v35, 16  ;;  %v2026_v41 = vsel %vm8943_vm9, %v2024_v52, %v2025_v30  ;;  %v2454_v42 = vrot.slane %v2453_v3, 4  ;;  %v3936_v38 = vld [vmem:[#allocation3 + $0x18] sm:$0x1] }
 0x18f   : > { %v1850_v7 = vsel %vm8972_vm13, %v1845_v8, %v1849_v22  ;;  %v2429_v46 = vor.u32 %v2428_v63, %v2424_v15  ;;  %v3507_v60 = vsel %vm3487_vm6, %v3474_v56, %v10414_v21  ;;  %v3505_v62 = vsel %vm3487_vm6, %v3472_v0, %v10367_v19 }
 0x190   : > { %v8076_v49 = vcombine.low %v1840_v25, %v1850_v7  ;;  %v2434_v24 = vrot.slane %v2432_v61, 5  ;;  %v2449_v54 = vsel %vm8972_vm13, %v2444_v36, %v10518_v23  ;;  %v2425_v53 = vsel %vm8972_vm13, %v2420_v20, %v2424_v15  ;;  %v3981_v20 = vld [vmem:[#allocation3 + $0x14] sm:$0x1]  ;;  %v4541_v61 = vld [vmem:[#allocation3] sm:$0xf] }
 0x191   : > { %v2430_v18 = vrot.slane %v2429_v46, 4  ;;  %v2631_v52 = vrot.slane %v10481_v13, 5  ;;  %v8092_v21 = vcombine.low %v2023_v48, %v2026_v41  ;;  %v7995_v56 = vrot.slane %v2474_v51, 9  ;;  %v10590_v7 = vld [vmem:[#allocation3 + $0x4] sm:$0xf] }
 0x192   : > { %3034 = vrot.lane.b32.xlu1 %v8076_v49, %s8860_s30  ;;  %v2624_v19 = vrot.slane %v10509_v5, 5  ;;  %v2627_v6 = vrot.slane %v2074_v35, 5  ;;  %v2459_v16 = vsel %vm8972_vm13, %v2454_v42, %v2458_v27  ;;  %v7996_v23 = vrot.slane %v2475_v45, 9  ;;  %v10601_v46 = vld [vmem:[#allocation3 + $0x8] sm:$0x1] }
 0x193   : > { %v2435_v29 = vsel %vm8972_vm13, %v2430_v18, %v2434_v24  ;;  %v3540_v8 = vsel %vm3520_vm7, %v3507_v60, %v10440_v31  ;;  %v3538_v5 = vsel %vm3520_vm7, %v3505_v62, %v10388_v58  ;;  %v2633_v35 = vrot.slane %v2631_v52, 4  ;;  %v10603_v51 = vld [vmem:[#allocation3] sm:$0xe]  ;;  %v3942_v62 = vld [vmem:[#allocation3 + $0x30] sm:$0x1] }
 0x194   : > { %v8123_v30 = vcombine.low %v2425_v53, %v2435_v29  ;;  %v2625_v3 = vsel %vm8943_vm9, %v7995_v56, %v2624_v19  ;;  %v2626_v43 = vrot.slane %v2624_v19, 4  ;;  %v2634_v15 = vrot.slane %v10512_v26, 5  ;;  %v10579_v26 = vpop.permute.xlu1 %2850 }
 0x195   : > { %v3573_v0 = vsel %vm3553_vm8, %v3540_v8, %v10470_v9  ;;  %v3571_v25 = vsel %vm3553_vm8, %v3538_v5, %v10416_v34  ;;  %v10581_v36 = vpop.permute.xlu0 %3024  ;;  %v3937_v34 = vsel %vm8905_vm3, 0, %v3936_v38  ;;  %v3933_v9 = vld [vmem:[#allocation3 + $0xc] sm:$0x1]  ;;  %v2632_v41 = vsel %vm8943_vm9, %v7996_v23, %v2631_v52  ;;  %v3948_v38 = vld [vmem:[#allocation3 + $0x48] sm:$0x1] }
 0x196   : > { %3114 = vrot.lane.b32.xlu1 %v8092_v21, %s8858_s28  ;;  %3288 = vrot.lane.b32.xlu0 %v8123_v30, %s8861_s6  ;;  %v2628_v31 = vsel %vm8943_vm9, %v2626_v43, %v2627_v6  ;;  %v3606_v22 = vsel %vm3586_vm10, %v3573_v0, %v10504_v12  ;;  %v3604_v58 = vsel %vm3586_vm10, %v3571_v25, %v10442_v33  ;;  %v3984_v12 = vld [vmem:[#allocation3 + $0x20] sm:$0x1]  ;;  %v3934_v42 = vsel %vm8905_vm3, 0, %v3933_v9  ;;  %v3987_v6 = vld [vmem:[#allocation3 + $0x2c] sm:$0x1] }
 0x197   : > { %v8139_v63 = vcombine.low %v2625_v3, %v2628_v31  ;;  %v3637_v48 = vsel %vm3619_vm11, %v3604_v58, %v10472_v4  ;;  %v3639_v27 = vsel %vm3619_vm11, %v3606_v22, %v10506_v11  ;;  %3938 = vst [vmem:[#allocation3 + $0x18] sm:$0x1] %v3937_v34  ;;  %v8124_v33 = vcombine.low %v2449_v54, %v2459_v16  ;;  %v3939_v54 = vld [vmem:[#allocation3 + $0x24] sm:$0x1]  ;;  %v3996_v22 = vld [vmem:[#allocation3 + $0x50] sm:$0x1] }
 0x198   : > { %8644 = vmatprep.mubr.msk.bf16.mxu0 %vm12843_vm4, %v3637_v48  ;;  %v8011_v4 = vcombine.low %v10295_v59, %v10325_v28  ;;  %v8012_v11 = vcombine.low %v10354_v44, %v10349_v55  ;;  %v2635_v49 = vsel %vm8943_vm9, %v2633_v35, %v2634_v15  ;;  %3935 = vst [vmem:[#allocation3 + $0xc] sm:$0x1] %v3934_v42  ;;  %v3985_v24 = vsel %vm8920_vm5, 0, %v3984_v12  ;;  %v10618_v18 = vpop.permute.xlu1 %2946  ;;  %v3945_v35 = vld [vmem:[#allocation3 + $0x3c] sm:$0x1] }
 0x199   : > { %8645 = vmatmul.mubr.msk.bf16.gmra.mxu0 %vm12843_vm4, %v3639_v27  ;;  %v3982_v45 = vsel %vm8920_vm5, 0, %v3981_v20  ;;  %v4590_v60 = vshrl.u32 %v4541_v61, 16  ;;  %3986 = vst [vmem:[#allocation3 + $0x20] sm:$0x1] %v3985_v24  ;;  %v4593_v53 = vshll.u32 %v4541_v61, 16  ;;  %v4599_v32 = vshll.u32 %v10590_v7, 16  ;;  %v10620_v52 = vpop.permute.xlu0 %3104 }
 0x19a   : > { %3210 = vrot.lane.b32.xlu1 %v8108_v39, %s8857_s27  ;;  %3368 = vrot.lane.b32.xlu0 %v8139_v63, %s8859_s29  ;;  %3983 = vst [vmem:[#allocation3 + $0x14] sm:$0x1] %v3982_v45  ;;  %v4603_v13 = vshrl.u32 %v10590_v7, 16  ;;  %v3990_v39 = vld [vmem:[#allocation3 + $0x38] sm:$0x1]  ;;  %v4609_v56 = vshll.u32 %v10601_v46, 16  ;;  %v8140_v16 = vcombine.low %v2632_v41, %v2635_v49 }
 0x19b   : > { %v4592_v21 = vrot.slane %v4590_v60, 4  ;;  %v5039_v19 = vrot.slane %v10590_v7, 5  ;;  %v4595_v29 = vrot.slane %v4593_v53, 5  ;;  %v4601_v23 = vrot.slane %v4599_v32, 5  ;;  %v3993_v58 = vld [vmem:[#allocation3 + $0x44] sm:$0x1] }
 0x19c   : > { %v4605_v8 = vrot.slane %v4603_v13, 4  ;;  %v4611_v30 = vrot.slane %v4609_v56, 5  ;;  %v8193_v3 = vrot.slane %v10603_v51, 9  ;;  %v5042_v5 = vrot.slane %v10601_v46, 5  ;;  %v8809_v34 = vld [vmem:[#allocation2 + $0x78] sm:$0xf] }
 0x19d   : > { %v5041_v43 = vrot.slane %v5039_v19, 4  ;;  %v4596_v15 = vor.u32 %v4595_v29, %v4592_v21  ;;  %v3943_v25 = vsel %vm8905_vm3, 0, %v3942_v62  ;;  %v3940_v31 = vsel %vm8905_vm3, 0, %v3939_v54  ;;  %v8810_v9 = vld [vmem:[#allocation2 + $0x7c] sm:$0xf]  ;;  %v3201_v41 = vpop.permute.xlu0 %3200 }
 0x19e   : > { %3290 = vrot.lane.b32.xlu1 %v8124_v33, %s8861_s6  ;;  %v4606_v0 = vor.u32 %v4605_v8, %v4601_v23  ;;  %v8007_v63 = vcombine.low %v8809_v34, %v8810_v9  ;;  %3944 = vst [vmem:[#allocation3 + $0x30] sm:$0x1] %v3943_v25  ;;  %3941 = vst [vmem:[#allocation3 + $0x24] sm:$0x1] %v3940_v31  ;;  %v3991_v48 = vsel %vm8920_vm5, 0, %v3990_v39  ;;  %v3988_v27 = vsel %vm8920_vm5, 0, %v3987_v6 }
 0x19f   : > { %v3949_v12 = vsel %vm8905_vm3, 0, %v3948_v38  ;;  %v4597_v20 = vrot.slane %v4596_v15, 4  ;;  %3992 = vst [vmem:[#allocation3 + $0x38] sm:$0x1] %v3991_v48  ;;  %3989 = vst [vmem:[#allocation3 + $0x2c] sm:$0x1] %v3988_v27  ;;  %v5040_v24 = vsel %vm8943_vm9, %v8193_v3, %v5039_v19  ;;  %v5043_v45 = vsel %vm8943_vm9, %v5041_v43, %v5042_v5 }
 0x1a0   : > { %v4607_v61 = vrot.slane %v4606_v0, 4  ;;  %3950 = vst [vmem:[#allocation3 + $0x48] sm:$0x1] %v3949_v12  ;;  %v3946_v33 = vsel %vm8905_vm3, 0, %v3945_v35  ;;  %v3997_v42 = vsel %vm8920_vm5, 0, %v3996_v22  ;;  %v3994_v46 = vsel %vm8920_vm5, 0, %v3993_v58 }
 0x1a1   : > { %3947 = vst [vmem:[#allocation3 + $0x3c] sm:$0x1] %v3946_v33  ;;  %v4602_v51 = vsel %vm8972_vm13, %v4597_v20, %v4601_v23  ;;  %3998 = vst [vmem:[#allocation3 + $0x50] sm:$0x1] %v3997_v42  ;;  %v3405_v60 = vsel %vm3372_vm15, %v8007_v63, %v10524_v37  ;;  %v8811_v54 = vld [vmem:[#allocation2 + $0x84] sm:$0xf]  ;;  %v8273_v39 = vcombine.low %v5040_v24, %v5043_v45 }
 0x1a2   : > { %3370 = vrot.lane.b32.xlu1 %v8140_v16, %s8859_s29  ;;  %v4612_v49 = vsel %vm8972_vm13, %v4607_v61, %v4611_v30  ;;  %3995 = vst [vmem:[#allocation3 + $0x44] sm:$0x1] %v3994_v46  ;;  %v8812_v53 = vld [vmem:[#allocation2 + $0x88] sm:$0xf]  ;;  %v3443_v21 = vsel %vm3421_vm1, %v3405_v60, %v10526_v10  ;;  %v3954_v42 = vld [vmem:[#allocation3 + $0x60] sm:$0x1] }
 0x1a3   : > { %v3027_v7 = vpop.permute.xlu1 %3026  ;;  %v8257_v62 = vcombine.low %v4602_v51, %v4612_v49  ;;  %v8008_v32 = vcombine.low %v8811_v54, %v8812_v53  ;;  %v3476_v6 = vsel %vm3454_vm2, %v3443_v21, %v10546_v17  ;;  %v4436_v45 = vld [vmem:[#allocation3 + $0x18] sm:$0xf] }
 0x1a4   : > { %v3509_v37 = vsel %vm3487_vm6, %v3476_v6, %v10581_v36  ;;  %v8813_v21 = vld [vmem:[#allocation2 + $0x90] sm:$0xf]  ;;  %v4429_v6 = vld [vmem:[#allocation3 + $0xc] sm:$0xf] }
 0x1a5   : > { %6478 = vrot.lane.b32.xlu0 %v8257_v62, %s8855_s25  ;;  %v3408_v19 = vsel %vm3372_vm15, %v8008_v32, %v10544_v40  ;;  %v3542_v29 = vsel %vm3520_vm7, %v3509_v37, %v10620_v52  ;;  %v3955_v62 = vsel %vm8905_vm3, 0, %v3954_v42 }
 0x1a6   : > { %v3445_v16 = vsel %vm3421_vm1, %v3408_v19, %v10579_v26  ;;  %v3575_v10 = vsel %vm3553_vm8, %v3542_v29, %v3201_v41  ;;  %3956 = vst [vmem:[#allocation3 + $0x60] sm:$0x1] %v3955_v62 }
 0x1a7   : > { %v3107_v13 = vpop.permute.xlu1 %3106  ;;  %v3281_v56 = vpop.permute.xlu0 %3280  ;;  %v3478_v17 = vsel %vm3454_vm2, %v3445_v16, %v10618_v18  ;;  %v10683_v18 = vld [vmem:[%s12838_s2] ss:$0 sm:$0xff] }
 0x1a8   : > { %v3608_v8 = vsel %vm3586_vm10, %v3575_v10, %v3281_v56  ;;  %v3511_v36 = vsel %vm3487_vm6, %v3478_v17, %v3027_v7  ;;  %v8814_v56 = vld [vmem:[#allocation2 + $0x94] sm:$0xf]  ;;  %v8816_v17 = vld [vmem:[#allocation2 + $0xa0] sm:$0xf] }
 0x1a9   : > { %6558 = vrot.lane.b32.xlu0 %v8273_v39, %s8854_s24  ;;  %v3544_v26 = vsel %vm3520_vm7, %v3511_v36, %v3107_v13  ;;  %v8009_v19 = vcombine.low %v8813_v21, %v8814_v56  ;;  %v4440_v36 = vld [vmem:[#allocation3 + $0x20] sm:$0x1] }
 0x1ab   : > { %v3203_v23 = vpop.permute.xlu1 %3202 }
 0x1ac   : > { %v3577_v52 = vsel %vm3553_vm8, %v3544_v26, %v3203_v23 }
 0x1af   : > { %v3361_v40 = vpop.permute.xlu0 %3360 }
 0x1b0   : > { %v3641_v38 = vsel %vm3619_vm11, %v3608_v8, %v3361_v40  ;;  %v8815_v40 = vld [vmem:[#allocation2 + $0x9c] sm:$0xf] }
 0x1b1   : > { %8648 = vmatprep.mubr.msk.bf16.mxu0 %vm12843_vm4, %v3641_v38  ;;  %v8010_v38 = vcombine.low %v8815_v40, %v8816_v17 }
 0x1b3   : > { %v3283_v30 = vpop.permute.xlu1 %3282 }
 0x1b4   : > { %v3610_v3 = vsel %vm3586_vm10, %v3577_v52, %v3283_v30 }
 0x1b6   : > { %v3363_v43 = vpop.permute.xlu0 %3362 }
 0x1b7   : > { %v3643_v5 = vsel %vm3619_vm11, %v3610_v3, %v3363_v43  ;;  %v2773_v0 = vpop.permute.xlu1 %2772 }
 0x1b8   : > { %8649 = vmatmul.mubr.msk.bf16.gmra.mxu0 %vm12843_vm4, %v3643_v5 }
 0x1ba   : > { %v10685_v35 = vpop.permute.xlu0 %2852 }
 0x1bb   : > { %v8630_v15 = vpop.f32.mrf.mxu0  ;;  %v2775_v20 = vpop.permute.xlu1 %2774 }
 0x1bc   : > { %v3759_v25 = vadd.f32 %v8630_v15, %v10683_v18 }
 0x1bd   : > { %v3750_v31 = vpop.f32.mrf.mxu0 }
 0x1be   : > { %v3879_v22 = vmax.f32 %v3759_v25, 0.0  ;;  %v3751_v58 = vadd.f32 %v10683_v18, %v3750_v31  ;;  %v10689_v9 = vpop.permute.xlu0 %2948  ;;  %v3411_v31 = vsel %vm3372_vm15, %v8009_v19, %v2773_v0 }
 0x1bf   : > { %v8631_v34 = vpop.f32.mrf.mxu0  ;;  %v2855_v16 = vpop.permute.xlu1 %2854  ;;  %v3447_v0 = vsel %vm3421_vm1, %v3411_v31, %v10685_v35 }
 0x1c0   : > { %v8443_v63 = vpack.c.bf16 %v3879_v22, %v3879_v22  ;;  %v3877_v48 = vmax.f32 %v3751_v58, 0.0  ;;  %v3762_v27 = vadd.f32 %v8631_v34, %v10683_v18  ;;  %v4433_v34 = vld [vmem:[#allocation3 + $0x14] sm:$0x1] }
 0x1c1   : > { %v3753_v12 = vpop.f32.mrf.mxu0 }
 0x1c2   : > { %v4127_v61 = vshrl.u32 %v8443_v63, 16  ;;  %v8441_v33 = vpack.c.bf16 %v3877_v48, %v3877_v48  ;;  %v3880_v7 = vmax.f32 %v3762_v27, 0.0  ;;  %v3754_v41 = vadd.f32 %v10683_v18, %v3753_v12 }
 0x1c3   : > { %v4130_v51 = vshll.u32 %v8443_v63, 16  ;;  %v3414_v63 = vsel %vm3372_vm15, %v8010_v38, %v2775_v20 }
 0x1c4   : > { %v4129_v46 = vrot.slane %v4127_v61, 7  ;;  %v4110_v49 = vshrl.u32 %v8441_v33, 16  ;;  %v8444_v24 = vpack.c.bf16 %v3880_v7, %v3880_v7  ;;  %v3878_v60 = vmax.f32 %v3754_v41, 0.0 }
 0x1c5   : > { %v4113_v13 = vshll.u32 %v8441_v33, 16  ;;  %v3951_v33 = vld [vmem:[#allocation3 + $0x54] sm:$0x1]  ;;  %v3449_v42 = vsel %vm3421_vm1, %v3414_v63, %v2855_v16 }
 0x1c6   : > { %v10695_v54 = vpop.permute.xlu0 %3028  ;;  %v4132_v53 = vor.u32 %v4130_v51, %v4129_v46  ;;  %v4112_v32 = vrot.slane %v4110_v49, 7  ;;  %v4135_v39 = vshrl.u32 %v8444_v24, 16  ;;  %v8442_v37 = vpack.c.bf16 %v3878_v60, %v3878_v60 }
 0x1c7   : > { %v4138_v8 = vshll.u32 %v8444_v24, 16  ;;  %v4133_v52 = vrot.slane %v4129_v46, 4  ;;  %v3952_v20 = vsel %vm8905_vm3, 0, %v3951_v33 }
 0x1c8   : > { %v4437_v29 = vsel %vm8965_vm12, %v4132_v53, %v4436_v45  ;;  %v4115_v23 = vor.u32 %v4113_v13, %v4112_v32  ;;  %v4137_v10 = vrot.slane %v4135_v39, 7  ;;  %v4118_v30 = vshrl.u32 %v8442_v37, 16  ;;  %v2951_v61 = vpop.permute.xlu1 %2950  ;;  %3953 = vst [vmem:[#allocation3 + $0x54] sm:$0x1] %v3952_v20 }
 0x1c9   : > { %4438 = vst [vmem:[#allocation3 + $0x18] sm:$0xf] %v4437_v29  ;;  %v4121_v25 = vshll.u32 %v8442_v37, 16  ;;  %v4116_v48 = vrot.slane %v4112_v32, 4  ;;  %v3480_v32 = vsel %vm3454_vm2, %v3447_v0, %v10689_v9  ;;  %v3482_v16 = vsel %vm3454_vm2, %v3449_v42, %v2951_v61 }
 0x1ca   : > { %v3109_v26 = vpop.permute.xlu0 %3108  ;;  %v4430_v3 = vsel %vm8965_vm12, %v4115_v23, %v4429_v6  ;;  %v4140_v43 = vor.u32 %v4138_v8, %v4137_v10  ;;  %v4142_v5 = vrot.slane %v4137_v10, 4  ;;  %v4120_v15 = vrot.slane %v4118_v30, 7 }
 0x1cb   : > { %4431 = vst [vmem:[#allocation3 + $0xc] sm:$0xf] %v4430_v3  ;;  %v3513_v23 = vsel %vm3487_vm6, %v3480_v32, %v10695_v54 }
 0x1cc   : > { %v4141_v22 = vsel %vm8979_vm14, %v4133_v52, %v4140_v43  ;;  %v4441_v58 = vsel %vm8905_vm3, %v4142_v5, %v4440_v36  ;;  %v4123_v27 = vor.u32 %v4121_v25, %v4120_v15  ;;  %v4125_v12 = vrot.slane %v4120_v15, 4 }
 0x1cd   : > { %4439 = vst.msk [vmem:[#allocation3 + $0x1c] sm:$0xf] %vm258_vm0, %v4141_v22  ;;  %4442 = vst [vmem:[#allocation3 + $0x20] sm:$0x1] %v4441_v58  ;;  %v3546_v17 = vsel %vm3520_vm7, %v3513_v23, %v3109_v26 }
 0x1ce   : > { %v4124_v7 = vsel %vm8979_vm14, %v4116_v48, %v4123_v27  ;;  %v4434_v41 = vsel %vm8905_vm3, %v4125_v12, %v4433_v34  ;;  %v3205_v46 = vpop.permute.xlu0 %3204 }
 0x1cf   : > { %4432 = vst.msk [vmem:[#allocation3 + $0x10] sm:$0xf] %vm258_vm0, %v4124_v7  ;;  %4435 = vst [vmem:[#allocation3 + $0x14] sm:$0x1] %v4434_v41  ;;  %v3579_v31 = vsel %vm3553_vm8, %v3546_v17, %v3205_v46 }
 0x1d0   : > { %v5151_v51 = vld [vmem:[#allocation3 + $0x18] sm:$0xf] }
 0x1d1   : > { %v5758_v49 = vld [vmem:[#allocation3 + $0x18] sm:$0xf]  ;;  %v5222_v35 = vshrl.u32 %v5151_v51, 16  ;;  %v5225_v45 = vshll.u32 %v5151_v51, 16 }
 0x1d2   : > { %v5582_v24 = vld [vmem:[#allocation3 + $0x18] sm:$0xe]  ;;  %v5807_v60 = vshrl.u32 %v5758_v49, 16  ;;  %v5810_v62 = vshll.u32 %v5758_v49, 16  ;;  %v5149_v13 = vld [vmem:[#allocation3 + $0xc] sm:$0xf] }
 0x1d3   : > { %v6190_v53 = vld [vmem:[#allocation3 + $0x18] sm:$0xe]  ;;  %v8210_v39 = vrot.slane %v5582_v24, 9  ;;  %v10720_v56 = vrot.slane %v5222_v35, 4  ;;  %v10722_v19 = vrot.slane %v5225_v45, 5  ;;  %v5198_v8 = vshrl.u32 %v5149_v13, 16 }
 0x1d4   : > { %v8225_v21 = vrot.slane %v6190_v53, 9  ;;  %v10724_v6 = vrot.slane %v5807_v60, 4  ;;  %v10726_v37 = vrot.slane %v5810_v62, 5  ;;  %v3031_v29 = vpop.permute.xlu1 %3030  ;;  %v10731_v10 = vld [vmem:[#allocation3 + $0x1c] sm:$0xf]  ;;  %v5201_v40 = vshll.u32 %v5149_v13, 16 }
 0x1d5   : > { %v10733_v9 = vld [vmem:[#allocation3 + $0x1c] sm:$0xf]  ;;  %v8290_v38 = vcombine.low %v5151_v51, %v10731_v10  ;;  %v5235_v36 = vshrl.u32 %v10731_v10, 16  ;;  %v10739_v52 = vld [vmem:[#allocation3 + $0x20] sm:$0x1]  ;;  %v10744_v5 = vrot.slane %v5198_v8, 4  ;;  %v3515_v48 = vsel %vm3487_vm6, %v3482_v16, %v3031_v29 }
 0x1d6   : > { %v5820_v30 = vshrl.u32 %v10733_v9, 16  ;;  %v10741_v3 = vld [vmem:[#allocation3 + $0x20] sm:$0x1]  ;;  %v3285_v43 = vpop.permute.xlu0 %3284  ;;  %v8337_v54 = vcombine.low %v5758_v49, %v10733_v9  ;;  %v10746_v15 = vrot.slane %v5201_v40, 5  ;;  %v5654_v25 = vrot.slane %v10731_v10, 5 }
 0x1d7   : > { %v4974_v26 = vld [vmem:[#allocation3 + $0xc] sm:$0xe]  ;;  %6656 = vrot.lane.b32.xlu1 %v8290_v38, %s8856_s26  ;;  %v10751_v22 = vld [vmem:[#allocation3 + $0x10] sm:$0xf]  ;;  %v5657_v58 = vrot.slane %v10739_v52, 5  ;;  %v6256_v34 = vrot.slane %v10733_v9, 5  ;;  %v3612_v12 = vsel %vm3586_vm10, %v3579_v31, %v3285_v43 }
 0x1d8   : > { %v10755_v63 = vld [vmem:[#allocation3 + $0x1c] sm:$0xf]  ;;  %v3111_v27 = vpop.permute.xlu1 %3110  ;;  %6910 = vrot.lane.b32.xlu0 %v8337_v54, %s8857_s27  ;;  %v5656_v61 = vrot.slane %v5654_v25, 4  ;;  %v6259_v33 = vrot.slane %v10741_v3, 5  ;;  %v10761_v0 = vld [vmem:[#allocation3 + $0x10] sm:$0xf]  ;;  %v8289_v20 = vcombine.low %v5149_v13, %v10751_v22  ;;  %v5655_v42 = vsel %vm8943_vm9, %v8210_v39, %v5654_v25 }
 0x1d9   : > { %v10763_v7 = vld [vmem:[#allocation3 + $0x14] sm:$0x1]  ;;  %v3548_v41 = vsel %vm3520_vm7, %v3515_v48, %v3111_v27  ;;  %v6258_v46 = vrot.slane %v6256_v34, 4  ;;  %v10769_v51 = vld [vmem:[#allocation3 + $0x20] sm:$0x1]  ;;  %v6257_v35 = vsel %vm8943_vm9, %v8225_v21, %v6256_v34  ;;  %v8194_v45 = vrot.slane %v4974_v26, 9 }
 0x1da   : > { %v4975_v49 = vld [vmem:[#allocation3 + $0x18] sm:$0xe]  ;;  %v5658_v24 = vsel %vm8943_vm9, %v5656_v61, %v5657_v58  ;;  %v5046_v60 = vrot.slane %v10761_v0, 5  ;;  %v5581_v62 = vld [vmem:[#allocation3 + $0xc] sm:$0xe]  ;;  %v5049_v13 = vrot.slane %v10763_v7, 5 }
 0x1db   : > { %v8322_v53 = vcombine.low %v5655_v42, %v5658_v24  ;;  %v6260_v32 = vsel %vm8943_vm9, %v6258_v46, %v6259_v33  ;;  %v5053_v39 = vrot.slane %v10755_v63, 5  ;;  %v8195_v8 = vrot.slane %v4975_v49, 9  ;;  %v10785_v38 = vld [vmem:[#allocation3 + $0x14] sm:$0x1]  ;;  %v8634_v31 = vpop.f32.mrf.mxu0 }
 0x1dc   : > { %v3207_v16 = vpop.permute.xlu1 %3206  ;;  %6654 = vrot.lane.b32.xlu0 %v8289_v20, %s8856_s26  ;;  %v8369_v29 = vcombine.low %v6257_v35, %v6260_v32  ;;  %v5048_v23 = vrot.slane %v5046_v60, 4  ;;  %v5056_v21 = vrot.slane %v10769_v51, 5  ;;  %v5047_v40 = vsel %vm8943_vm9, %v8194_v45, %v5046_v60 }
 0x1dd   : > { %6816 = vrot.lane.b32.xlu1 %v8322_v53, %s8858_s28  ;;  %v5055_v17 = vrot.slane %v5053_v39, 4  ;;  %v8209_v43 = vrot.slane %v5581_v62, 9  ;;  %v5647_v54 = vrot.slane %v10751_v22, 5  ;;  %v3581_v25 = vsel %vm3553_vm8, %v3548_v41, %v3207_v16  ;;  %v3766_v41 = vpop.f32.mrf.mxu0 }
 0x1de   : > { %v3365_v26 = vpop.permute.xlu0 %3364  ;;  %v5050_v58 = vsel %vm8943_vm9, %v5048_v23, %v5049_v13  ;;  %v5054_v34 = vsel %vm8943_vm9, %v8195_v8, %v5053_v39  ;;  %v5231_v48 = vshll.u32 %v10731_v10, 16  ;;  %v3775_v61 = vadd.f32 %v8634_v31, %v10683_v18 }
 0x1df   : > { %v3645_v27 = vsel %vm3619_vm11, %v3612_v12, %v3365_v26  ;;  %v8274_v33 = vcombine.low %v5047_v40, %v5050_v58  ;;  %v5057_v20 = vsel %vm8943_vm9, %v5055_v17, %v5056_v21  ;;  %v5649_v46 = vrot.slane %v5647_v54, 4  ;;  %v8635_v62 = vpop.f32.mrf.mxu0 }
 0x1e0   : > { %8652 = vmatprep.mubr.msk.bf16.mxu0 %vm12843_vm4, %v3645_v27  ;;  %7070 = vrot.lane.b32.xlu0 %v8369_v29, %s8859_s29  ;;  %v8275_v42 = vcombine.low %v5054_v34, %v5057_v20  ;;  %v5650_v49 = vrot.slane %v10785_v38, 5  ;;  %v5228_v24 = vor.u32 %v10722_v19, %v10720_v56  ;;  %v3883_v35 = vmax.f32 %v3775_v61, 0.0 }
 0x1e1   : > { %v3767_v12 = vadd.f32 %v10683_v18, %v3766_v41  ;;  %6560 = vrot.lane.b32.xlu1 %v8274_v33, %s8854_s24  ;;  %v5233_v45 = vrot.slane %v5231_v48, 5  ;;  %v5237_v60 = vrot.slane %v5235_v36, 4  ;;  %v5241_v32 = vshll.u32 %v10739_v52, 16  ;;  %v3769_v36 = vpop.f32.mrf.mxu0 }
 0x1e2   : > { %v5651_v53 = vsel %vm8943_vm9, %v5649_v46, %v5650_v49  ;;  %v5813_v13 = vor.u32 %v10726_v37, %v10724_v6  ;;  %v5816_v56 = vshll.u32 %v10733_v9, 16  ;;  %v8447_v19 = vpack.c.bf16 %v3883_v35, %v3883_v35 }
 0x1e3   : > { %v3881_v39 = vmax.f32 %v3767_v12, 0.0  ;;  %v3778_v16 = vadd.f32 %v8635_v62, %v10683_v18  ;;  %v5648_v29 = vsel %vm8943_vm9, %v8209_v43, %v5647_v54  ;;  %v5229_v8 = vrot.slane %v5228_v24, 4 }
 0x1e4   : > { %v3287_v10 = vpop.permute.xlu1 %3286  ;;  %6562 = vrot.lane.b32.xlu0 %v8275_v42, %s8854_s24  ;;  %v8321_v23 = vcombine.low %v5648_v29, %v5651_v53  ;;  %v5238_v21 = vor.u32 %v5237_v60, %v5233_v45  ;;  %v5243_v52 = vrot.slane %v5241_v32, 5  ;;  %v4161_v6 = vshrl.u32 %v8447_v19, 16  ;;  %v4443_v53 = vld [vmem:[#allocation3 + $0x24] sm:$0xf] }
 0x1e5   : > { %v3614_v40 = vsel %vm3586_vm10, %v3581_v25, %v3287_v10  ;;  %v8445_v37 = vpack.c.bf16 %v3881_v39, %v3881_v39  ;;  %v10818_v17 = vrot.slane %v5813_v13, 4  ;;  %v3884_v31 = vmax.f32 %v3778_v16, 0.0  ;;  %v4450_v25 = vld [vmem:[#allocation3 + $0x30] sm:$0xf] }
 0x1e6   : > { %v3367_v26 = vpop.permute.xlu0 %3366  ;;  %v3770_v58 = vadd.f32 %v10683_v18, %v3769_v36  ;;  %v5239_v34 = vrot.slane %v5238_v21, 4  ;;  %v10821_v43 = vrot.slane %v5816_v56, 5  ;;  %v4163_v48 = vrot.slane %v4161_v6, 7  ;;  %v4545_v56 = vld [vmem:[#allocation3 + $0x18] sm:$0xf] }
 0x1e7   : > { %v3647_v54 = vsel %vm3619_vm11, %v3614_v40, %v3367_v26  ;;  %v4164_v27 = vshll.u32 %v8447_v19, 16  ;;  %v4144_v61 = vshrl.u32 %v8445_v37, 16  ;;  %v5211_v20 = vshrl.u32 %v10751_v22, 16 }
 0x1e8   : > { %v2777_v33 = vpop.permute.xlu1 %2776  ;;  %8653 = vmatmul.mubr.msk.bf16.gmra.mxu0 %vm12843_vm4, %v3647_v54  ;;  %v8448_v41 = vpack.c.bf16 %v3884_v31, %v3884_v31  ;;  %v3882_v42 = vmax.f32 %v3770_v58, 0.0  ;;  %6814 = vrot.lane.b32.xlu0 %v8321_v23, %s8858_s28  ;;  %v5234_v46 = vsel %vm8972_vm13, %v5229_v8, %v5233_v45  ;;  %v4147_v35 = vshll.u32 %v8445_v37, 16  ;;  %v4454_v8 = vld [vmem:[#allocation3 + $0x38] sm:$0x1] }
 0x1e9   : > { %v4166_v49 = vor.u32 %v4164_v27, %v4163_v48  ;;  %v4146_v24 = vrot.slane %v4144_v61, 7  ;;  %v5244_v12 = vsel %vm8972_vm13, %v5239_v34, %v5243_v52  ;;  %v3417_v60 = vsel %vm3372_vm15, %v8011_v4, %v2777_v33  ;;  %v4447_v34 = vld [vmem:[#allocation3 + $0x2c] sm:$0x1] }
 0x1ea   : > { %v2857_v62 = vpop.permute.xlu0 %2856  ;;  %v4169_v32 = vshrl.u32 %v8448_v41, 16  ;;  %v8446_v13 = vpack.c.bf16 %v3882_v42, %v3882_v42  ;;  %v5819_v45 = vsel %vm8972_vm13, %v10818_v17, %v10821_v43  ;;  %v4167_v19 = vrot.slane %v4163_v48, 4 }
 0x1eb   : > { %v4451_v39 = vsel %vm8965_vm12, %v4166_v49, %v4450_v25  ;;  %v4149_v16 = vor.u32 %v4147_v35, %v4146_v24  ;;  %v4172_v29 = vshll.u32 %v8448_v41, 16  ;;  %v10841_v4 = vcombine.low %v5234_v46, %v5244_v12 }
 0x1ec   : > { %4452 = vst [vmem:[#allocation3 + $0x30] sm:$0xf] %v4451_v39  ;;  %v4171_v59 = vrot.slane %v4169_v32, 7  ;;  %v4152_v28 = vshrl.u32 %v8446_v13, 16  ;;  %v5822_v10 = vrot.slane %v5820_v30, 4  ;;  %v3451_v36 = vsel %vm3421_vm1, %v3417_v60, %v2857_v62  ;;  %v2779_v40 = vpop.permute.xlu1 %2778 }
 0x1ed   : > { %v4444_v23 = vsel %vm8965_vm12, %v4149_v16, %v4443_v53  ;;  %v4155_v21 = vshll.u32 %v8446_v13, 16  ;;  %v4638_v52 = vshrl.u32 %v4545_v56, 16  ;;  %v4150_v58 = vrot.slane %v4146_v24, 4 }
 0x1ee   : > { %4445 = vst [vmem:[#allocation3 + $0x24] sm:$0xf] %v4444_v23  ;;  %v4174_v6 = vor.u32 %v4172_v29, %v4171_v59  ;;  %v4176_v37 = vrot.slane %v4171_v59, 4  ;;  %v4154_v26 = vrot.slane %v4152_v28, 7  ;;  %v5823_v31 = vor.u32 %v5822_v10, %v10821_v43  ;;  %v2953_v48 = vpop.permute.xlu0 %2952 }
 0x1ef   : > { %v5826_v9 = vshll.u32 %v10741_v3, 16  ;;  %v4640_v30 = vrot.slane %v4638_v52, 4  ;;  %v4641_v54 = vshll.u32 %v4545_v56, 16  ;;  %v3420_v41 = vsel %vm3372_vm15, %v8012_v11, %v2779_v40 }
 0x1f0   : > { %v4175_v27 = vsel %vm8979_vm14, %v4167_v19, %v4174_v6  ;;  %v4455_v61 = vsel %vm8905_vm3, %v4176_v37, %v4454_v8  ;;  %v4157_v33 = vor.u32 %v4155_v21, %v4154_v26  ;;  %v4159_v25 = vrot.slane %v4154_v26, 4  ;;  %v2859_v32 = vpop.permute.xlu1 %2858 }
 0x1f1   : > { %4453 = vst.msk [vmem:[#allocation3 + $0x34] sm:$0xf] %vm258_vm0, %v4175_v27  ;;  %4456 = vst [vmem:[#allocation3 + $0x38] sm:$0x1] %v4455_v61  ;;  %v5824_v3 = vrot.slane %v5823_v31, 4  ;;  %v4643_v42 = vrot.slane %v4641_v54, 5  ;;  %v3484_v55 = vsel %vm3454_vm2, %v3451_v36, %v2953_v48 }
 0x1f2   : > { %v4647_v46 = vshll.u32 %v10755_v63, 16  ;;  %v4158_v49 = vsel %vm8979_vm14, %v4150_v58, %v4157_v33  ;;  %v4448_v24 = vsel %vm8905_vm3, %v4159_v25, %v4447_v34  ;;  %v4651_v35 = vshrl.u32 %v10755_v63, 16 }
 0x1f3   : > { %v4657_v12 = vshll.u32 %v10769_v51, 16  ;;  %4446 = vst.msk [vmem:[#allocation3 + $0x28] sm:$0xf] %vm258_vm0, %v4158_v49  ;;  %4449 = vst [vmem:[#allocation3 + $0x2c] sm:$0x1] %v4448_v24  ;;  %v5828_v60 = vrot.slane %v5826_v9, 5  ;;  %v4644_v62 = vor.u32 %v4643_v42, %v4640_v30  ;;  %v3453_v63 = vsel %vm3421_vm1, %v3420_v41, %v2859_v32 }
 0x1f4   : > { %v5155_v44 = vld [vmem:[#allocation3 + $0x30] sm:$0xf]  ;;  %v10868_v53 = vrot.slane %v4647_v46, 5  ;;  %v4653_v29 = vrot.slane %v4651_v35, 4  ;;  %v5204_v30 = vor.u32 %v10746_v15, %v10744_v5  ;;  %v4543_v49 = vld [vmem:[#allocation3 + $0xc] sm:$0xf] }
 0x1f5   : > { %v5762_v11 = vld [vmem:[#allocation3 + $0x30] sm:$0xf]  ;;  %v5270_v13 = vshrl.u32 %v5155_v44, 16  ;;  %v5273_v56 = vshll.u32 %v5155_v44, 16  ;;  %v5829_v51 = vsel %vm8972_vm13, %v5824_v3, %v5828_v60  ;;  %v4645_v16 = vrot.slane %v4644_v62, 4 }
 0x1f6   : > { %v5855_v19 = vshrl.u32 %v5762_v11, 16  ;;  %v5858_v39 = vshll.u32 %v5762_v11, 16  ;;  %v10873_v59 = vld [vmem:[#allocation3 + $0x24] sm:$0xf]  ;;  %v4659_v23 = vrot.slane %v4657_v12, 5  ;;  %v4654_v40 = vor.u32 %v4653_v29, %v10868_v53 }
 0x1f7   : > { %v10875_v28 = vrot.slane %v5270_v13, 4  ;;  %v10877_v10 = vrot.slane %v5273_v56, 5  ;;  %v10881_v8 = vld [vmem:[#allocation3 + $0x24] sm:$0xf]  ;;  %v3033_v21 = vpop.permute.xlu0 %3032  ;;  %v5246_v6 = vshrl.u32 %v10873_v59, 16  ;;  %v5249_v37 = vshll.u32 %v10873_v59, 16 }
 0x1f8   : > { %v10879_v36 = vrot.slane %v5855_v19, 4  ;;  %v10883_v52 = vrot.slane %v5858_v39, 5  ;;  %v10888_v26 = vld [vmem:[#allocation3 + $0x34] sm:$0xf]  ;;  %v8353_v58 = vcombine.low %v5819_v45, %v5829_v51  ;;  %v5831_v34 = vshrl.u32 %v10881_v8, 16 }
 0x1f9   : > { %v10890_v31 = vld [vmem:[#allocation3 + $0x34] sm:$0xf]  ;;  %v5834_v9 = vshll.u32 %v10881_v8, 16  ;;  %v3517_v54 = vsel %vm3487_vm6, %v3484_v55, %v3033_v21  ;;  %v8292_v48 = vcombine.low %v5155_v44, %v10888_v26  ;;  %v4650_v61 = vsel %vm8972_vm13, %v4645_v16, %v10868_v53  ;;  %v6192_v39 = vld [vmem:[#allocation3 + $0x30] sm:$0xe] }
 0x1fa   : > { %v8339_v27 = vcombine.low %v5762_v11, %v10890_v31  ;;  %v2955_v33 = vpop.permute.xlu1 %2954  ;;  %v5283_v17 = vshrl.u32 %v10888_v26, 16  ;;  %v5868_v43 = vshrl.u32 %v10890_v31, 16  ;;  %v4655_v45 = vrot.slane %v4654_v40, 4  ;;  %v10909_v25 = vld [vmem:[#allocation3 + $0x28] sm:$0xf] }
 0x1fb   : > { %v5276_v5 = vor.u32 %v10877_v10, %v10875_v28  ;;  %v10914_v15 = vsel %vm3454_vm2, %v3453_v63, %v2955_v33  ;;  %v3113_v41 = vpop.permute.xlu0 %3112  ;;  %6660 = vrot.lane.b32.xlu1 %v8292_v48, %s8856_s26  ;;  %v10918_v3 = vrot.slane %v5246_v6, 4  ;;  %v10920_v42 = vrot.slane %v5249_v37, 5  ;;  %v10928_v55 = vld [vmem:[#allocation3 + $0x28] sm:$0xf] }
 0x1fc   : > { %6914 = vrot.lane.b32.xlu0 %v8339_v27, %s8857_s27  ;;  %v10922_v46 = vrot.slane %v5831_v34, 4  ;;  %v3550_v24 = vsel %vm3520_vm7, %v3517_v54, %v3113_v41  ;;  %v5259_v35 = vshrl.u32 %v10909_v25, 16  ;;  %v8291_v12 = vcombine.low %v10873_v59, %v10909_v25 }
 0x1fd   : > { %v10930_v44 = vrot.slane %v5834_v9, 5  ;;  %v4660_v11 = vsel %vm8972_vm13, %v4655_v45, %v4659_v23  ;;  %v5205_v60 = vrot.slane %v5204_v30, 4  ;;  %v5207_v62 = vshll.u32 %v10751_v22, 16  ;;  %v5584_v23 = vld [vmem:[#allocation3 + $0x30] sm:$0xe] }
 0x1fe   : > { %v5213_v53 = vrot.slane %v5211_v20, 4  ;;  %v5217_v32 = vshll.u32 %v10785_v38, 16  ;;  %v4614_v13 = vshrl.u32 %v4543_v49, 16  ;;  %v4617_v56 = vshll.u32 %v4543_v49, 16  ;;  %v10952_v9 = vld [vmem:[#allocation3 + $0x38] sm:$0x1] }
 0x1ff   : > { %v4623_v19 = vshll.u32 %v10761_v0, 16  ;;  %6736 = vrot.lane.b32.xlu1 %v10841_v4, %s8860_s30  ;;  %v5844_v63 = vshrl.u32 %v10928_v55, 16  ;;  %v5209_v51 = vrot.slane %v5207_v62, 5  ;;  %v4627_v16 = vshrl.u32 %v10761_v0, 16  ;;  %v10947_v4 = vld [vmem:[#allocation3 + $0x38] sm:$0x1]  ;;  %v3209_v30 = vpop.permute.xlu0 %3208 }
 0x200   : > { %6990 = vrot.lane.b32.xlu0 %v8353_v58, %s8861_s6  ;;  %v4633_v22 = vshll.u32 %v10763_v7, 16  ;;  %v8259_v20 = vcombine.low %v4650_v61, %v4660_v11  ;;  %v8338_v38 = vcombine.low %v10881_v8, %v10928_v55  ;;  %v4616_v29 = vrot.slane %v4614_v13, 4  ;;  %v4977_v49 = vld [vmem:[#allocation3 + $0x30] sm:$0xe] }
 0x201   : > { %v4619_v59 = vrot.slane %v4617_v56, 5  ;;  %v5214_v21 = vor.u32 %v5213_v53, %v5209_v51  ;;  %v4625_v40 = vrot.slane %v4623_v19, 5  ;;  %v4629_v6 = vrot.slane %v4627_v16, 4  ;;  %v10970_v16 = vld [vmem:[#allocation3 + $0x28] sm:$0xf] }
 0x202   : > { %v8227_v37 = vrot.slane %v6192_v39, 9  ;;  %v5210_v58 = vsel %vm8972_vm13, %v5205_v60, %v5209_v51  ;;  %v5219_v34 = vrot.slane %v5217_v32, 5  ;;  %v6270_v7 = vrot.slane %v10890_v31, 5  ;;  %v10968_v51 = vld [vmem:[#allocation3 + $0x38] sm:$0x1] }
 0x203   : > { %v4620_v0 = vor.u32 %v4619_v59, %v4616_v29  ;;  %6482 = vrot.lane.b32.xlu1 %v8259_v20, %s8855_s25  ;;  %v5215_v8 = vrot.slane %v5214_v21, 4  ;;  %v4630_v54 = vor.u32 %v4629_v6, %v4625_v40  ;;  %v4635_v48 = vrot.slane %v4633_v22, 5  ;;  %v10981_v59 = vld [vmem:[#allocation3 + $0x2c] sm:$0x1]  ;;  %v6191_v21 = vld [vmem:[#allocation3 + $0x24] sm:$0xe] }
 0x204   : > { %6658 = vrot.lane.b32.xlu0 %v8291_v12, %s8856_s26  ;;  %v5668_v27 = vrot.slane %v10888_v26, 5  ;;  %v6272_v33 = vrot.slane %v6270_v7, 4  ;;  %v6273_v45 = vrot.slane %v10947_v4, 5  ;;  %v8212_v41 = vrot.slane %v5584_v23, 9  ;;  %v3035_v11 = vpop.permute.xlu1 %3034  ;;  %v10961_v12 = vld [vmem:[#allocation3 + $0x34] sm:$0xf] }
 0x205   : > { %v4621_v61 = vrot.slane %v4620_v0, 4  ;;  %v5220_v60 = vsel %vm8972_vm13, %v5215_v8, %v5219_v34  ;;  %v4631_v62 = vrot.slane %v4630_v54, 4  ;;  %v5671_v32 = vrot.slane %v10952_v9, 5  ;;  %v4976_v23 = vld [vmem:[#allocation3 + $0x24] sm:$0xe] }
 0x206   : > { %v5670_v53 = vrot.slane %v5668_v27, 4  ;;  %v3583_v13 = vsel %vm3553_vm8, %v3550_v24, %v3209_v30  ;;  %v8305_v56 = vcombine.low %v5210_v58, %v5220_v60  ;;  %v6271_v19 = vsel %vm8943_vm9, %v8227_v37, %v6270_v7  ;;  %v10989_v54 = vld [vmem:[#allocation3 + $0x2c] sm:$0x1] }
 0x207   : > { %v6274_v39 = vsel %vm8943_vm9, %v6272_v33, %v6273_v45  ;;  %v3519_v22 = vsel %vm3487_vm6, %v10914_v15, %v3035_v11  ;;  %6912 = vrot.lane.b32.xlu1 %v8338_v38, %s8857_s27  ;;  %v4636_v20 = vsel %vm8972_vm13, %v4631_v62, %v4635_v48  ;;  %v5669_v24 = vsel %vm8943_vm9, %v8212_v41, %v5668_v27  ;;  %v10996_v60 = vld [vmem:[#allocation3 + $0x2c] sm:$0x1] }
 0x208   : > { %v5672_v29 = vsel %vm8943_vm9, %v5670_v53, %v5671_v32  ;;  %6734 = vrot.lane.b32.xlu0 %v8305_v56, %s8860_s30  ;;  %v4626_v15 = vsel %vm8972_vm13, %v4621_v61, %v4625_v40  ;;  %v8371_v6 = vcombine.low %v6271_v19, %v6274_v39  ;;  %v8197_v38 = vrot.slane %v4977_v49, 9  ;;  %v3115_v58 = vpop.permute.xlu1 %3114  ;;  %v3289_v34 = vpop.permute.xlu0 %3288  ;;  %v5583_v40 = vld [vmem:[#allocation3 + $0x24] sm:$0xe] }
 0x209   : > { %v5067_v37 = vrot.slane %v10961_v12, 5  ;;  %v8258_v0 = vcombine.low %v4626_v15, %v4636_v20  ;;  %v8324_v7 = vcombine.low %v5669_v24, %v5672_v29  ;;  %v5070_v30 = vrot.slane %v10968_v51, 5 }
 0x20a   : > { %v5060_v8 = vrot.slane %v10970_v16, 5  ;;  %v8196_v27 = vrot.slane %v4976_v23, 9  ;;  %v5063_v33 = vrot.slane %v10981_v59, 5  ;;  %v8226_v45 = vrot.slane %v6191_v21, 9 }
 0x20b   : > { %v5069_v48 = vrot.slane %v5067_v37, 4  ;;  %v3552_v61 = vsel %vm3520_vm7, %v3519_v22, %v3115_v58  ;;  %v3616_v41 = vsel %vm3586_vm10, %v3583_v13, %v3289_v34  ;;  %6480 = vrot.lane.b32.xlu1 %v8258_v0, %s8855_s25  ;;  %v6263_v11 = vrot.slane %v10928_v55, 5 }
 0x20c   : > { %v5062_v49 = vrot.slane %v5060_v8, 4  ;;  %7074 = vrot.lane.b32.xlu0 %v8371_v6, %s8859_s29  ;;  %v5068_v62 = vsel %vm8943_vm9, %v8197_v38, %v5067_v37  ;;  %v5061_v32 = vsel %vm8943_vm9, %v8196_v27, %v5060_v8  ;;  %v5661_v13 = vrot.slane %v10909_v25, 5  ;;  %v3211_v56 = vpop.permute.xlu1 %3210  ;;  %v3369_v19 = vpop.permute.xlu0 %3368 }
 0x20d   : > { %v5071_v53 = vsel %vm8943_vm9, %v5069_v48, %v5070_v30  ;;  %v6265_v22 = vrot.slane %v6263_v11, 4  ;;  %v6266_v20 = vrot.slane %v10989_v54, 5  ;;  %v8211_v24 = vrot.slane %v5583_v40, 9 }
 0x20e   : > { %v5064_v39 = vsel %vm8943_vm9, %v5062_v49, %v5063_v33  ;;  %v3649_v29 = vsel %vm3619_vm11, %v3616_v41, %v3369_v19  ;;  %v8638_v23 = vpop.f32.mrf.mxu0  ;;  %v8277_v21 = vcombine.low %v5068_v62, %v5071_v53  ;;  %v6264_v15 = vsel %vm8943_vm9, %v8226_v45, %v6263_v11 }
 0x20f   : > { %v5664_v6 = vrot.slane %v10996_v60, 5  ;;  %v3585_v38 = vsel %vm3553_vm8, %v3552_v61, %v3211_v56  ;;  %8656 = vmatprep.mubr.msk.bf16.mxu0 %vm12843_vm4, %v3649_v29  ;;  %v3791_v37 = vadd.f32 %v8638_v23, %v10683_v18  ;;  %6820 = vrot.lane.b32.xlu1 %v8324_v7, %s8858_s28  ;;  %v6267_v58 = vsel %vm8943_vm9, %v6265_v22, %v6266_v20 }
 0x210   : > { %v5663_v34 = vrot.slane %v5661_v13, 4  ;;  %v3782_v0 = vpop.f32.mrf.mxu0  ;;  %6566 = vrot.lane.b32.xlu0 %v8277_v21, %s8854_s24  ;;  %v8276_v30 = vcombine.low %v5061_v32, %v5064_v39  ;;  %v5662_v8 = vsel %vm8943_vm9, %v8211_v24, %v5661_v13  ;;  %v5279_v48 = vshll.u32 %v10888_v26, 16  ;;  %v3291_v33 = vpop.permute.xlu1 %3290 }
 0x211   : > { %v5285_v27 = vrot.slane %v5283_v17, 4  ;;  %v3887_v45 = vmax.f32 %v3791_v37, 0.0  ;;  %v3783_v7 = vadd.f32 %v10683_v18, %v3782_v0  ;;  %v5289_v61 = vshll.u32 %v10952_v9, 16 }
 0x212   : > { %v5665_v40 = vsel %vm8943_vm9, %v5663_v34, %v5664_v6  ;;  %v8639_v41 = vpop.f32.mrf.mxu0  ;;  %v8370_v49 = vcombine.low %v6264_v15, %v6267_v58  ;;  %v11032_v11 = vrot.slane %v5276_v5, 4  ;;  %v11034_v62 = vrot.slane %v5279_v48, 5  ;;  %v4464_v6 = vld [vmem:[#allocation3 + $0x48] sm:$0xf]  ;;  %v4549_v48 = vld [vmem:[#allocation3 + $0x30] sm:$0xf] }
 0x213   : > { %v5861_v26 = vor.u32 %v10883_v52, %v10879_v36  ;;  %v3618_v17 = vsel %vm3586_vm10, %v3585_v38, %v3291_v33  ;;  %v8451_v53 = vpack.c.bf16 %v3887_v45, %v3887_v45  ;;  %v3885_v32 = vmax.f32 %v3783_v7, 0.0  ;;  %6564 = vrot.lane.b32.xlu1 %v8276_v30, %s8854_s24  ;;  %v4457_v33 = vld [vmem:[#allocation3 + $0x3c] sm:$0xf] }
 0x214   : > { %v3794_v13 = vadd.f32 %v8639_v41, %v10683_v18  ;;  %v3785_v9 = vpop.f32.mrf.mxu0  ;;  %7072 = vrot.lane.b32.xlu0 %v8370_v49, %s8859_s29  ;;  %v8323_v56 = vcombine.low %v5662_v8, %v5665_v40  ;;  %v5286_v28 = vor.u32 %v5285_v27, %v11034_v62  ;;  %v5864_v10 = vshll.u32 %v10890_v31, 16  ;;  %v3371_v36 = vpop.permute.xlu1 %3370 }
 0x215   : > { %v5870_v5 = vrot.slane %v5868_v43, 4  ;;  %v4195_v52 = vshrl.u32 %v8451_v53, 16  ;;  %v8449_v19 = vpack.c.bf16 %v3885_v32, %v3885_v32  ;;  %v11046_v22 = vrot.slane %v5289_v61, 5 }
 0x216   : > { %v3888_v39 = vmax.f32 %v3794_v13, 0.0  ;;  %v3651_v20 = vsel %vm3619_vm11, %v3618_v17, %v3371_v36  ;;  %v3786_v24 = vadd.f32 %v10683_v18, %v3785_v9  ;;  %v11050_v29 = vrot.slane %v5286_v28, 4  ;;  %v4468_v17 = vld [vmem:[#allocation3 + $0x50] sm:$0x1] }
 0x217   : > { %v11052_v23 = vrot.slane %v5864_v10, 5  ;;  %8657 = vmatmul.mubr.msk.bf16.gmra.mxu0 %vm12843_vm4, %v3651_v20  ;;  %v4197_v21 = vrot.slane %v4195_v52, 7  ;;  %v4198_v15 = vshll.u32 %v8451_v53, 16  ;;  %v4178_v31 = vshrl.u32 %v8449_v19, 16  ;;  %v4461_v52 = vld [vmem:[#allocation3 + $0x44] sm:$0x1] }
 0x218   : > { %v8452_v43 = vpack.c.bf16 %v3888_v39, %v3888_v39  ;;  %v3886_v38 = vmax.f32 %v3786_v24, 0.0  ;;  %6818 = vrot.lane.b32.xlu0 %v8323_v56, %s8858_s28  ;;  %v5282_v37 = vsel %vm8972_vm13, %v11032_v11, %v11034_v62  ;;  %v11060_v18 = vrot.slane %v5861_v26, 4 }
 0x219   : > { %v5871_v58 = vor.u32 %v5870_v5, %v11052_v23  ;;  %v4200_v34 = vor.u32 %v4198_v15, %v4197_v21  ;;  %v4180_v0 = vrot.slane %v4178_v31, 7  ;;  %v4181_v30 = vshll.u32 %v8449_v19, 16  ;;  %v3999_v15 = vld [vmem:[#allocation3 + $0x5c] sm:$0x1] }
 0x21a   : > { %v4203_v8 = vshrl.u32 %v8452_v43, 16  ;;  %v4201_v27 = vrot.slane %v4197_v21, 4  ;;  %v4206_v45 = vshll.u32 %v8452_v43, 16  ;;  %v8450_v7 = vpack.c.bf16 %v3886_v38, %v3886_v38  ;;  %v4002_v21 = vld [vmem:[#allocation3 + $0x68] sm:$0x1] }
 0x21b   : > { %v5292_v40 = vsel %vm8972_vm13, %v11050_v29, %v11046_v22  ;;  %v4465_v61 = vsel %vm8965_vm12, %v4200_v34, %v4464_v6  ;;  %v4183_v41 = vor.u32 %v4181_v30, %v4180_v0  ;;  %v5872_v26 = vrot.slane %v5871_v58, 4 }
 0x21c   : > { %v4205_v49 = vrot.slane %v4203_v8, 7  ;;  %4466 = vst [vmem:[#allocation3 + $0x48] sm:$0xf] %v4465_v61  ;;  %v4186_v53 = vshrl.u32 %v8450_v7, 16  ;;  %v4189_v32 = vshll.u32 %v8450_v7, 16  ;;  %v5874_v13 = vshll.u32 %v10947_v4, 16 }
 0x21d   : > { %v4686_v9 = vshrl.u32 %v4549_v48, 16  ;;  %v4458_v56 = vsel %vm8965_vm12, %v4183_v41, %v4457_v33  ;;  %v4689_v5 = vshll.u32 %v4549_v48, 16  ;;  %v4695_v22 = vshll.u32 %v10961_v12, 16 }
 0x21e   : > { %v4208_v28 = vor.u32 %v4206_v45, %v4205_v49  ;;  %v4210_v10 = vrot.slane %v4205_v49, 4  ;;  %4459 = vst [vmem:[#allocation3 + $0x3c] sm:$0xf] %v4458_v56  ;;  %v4188_v36 = vrot.slane %v4186_v53, 7  ;;  %v5876_v19 = vrot.slane %v5874_v13, 5 }
 0x21f   : > { %v4688_v39 = vrot.slane %v4686_v9, 4  ;;  %v4691_v24 = vrot.slane %v4689_v5, 5  ;;  %v4699_v29 = vshrl.u32 %v10961_v12, 16  ;;  %v4184_v31 = vrot.slane %v4180_v0, 4 }
 0x220   : > { %v4209_v20 = vsel %vm8979_vm14, %v4201_v27, %v4208_v28  ;;  %v4469_v4 = vsel %vm8905_vm3, %v4210_v10, %v4468_v17  ;;  %v4191_v43 = vor.u32 %v4189_v32, %v4188_v36  ;;  %v4193_v6 = vrot.slane %v4188_v36, 4 }
 0x221   : > { %4467 = vst.msk [vmem:[#allocation3 + $0x4c] sm:$0xf] %vm258_vm0, %v4209_v20  ;;  %4470 = vst [vmem:[#allocation3 + $0x50] sm:$0x1] %v4469_v4  ;;  %v4697_v38 = vrot.slane %v4695_v22, 5  ;;  %v5877_v58 = vsel %vm8972_vm13, %v5872_v26, %v5876_v19  ;;  %v4692_v34 = vor.u32 %v4691_v24, %v4688_v39  ;;  %v4701_v30 = vrot.slane %v4699_v29, 4 }
 0x222   : > { %v4705_v8 = vshll.u32 %v10968_v51, 16  ;;  %v4192_v48 = vsel %vm8979_vm14, %v4184_v31, %v4191_v43  ;;  %v4462_v12 = vsel %vm8905_vm3, %v4193_v6, %v4461_v52  ;;  %v4003_v0 = vsel %vm8920_vm5, 0, %v4002_v21  ;;  %v8818_v52 = vld [vmem:[#allocation3 + $0x4] sm:$0xf] }
 0x223   : > { %v4000_v27 = vsel %vm8920_vm5, 0, %v3999_v15  ;;  %4460 = vst.msk [vmem:[#allocation3 + $0x40] sm:$0xf] %vm258_vm0, %v4192_v48  ;;  %4463 = vst [vmem:[#allocation3 + $0x44] sm:$0x1] %v4462_v12  ;;  %v5867_v51 = vsel %vm8972_vm13, %v11060_v18, %v11052_v23  ;;  %v4693_v7 = vrot.slane %v4692_v34, 4  ;;  %v4702_v61 = vor.u32 %v4701_v30, %v4697_v38  ;;  %v6479_v34 = vpop.permute.xlu0 %6478 }
 0x224   : > { %v5159_v33 = vld [vmem:[#allocation3 + $0x48] sm:$0xf]  ;;  %4004 = vst [vmem:[#allocation3 + $0x68] sm:$0x1] %v4003_v0  ;;  %4001 = vst [vmem:[#allocation3 + $0x5c] sm:$0x1] %v4000_v27  ;;  %v5252_v41 = vor.u32 %v10920_v42, %v10918_v3  ;;  %v8308_v32 = vcombine.low %v5282_v37, %v5292_v40  ;;  %v8355_v13 = vcombine.low %v5867_v51, %v5877_v58 }
 0x225   : > { %v5766_v45 = vld [vmem:[#allocation3 + $0x48] sm:$0xf]  ;;  %v5318_v49 = vshrl.u32 %v5159_v33, 16  ;;  %v5321_v26 = vshll.u32 %v5159_v33, 16  ;;  %v4703_v9 = vrot.slane %v4702_v61, 4  ;;  %v4707_v23 = vrot.slane %v4705_v8, 5 }
 0x226   : > { %v5903_v17 = vshrl.u32 %v5766_v45, 16  ;;  %v5906_v53 = vshll.u32 %v5766_v45, 16  ;;  %v11102_v18 = vld [vmem:[#allocation3 + $0x3c] sm:$0xf]  ;;  %v8817_v40 = vld [vmem:[#allocation3] sm:$0xf]  ;;  %v4698_v20 = vsel %vm8972_vm13, %v4693_v7, %v4697_v38  ;;  %v5837_v15 = vor.u32 %v10930_v44, %v10922_v46 }
 0x227   : > { %v11104_v56 = vrot.slane %v5318_v49, 4  ;;  %v11106_v28 = vrot.slane %v5321_v26, 5  ;;  %v11112_v10 = vld [vmem:[#allocation3 + $0x3c] sm:$0xf]  ;;  %v4708_v11 = vsel %vm8972_vm13, %v4703_v9, %v4707_v23  ;;  %v5294_v62 = vshrl.u32 %v11102_v18, 16 }
 0x228   : > { %v11108_v3 = vrot.slane %v5903_v17, 4  ;;  %v11110_v42 = vrot.slane %v5906_v53, 5  ;;  %v11114_v5 = vld [vmem:[#allocation3 + $0x4c] sm:$0xf]  ;;  %v5297_v37 = vshll.u32 %v11102_v18, 16  ;;  %v8241_v19 = vcombine.low %v8817_v40, %v8818_v52 }
 0x229   : > { %v11116_v36 = vld [vmem:[#allocation3 + $0x4c] sm:$0xf]  ;;  %v8294_v39 = vcombine.low %v5159_v33, %v11114_v5  ;;  %v11126_v4 = vrot.slane %v5252_v41, 4  ;;  %v5331_v24 = vshrl.u32 %v11114_v5, 16  ;;  %v5879_v21 = vshrl.u32 %v11112_v10, 16 }
 0x22a   : > { %v8341_v22 = vcombine.low %v5766_v45, %v11116_v36  ;;  %v5916_v29 = vshrl.u32 %v11116_v36, 16  ;;  %v8261_v31 = vcombine.low %v4698_v20, %v4708_v11  ;;  %v11135_v43 = vld [vmem:[#allocation3 + $0x40] sm:$0xf]  ;;  %v11137_v6 = vrot.slane %v5294_v62, 4  ;;  %v4547_v8 = vld [vmem:[#allocation3 + $0x24] sm:$0xf] }
 0x22b   : > { %6664 = vrot.lane.b32.xlu1 %v8294_v39, %s8856_s26  ;;  %v11139_v38 = vrot.slane %v5297_v37, 5  ;;  %v5324_v58 = vor.u32 %v11106_v28, %v11104_v56  ;;  %v5307_v30 = vshrl.u32 %v11135_v43, 16  ;;  %v8293_v46 = vcombine.low %v11102_v18, %v11135_v43  ;;  %v11146_v44 = vld [vmem:[#allocation3 + $0x40] sm:$0xf]  ;;  %v6194_v51 = vld [vmem:[#allocation3 + $0x48] sm:$0xe] }
 0x22c   : > { %6918 = vrot.lane.b32.xlu0 %v8341_v22, %s8857_s27  ;;  %v5909_v48 = vor.u32 %v11110_v42, %v11108_v3  ;;  %v11151_v12 = vsel %vm3372_vm15, %v8241_v19, %v6479_v34  ;;  %v11153_v0 = vrot.slane %v5879_v21, 4  ;;  %v5882_v27 = vshll.u32 %v11112_v10, 16  ;;  %v11162_v26 = vld [vmem:[#allocation3 + $0x50] sm:$0x1]  ;;  %v4979_v22 = vld [vmem:[#allocation3 + $0x48] sm:$0xe] }
 0x22d   : > { %v5255_v33 = vshll.u32 %v10909_v25, 16  ;;  %v5261_v45 = vrot.slane %v5259_v35, 4  ;;  %v5892_v7 = vshrl.u32 %v11146_v44, 16  ;;  %v5265_v61 = vshll.u32 %v10996_v60, 16  ;;  %v11185_v34 = vld [vmem:[#allocation3 + $0x4c] sm:$0xf] }
 0x22e   : > { %v5838_v41 = vrot.slane %v5837_v15, 4  ;;  %v5840_v49 = vshll.u32 %v10928_v55, 16  ;;  %v8340_v17 = vcombine.low %v11112_v10, %v11146_v44  ;;  %v5846_v25 = vrot.slane %v5844_v63, 4 }
 0x22f   : > { %6740 = vrot.lane.b32.xlu1 %v8308_v32, %s8860_s30  ;;  %v5257_v53 = vrot.slane %v5255_v33, 5  ;;  %v5850_v35 = vshll.u32 %v10989_v54, 16  ;;  %v5267_v9 = vrot.slane %v5265_v61, 5  ;;  %v8229_v23 = vrot.slane %v6194_v51, 9 }
 0x230   : > { %6994 = vrot.lane.b32.xlu0 %v8355_v13, %s8861_s6  ;;  %v5842_v60 = vrot.slane %v5840_v49, 5  ;;  %v6284_v18 = vrot.slane %v11116_v36, 5  ;;  %v6287_v13 = vrot.slane %v11162_v26, 5  ;;  %v4662_v62 = vshrl.u32 %v4547_v8, 16 }
 0x231   : > { %v5258_v32 = vsel %vm8972_vm13, %v11126_v4, %v5257_v53  ;;  %v5262_v11 = vor.u32 %v5261_v45, %v5257_v53  ;;  %v5852_v63 = vrot.slane %v5850_v35, 5  ;;  %v4665_v19 = vshll.u32 %v4547_v8, 16  ;;  %v5586_v45 = vld [vmem:[#allocation3 + $0x48] sm:$0xe] }
 0x232   : > { %v5843_v37 = vsel %vm8972_vm13, %v5838_v41, %v5842_v60  ;;  %v5847_v55 = vor.u32 %v5846_v25, %v5842_v60  ;;  %v6286_v40 = vrot.slane %v6284_v18, 4  ;;  %v4664_v52 = vrot.slane %v4662_v62, 4 }
 0x233   : > { %6486 = vrot.lane.b32.xlu1 %v8261_v31, %s8855_s25  ;;  %v5263_v54 = vrot.slane %v5262_v11, 4  ;;  %v4671_v39 = vshll.u32 %v10970_v16, 16  ;;  %v4675_v21 = vshrl.u32 %v10970_v16, 16  ;;  %v4681_v15 = vshll.u32 %v10981_v59, 16  ;;  %v11193_v16 = vld [vmem:[#allocation3 + $0x50] sm:$0x1] }
 0x234   : > { %6662 = vrot.lane.b32.xlu0 %v8293_v46, %s8856_s26  ;;  %v5848_v20 = vrot.slane %v5847_v55, 4  ;;  %v6288_v4 = vsel %vm8943_vm9, %v6286_v40, %v6287_v13  ;;  %v6285_v46 = vsel %vm8943_vm9, %v8229_v23, %v6284_v18  ;;  %v4667_v8 = vrot.slane %v4665_v19, 5  ;;  %v6193_v11 = vld [vmem:[#allocation3 + $0x3c] sm:$0xe] }
 0x235   : > { %v5268_v31 = vsel %vm8972_vm13, %v5263_v54, %v5267_v9  ;;  %v4673_v33 = vrot.slane %v4671_v39, 5  ;;  %v8373_v41 = vcombine.low %v6285_v46, %v6288_v4  ;;  %v4677_v49 = vrot.slane %v4675_v21, 4  ;;  %v11197_v9 = vld [vmem:[#allocation3 + $0x50] sm:$0x1]  ;;  %v4978_v19 = vld [vmem:[#allocation3 + $0x3c] sm:$0xe] }
 0x236   : > { %v8307_v51 = vcombine.low %v5258_v32, %v5268_v31  ;;  %v5853_v61 = vsel %vm8972_vm13, %v5848_v20, %v5852_v63  ;;  %v4668_v59 = vor.u32 %v4667_v8, %v4664_v52  ;;  %v4683_v53 = vrot.slane %v4681_v15, 5  ;;  %v11204_v63 = vld [vmem:[#allocation3 + $0x44] sm:$0x1]  ;;  %v11215_v21 = vld [vmem:[#allocation3 + $0x40] sm:$0xf] }
 0x237   : > { %6916 = vrot.lane.b32.xlu1 %v8340_v17, %s8857_s27  ;;  %v8199_v25 = vrot.slane %v4979_v22, 9  ;;  %v5081_v35 = vrot.slane %v11185_v34, 5  ;;  %v8354_v60 = vcombine.low %v5843_v37, %v5853_v61  ;;  %v4678_v23 = vor.u32 %v4677_v49, %v4673_v33  ;;  %v11217_v15 = vld [vmem:[#allocation3 + $0x44] sm:$0x1] }
 0x238   : > { %6738 = vrot.lane.b32.xlu0 %v8307_v51, %s8860_s30  ;;  %v8214_v18 = vrot.slane %v5586_v45, 9  ;;  %v5682_v32 = vrot.slane %v11114_v5, 5  ;;  %v4669_v13 = vrot.slane %v4668_v59, 4  ;;  %v5084_v55 = vrot.slane %v11193_v16, 5  ;;  %v11225_v45 = vld [vmem:[#allocation3 + $0x44] sm:$0x1] }
 0x239   : > { %v5082_v62 = vsel %vm8943_vm9, %v8199_v25, %v5081_v35  ;;  %v5083_v17 = vrot.slane %v5081_v35, 4  ;;  %v4679_v40 = vrot.slane %v4678_v23, 4  ;;  %v5685_v37 = vrot.slane %v11197_v9, 5  ;;  %v5585_v51 = vld [vmem:[#allocation3 + $0x3c] sm:$0xe] }
 0x23a   : > { %v5683_v54 = vsel %vm8943_vm9, %v8214_v18, %v5682_v32  ;;  %v5684_v52 = vrot.slane %v5682_v32, 4  ;;  %v4674_v39 = vsel %vm8972_vm13, %v4669_v13, %v4673_v33  ;;  %v8228_v20 = vrot.slane %v6193_v11, 9 }
 0x23b   : > { %6992 = vrot.lane.b32.xlu1 %v8354_v60, %s8861_s6  ;;  %v5085_v22 = vsel %vm8943_vm9, %v5083_v17, %v5084_v55  ;;  %v6277_v4 = vrot.slane %v11146_v44, 5  ;;  %v4684_v31 = vsel %vm8972_vm13, %v4679_v40, %v4683_v53  ;;  %v6280_v33 = vrot.slane %v11204_v63, 5 }
 0x23c   : > { %7078 = vrot.lane.b32.xlu0 %v8373_v41, %s8859_s29  ;;  %v8279_v46 = vcombine.low %v5082_v62, %v5085_v22  ;;  %v5686_v8 = vsel %vm8943_vm9, %v5684_v52, %v5685_v37  ;;  %v8260_v61 = vcombine.low %v4674_v39, %v4684_v31  ;;  %v8198_v25 = vrot.slane %v4978_v19, 9  ;;  %v11249_v39 = vld [vmem:[%s12838_s2] ss:$0 sm:$0xff]  ;;  %v3960_v31 = vld [vmem:[#allocation3 + $0x78] sm:$0x1] }
 0x23d   : > { %v8326_v49 = vcombine.low %v5683_v54, %v5686_v8  ;;  %v6279_v59 = vrot.slane %v6277_v4, 4  ;;  %v6278_v35 = vsel %vm8943_vm9, %v8228_v20, %v6277_v4  ;;  %v5074_v41 = vrot.slane %v11215_v21, 5 }
 0x23e   : > { %v5077_v53 = vrot.slane %v11217_v15, 5  ;;  %v5675_v60 = vrot.slane %v11135_v43, 5  ;;  %v8213_v18 = vrot.slane %v5585_v51, 9  ;;  %v5678_v32 = vrot.slane %v11225_v45, 5 }
 0x23f   : > { %6484 = vrot.lane.b32.xlu1 %v8260_v61, %s8855_s25  ;;  %v6281_v23 = vsel %vm8943_vm9, %v6279_v59, %v6280_v33  ;;  %v5327_v11 = vshll.u32 %v11114_v5, 16  ;;  %v5075_v62 = vsel %vm8943_vm9, %v8198_v25, %v5074_v41  ;;  %v5076_v17 = vrot.slane %v5074_v41, 4 }
 0x240   : > { %6570 = vrot.lane.b32.xlu0 %v8279_v46, %s8854_s24  ;;  %v8372_v13 = vcombine.low %v6278_v35, %v6281_v23  ;;  %v5325_v55 = vrot.slane %v5324_v58, 4  ;;  %v8642_v40 = vpop.f32.mrf.mxu0  ;;  %v5677_v54 = vrot.slane %v5675_v60, 4  ;;  %v5333_v37 = vrot.slane %v5331_v24, 4 }
 0x241   : > { %v5329_v52 = vrot.slane %v5327_v11, 5  ;;  %v5337_v19 = vshll.u32 %v11197_v9, 16  ;;  %v3807_v22 = vadd.f32 %v11249_v39, %v8642_v40  ;;  %v5078_v20 = vsel %vm8943_vm9, %v5076_v17, %v5077_v53  ;;  %v3957_v53 = vld [vmem:[#allocation3 + $0x6c] sm:$0x1] }
 0x242   : > { %v5676_v56 = vsel %vm8943_vm9, %v8213_v18, %v5675_v60  ;;  %v5912_v28 = vshll.u32 %v11116_v36, 16  ;;  %v3798_v58 = vpop.f32.mrf.mxu0  ;;  %v8278_v5 = vcombine.low %v5075_v62, %v5078_v20  ;;  %v5679_v24 = vsel %vm8943_vm9, %v5677_v54, %v5678_v32 }
 0x243   : > { %6824 = vrot.lane.b32.xlu1 %v8326_v49, %s8858_s28  ;;  %v5334_v9 = vor.u32 %v5333_v37, %v5329_v52  ;;  %v11263_v4 = vrot.slane %v5909_v48, 4  ;;  %v3891_v46 = vmax.f32 %v3807_v22, 0.0  ;;  %v3799_v8 = vadd.f32 %v11249_v39, %v3798_v58  ;;  %v4478_v22 = vld [vmem:[#allocation3 + $0x60] sm:$0xf] }
 0x244   : > { %7076 = vrot.lane.b32.xlu0 %v8372_v13, %s8859_s29  ;;  %v8325_v33 = vcombine.low %v5676_v56, %v5679_v24  ;;  %v5339_v51 = vrot.slane %v5337_v19, 5  ;;  %v8643_v61 = vpop.f32.mrf.mxu0  ;;  %v11267_v59 = vrot.slane %v5912_v28, 5  ;;  %v5918_v25 = vrot.slane %v5916_v29, 4  ;;  %v11297_v19 = vpop.permute.xlu0 %6558 }
 0x245   : > { %v5335_v49 = vrot.slane %v5334_v9, 4  ;;  %v5922_v35 = vshll.u32 %v11162_v26, 16  ;;  %v8455_v3 = vpack.c.bf16 %v3891_v46, %v3891_v46  ;;  %v3889_v42 = vmax.f32 %v3799_v8, 0.0  ;;  %v4471_v8 = vld [vmem:[#allocation3 + $0x54] sm:$0xf] }
 0x246   : > { %v3810_v48 = vadd.f32 %v11249_v39, %v8643_v61  ;;  %v3961_v41 = vsel %vm8905_vm3, 0, %v3960_v31  ;;  %v3801_v60 = vpop.f32.mrf.mxu0  ;;  %v11277_v23 = vrot.slane %v5882_v27, 5  ;;  %v5330_v36 = vsel %vm8972_vm13, %v5325_v55, %v5329_v52  ;;  %v4553_v27 = vld [vmem:[#allocation3 + $0x48] sm:$0xf] }
 0x247   : > { %6568 = vrot.lane.b32.xlu1 %v8278_v5, %s8854_s24  ;;  %v5340_v29 = vsel %vm8972_vm13, %v5335_v49, %v5339_v51  ;;  %v5919_v26 = vor.u32 %v5918_v25, %v11267_v59  ;;  %3962 = vst [vmem:[#allocation3 + $0x78] sm:$0x1] %v3961_v41  ;;  %v4229_v18 = vshrl.u32 %v8455_v3, 16  ;;  %v8453_v32 = vpack.c.bf16 %v3889_v42, %v3889_v42  ;;  %v4008_v42 = vld [vmem:[#allocation3 + $0x80] sm:$0x1] }
 0x248   : > { %v3892_v11 = vmax.f32 %v3810_v48, 0.0  ;;  %6822 = vrot.lane.b32.xlu0 %v8325_v33, %s8858_s28  ;;  %v5915_v10 = vsel %vm8972_vm13, %v11263_v4, %v11267_v59  ;;  %v3802_v13 = vadd.f32 %v11249_v39, %v3801_v60  ;;  %v11293_v17 = vrot.slane %v5922_v35, 5  ;;  %v4482_v48 = vld [vmem:[#allocation3 + $0x68] sm:$0x1] }
 0x249   : > { %v11291_v62 = vrot.slane %v5919_v26, 4  ;;  %v3958_v55 = vsel %vm8905_vm3, 0, %v3957_v53  ;;  %v4231_v40 = vrot.slane %v4229_v18, 7  ;;  %v4232_v54 = vshll.u32 %v8455_v3, 16 }
 0x24a   : > { %v4212_v52 = vshrl.u32 %v8453_v32, 16  ;;  %v8456_v37 = vpack.c.bf16 %v3892_v11, %v3892_v11  ;;  %3959 = vst [vmem:[#allocation3 + $0x6c] sm:$0x1] %v3958_v55  ;;  %v3890_v20 = vmax.f32 %v3802_v13, 0.0  ;;  %v11299_v56 = vcombine.low %v5330_v36, %v5340_v29  ;;  %v11311_v11 = vpop.permute.xlu0 %6910  ;;  %v4005_v55 = vld [vmem:[#allocation3 + $0x74] sm:$0x1] }
 0x24b   : > { %v4734_v28 = vshrl.u32 %v4553_v27, 16  ;;  %v4737_v58 = vshll.u32 %v4553_v27, 16  ;;  %v4234_v5 = vor.u32 %v4232_v54, %v4231_v40  ;;  %v4215_v9 = vshll.u32 %v8453_v32, 16 }
 0x24c   : > { %v4214_v24 = vrot.slane %v4212_v52, 7  ;;  %v4237_v31 = vshrl.u32 %v8456_v37, 16  ;;  %v4235_v46 = vrot.slane %v4231_v40, 4  ;;  %v8454_v33 = vpack.c.bf16 %v3890_v20, %v3890_v20  ;;  %v4475_v52 = vld [vmem:[#allocation3 + $0x5c] sm:$0x1] }
 0x24d   : > { %v5925_v51 = vsel %vm8972_vm13, %v11291_v62, %v11293_v17  ;;  %v4736_v61 = vrot.slane %v4734_v28, 4  ;;  %v4479_v49 = vsel %vm8965_vm12, %v4234_v5, %v4478_v22  ;;  %v4240_v3 = vshll.u32 %v8456_v37, 16 }
 0x24e   : > { %v4217_v25 = vor.u32 %v4215_v9, %v4214_v24  ;;  %v4239_v35 = vrot.slane %v4237_v31, 7  ;;  %4480 = vst [vmem:[#allocation3 + $0x60] sm:$0xf] %v4479_v49  ;;  %v4220_v41 = vshrl.u32 %v8454_v33, 16  ;;  %v4223_v53 = vshll.u32 %v8454_v33, 16  ;;  %v6655_v59 = vpop.permute.xlu0 %6654 }
 0x24f   : > { %v4739_v60 = vrot.slane %v4737_v58, 5  ;;  %v4743_v36 = vshll.u32 %v11185_v34, 16  ;;  %v4747_v32 = vshrl.u32 %v11185_v34, 16  ;;  %v4753_v17 = vshll.u32 %v11193_v16, 16 }
 0x250   : > { %v4472_v29 = vsel %vm8965_vm12, %v4217_v25, %v4471_v8  ;;  %v4242_v26 = vor.u32 %v4240_v3, %v4239_v35  ;;  %v4244_v18 = vrot.slane %v4239_v35, 4  ;;  %v4222_v27 = vrot.slane %v4220_v41, 7 }
 0x251   : > { %4473 = vst [vmem:[#allocation3 + $0x54] sm:$0xf] %v4472_v29  ;;  %v4740_v13 = vor.u32 %v4739_v60, %v4736_v61  ;;  %v4745_v62 = vrot.slane %v4743_v36, 5  ;;  %v4749_v37 = vrot.slane %v4747_v32, 4  ;;  %v4009_v34 = vsel %vm8920_vm5, 0, %v4008_v42 }
 0x252   : > { %v4243_v40 = vsel %vm8979_vm14, %v4235_v46, %v4242_v26  ;;  %v4483_v54 = vsel %vm8905_vm3, %v4244_v18, %v4482_v48  ;;  %v4218_v22 = vrot.slane %v4214_v24, 4  ;;  %v4225_v20 = vor.u32 %v4223_v53, %v4222_v27  ;;  %4010 = vst [vmem:[#allocation3 + $0x80] sm:$0x1] %v4009_v34 }
 0x253   : > { %4481 = vst.msk [vmem:[#allocation3 + $0x64] sm:$0xf] %vm258_vm0, %v4243_v40  ;;  %4484 = vst [vmem:[#allocation3 + $0x68] sm:$0x1] %v4483_v54  ;;  %v4227_v28 = vrot.slane %v4222_v27, 4  ;;  %v4741_v58 = vrot.slane %v4740_v13, 4  ;;  %v4750_v16 = vor.u32 %v4749_v37, %v4745_v62  ;;  %v5300_v9 = vor.u32 %v11139_v38, %v11137_v6 }
 0x254   : > { %v4006_v5 = vsel %vm8920_vm5, 0, %v4005_v55  ;;  %v5303_v31 = vshll.u32 %v11135_v43, 16  ;;  %v4226_v46 = vsel %vm8979_vm14, %v4218_v22, %v4225_v20  ;;  %v11335_v8 = vcombine.low %v5915_v10, %v5925_v51 }
 0x255   : > { %v4476_v24 = vsel %vm8905_vm3, %v4227_v28, %v4475_v52  ;;  %v4755_v33 = vrot.slane %v4753_v17, 5  ;;  %4007 = vst [vmem:[#allocation3 + $0x74] sm:$0x1] %v4006_v5  ;;  %4474 = vst.msk [vmem:[#allocation3 + $0x58] sm:$0xf] %vm258_vm0, %v4226_v46  ;;  %v4746_v61 = vsel %vm8972_vm13, %v4741_v58, %v4745_v62  ;;  %v4751_v49 = vrot.slane %v4750_v16, 4 }
 0x256   : > { %4477 = vst [vmem:[#allocation3 + $0x5c] sm:$0x1] %v4476_v24  ;;  %v5163_v6 = vld [vmem:[#allocation3 + $0x60] sm:$0xf]  ;;  %v5309_v25 = vrot.slane %v5307_v30, 4  ;;  %v7151_v4 = vsel %vm3421_vm1, %v11151_v12, %v11297_v19  ;;  %v11349_v41 = vrot.slane %v5300_v9, 4  ;;  %v5885_v43 = vor.u32 %v11277_v23, %v11153_v0 }
 0x257   : > { %v5770_v38 = vld [vmem:[#allocation3 + $0x60] sm:$0xf]  ;;  %v5366_v10 = vshrl.u32 %v5163_v6, 16  ;;  %v5369_v51 = vshll.u32 %v5163_v6, 16  ;;  %v4756_v42 = vsel %vm8972_vm13, %v4751_v49, %v4755_v33  ;;  %v11351_v53 = vrot.slane %v5303_v31, 5 }
 0x258   : > { %v5951_v35 = vshrl.u32 %v5770_v38, 16  ;;  %v5954_v3 = vshll.u32 %v5770_v38, 16  ;;  %v11347_v48 = vld [vmem:[#allocation3 + $0x54] sm:$0xf]  ;;  %v5313_v60 = vshll.u32 %v11225_v45, 16  ;;  %v11363_v36 = vsel %vm3454_vm2, %v7151_v4, %v6655_v59 }
 0x259   : > { %v11355_v30 = vrot.slane %v5366_v10, 4  ;;  %v11357_v12 = vrot.slane %v5369_v51, 5  ;;  %v11359_v19 = vld [vmem:[#allocation3 + $0x54] sm:$0xf]  ;;  %v8263_v0 = vcombine.low %v4746_v61, %v4756_v42  ;;  %v5310_v23 = vor.u32 %v5309_v25, %v11351_v53  ;;  %v8646_v17 = vpop.f32.mrf.mxu0  ;;  %v11393_v16 = vld [vmem:[#allocation3 + $0x1c] sm:$0xf] }
 0x25a   : > { %v11365_v29 = vld [vmem:[#allocation3 + $0x64] sm:$0xf]  ;;  %v11369_v18 = vrot.slane %v5951_v35, 4  ;;  %v11371_v32 = vrot.slane %v5954_v3, 5  ;;  %v3823_v55 = vadd.f32 %v11249_v39, %v8646_v17  ;;  %v5342_v40 = vshrl.u32 %v11347_v48, 16 }
 0x25b   : > { %v11367_v26 = vld [vmem:[#allocation3 + $0x64] sm:$0xf]  ;;  %v8296_v27 = vcombine.low %v5163_v6, %v11365_v29  ;;  %v5345_v54 = vshll.u32 %v11347_v48, 16  ;;  %v5927_v52 = vshrl.u32 %v11359_v19, 16  ;;  %v3814_v37 = vpop.f32.mrf.mxu0  ;;  %v5930_v20 = vshll.u32 %v11359_v19, 16 }
 0x25c   : > { %v8343_v62 = vcombine.low %v5770_v38, %v11367_v26  ;;  %v11384_v34 = vld [vmem:[#allocation3 + $0x58] sm:$0xf]  ;;  %v5306_v28 = vsel %vm8972_vm13, %v11349_v41, %v11351_v53  ;;  %v5311_v58 = vrot.slane %v5310_v23, 4  ;;  %v3895_v31 = vmax.f32 %v3823_v55, 0.0  ;;  %v5587_v51 = vld [vmem:[#allocation3 + $0x54] sm:$0xe] }
 0x25d   : > { %6668 = vrot.lane.b32.xlu1 %v8296_v27, %s8856_s26  ;;  %v11386_v22 = vld [vmem:[#allocation3 + $0x58] sm:$0xf]  ;;  %v3815_v46 = vadd.f32 %v11249_v39, %v3814_v37  ;;  %v5372_v24 = vor.u32 %v11357_v12, %v11355_v30  ;;  %v8647_v6 = vpop.f32.mrf.mxu0  ;;  %v11404_v38 = vrot.slane %v5342_v40, 4  ;;  %v11406_v61 = vrot.slane %v5345_v54, 5 }
 0x25e   : > { %6922 = vrot.lane.b32.xlu0 %v8343_v62, %s8857_s27  ;;  %v11395_v5 = vld [vmem:[#allocation3 + $0x18] sm:$0xf]  ;;  %v8295_v25 = vcombine.low %v11347_v48, %v11384_v34  ;;  %v8459_v4 = vpack.c.bf16 %v3895_v31, %v3895_v31  ;;  %v3826_v10 = vadd.f32 %v11249_v39, %v8647_v6  ;;  %v8342_v3 = vcombine.low %v11359_v19, %v11386_v22 }
 0x25f   : > { %v3893_v59 = vmax.f32 %v3815_v46, 0.0  ;;  %v3817_v35 = vpop.f32.mrf.mxu0  ;;  %v11419_v42 = vrot.slane %v5927_v52, 4  ;;  %v5315_v41 = vrot.slane %v5313_v60, 5  ;;  %v5888_v48 = vshll.u32 %v11146_v44, 16  ;;  %v11427_v60 = vpop.permute.xlu0 %7070  ;;  %v4492_v31 = vld [vmem:[#allocation3 + $0x78] sm:$0xf] }
 0x260   : > { %v4263_v53 = vshrl.u32 %v8459_v4, 16  ;;  %v3896_v27 = vmax.f32 %v3826_v10, 0.0  ;;  %v5886_v62 = vrot.slane %v5885_v43, 4  ;;  %v3818_v17 = vadd.f32 %v11249_v39, %v3817_v35 }
 0x261   : > { %6744 = vrot.lane.b32.xlu1 %v11299_v56, %s8860_s30  ;;  %v8457_v23 = vpack.c.bf16 %v3893_v59, %v3893_v59  ;;  %v5316_v56 = vsel %vm8972_vm13, %v5311_v58, %v5315_v41  ;;  %v5890_v55 = vrot.slane %v5888_v48, 5  ;;  %v4266_v54 = vshll.u32 %v8459_v4, 16  ;;  %v8775_v4 = vld [vmem:[%s12839_s3 + $0x10] ss:$0 sps:$4 sm:$0x33]  }
 0x262   : > { %6998 = vrot.lane.b32.xlu0 %v11335_v8, %s8861_s6  ;;  %v5894_v8 = vrot.slane %v5892_v7, 4  ;;  %v4265_v40 = vrot.slane %v4263_v53, 7  ;;  %v8460_v37 = vpack.c.bf16 %v3896_v27, %v3896_v27  ;;  %v3894_v43 = vmax.f32 %v3818_v17, 0.0  ;;  %v4551_v7 = vld [vmem:[#allocation3 + $0x3c] sm:$0xf] }
 0x263   : > { %v4246_v52 = vshrl.u32 %v8457_v23, 16  ;;  %v4249_v46 = vshll.u32 %v8457_v23, 16  ;;  %v8309_v6 = vcombine.low %v5306_v28, %v5316_v56  ;;  %v5891_v44 = vsel %vm8972_vm13, %v5886_v62, %v5890_v55  ;;  %v4485_v48 = vld [vmem:[#allocation3 + $0x6c] sm:$0xf]  ;;  %v4496_v56 = vld [vmem:[#allocation3 + $0x80] sm:$0x1] }
 0x264   : > { %v5895_v59 = vor.u32 %v5894_v8, %v5890_v55  ;;  %v4268_v58 = vor.u32 %v4266_v54, %v4265_v40  ;;  %v4271_v35 = vshrl.u32 %v8460_v37, 16  ;;  %v4269_v41 = vrot.slane %v4265_v40, 4  ;;  %v6196_v8 = vld [vmem:[#allocation3 + $0x60] sm:$0xe] }
 0x265   : > { %6490 = vrot.lane.b32.xlu1 %v8263_v0, %s8855_s25  ;;  %v4248_v10 = vrot.slane %v4246_v52, 7  ;;  %v8458_v53 = vpack.c.bf16 %v3894_v43, %v3894_v43  ;;  %v4274_v17 = vshll.u32 %v8460_v37, 16  ;;  %vm12859_vm4 = vcmask 1041408   ;;  %v11444_v52 = vpop.permute.xlu1 %6656 }
 0x266   : > { %6666 = vrot.lane.b32.xlu0 %v8295_v25, %s8856_s26  ;;  %v5896_v0 = vrot.slane %v5895_v59, 4  ;;  %v5898_v25 = vshll.u32 %v11204_v63, 16  ;;  %v4493_v28 = vsel %vm8965_vm12, %v4268_v58, %v4492_v31  ;;  %v4273_v27 = vrot.slane %v4271_v35, 7  ;;  %8699 = vmatprep.subr.msk.bf16.mxu1 %vm12859_vm4, %v8775_v4  ;;  %v11442_v63 = vld [vmem:[#allocation3 + $0x68] sm:$0x1]  ;;  %v11449_v59 = vpop.permute.xlu0 %6562 }
 0x267   : > { %v4251_v23 = vor.u32 %v4249_v46, %v4248_v10  ;;  %4494 = vst [vmem:[#allocation3 + $0x78] sm:$0xf] %v4493_v28  ;;  %v4252_v62 = vrot.slane %v4248_v10, 4  ;;  %v4254_v55 = vshrl.u32 %v8458_v53, 16  ;;  %v4257_v54 = vshll.u32 %v8458_v53, 16 }
 0x268   : > { %v5900_v40 = vrot.slane %v5898_v25, 5  ;;  %v4276_v31 = vor.u32 %v4274_v17, %v4273_v27  ;;  %v4278_v46 = vrot.slane %v4273_v27, 4  ;;  %v6298_v43 = vrot.slane %v11367_v26, 5 }
 0x269   : > { %6920 = vrot.lane.b32.xlu1 %v8342_v3, %s8857_s27  ;;  %v4486_v37 = vsel %vm8965_vm12, %v4251_v23, %v4485_v48  ;;  %v4256_v58 = vrot.slane %v4254_v55, 7  ;;  %v4710_v10 = vshrl.u32 %v4551_v7, 16  ;;  %v4489_v48 = vld [vmem:[#allocation3 + $0x74] sm:$0x1]  ;;  %v6301_v25 = vrot.slane %v11442_v63, 5 }
 0x26a   : > { %6742 = vrot.lane.b32.xlu0 %v8309_v6, %s8860_s30  ;;  %4487 = vst [vmem:[#allocation3 + $0x6c] sm:$0xf] %v4486_v37  ;;  %v5901_v3 = vsel %vm8972_vm13, %v5896_v0, %v5900_v40  ;;  %v8231_v6 = vrot.slane %v6196_v8, 9  ;;  %v4277_v35 = vsel %vm8979_vm14, %v4269_v41, %v4276_v31  ;;  %v4497_v4 = vsel %vm8905_vm3, %v4278_v46, %v4496_v56  ;;  %v4981_v0 = vld [vmem:[#allocation3 + $0x60] sm:$0xe] }
 0x26b   : > { %v8356_v53 = vcombine.low %v5891_v44, %v5901_v3  ;;  %4495 = vst.msk [vmem:[#allocation3 + $0x7c] sm:$0xf] %vm258_vm0, %v4277_v35  ;;  %4498 = vst [vmem:[#allocation3 + $0x80] sm:$0x1] %v4497_v4  ;;  %v4259_v28 = vor.u32 %v4257_v54, %v4256_v58  ;;  %v4261_v23 = vrot.slane %v4256_v58, 4  ;;  %v6300_v27 = vrot.slane %v6298_v43, 4  ;;  %v11480_v35 = vpop.permute.xlu0 %6814 }
 0x26c   : > { %v4712_v17 = vrot.slane %v4710_v10, 4  ;;  %v4713_v8 = vshll.u32 %v4551_v7, 16  ;;  %v4719_v41 = vshll.u32 %v11215_v21, 16  ;;  %v4723_v55 = vshrl.u32 %v11215_v21, 16  ;;  %v11463_v44 = vld [vmem:[#allocation3 + $0x64] sm:$0xf]  ;;  %v11477_v21 = vpop.permute.xlu1 %6816 }
 0x26d   : > { %6996 = vrot.lane.b32.xlu1 %v8356_v53, %s8861_s6  ;;  %v4729_v56 = vshll.u32 %v11217_v15, 16  ;;  %v4260_v40 = vsel %vm8979_vm14, %v4252_v62, %v4259_v28  ;;  %v4490_v54 = vsel %vm8905_vm3, %v4261_v23, %v4489_v48  ;;  %v6299_v37 = vsel %vm8943_vm9, %v8231_v6, %v6298_v43  ;;  %v11473_v31 = vld [vmem:[#allocation3 + $0x68] sm:$0x1]  ;;  %12860 = vst [vmem:[#allocation4_spill] sm:$0xff] %v11477_v21  ;;  %v5588_v10 = vld [vmem:[#allocation3 + $0x60] sm:$0xe] }
 0x26e   : > { %v6302_v7 = vsel %vm8943_vm9, %v6300_v27, %v6301_v25  ;;  %v11475_v46 = vld [vmem:[#allocation3 + $0x68] sm:$0x1]  ;;  %4488 = vst.msk [vmem:[#allocation3 + $0x70] sm:$0xf] %vm258_vm0, %v4260_v40  ;;  %4491 = vst [vmem:[#allocation3 + $0x74] sm:$0x1] %v4490_v54 }
 0x26f   : > { %v8375_v15 = vcombine.low %v6299_v37, %v6302_v7  ;;  %v4715_v62 = vrot.slane %v4713_v8, 5  ;;  %v4721_v58 = vrot.slane %v4719_v41, 5  ;;  %v4725_v3 = vrot.slane %v4723_v55, 4  ;;  %v11490_v27 = vld [vmem:[#allocation3 + $0x5c] sm:$0x1]  ;;  %v11498_v37 = vpop.permute.xlu0 %6914 }
 0x270   : > { %v11484_v43 = vrot.slane %v5930_v20, 5  ;;  %v4731_v6 = vrot.slane %v4729_v56, 5  ;;  %v8201_v4 = vrot.slane %v4981_v0, 9  ;;  %v5095_v48 = vrot.slane %v11463_v44, 5  ;;  %v6195_v8 = vld [vmem:[#allocation3 + $0x54] sm:$0xe]  ;;  %v11503_v9 = vpop.permute.xlu1 %6560 }
 0x271   : > { %7082 = vrot.lane.b32.xlu0 %v8375_v15, %s8859_s29  ;;  %v4716_v53 = vor.u32 %v4715_v62, %v4712_v17  ;;  %v4726_v25 = vor.u32 %v4725_v3, %v4721_v58  ;;  %v5098_v28 = vrot.slane %v11473_v31, 5  ;;  %v5696_v23 = vrot.slane %v11365_v29, 5  ;;  %v11496_v54 = vld [vmem:[#allocation3 + $0x58] sm:$0xf]  ;;  %12861 = vst [vmem:[#allocation5_spill] sm:$0xff] %v11498_v37 }
 0x272   : > { %v5097_v41 = vrot.slane %v5095_v48, 4  ;;  %v8216_v55 = vrot.slane %v5588_v10, 9  ;;  %v5699_v19 = vrot.slane %v11475_v46, 5  ;;  %v6291_v20 = vrot.slane %v11386_v22, 5  ;;  %v4980_v10 = vld [vmem:[#allocation3 + $0x54] sm:$0xe] }
 0x273   : > { %v4717_v0 = vrot.slane %v4716_v53, 4  ;;  %v4727_v56 = vrot.slane %v4726_v25, 4  ;;  %v5096_v40 = vsel %vm8943_vm9, %v8201_v4, %v5095_v48  ;;  %v5698_v17 = vrot.slane %v5696_v23, 4  ;;  %v11511_v49 = vld [vmem:[#allocation3 + $0x78] sm:$0xf] }
 0x274   : > { %v5099_v7 = vsel %vm8943_vm9, %v5097_v41, %v5098_v28  ;;  %v8230_v15 = vrot.slane %v6195_v8, 9  ;;  %v6293_v62 = vrot.slane %v6291_v20, 4  ;;  %v6294_v3 = vrot.slane %v11490_v27, 5  ;;  %v5165_v21 = vld [vmem:[#allocation3 + $0x6c] sm:$0xf] }
 0x275   : > { %v4722_v53 = vsel %vm8972_vm13, %v4717_v0, %v4721_v58  ;;  %v4732_v4 = vsel %vm8972_vm13, %v4727_v56, %v4731_v6  ;;  %v8281_v48 = vcombine.low %v5096_v40, %v5099_v7  ;;  %v5700_v25 = vsel %vm8943_vm9, %v5698_v17, %v5699_v19  ;;  %v11519_v0 = vld [vmem:[#allocation3 + $0x5c] sm:$0x1] }
 0x276   : > { %v8262_v28 = vcombine.low %v4722_v53, %v4732_v4  ;;  %v5697_v8 = vsel %vm8943_vm9, %v8216_v55, %v5696_v23  ;;  %v6292_v41 = vsel %vm8943_vm9, %v8230_v15, %v6291_v20  ;;  %v6295_v58 = vsel %vm8943_vm9, %v6293_v62, %v6294_v3  ;;  %v11521_v6 = vld [vmem:[#allocation3 + $0x5c] sm:$0x1]  ;;  %v11531_v62 = vld [vmem:[#allocation3 + $0x78] sm:$0xf]  ;;  %v11533_v3 = vpop.permute.xlu1 %6660 }
 0x277   : > { %6574 = vrot.lane.b32.xlu0 %v8281_v48, %s8854_s24  ;;  %v8328_v19 = vcombine.low %v5697_v8, %v5700_v25  ;;  %v8374_v56 = vcombine.low %v6292_v41, %v6295_v58  ;;  %v8200_v40 = vrot.slane %v4980_v10, 9  ;;  %v5088_v17 = vrot.slane %v11496_v54, 5  ;;  %v11525_v7 = vld [vmem:[#allocation3 + $0x7c] sm:$0xf]  ;;  %12862 = vst [vmem:[#allocation6_spill] sm:$0xff] %v11533_v3 }
 0x278   : > { %6488 = vrot.lane.b32.xlu1 %v8262_v28, %s8855_s25  ;;  %v8215_v23 = vrot.slane %v5587_v51, 9  ;;  %v5689_v55 = vrot.slane %v11384_v34, 5  ;;  %v5414_v20 = vshrl.u32 %v11511_v49, 16  ;;  %v5417_v15 = vshll.u32 %v11511_v49, 16  ;;  %v11539_v25 = vld [vmem:[#allocation3 + $0x7c] sm:$0xf]  ;;  %v8650_v51 = vpop.f32.mrf.mxu0  ;;  %v11541_v28 = vpop.permute.xlu0 %6990 }
 0x279   : > { %v5089_v10 = vsel %vm8943_vm9, %v8200_v40, %v5088_v17  ;;  %v5090_v53 = vrot.slane %v5088_v17, 4  ;;  %v5091_v4 = vrot.slane %v11519_v0, 5  ;;  %v5692_v48 = vrot.slane %v11521_v6, 5 }
 0x27a   : > { %v5690_v8 = vsel %vm8943_vm9, %v8215_v23, %v5689_v55  ;;  %v5691_v41 = vrot.slane %v5689_v55, 4  ;;  %v8298_v58 = vcombine.low %v11511_v49, %v11525_v7  ;;  %v11551_v17 = vrot.slane %v5414_v20, 4  ;;  %v11574_v45 = vpop.permute.xlu1 %6736 }
 0x27b   : > { %7080 = vrot.lane.b32.xlu0 %v8374_v56, %s8859_s29  ;;  %v5092_v40 = vsel %vm8943_vm9, %v5090_v53, %v5091_v4  ;;  %v11553_v33 = vrot.slane %v5417_v15, 5  ;;  %v8345_v53 = vcombine.low %v11531_v62, %v11539_v25  ;;  %v5373_v20 = vrot.slane %v5372_v24, 4  ;;  %v3966_v4 = vld [vmem:[#allocation3 + $0x90] sm:$0x1] }
 0x27c   : > { %6828 = vrot.lane.b32.xlu1 %v8328_v19, %s8858_s28  ;;  %v8280_v23 = vcombine.low %v5089_v10, %v5092_v40  ;;  %v5693_v55 = vsel %vm8943_vm9, %v5691_v41, %v5692_v48  ;;  %v5375_v15 = vshll.u32 %v11365_v29, 16  ;;  %v3830_v19 = vpop.f32.mrf.mxu0  ;;  %v12863_v10 = vshrl.u32 %v11365_v29, 16 }
 0x27d   : > { %v8327_v56 = vcombine.low %v5690_v8, %v5693_v55  ;;  %v5385_v48 = vshll.u32 %v11475_v46, 16  ;;  %v12864_v41 = vor.u32 %v11371_v32, %v11369_v18  ;;  %v5960_v55 = vshll.u32 %v11367_v26, 16  ;;  %v11581_v46 = vpop.permute.xlu0 %6658 }
 0x27e   : > { %v5381_v40 = vrot.slane %v12863_v10, 4  ;;  %v5377_v30 = vrot.slane %v5375_v15, 5  ;;  %v12865_v12 = vshrl.u32 %v11367_v26, 16  ;;  %v5970_v49 = vshll.u32 %v11442_v63, 16  ;;  %v3963_v10 = vld [vmem:[#allocation3 + $0x84] sm:$0x1] }
 0x27f   : > { %v5958_v8 = vrot.slane %v12864_v41, 4  ;;  %6826 = vrot.lane.b32.xlu0 %v8327_v56, %s8858_s28  ;;  %v3839_v29 = vadd.f32 %v11249_v39, %v8650_v51  ;;  %v5387_v18 = vrot.slane %v5385_v48, 5  ;;  %v5962_v32 = vrot.slane %v5960_v55, 5  ;;  %v4557_v15 = vld [vmem:[#allocation3 + $0x60] sm:$0xf] }
 0x280   : > { %v5966_v24 = vrot.slane %v12865_v12, 4  ;;  %6572 = vrot.lane.b32.xlu1 %v8280_v23, %s8854_s24  ;;  %v3967_v41 = vsel %vm8905_vm3, 0, %v3966_v4  ;;  %v3831_v56 = vadd.f32 %v11249_v39, %v3830_v19  ;;  %v5378_v26 = vsel %vm8972_vm13, %v5373_v20, %v5377_v30 }
 0x281   : > { %v5382_v12 = vor.u32 %v5381_v40, %v5377_v30  ;;  %v5972_v63 = vrot.slane %v5970_v49, 5  ;;  %v3899_v13 = vmax.f32 %v3839_v29, 0.0  ;;  %3968 = vst [vmem:[#allocation3 + $0x90] sm:$0x1] %v3967_v41  ;;  %v5963_v51 = vsel %vm8972_vm13, %v5958_v8, %v5962_v32  ;;  %v11597_v30 = vpop.permute.xlu1 %6482 }
 0x282   : > { %v5967_v3 = vor.u32 %v5966_v24, %v5962_v32  ;;  %v3897_v23 = vmax.f32 %v3831_v56, 0.0  ;;  %v3964_v48 = vsel %vm8905_vm3, 0, %v3963_v10  ;;  %v4782_v55 = vshrl.u32 %v4557_v15, 16  ;;  %v11601_v32 = vpop.permute.xlu0 %6734 }
 0x283   : > { %6926 = vrot.lane.b32.xlu0 %v8345_v53, %s8857_s27  ;;  %v5383_v4 = vrot.slane %v5382_v12, 4  ;;  %v8463_v19 = vpack.c.bf16 %v3899_v13, %v3899_v13  ;;  %3965 = vst [vmem:[#allocation3 + $0x84] sm:$0x1] %v3964_v48  ;;  %v4785_v37 = vshll.u32 %v4557_v15, 16  ;;  %v4791_v40 = vshll.u32 %v11463_v44, 16  ;;  %v8651_v13 = vpop.f32.mrf.mxu0 }
 0x284   : > { %6672 = vrot.lane.b32.xlu1 %v8298_v58, %s8856_s26  ;;  %v5968_v49 = vrot.slane %v5967_v3, 4  ;;  %v8461_v20 = vpack.c.bf16 %v3897_v23, %v3897_v23  ;;  %v4795_v8 = vshrl.u32 %v11463_v44, 16  ;;  %v4784_v10 = vrot.slane %v4782_v55, 4  ;;  %v4014_v15 = vld [vmem:[#allocation3 + $0x98] sm:$0x1] }
 0x285   : > { %v5388_v24 = vsel %vm8972_vm13, %v5383_v4, %v5387_v18  ;;  %v4297_v29 = vshrl.u32 %v8463_v19, 16  ;;  %v4300_v53 = vshll.u32 %v8463_v19, 16  ;;  %v4787_v23 = vrot.slane %v4785_v37, 5 }
 0x286   : > { %v8312_v41 = vcombine.low %v5378_v26, %v5388_v24  ;;  %v5973_v3 = vsel %vm8972_vm13, %v5968_v49, %v5972_v63  ;;  %v4280_v58 = vshrl.u32 %v8461_v20, 16  ;;  %v4283_v56 = vshll.u32 %v8461_v20, 16 }
 0x287   : > { %v8359_v12 = vcombine.low %v5963_v51, %v5973_v3  ;;  %v11605_v44 = vrot.slane %v4297_v29, 7  ;;  %v4793_v48 = vrot.slane %v4791_v40, 5  ;;  %v4797_v19 = vrot.slane %v4795_v8, 4  ;;  %v11628_v3 = vpop.permute.xlu1 %6912 }
 0x288   : > { %6748 = vrot.lane.b32.xlu1 %v8312_v41, %s8860_s30  ;;  %v4506_v18 = vld [vmem:[#allocation3 + $0x90] sm:$0xf]  ;;  %v11608_v4 = vrot.slane %v4280_v58, 7  ;;  %v4801_v26 = vshll.u32 %v11473_v31, 16  ;;  %v3842_v55 = vadd.f32 %v11249_v39, %v8651_v13  ;;  %v12866_v63 = vshrl.u32 %v11531_v62, 16  ;;  %12868 = vst [vmem:[#allocation7_spill] sm:$0xff] %v11628_v3 }
 0x289   : > { %7002 = vrot.lane.b32.xlu0 %v8359_v12, %s8861_s6  ;;  %v4302_v37 = vor.u32 %v4300_v53, %v11605_v44  ;;  %v4788_v51 = vor.u32 %v4787_v23, %v4784_v10  ;;  %v4015_v20 = vsel %vm8920_vm5, 0, %v4014_v15  ;;  %v12867_v40 = vshll.u32 %v11531_v62, 16  ;;  %v11626_v41 = vld [vmem:[#allocation3 + $0x70] sm:$0xf]  ;;  %v3833_v62 = vpop.f32.mrf.mxu0  ;;  %v4011_v12 = vld [vmem:[#allocation3 + $0x8c] sm:$0x1]  ;;  %v11632_v23 = vpop.permute.xlu0 %7074 }
 0x28a   : > { %v11614_v49 = vrot.slane %v12866_v63, 4  ;;  %v4303_v31 = vrot.slane %v11605_v44, 4  ;;  %v4285_v8 = vor.u32 %v4283_v56, %v11608_v4  ;;  %v4499_v29 = vld [vmem:[#allocation3 + $0x84] sm:$0xf]  ;;  %v4798_v13 = vor.u32 %v4797_v19, %v4793_v48  ;;  %4016 = vst [vmem:[#allocation3 + $0x98] sm:$0x1] %v4015_v20 }
 0x28b   : > { %v11622_v24 = vrot.slane %v12867_v40, 5  ;;  %v4507_v53 = vsel %vm8965_vm12, %v4302_v37, %v4506_v18  ;;  %v4789_v10 = vrot.slane %v4788_v51, 4  ;;  %v3900_v58 = vmax.f32 %v3842_v55, 0.0  ;;  %12869 = vst [vmem:[#allocation8_spill] sm:$0xff] %v11632_v23  ;;  %v5772_v37 = vld [vmem:[#allocation3 + $0x6c] sm:$0xf] }
 0x28c   : > { %v5390_v15 = vshrl.u32 %v5165_v21, 16  ;;  %4508 = vst [vmem:[#allocation3 + $0x90] sm:$0xf] %v4507_v53  ;;  %v4500_v56 = vsel %vm8965_vm12, %v4285_v8, %v4499_v29  ;;  %v4799_v44 = vrot.slane %v4798_v13, 4  ;;  %v4803_v19 = vrot.slane %v4801_v26, 5 }
 0x28d   : > { %v5393_v63 = vshll.u32 %v5165_v21, 16  ;;  %4501 = vst [vmem:[#allocation3 + $0x84] sm:$0xf] %v4500_v56  ;;  %v8464_v40 = vpack.c.bf16 %v3900_v58, %v3900_v58  ;;  %v8297_v55 = vcombine.low %v5165_v21, %v11626_v41  ;;  %v4794_v51 = vsel %vm8972_vm13, %v4789_v10, %v4793_v48  ;;  %v11651_v21 = vld [vmem:[#allocation3 + $0x70] sm:$0xf] }
 0x28e   : > { %v4804_v53 = vsel %vm8972_vm13, %v4799_v44, %v4803_v19  ;;  %v3834_v8 = vadd.f32 %v11249_v39, %v3833_v62  ;;  %v4012_v26 = vsel %vm8920_vm5, 0, %v4011_v12  ;;  %v11646_v56 = vrot.slane %v5390_v15, 4  ;;  %v11653_v19 = vpop.permute.xlu1 %6480 }
 0x28f   : > { %v8265_v29 = vcombine.low %v4794_v51, %v4804_v53  ;;  %v4305_v13 = vshrl.u32 %v8464_v40, 16  ;;  %v11648_v58 = vrot.slane %v5393_v63, 5  ;;  %6670 = vrot.lane.b32.xlu0 %v8297_v55, %s8856_s26  ;;  %4013 = vst [vmem:[#allocation3 + $0x8c] sm:$0x1] %v4012_v26  ;;  %v4308_v48 = vshll.u32 %v8464_v40, 16  ;;  %v11661_v55 = vpop.permute.xlu0 %6566 }
 0x290   : > { %v3898_v10 = vmax.f32 %v3834_v8, 0.0  ;;  %v5975_v18 = vshrl.u32 %v5772_v37, 16  ;;  %v5978_v44 = vshll.u32 %v5772_v37, 16  ;;  %v5348_v15 = vor.u32 %v11406_v61, %v11404_v38 }
 0x291   : > { %6494 = vrot.lane.b32.xlu1 %v8265_v29, %s8855_s25  ;;  %v4307_v39 = vrot.slane %v4305_v13, 7  ;;  %v5351_v62 = vshll.u32 %v11384_v34, 16  ;;  %v12870_v12 = vshrl.u32 %v11384_v34, 16  ;;  %v4510_v51 = vld [vmem:[#allocation3 + $0x98] sm:$0x1]  ;;  %v8344_v8 = vcombine.low %v5772_v37, %v11651_v21 }
 0x292   : > { %v8462_v40 = vpack.c.bf16 %v3898_v10, %v3898_v10  ;;  %v5361_v26 = vshll.u32 %v11521_v6, 16  ;;  %v5349_v20 = vrot.slane %v5348_v15, 4  ;;  %v11666_v61 = vrot.slane %v5975_v18, 4 }
 0x293   : > { %v5357_v63 = vrot.slane %v12870_v12, 4  ;;  %v4310_v29 = vor.u32 %v4308_v48, %v4307_v39  ;;  %v4312_v13 = vrot.slane %v4307_v39, 4  ;;  %v5353_v23 = vrot.slane %v5351_v62, 5  ;;  %v6198_v48 = vld [vmem:[#allocation3 + $0x78] sm:$0xe] }
 0x294   : > { %v4288_v38 = vshrl.u32 %v8462_v40, 16  ;;  %v11668_v3 = vrot.slane %v5978_v44, 5  ;;  %v5933_v34 = vor.u32 %v11484_v43, %v11419_v42  ;;  %v4291_v12 = vshll.u32 %v8462_v40, 16  ;;  %v11681_v43 = vld [vmem:[#allocation3 + $0x80] sm:$0x1] }
 0x295   : > { %v4311_v10 = vsel %vm8979_vm14, %v4303_v31, %v4310_v29  ;;  %v4511_v37 = vsel %vm8905_vm3, %v4312_v13, %v4510_v51  ;;  %6924 = vrot.lane.b32.xlu1 %v8344_v8, %s8857_s27  ;;  %v5358_v6 = vor.u32 %v5357_v63, %v5353_v23  ;;  %v5354_v44 = vsel %vm8972_vm13, %v5349_v20, %v5353_v23  ;;  %v11683_v31 = vpop.permute.xlu1 %6820  ;;  %v11689_v29 = vpop.permute.xlu0 %7072 }
 0x296   : > { %4509 = vst.msk [vmem:[#allocation3 + $0x94] sm:$0xf] %vm258_vm0, %v4311_v10  ;;  %4512 = vst [vmem:[#allocation3 + $0x98] sm:$0x1] %v4511_v37  ;;  %v4290_v18 = vrot.slane %v4288_v38, 7  ;;  %v5363_v39 = vrot.slane %v5361_v26, 5 }
 0x297   : > { %v5936_v42 = vshll.u32 %v11386_v22, 16  ;;  %12871 = vst [vmem:[#allocation9_spill] sm:$0xff] %v11683_v31  ;;  %v4503_v15 = vld [vmem:[#allocation3 + $0x8c] sm:$0x1]  ;;  %v5359_v62 = vrot.slane %v5358_v6, 4  ;;  %v12872_v51 = vshrl.u32 %v11386_v22, 16 }
 0x298   : > { %v5946_v40 = vshll.u32 %v11490_v27, 16  ;;  %v6312_v8 = vrot.slane %v11539_v25, 5  ;;  %v4293_v13 = vor.u32 %v4291_v12, %v4290_v18  ;;  %v4295_v23 = vrot.slane %v4290_v18, 4  ;;  %v4555_v38 = vld [vmem:[#allocation3 + $0x54] sm:$0xf] }
 0x299   : > { %v5942_v63 = vrot.slane %v12872_v51, 4  ;;  %v5934_v20 = vrot.slane %v5933_v34, 4  ;;  %v5938_v26 = vrot.slane %v5936_v42, 5  ;;  %v5364_v10 = vsel %vm8972_vm13, %v5359_v62, %v5363_v39  ;;  %v11703_v62 = vld [vmem:[#allocation3 + $0x7c] sm:$0xf] }
 0x29a   : > { %v8233_v37 = vrot.slane %v6198_v48, 9  ;;  %v6314_v53 = vrot.slane %v6312_v8, 4  ;;  %v6315_v6 = vrot.slane %v11681_v43, 5  ;;  %v12873_v22 = vrot.slane %v11608_v4, 4 }
 0x29b   : > { %v4504_v51 = vsel %vm8905_vm3, %v4295_v23, %v4503_v15  ;;  %v8311_v12 = vcombine.low %v5354_v44, %v5364_v10  ;;  %v5948_v18 = vrot.slane %v5946_v40, 5  ;;  %v5943_v34 = vor.u32 %v5942_v63, %v5938_v26  ;;  %v11711_v63 = vpop.permute.xlu1 %6564 }
 0x29c   : > { %v4294_v27 = vsel %vm8979_vm14, %v12873_v22, %v4293_v13  ;;  %4505 = vst [vmem:[#allocation3 + $0x8c] sm:$0x1] %v4504_v51  ;;  %v6316_v48 = vsel %vm8943_vm9, %v6314_v53, %v6315_v6  ;;  %v4758_v39 = vshrl.u32 %v4555_v38, 16  ;;  %v4761_v42 = vshll.u32 %v4555_v38, 16  ;;  %v4983_v13 = vld [vmem:[#allocation3 + $0x78] sm:$0xe]  ;;  %v11717_v22 = vpop.permute.xlu0 %6818 }
 0x29d   : > { %4502 = vst.msk [vmem:[#allocation3 + $0x88] sm:$0xf] %vm258_vm0, %v4294_v27  ;;  %6746 = vrot.lane.b32.xlu0 %v8311_v12, %s8860_s30  ;;  %v6313_v4 = vsel %vm8943_vm9, %v8233_v37, %v6312_v8  ;;  %v4767_v15 = vshll.u32 %v11496_v54, 16  ;;  %v4771_v44 = vshrl.u32 %v11496_v54, 16  ;;  %v4777_v40 = vshll.u32 %v11519_v0, 16  ;;  %12874 = vst [vmem:[#allocation10_spill] sm:$0xff] %v11711_v63 }
 0x29e   : > { %v5939_v53 = vsel %vm8972_vm13, %v5934_v20, %v5938_v26  ;;  %v5944_v23 = vrot.slane %v5943_v34, 4  ;;  %v4760_v38 = vrot.slane %v4758_v39, 4  ;;  %v4763_v10 = vrot.slane %v4761_v42, 5  ;;  %v11715_v6 = vld [vmem:[#allocation3 + $0x80] sm:$0x1] }
 0x29f   : > { %v8377_v8 = vcombine.low %v6313_v4, %v6316_v48  ;;  %v4769_v37 = vrot.slane %v4767_v15, 5  ;;  %v4773_v27 = vrot.slane %v4771_v44, 4  ;;  %v5109_v54 = vrot.slane %v11703_v62, 5  ;;  %v5590_v51 = vld [vmem:[#allocation3 + $0x78] sm:$0xe]  ;;  %v11728_v15 = vpop.permute.xlu1 %6664 }
 0x2a0   : > { %v5949_v0 = vsel %vm8972_vm13, %v5944_v23, %v5948_v18  ;;  %v4764_v12 = vor.u32 %v4763_v10, %v4760_v38  ;;  %v4779_v31 = vrot.slane %v4777_v40, 5  ;;  %v8203_v63 = vrot.slane %v4983_v13, 9  ;;  %v11722_v20 = vld [vmem:[#allocation3 + $0x80] sm:$0x1]  ;;  %v11726_v42 = vld [vmem:[#allocation3 + $0x74] sm:$0x1] }
 0x2a1   : > { %v8358_v26 = vcombine.low %v5939_v53, %v5949_v0  ;;  %7086 = vrot.lane.b32.xlu0 %v8377_v8, %s8859_s29  ;;  %v4774_v34 = vor.u32 %v4773_v27, %v4769_v37  ;;  %v5111_v39 = vrot.slane %v5109_v54, 4  ;;  %v5112_v48 = vrot.slane %v11715_v6, 5  ;;  %v6197_v4 = vld [vmem:[#allocation3 + $0x6c] sm:$0xe]  ;;  %12875 = vst [vmem:[#allocation11_spill] sm:$0xff] %v11728_v15 }
 0x2a2   : > { %v4765_v44 = vrot.slane %v4764_v12, 4  ;;  %v5110_v18 = vsel %vm8943_vm9, %v8203_v63, %v5109_v54  ;;  %v8218_v40 = vrot.slane %v5590_v51, 9  ;;  %v5710_v13 = vrot.slane %v11525_v7, 5  ;;  %v11738_v8 = vld [vmem:[#allocation3 + $0x70] sm:$0xf]  ;;  %v11741_v51 = vpop.permute.xlu0 %6918 }
 0x2a3   : > { %7000 = vrot.lane.b32.xlu1 %v8358_v26, %s8861_s6  ;;  %v4775_v53 = vrot.slane %v4774_v34, 4  ;;  %v5113_v23 = vsel %vm8943_vm9, %v5111_v39, %v5112_v48  ;;  %v5713_v38 = vrot.slane %v11722_v20, 5  ;;  %v6305_v10 = vrot.slane %v11651_v21, 5  ;;  %v4982_v54 = vld [vmem:[#allocation3 + $0x6c] sm:$0xe] }
 0x2a4   : > { %v8283_v27 = vcombine.low %v5110_v18, %v5113_v23  ;;  %v5712_v0 = vrot.slane %v5710_v13, 4  ;;  %v8232_v12 = vrot.slane %v6197_v4, 9  ;;  %v6308_v63 = vrot.slane %v11726_v42, 5 }
 0x2a5   : > { %v4770_v26 = vsel %vm8972_vm13, %v4765_v44, %v4769_v37  ;;  %v4780_v34 = vsel %vm8972_vm13, %v4775_v53, %v4779_v31  ;;  %v6307_v39 = vrot.slane %v6305_v10, 4  ;;  %v12876_v48 = vcombine.low %v11395_v5, %v11393_v16  ;;  %v11759_v31 = vld [vmem:[#allocation3 + $0x74] sm:$0x1]  ;;  %v5589_v44 = vld [vmem:[#allocation3 + $0x6c] sm:$0xe] }
 0x2a6   : > { %v8264_v23 = vcombine.low %v4770_v26, %v4780_v34  ;;  %6578 = vrot.lane.b32.xlu0 %v8283_v27, %s8854_s24  ;;  %v5711_v4 = vsel %vm8943_vm9, %v8218_v40, %v5710_v13  ;;  %v5714_v15 = vsel %vm8943_vm9, %v5712_v0, %v5713_v38  ;;  %v6306_v16 = vsel %vm8943_vm9, %v8232_v12, %v6305_v10  ;;  %v11766_v27 = vld [vmem:[#allocation3 + $0x74] sm:$0x1]  ;;  %v11768_v40 = vpop.permute.xlu1 %6740 }
 0x2a7   : > { %v7110_v18 = vsel %vm3372_vm15, %v12876_v48, %v11597_v30  ;;  %v6309_v5 = vsel %vm8943_vm9, %v6307_v39, %v6308_v63  ;;  %v8202_v30 = vrot.slane %v4982_v54, 9  ;;  %v5102_v53 = vrot.slane %v11738_v8, 5  ;;  %v11786_v39 = vpop.permute.xlu0 %6994 }
 0x2a8   : > { %v7155_v37 = vsel %vm3421_vm1, %v7110_v18, %v11449_v59  ;;  %6492 = vrot.lane.b32.xlu1 %v8264_v23, %s8855_s25  ;;  %v8330_v13 = vcombine.low %v5711_v4, %v5714_v15  ;;  %v8376_v59 = vcombine.low %v6306_v16, %v6309_v5  ;;  %v5703_v10 = vrot.slane %v11626_v41, 5 }
 0x2a9   : > { %v11773_v38 = vsel %vm3454_vm2, %v7155_v37, %v11581_v46  ;;  %v5103_v0 = vsel %vm8943_vm9, %v8202_v30, %v5102_v53  ;;  %v5104_v12 = vrot.slane %v5102_v53, 4  ;;  %v5105_v63 = vrot.slane %v11759_v31, 5 }
 0x2aa   : > { %v8217_v54 = vrot.slane %v5589_v44, 9  ;;  %7084 = vrot.lane.b32.xlu0 %v8376_v59, %s8859_s29  ;;  %v5705_v26 = vrot.slane %v5703_v10, 4  ;;  %v5706_v34 = vrot.slane %v11766_v27, 5  ;;  %v7215_v15 = vsel %vm3487_vm6, %v11363_v36, %v11601_v32  ;;  %v4561_v44 = vld [vmem:[#allocation3 + $0x78] sm:$0xf]  ;;  %v11806_v53 = vpop.permute.xlu1 %6486 }
 0x2ab   : > { %v5420_v46 = vor.u32 %v11553_v33, %v11551_v17  ;;  %v5106_v48 = vsel %vm8943_vm9, %v5104_v12, %v5105_v63  ;;  %v5423_v23 = vshll.u32 %v11525_v7, 16  ;;  %v12877_v4 = vshrl.u32 %v11525_v7, 16  ;;  %v8822_v63 = vld [vmem:[#allocation3 + $0x10] sm:$0xf] }
 0x2ac   : > { %v5704_v18 = vsel %vm8943_vm9, %v8217_v54, %v5703_v10  ;;  %6832 = vrot.lane.b32.xlu1 %v8330_v13, %s8858_s28  ;;  %v5707_v36 = vsel %vm8943_vm9, %v5705_v26, %v5706_v34  ;;  %v5433_v33 = vshll.u32 %v11722_v20, 16  ;;  %v6005_v17 = vor.u32 %v11622_v24, %v11614_v49  ;;  %v8823_v54 = vld [vmem:[#allocation3 + $0xc] sm:$0xf] }
 0x2ad   : > { %v5429_v37 = vrot.slane %v12877_v4, 4  ;;  %v5421_v32 = vrot.slane %v5420_v46, 4  ;;  %v8329_v16 = vcombine.low %v5704_v18, %v5707_v36  ;;  %v11803_v5 = vsel %vm3520_vm7, %v7215_v15, %v11480_v35  ;;  %v11816_v46 = vpop.permute.xlu0 %6662 }
 0x2ae   : > { %v5425_v30 = vrot.slane %v5423_v23, 5  ;;  %v6008_v7 = vshll.u32 %v11539_v25, 16  ;;  %v8282_v13 = vcombine.low %v5103_v0, %v5106_v48  ;;  %v6006_v59 = vrot.slane %v6005_v17, 4 }
 0x2af   : > { %v12878_v10 = vshrl.u32 %v11539_v25, 16  ;;  %v6018_v20 = vshll.u32 %v11681_v43, 16  ;;  %6830 = vrot.lane.b32.xlu0 %v8329_v16, %s8858_s28  ;;  %v8242_v35 = vcombine.low %v8823_v54, %v8822_v63  ;;  %v4830_v26 = vshrl.u32 %v4561_v44, 16 }
 0x2b0   : > { %v5430_v49 = vor.u32 %v5429_v37, %v5425_v30  ;;  %v6010_v24 = vrot.slane %v6008_v7, 5  ;;  %6576 = vrot.lane.b32.xlu1 %v8282_v13, %s8854_s24  ;;  %v5426_v34 = vsel %vm8972_vm13, %v5421_v32, %v5425_v30  ;;  %v5435_v0 = vrot.slane %v5433_v33, 5  ;;  %v8654_v30 = vpop.f32.mrf.mxu0  ;;  %v11826_v7 = vpop.permute.xlu1 %6916 }
 0x2b1   : > { %v6014_v12 = vrot.slane %v12878_v10, 4  ;;  %v4833_v15 = vshll.u32 %v4561_v44, 16  ;;  %v4839_v25 = vshll.u32 %v11703_v62, 16  ;;  %v6020_v18 = vrot.slane %v6018_v20, 5 }
 0x2b2   : > { %v5431_v43 = vrot.slane %v5430_v49, 4  ;;  %v7107_v23 = vsel %vm3372_vm15, %v8242_v35, %v11653_v19  ;;  %v6011_v4 = vsel %vm8972_vm13, %v6006_v59, %v6010_v24  ;;  %v4832_v37 = vrot.slane %v4830_v26, 4 }
 0x2b3   : > { %v6015_v48 = vor.u32 %v6014_v12, %v6010_v24  ;;  %v4835_v36 = vrot.slane %v4833_v15, 5  ;;  %v4841_v17 = vrot.slane %v4839_v25, 5  ;;  %v4843_v44 = vshrl.u32 %v11703_v62, 16  ;;  %v3972_v12 = vld [vmem:[#allocation3 + $0xa8] sm:$0x1]  ;;  %v3846_v15 = vpop.f32.mrf.mxu0 }
 0x2b4   : > { %v5436_v32 = vsel %vm8972_vm13, %v5431_v43, %v5435_v0  ;;  %v4849_v16 = vshll.u32 %v11715_v6, 16  ;;  %v5396_v19 = vor.u32 %v11648_v58, %v11646_v56  ;;  %v5399_v59 = vshll.u32 %v11626_v41, 16  ;;  %v11838_v56 = vpop.permute.xlu0 %6738  ;;  %v11844_v0 = vld [vmem:[%s12838_s2] ss:$0 sm:$0xff]  ;;  %v3969_v25 = vld [vmem:[#allocation3 + $0x9c] sm:$0x1] }
 0x2b5   : > { %v6016_v33 = vrot.slane %v6015_v48, 4  ;;  %v8314_v13 = vcombine.low %v5426_v34, %v5436_v32  ;;  %v4836_v10 = vor.u32 %v4835_v36, %v4832_v37  ;;  %v7153_v49 = vsel %vm3421_vm1, %v7107_v23, %v11503_v9  ;;  %v11859_v32 = vld [vmem:[#allocation3 + $0x84] sm:$0xf] }
 0x2b6   : > { %v4845_v62 = vrot.slane %v4843_v44, 4  ;;  %v12879_v6 = vshrl.u32 %v11626_v41, 16  ;;  %v5397_v35 = vrot.slane %v5396_v19, 4  ;;  %v5401_v26 = vrot.slane %v5399_v59, 5  ;;  %v4020_v19 = vld [vmem:[#allocation3 + $0xb0] sm:$0x1] }
 0x2b7   : > { %v6021_v20 = vsel %vm8972_vm13, %v6016_v33, %v6020_v18  ;;  %6752 = vrot.lane.b32.xlu1 %v8314_v13, %s8860_s30  ;;  %v4837_v54 = vrot.slane %v4836_v10, 4  ;;  %v5409_v34 = vshll.u32 %v11766_v27, 16  ;;  %v3855_v9 = vadd.f32 %v11844_v0, %v8654_v30  ;;  %v11861_v33 = vpop.permute.xlu1 %6992 }
 0x2b8   : > { %v5405_v24 = vrot.slane %v12879_v6, 4  ;;  %v8361_v63 = vcombine.low %v6011_v4, %v6021_v20  ;;  %v4846_v58 = vor.u32 %v4845_v62, %v4841_v17  ;;  %v3973_v41 = vsel %vm8905_vm3, 0, %v3972_v12 }
 0x2b9   : > { %v11852_v43 = vsel %vm3454_vm2, %v7153_v49, %v11444_v52  ;;  %v4851_v48 = vrot.slane %v4849_v16, 5  ;;  %3974 = vst [vmem:[#allocation3 + $0xa8] sm:$0x1] %v3973_v41  ;;  %v7279_v18 = vsel %vm3553_vm8, %v11803_v5, %v11311_v11  ;;  %v5411_v4 = vrot.slane %v5409_v34, 5  ;;  %v11868_v11 = vld [vmem:[#allocation3 + $0x88] sm:$0xf] }
 0x2ba   : > { %7006 = vrot.lane.b32.xlu0 %v8361_v63, %s8861_s6  ;;  %v5406_v27 = vor.u32 %v5405_v24, %v5401_v26  ;;  %v4847_v23 = vrot.slane %v4846_v58, 4  ;;  %v3903_v37 = vmax.f32 %v3855_v9, 0.0  ;;  %v7311_v36 = vsel %vm3586_vm10, %v7279_v18, %v11541_v28  ;;  %v11889_v9 = vld [vmem:[#allocation3 + $0x8c] sm:$0x1]  ;;  %v4017_v18 = vld [vmem:[#allocation3 + $0xa4] sm:$0x1] }
 0x2bb   : > { %v7343_v52 = vsel %vm3619_vm11, %v7311_v36, %v11427_v60  ;;  %v3847_v16 = vadd.f32 %v11844_v0, %v3846_v15  ;;  %v3970_v30 = vsel %vm8905_vm3, 0, %v3969_v25  ;;  %v4842_v5 = vsel %vm8972_vm13, %v4837_v54, %v4841_v17  ;;  %v8655_v60 = vpop.f32.mrf.mxu0  ;;  %v11880_v17 = vpop.permute.xlu0 %7078  ;;  %v6199_v54 = vld [vmem:[#allocation3 + $0x84] sm:$0xe] }
 0x2bc   : > { %v5407_v44 = vrot.slane %v5406_v27, 4  ;;  %v4852_v28 = vsel %vm8972_vm13, %v4847_v23, %v4851_v48  ;;  %v5402_v13 = vsel %vm8972_vm13, %v5397_v35, %v5401_v26  ;;  %v8467_v10 = vpack.c.bf16 %v3903_v37, %v3903_v37  ;;  %3971 = vst [vmem:[#allocation3 + $0x9c] sm:$0x1] %v3970_v30  ;;  %v11898_v23 = vpop.permute.xlu1 %6484 }
 0x2bd   : > { %vm12880_vm4 = vcmask 293888   ;;  %v8267_v59 = vcombine.low %v4842_v5, %v4852_v28  ;;  %v3901_v20 = vmax.f32 %v3847_v16, 0.0  ;;  %v6023_v49 = vshrl.u32 %v11859_v32, 16  ;;  %v3849_v27 = vpop.f32.mrf.mxu0 }
 0x2be   : > { %8666 = vmatprep.mubr.msk.bf16.mxu1 %vm12880_vm4, %v7343_v52  ;;  %v5412_v12 = vsel %vm8972_vm13, %v5407_v44, %v5411_v4  ;;  %v4331_v6 = vshrl.u32 %v8467_v10, 16  ;;  %v6036_v24 = vshrl.u32 %v11868_v11, 16  ;;  %v8346_v63 = vcombine.low %v11859_v32, %v11868_v11 }
 0x2bf   : > { %v8313_v62 = vcombine.low %v5402_v13, %v5412_v12  ;;  %6498 = vrot.lane.b32.xlu1 %v8267_v59, %s8855_s25  ;;  %v4334_v35 = vshll.u32 %v8467_v10, 16  ;;  %v8465_v26 = vpack.c.bf16 %v3901_v20, %v3901_v20  ;;  %v3858_v58 = vadd.f32 %v11844_v0, %v8655_v60  ;;  %v11909_v59 = vpop.permute.xlu0 %6570 }
 0x2c0   : > { %v4021_v34 = vsel %vm8920_vm5, 0, %v4020_v19  ;;  %v11892_v41 = vrot.slane %v4331_v6, 7  ;;  %v11894_v15 = vrot.slane %v6023_v49, 4  ;;  %v6026_v25 = vshll.u32 %v11859_v32, 16  ;;  %v4520_v4 = vld [vmem:[#allocation3 + $0xa8] sm:$0xf] }
 0x2c1   : > { %6750 = vrot.lane.b32.xlu0 %v8313_v62, %s8860_s30  ;;  %4022 = vst [vmem:[#allocation3 + $0xb0] sm:$0x1] %v4021_v34  ;;  %v6319_v48 = vrot.slane %v11868_v11, 5  ;;  %v4314_v37 = vshrl.u32 %v8465_v26, 16  ;;  %v4317_v36 = vshll.u32 %v8465_v26, 16  ;;  %v3904_v44 = vmax.f32 %v3858_v58, 0.0 }
 0x2c2   : > { %v8234_v52 = vrot.slane %v6199_v54, 9  ;;  %v4336_v16 = vor.u32 %v4334_v35, %v11892_v41  ;;  %v4337_v30 = vrot.slane %v11892_v41, 4  ;;  %v6322_v28 = vrot.slane %v11889_v9, 5  ;;  %v5169_v58 = vld [vmem:[#allocation3 + $0x84] sm:$0xf] }
 0x2c3   : > { %v6321_v5 = vrot.slane %v6319_v48, 4  ;;  %v11903_v13 = vrot.slane %v4314_v37, 7  ;;  %6928 = vrot.lane.b32.xlu1 %v8346_v63, %s8857_s27  ;;  %v8468_v10 = vpack.c.bf16 %v3904_v44, %v3904_v44  ;;  %v3850_v60 = vadd.f32 %v11844_v0, %v3849_v27  ;;  %v4513_v20 = vld [vmem:[#allocation3 + $0x9c] sm:$0xf] }
 0x2c4   : > { %v4018_v19 = vsel %vm8920_vm5, 0, %v4017_v18  ;;  %v4521_v12 = vsel %vm8965_vm12, %v4336_v16, %v4520_v4  ;;  %v5981_v62 = vor.u32 %v11668_v3, %v11666_v61  ;;  %v5984_v6 = vshll.u32 %v11651_v21, 16  ;;  %v11921_v4 = vpop.permute.xlu1 %6824 }
 0x2c5   : > { %v6323_v49 = vsel %vm8943_vm9, %v6321_v5, %v6322_v28  ;;  %4019 = vst [vmem:[#allocation3 + $0xa4] sm:$0x1] %v4018_v19  ;;  %4522 = vst [vmem:[#allocation3 + $0xa8] sm:$0xf] %v4521_v12  ;;  %v4319_v63 = vor.u32 %v4317_v36, %v11903_v13  ;;  %v4339_v54 = vshrl.u32 %v8468_v10, 16  ;;  %v4342_v35 = vshll.u32 %v8468_v10, 16 }
 0x2c6   : > { %v6320_v26 = vsel %vm8943_vm9, %v8234_v52, %v6319_v48  ;;  %v3902_v41 = vmax.f32 %v3850_v60, 0.0  ;;  %v5982_v27 = vrot.slane %v5981_v62, 4  ;;  %v5986_v18 = vrot.slane %v5984_v6, 5 }
 0x2c7   : > { %v8378_v34 = vcombine.low %v6320_v26, %v6323_v49  ;;  %v4514_v3 = vsel %vm8965_vm12, %v4319_v63, %v4513_v20  ;;  %v4341_v61 = vrot.slane %v4339_v54, 7  ;;  %v12881_v37 = vshrl.u32 %v11651_v21, 16  ;;  %v11932_v20 = vld [vmem:[#allocation3 + $0x88] sm:$0xf]  ;;  %v4559_v21 = vld [vmem:[#allocation3 + $0x6c] sm:$0xf]  ;;  %v11934_v49 = vpop.permute.xlu0 %7076 }
 0x2c8   : > { %v5994_v36 = vshll.u32 %v11726_v42, 16  ;;  %v4320_v16 = vrot.slane %v11903_v13, 4  ;;  %4515 = vst [vmem:[#allocation3 + $0x9c] sm:$0xf] %v4514_v3  ;;  %v4524_v48 = vld [vmem:[#allocation3 + $0xb0] sm:$0x1]  ;;  %v8466_v52 = vpack.c.bf16 %v3902_v41, %v3902_v41  ;;  %v5987_v19 = vsel %vm8972_vm13, %v5982_v27, %v5986_v18  ;;  %v11942_v3 = vpop.permute.xlu1 %6568 }
 0x2c9   : > { %v5990_v44 = vrot.slane %v12881_v37, 4  ;;  %7088 = vrot.lane.b32.xlu0 %v8378_v34, %s8859_s29  ;;  %v5438_v5 = vshrl.u32 %v5169_v58, 16  ;;  %v5441_v28 = vshll.u32 %v5169_v58, 16  ;;  %v4344_v10 = vor.u32 %v4342_v35, %v4341_v61 }
 0x2ca   : > { %v4346_v60 = vrot.slane %v4341_v61, 4  ;;  %v4322_v42 = vshrl.u32 %v8466_v52, 16  ;;  %v4325_v13 = vshll.u32 %v8466_v52, 16  ;;  %v5996_v62 = vrot.slane %v5994_v36, 5 }
 0x2cb   : > { %v5991_v12 = vor.u32 %v5990_v44, %v5986_v18  ;;  %v5440_v6 = vrot.slane %v5438_v5, 4  ;;  %v4345_v63 = vsel %vm8979_vm14, %v4337_v30, %v4344_v10  ;;  %v5443_v26 = vrot.slane %v5441_v28, 5  ;;  %v11950_v28 = vld [vmem:[#allocation3 + $0x8c] sm:$0x1] }
 0x2cc   : > { %v4525_v54 = vsel %vm8905_vm3, %v4346_v60, %v4524_v48  ;;  %4523 = vst.msk [vmem:[#allocation3 + $0xac] sm:$0xf] %vm258_vm0, %v4345_v63  ;;  %v4324_v34 = vrot.slane %v4322_v42, 7  ;;  %v8299_v41 = vcombine.low %v5169_v58, %v11932_v20  ;;  %v4806_v27 = vshrl.u32 %v4559_v21, 16  ;;  %v4517_v61 = vld [vmem:[#allocation3 + $0xa4] sm:$0x1] }
 0x2cd   : > { %v5992_v35 = vrot.slane %v5991_v12, 4  ;;  %4526 = vst [vmem:[#allocation3 + $0xb0] sm:$0x1] %v4525_v54  ;;  %v4809_v18 = vshll.u32 %v4559_v21, 16  ;;  %v5451_v30 = vshrl.u32 %v11932_v20, 16  ;;  %v4815_v44 = vshll.u32 %v11738_v8, 16 }
 0x2ce   : > { %v4819_v36 = vshrl.u32 %v11738_v8, 16  ;;  %v4327_v48 = vor.u32 %v4325_v13, %v4324_v34  ;;  %v4329_v52 = vrot.slane %v4324_v34, 4  ;;  %6674 = vrot.lane.b32.xlu0 %v8299_v41, %s8856_s26  ;;  %v4808_v58 = vrot.slane %v4806_v27, 4  ;;  %v11953_v42 = vld [vmem:[#allocation3 + $0x90] sm:$0xf] }
 0x2cf   : > { %v5997_v37 = vsel %vm8972_vm13, %v5992_v35, %v5996_v62  ;;  %v4811_v10 = vrot.slane %v4809_v18, 5  ;;  %v4817_v60 = vrot.slane %v4815_v44, 5  ;;  %v4825_v21 = vshll.u32 %v11759_v31, 16  ;;  %v11955_v62 = vpop.permute.xlu0 %6822  ;;  %v11965_v41 = vld [vmem:[#allocation3 + $0x94] sm:$0xf] }
 0x2d0   : > { %v8360_v5 = vcombine.low %v5987_v19, %v5997_v37  ;;  %v4821_v12 = vrot.slane %v4819_v36, 4  ;;  %v4328_v8 = vsel %vm8979_vm14, %v4320_v16, %v4327_v48  ;;  %v4518_v19 = vsel %vm8905_vm3, %v4329_v52, %v4517_v61  ;;  %v11969_v37 = vpop.permute.xlu1 %6668 }
 0x2d1   : > { %v5444_v13 = vor.u32 %v5443_v26, %v5440_v6  ;;  %v5447_v63 = vshll.u32 %v11932_v20, 16  ;;  %4516 = vst.msk [vmem:[#allocation3 + $0xa0] sm:$0xf] %vm258_vm0, %v4328_v8  ;;  %4519 = vst [vmem:[#allocation3 + $0xa4] sm:$0x1] %v4518_v19  ;;  %v4812_v54 = vor.u32 %v4811_v10, %v4808_v58  ;;  %v5453_v35 = vrot.slane %v5451_v30, 4 }
 0x2d2   : > { %7004 = vrot.lane.b32.xlu1 %v8360_v5, %s8861_s6  ;;  %v4822_v31 = vor.u32 %v4821_v12, %v4817_v60  ;;  %v5457_v34 = vshll.u32 %v11950_v28, 16  ;;  %v5462_v18 = vshrl.u32 %v11953_v42, 16  ;;  %v5465_v61 = vshll.u32 %v11953_v42, 16  ;;  %v5591_v30 = vld [vmem:[#allocation3 + $0x84] sm:$0xe] }
 0x2d3   : > { %v5445_v27 = vrot.slane %v5444_v13, 4  ;;  %v5449_v16 = vrot.slane %v5447_v63, 5  ;;  %v11973_v6 = vrot.slane %v6026_v25, 5  ;;  %v4813_v26 = vrot.slane %v4812_v54, 4  ;;  %v11978_v10 = vld [vmem:[#allocation3 + $0x88] sm:$0xf]  ;;  %v11990_v13 = vpop.permute.xlu0 %6922 }
 0x2d4   : > { %v4823_v44 = vrot.slane %v4822_v31, 4  ;;  %v4827_v36 = vrot.slane %v4825_v21, 5  ;;  %v5459_v5 = vrot.slane %v5457_v34, 5  ;;  %v11980_v12 = vld [vmem:[#allocation3 + $0x90] sm:$0xf]  ;;  %v11986_v8 = vrot.slane %v5462_v18, 4 }
 0x2d5   : > { %v5450_v48 = vsel %vm8972_vm13, %v5445_v27, %v5449_v16  ;;  %v5454_v52 = vor.u32 %v5453_v35, %v5449_v16  ;;  %v4818_v32 = vsel %vm8972_vm13, %v4813_v26, %v4817_v60  ;;  %v11988_v21 = vrot.slane %v5465_v61, 5  ;;  %v4984_v19 = vld [vmem:[#allocation3 + $0x84] sm:$0xe]  ;;  %v11995_v34 = vld [vmem:[#allocation3 + $0x8c] sm:$0x1] }
 0x2d6   : > { %v4828_v25 = vsel %vm8972_vm13, %v4823_v44, %v4827_v36  ;;  %v8300_v31 = vcombine.low %v11953_v42, %v11965_v41  ;;  %v5717_v35 = vrot.slane %v11932_v20, 5  ;;  %v8219_v60 = vrot.slane %v5591_v30, 9  ;;  %v11999_v18 = vld [vmem:[#allocation3 + $0x94] sm:$0xf]  ;;  %v12006_v36 = vpop.permute.xlu1 %6744  ;;  %v8827_v58 = vld [vmem:[#allocation3 + $0x30] sm:$0xf] }
 0x2d7   : > { %v8266_v63 = vcombine.low %v4818_v32, %v4828_v25  ;;  %v5455_v54 = vrot.slane %v5454_v52, 4  ;;  %v5720_v27 = vrot.slane %v11950_v28, 5  ;;  %v5116_v16 = vrot.slane %v11978_v10, 5  ;;  %v8776_v25 = vld [vmem:[%s12839_s3 + $0x8] sm:$0xff]  }
 0x2d8   : > { %v6047_v61 = vshrl.u32 %v11980_v12, 16  ;;  %v5719_v44 = vrot.slane %v5717_v35, 4  ;;  %v8204_v42 = vrot.slane %v4984_v19, 9  ;;  %v6050_v20 = vshll.u32 %v11980_v12, 16 }
 0x2d9   : > { %6496 = vrot.lane.b32.xlu1 %v8266_v63, %s8855_s25  ;;  %v5460_v26 = vsel %vm8972_vm13, %v5455_v54, %v5459_v5  ;;  %v5118_v52 = vrot.slane %v5116_v16, 4  ;;  %v5119_v28 = vrot.slane %v11995_v34, 5  ;;  %v5718_v63 = vsel %vm8943_vm9, %v8219_v60, %v5717_v35  ;;  %v8826_v60 = vld [vmem:[#allocation3 + $0x34] sm:$0xf] }
 0x2da   : > { %v8315_v30 = vcombine.low %v5450_v48, %v5460_v26  ;;  %v6049_v32 = vrot.slane %v6047_v61, 4  ;;  %v5721_v5 = vsel %vm8943_vm9, %v5719_v44, %v5720_v27  ;;  %v6052_v19 = vrot.slane %v6050_v20, 5  ;;  %v8825_v26 = vld [vmem:[%s12839_s3 + $0x10] ss:$0 sps:$4 sm:$0x33]   ;;  %v12026_v44 = vpop.permute.xlu0 %6998 }
 0x2db   : > { %v6060_v54 = vshrl.u32 %v11999_v18, 16  ;;  %v5117_v48 = vsel %vm8943_vm9, %v8204_v42, %v5116_v16  ;;  %v5120_v61 = vsel %vm8943_vm9, %v5118_v52, %v5119_v28  ;;  %vm12882_vm4 = vcmask 1041408  }
 0x2dc   : > { %6754 = vrot.lane.b32.xlu0 %v8315_v30, %s8860_s30  ;;  %v7434_v35 = vsel %vm12882_vm4, %v8825_v26, 0  ;;  %v8245_v27 = vcombine.low %v8827_v58, %v8826_v60  ;;  %v8331_v20 = vcombine.low %v5718_v63, %v5721_v5  ;;  %v6029_v16 = vor.u32 %v11973_v6, %v11894_v15  ;;  %v12037_v58 = vld [vmem:[#allocation3 + $0x98] sm:$0x1]  ;;  %v8777_v15 = vld [vmem:[%s12839_s3] sm:$0xff]  }
 0x2dd   : > { %6676 = vrot.lane.b32.xlu1 %v8300_v31, %s8856_s26  ;;  %8661 = vmatpush3.bf16.msra.mxu1 %v7434_v35  ;;  %v6032_v42 = vshll.u32 %v11868_v11, 16  ;;  %v6038_v30 = vrot.slane %v6036_v24, 4  ;;  %v6042_v28 = vshll.u32 %v11889_v9, 16  ;;  %v6053_v26 = vor.u32 %v6052_v19, %v6049_v32  ;;  %v4563_v24 = vld [vmem:[#allocation3 + $0x84] sm:$0xf]  ;;  %v12043_v35 = vpop.permute.xlu1 %6490 }
 0x2de   : > { %v7116_v52 = vsel %vm3372_vm15, %v8245_v27, %v11806_v53  ;;  %v6056_v31 = vshll.u32 %v11999_v18, 16  ;;  %8662 = vmatprep.subr.bf16.mxu1 %v8776_v25  ;;  %v8284_v6 = vcombine.low %v5117_v48, %v5120_v61  ;;  %v6030_v63 = vrot.slane %v6029_v16, 4  ;;  %v6200_v16 = vld [vmem:[#allocation3 + $0x90] sm:$0xe] }
 0x2df   : > { %v6034_v5 = vrot.slane %v6032_v42, 5  ;;  %v6062_v11 = vrot.slane %v6060_v54, 4  ;;  %v8347_v53 = vcombine.low %v11980_v12, %v11999_v18  ;;  %v12050_v9 = vsel %vm3421_vm1, %v7116_v52, %v11661_v55  ;;  %v12061_v42 = vpop.permute.xlu0 %6666 }
 0x2e0   : > { %6834 = vrot.lane.b32.xlu0 %v8331_v20, %s8858_s28  ;;  %v6054_v32 = vrot.slane %v6053_v26, 4  ;;  %v6058_v19 = vrot.slane %v6056_v31, 5  ;;  %v6044_v61 = vrot.slane %v6042_v28, 5  ;;  %v6066_v54 = vshll.u32 %v12037_v58, 16  ;;  %v8658_v26 = vpop.f32.mrf.mxu0 }
 0x2e1   : > { %6580 = vrot.lane.b32.xlu1 %v8284_v6, %s8854_s24  ;;  %v6039_v48 = vor.u32 %v6038_v30, %v6034_v5  ;;  %8663 = vmatpush3.bf16.msra.mxu1 %v8776_v25  ;;  %v7219_v60 = vsel %vm3487_vm6, %v11773_v38, %v11838_v56  ;;  %v6035_v12 = vsel %vm8972_vm13, %v6030_v63, %v6034_v5  ;;  %v4854_v20 = vshrl.u32 %v4563_v24, 16 }
 0x2e2   : > { %v6059_v55 = vsel %vm8972_vm13, %v6054_v32, %v6058_v19  ;;  %v6063_v27 = vor.u32 %v6062_v11, %v6058_v19  ;;  %8664 = vmatprep.subr.bf16.mxu1 %v8777_v15  ;;  %v6068_v52 = vrot.slane %v6066_v54, 5  ;;  %v7251_v25 = vsel %vm3520_vm7, %v7219_v60, %v11717_v22  ;;  %v3978_v19 = vld [vmem:[#allocation3 + $0xc0] sm:$0x1]  ;;  %v12071_v22 = vpop.permute.xlu1 %6920 }
 0x2e3   : > { %v6040_v30 = vrot.slane %v6039_v48, 4  ;;  %v4857_v28 = vshll.u32 %v4563_v24, 16  ;;  %v4856_v56 = vrot.slane %v4854_v20, 4  ;;  %v4863_v31 = vshll.u32 %v11978_v10, 16 }
 0x2e4   : > { %6930 = vrot.lane.b32.xlu0 %v8347_v53, %s8857_s27  ;;  %v6064_v38 = vrot.slane %v6063_v27, 4  ;;  %v4867_v6 = vshrl.u32 %v11978_v10, 16  ;;  %v4873_v11 = vshll.u32 %v11995_v34, 16  ;;  %v8235_v32 = vrot.slane %v6200_v16, 9 }
 0x2e5   : > { %v6045_v63 = vsel %vm8972_vm13, %v6040_v30, %v6044_v61  ;;  %v4859_v5 = vrot.slane %v4857_v28, 5  ;;  %8665 = vmatpush3.bf16.msra.mxu1 %v8777_v15  ;;  %v4865_v48 = vrot.slane %v4863_v31, 5  ;;  %v6326_v20 = vrot.slane %v11999_v18, 5  ;;  %v3862_v61 = vpop.f32.mrf.mxu0  ;;  %v3975_v30 = vld [vmem:[#allocation3 + $0xb4] sm:$0x1] }
 0x2e6   : > { %v8362_v24 = vcombine.low %v6035_v12, %v6045_v63  ;;  %v6069_v53 = vsel %vm8972_vm13, %v6064_v38, %v6068_v52  ;;  %v4869_v54 = vrot.slane %v4867_v6, 4  ;;  %v4875_v10 = vrot.slane %v4873_v11, 5  ;;  %v12081_v52 = vpop.permute.xlu0 %6742  ;;  %v12884_v11 = vld [vmem:[#allocation7_spill] sm:$0xff] }
 0x2e7   : > { %v8363_v60 = vcombine.low %v6059_v55, %v6069_v53  ;;  %v4860_v27 = vor.u32 %v4859_v5, %v4856_v56  ;;  %v6329_v16 = vrot.slane %v12037_v58, 5  ;;  %v3871_v15 = vadd.f32 %v11844_v0, %v8658_v26  ;;  %v12883_v56 = vld [vmem:[#allocation4_spill] sm:$0xff] }
 0x2e8   : > { %7008 = vrot.lane.b32.xlu1 %v8362_v24, %s8861_s6  ;;  %v4870_v34 = vor.u32 %v4869_v54, %v4865_v48  ;;  %v3979_v12 = vsel %vm8905_vm3, 0, %v3978_v19  ;;  %v6327_v18 = vsel %vm8943_vm9, %v8235_v32, %v6326_v20  ;;  %v6328_v28 = vrot.slane %v6326_v20, 4 }
 0x2e9   : > { %7010 = vrot.lane.b32.xlu0 %v8363_v60, %s8861_s6  ;;  %v4861_v55 = vrot.slane %v4860_v27, 4  ;;  %3980 = vst [vmem:[#allocation3 + $0xc0] sm:$0x1] %v3979_v12  ;;  %v7217_v58 = vsel %vm3487_vm6, %v11852_v43, %v11574_v45  ;;  %v3907_v26 = vmax.f32 %v3871_v15, 0.0  ;;  %v3863_v6 = vadd.f32 %v11844_v0, %v3862_v61  ;;  %v12100_v45 = vld [vmem:[#allocation3 + $0x98] sm:$0x1]  ;;  %v12102_v43 = vpop.permute.xlu1 %6996  ;;  %v8659_v60 = vpop.f32.mrf.mxu0 }
 0x2ea   : > { %v4871_v38 = vrot.slane %v4870_v34, 4  ;;  %v7249_v31 = vsel %vm3520_vm7, %v7217_v58, %v12883_v56  ;;  %v6330_v5 = vsel %vm8943_vm9, %v6328_v28, %v6329_v16  ;;  %v3976_v19 = vsel %vm8905_vm3, 0, %v3975_v30  ;;  %v4026_v16 = vld [vmem:[#allocation3 + $0xc8] sm:$0x1]  ;;  %v12885_v15 = vld [vmem:[#allocation5_spill] sm:$0xff] }
 0x2eb   : > { %v4866_v63 = vsel %vm8972_vm13, %v4861_v55, %v4865_v48  ;;  %v7281_v32 = vsel %vm3553_vm8, %v7249_v31, %v12884_v11  ;;  %v8379_v53 = vcombine.low %v6327_v18, %v6330_v5  ;;  %v8471_v54 = vpack.c.bf16 %v3907_v26, %v3907_v26  ;;  %3977 = vst [vmem:[#allocation3 + $0xb4] sm:$0x1] %v3976_v19  ;;  %v12117_v18 = vpop.permute.xlu0 %7082  ;;  %v3865_v31 = vpop.f32.mrf.mxu0 }
 0x2ec   : > { %v4876_v24 = vsel %vm8972_vm13, %v4871_v38, %v4875_v10  ;;  %v7313_v48 = vsel %vm3586_vm10, %v7281_v32, %v11861_v33  ;;  %v3905_v20 = vmax.f32 %v3863_v6, 0.0  ;;  %v5468_v61 = vor.u32 %v11988_v21, %v11986_v8 }
 0x2ed   : > { %v8268_v27 = vcombine.low %v4866_v63, %v4876_v24  ;;  %v5471_v34 = vshll.u32 %v11965_v41, 16  ;;  %v7283_v12 = vsel %vm3553_vm8, %v7251_v25, %v12885_v15  ;;  %7090 = vrot.lane.b32.xlu0 %v8379_v53, %s8859_s29  ;;  %v4365_v10 = vshrl.u32 %v8471_v54, 16  ;;  %v12128_v19 = vpop.permute.xlu1 %6488 }
 0x2ee   : > { %v12886_v30 = vshrl.u32 %v11965_v41, 16  ;;  %v5481_v33 = vshll.u32 %v12100_v45, 16  ;;  %v8469_v28 = vpack.c.bf16 %v3905_v20, %v3905_v20  ;;  %v5469_v8 = vrot.slane %v5468_v61, 4 }
 0x2ef   : > { %6500 = vrot.lane.b32.xlu1 %v8268_v27, %s8855_s25  ;;  %v5473_v21 = vrot.slane %v5471_v34, 5  ;;  %v3874_v58 = vadd.f32 %v11844_v0, %v8659_v60  ;;  %v12121_v38 = vrot.slane %v4365_v10, 7  ;;  %v4368_v25 = vshll.u32 %v8471_v54, 16  ;;  %v8828_v60 = vld [vmem:[#allocation3 + $0x28] sm:$0xf] }
 0x2f0   : > { %v5477_v55 = vrot.slane %v12886_v30, 4  ;;  %v4027_v26 = vsel %vm8920_vm5, 0, %v4026_v16  ;;  %v7345_v56 = vsel %vm3619_vm11, %v7313_v48, %v11689_v29  ;;  %v4534_v6 = vld [vmem:[#allocation3 + $0xc0] sm:$0xf]  ;;  %v4348_v63 = vshrl.u32 %v8469_v28, 16 }
 0x2f1   : > { %v4351_v5 = vshll.u32 %v8469_v28, 16  ;;  %v5483_v32 = vrot.slane %v5481_v33, 5  ;;  %4028 = vst [vmem:[#allocation3 + $0xc8] sm:$0x1] %v4027_v26  ;;  %vm12887_vm4 = vcmask 293888   ;;  %v4370_v24 = vor.u32 %v4368_v25, %v12121_v38  ;;  %v12888_v33 = vld [vmem:[#allocation8_spill] sm:$0xff] }
 0x2f2   : > { %v5478_v11 = vor.u32 %v5477_v55, %v5473_v21  ;;  %8667 = vmatmul.mubr.msk.bf16.vlgmr.msra.gmra.mxu1 %vm12887_vm4, %v7345_v56  ;;  %v5474_v53 = vsel %vm8972_vm13, %v5469_v8, %v5473_v21  ;;  %v3908_v54 = vmax.f32 %v3874_v58, 0.0  ;;  %v8829_v27 = vld [vmem:[#allocation3 + $0x24] sm:$0xf]  ;;  %v12133_v48 = vrot.slane %v4348_v63, 7  ;;  %v4023_v16 = vld [vmem:[#allocation3 + $0xbc] sm:$0x1]  ;;  %v12144_v58 = vpop.permute.xlu0 %6574 }
 0x2f3   : > { %v8244_v29 = vcombine.low %v8829_v27, %v8828_v60  ;;  %v7315_v61 = vsel %vm3586_vm10, %v7283_v12, %v11786_v39  ;;  %v3866_v34 = vadd.f32 %v11844_v0, %v3865_v31  ;;  %v4535_v15 = vsel %vm8965_vm12, %v4370_v24, %v4534_v6  ;;  %v4527_v10 = vld [vmem:[#allocation3 + $0xb4] sm:$0xf]  ;;  %v6201_v8 = vld [vmem:[#allocation3 + $0x9c] sm:$0xe]  ;;  %v5592_v21 = vld [vmem:[#allocation3 + $0x90] sm:$0xe]  ;;  %v12164_v60 = vpop.permute.xlu1 %6828 }
 0x2f4   : > { %v5479_v20 = vrot.slane %v5478_v11, 4  ;;  %v8472_v30 = vpack.c.bf16 %v3908_v54, %v3908_v54  ;;  %v7347_v28 = vsel %vm3619_vm11, %v7315_v61, %v12888_v33  ;;  %v4371_v39 = vrot.slane %v12121_v38, 4  ;;  %4536 = vst [vmem:[#allocation3 + $0xc0] sm:$0xf] %v4535_v15  ;;  %v12154_v26 = vld [vmem:[#allocation3 + $0xa4] sm:$0x1] }
 0x2f5   : > { %v7113_v55 = vsel %vm3372_vm15, %v8244_v29, %v11898_v23  ;;  %v4353_v0 = vor.u32 %v4351_v5, %v12133_v48  ;;  %v4354_v12 = vrot.slane %v12133_v48, 4  ;;  %8670 = vmatprep.mubr.msk.bf16.mxu1 %vm12887_vm4, %v7347_v28  ;;  %v12152_v23 = vld [vmem:[#allocation3 + $0xa0] sm:$0xf]  ;;  %v12889_v63 = vld [vmem:[#allocation10_spill] sm:$0xff]  ;;  %v4985_v11 = vld [vmem:[#allocation3 + $0x90] sm:$0xe] }
 0x2f6   : > { %v5484_v25 = vsel %vm8972_vm13, %v5479_v20, %v5483_v32  ;;  %v4373_v31 = vshrl.u32 %v8472_v30, 16  ;;  %v4376_v6 = vshll.u32 %v8472_v30, 16  ;;  %v12158_v38 = vsel %vm3421_vm1, %v7113_v55, %v12889_v63  ;;  %v12169_v61 = vld [vmem:[#allocation3 + $0x94] sm:$0xf]  ;;  %v12175_v28 = vld [vmem:[#allocation3 + $0x98] sm:$0x1] }
 0x2f7   : > { %v8316_v56 = vcombine.low %v5474_v53, %v5484_v25  ;;  %v4528_v5 = vsel %vm8965_vm12, %v4353_v0, %v4527_v10  ;;  %v3906_v24 = vmax.f32 %v3866_v34, 0.0  ;;  %v4024_v32 = vsel %vm8920_vm5, 0, %v4023_v16  ;;  %v5780_v63 = vld [vmem:[#allocation3 + $0x9c] sm:$0xf] }
 0x2f8   : > { %v8236_v54 = vrot.slane %v6201_v8, 9  ;;  %4529 = vst [vmem:[#allocation3 + $0xb4] sm:$0xf] %v4528_v5  ;;  %v4375_v53 = vrot.slane %v4373_v31, 7  ;;  %4025 = vst [vmem:[#allocation3 + $0xbc] sm:$0x1] %v4024_v32  ;;  %v12177_v8 = vpop.permute.xlu0 %7080 }
 0x2f9   : > { %6756 = vrot.lane.b32.xlu1 %v8316_v56, %s8860_s30  ;;  %v6333_v27 = vrot.slane %v12152_v23, 5  ;;  %v6336_v29 = vrot.slane %v12154_v26, 5  ;;  %v8220_v20 = vrot.slane %v5592_v21, 9  ;;  %v4538_v47 = vld [vmem:[#allocation3 + $0xc8] sm:$0x1]  ;;  %v8470_v34 = vpack.c.bf16 %v3906_v24, %v3906_v24 }
 0x2fa   : > { %v5724_v2 = vrot.slane %v11965_v41, 5  ;;  %v5727_v16 = vrot.slane %v12100_v45, 5  ;;  %v8205_v15 = vrot.slane %v4985_v11, 9  ;;  %v4378_v10 = vor.u32 %v4376_v6, %v4375_v53 }
 0x2fb   : > { %v4380_v30 = vrot.slane %v4375_v53, 4  ;;  %v6334_v55 = vsel %vm8943_vm9, %v8236_v54, %v6333_v27  ;;  %v6335_v33 = vrot.slane %v6333_v27, 4  ;;  %v4356_v21 = vshrl.u32 %v8470_v34, 16  ;;  %v12192_v54 = vld [vmem:[#allocation3 + $0xa0] sm:$0xf]  ;;  %v12194_v53 = vpop.permute.xlu1 %6572 }
 0x2fc   : > { %v4359_v0 = vshll.u32 %v8470_v34, 16  ;;  %v5725_v25 = vsel %vm8943_vm9, %v8220_v20, %v5724_v2  ;;  %v5726_v56 = vrot.slane %v5724_v2, 4  ;;  %v4379_v41 = vsel %vm8979_vm14, %v4371_v39, %v4378_v10  ;;  %v5173_v39 = vld [vmem:[#allocation3 + $0x9c] sm:$0xf] }
 0x2fd   : > { %v4539_v45 = vsel %vm8905_vm3, %v4380_v30, %v4538_v47  ;;  %v6337_v31 = vsel %vm8943_vm9, %v6335_v33, %v6336_v29  ;;  %v5123_v6 = vrot.slane %v12169_v61, 5  ;;  %4537 = vst.msk [vmem:[#allocation3 + $0xc4] sm:$0xf] %vm258_vm0, %v4379_v41  ;;  %v4358_v11 = vrot.slane %v4356_v21, 7 }
 0x2fe   : > { %4540 = vst [vmem:[#allocation3 + $0xc8] sm:$0x1] %v4539_v45  ;;  %v8380_v5 = vcombine.low %v6334_v55, %v6337_v31  ;;  %v5728_v24 = vsel %vm8943_vm9, %v5726_v56, %v5727_v16  ;;  %v5126_v32 = vrot.slane %v12175_v28, 5  ;;  %v8348_v47 = vcombine.low %v5780_v63, %v12152_v23  ;;  %v12212_v31 = vld [vmem:[#allocation3 + $0xa4] sm:$0x1] }
 0x2ff   : > { %v8332_v27 = vcombine.low %v5725_v25, %v5728_v24  ;;  %v5124_v29 = vsel %vm8943_vm9, %v8205_v15, %v5123_v6  ;;  %v5125_v20 = vrot.slane %v5123_v6, 4  ;;  %v4361_v34 = vor.u32 %v4359_v0, %v4358_v11  ;;  %v4531_v10 = vld [vmem:[#allocation3 + $0xbc] sm:$0x1]  ;;  %v12204_v15 = vpop.permute.xlu0 %6826  ;;  %v12221_v24 = vld [vmem:[#allocation3 + $0x90] sm:$0xf] }
 0x300   : > { %v4363_v2 = vrot.slane %v4358_v11, 4  ;;  %7092 = vrot.lane.b32.xlu0 %v8380_v5, %s8859_s29  ;;  %v6071_v16 = vshrl.u32 %v5780_v63, 16  ;;  %v6074_v30 = vshll.u32 %v5780_v63, 16  ;;  %v5486_v33 = vshrl.u32 %v5173_v39, 16  ;;  %12890 = vst [vmem:[#allocation4_spill] sm:$0xff] %v12221_v24 }
 0x301   : > { %6836 = vrot.lane.b32.xlu1 %v8332_v27, %s8858_s28  ;;  %v5127_v55 = vsel %vm8943_vm9, %v5125_v20, %v5126_v32  ;;  %v5489_v21 = vshll.u32 %v5173_v39, 16  ;;  %v5499_v25 = vshrl.u32 %v12192_v54, 16  ;;  %v4362_v0 = vsel %vm8979_vm14, %v4354_v12, %v4361_v34  ;;  %v12223_v32 = vpop.permute.xlu1 %6672 }
 0x302   : > { %v4532_v56 = vsel %vm8905_vm3, %v4363_v2, %v4531_v10  ;;  %v8285_v41 = vcombine.low %v5124_v29, %v5127_v55  ;;  %v6073_v45 = vrot.slane %v6071_v16, 4  ;;  %4530 = vst.msk [vmem:[#allocation3 + $0xb8] sm:$0xf] %vm258_vm0, %v4362_v0  ;;  %v6076_v6 = vrot.slane %v6074_v30, 5  ;;  %vm12895_vm3 = vmmov %vm12887_vm4 }
 0x303   : > { %4533 = vst [vmem:[#allocation3 + $0xbc] sm:$0x1] %v4532_v56  ;;  %v5488_v63 = vrot.slane %v5486_v33, 4  ;;  %v5491_v11 = vrot.slane %v5489_v21, 5  ;;  %v8301_v5 = vcombine.low %v5173_v39, %v12192_v54  ;;  %v6080_v57 = vshll.u32 %v12152_v23, 16  ;;  %v12228_v33 = vpop.permute.xlu0 %6926  ;;  %vm12896_vm5 = vmmov %vm12895_vm3 }
 0x304   : > { %6582 = vrot.lane.b32.xlu0 %v8285_v41, %s8854_s24  ;;  %v6084_v48 = vshrl.u32 %v12152_v23, 16  ;;  %v6090_v1 = vshll.u32 %v12154_v26, 16  ;;  %v5495_v12 = vshll.u32 %v12192_v54, 16  ;;  %v6077_v27 = vor.u32 %v6076_v6, %v6073_v45  ;;  %v5593_v56 = vld [vmem:[#allocation3 + $0x9c] sm:$0xe]  ;;  %vm12898_vm12 = vmmov %vm12895_vm3 }
 0x305   : > { %6932 = vrot.lane.b32.xlu1 %v8348_v47, %s8857_s27  ;;  %v5492_v29 = vor.u32 %v5491_v11, %v5488_v63  ;;  %v5501_v20 = vrot.slane %v5499_v25, 4  ;;  %v5505_v39 = vshll.u32 %v12212_v31, 16  ;;  %v6082_v34 = vrot.slane %v6080_v57, 5  ;;  %vm12899_vm14 = vmmov %vm12895_vm3 }
 0x306   : > { %v6086_v2 = vrot.slane %v6084_v48, 4  ;;  %v6092_v10 = vrot.slane %v6090_v1, 5  ;;  %v5497_v16 = vrot.slane %v5495_v12, 5  ;;  %v6078_v23 = vrot.slane %v6077_v27, 4  ;;  %v12238_v1 = vpop.permute.xlu1 %6748  ;;  %vm12900_vm4 = vmmov %vm12895_vm3 }
 0x307   : > { %v5493_v30 = vrot.slane %v5492_v29, 4  ;;  %v5507_v26 = vrot.slane %v5505_v39, 5  ;;  %v4878_v55 = vshrl.u32 %v12221_v24, 16  ;;  %v4881_v0 = vshll.u32 %v12221_v24, 16  ;;  %v12242_v39 = vld [vmem:[#allocation3 + $0x9c] sm:$0xf] }
 0x308   : > { %6678 = vrot.lane.b32.xlu0 %v8301_v5, %s8856_s26  ;;  %v6087_v21 = vor.u32 %v6086_v2, %v6082_v34  ;;  %v5502_v47 = vor.u32 %v5501_v20, %v5497_v16  ;;  %v4887_v25 = vshll.u32 %v12169_v61, 16  ;;  %v6083_v41 = vsel %vm8972_vm13, %v6078_v23, %v6082_v34  ;;  %12891 = vst [vmem:[#allocation7_spill] sm:$0xff] %v12242_v39  ;;  %v12249_v23 = vld [vmem:[#allocation3 + $0xa0] sm:$0xf] }
 0x309   : > { %v5498_v45 = vsel %vm8972_vm13, %v5493_v30, %v5497_v16  ;;  %v4880_v6 = vrot.slane %v4878_v55, 4  ;;  %v4891_v63 = vshrl.u32 %v12169_v61, 16  ;;  %v4883_v48 = vrot.slane %v4881_v0, 5  ;;  %12892 = vst [vmem:[#allocation5_spill] sm:$0xff] %v12249_v23 }
 0x30a   : > { %v6088_v11 = vrot.slane %v6087_v21, 4  ;;  %v5503_v57 = vrot.slane %v5502_v47, 4  ;;  %v4889_v5 = vrot.slane %v4887_v25, 5  ;;  %v4897_v27 = vshll.u32 %v12175_v28, 16  ;;  %v12251_v47 = vld [vmem:[#allocation3 + $0xa4] sm:$0x1] }
 0x30b   : > { %v4893_v12 = vrot.slane %v4891_v63, 4  ;;  %v8221_v29 = vrot.slane %v5593_v56, 9  ;;  %v5731_v20 = vrot.slane %v12192_v54, 5  ;;  %v4884_v2 = vor.u32 %v4883_v48, %v4880_v6  ;;  %v12253_v54 = vpop.permute.xlu0 %7002  ;;  %v5782_v48 = vld [vmem:[#allocation3 + $0xa8] sm:$0xf] }
 0x30c   : > { %v6093_v34 = vsel %vm8972_vm13, %v6088_v11, %v6092_v10  ;;  %v5508_v61 = vsel %vm8972_vm13, %v5503_v57, %v5507_v26  ;;  %v5734_v16 = vrot.slane %v12212_v31, 5  ;;  %v4899_v28 = vrot.slane %v4897_v27, 5 }
 0x30d   : > { %v8364_v30 = vcombine.low %v6083_v41, %v6093_v34  ;;  %v8317_v55 = vcombine.low %v5498_v45, %v5508_v61  ;;  %v4894_v21 = vor.u32 %v4893_v12, %v4889_v5  ;;  %v4885_v0 = vrot.slane %v4884_v2, 4  ;;  %v12268_v12 = vpop.permute.xlu1 %6494  ;;  %v12272_v61 = vld [vmem:[#allocation3 + $0xac] sm:$0xf] }
 0x30e   : > { %v5732_v10 = vsel %vm8943_vm9, %v8221_v29, %v5731_v20  ;;  %v5733_v25 = vrot.slane %v5731_v20, 4  ;;  %v4902_v26 = vshrl.u32 %v12242_v39, 16  ;;  %v4905_v56 = vshll.u32 %v12242_v39, 16 }
 0x30f   : > { %7012 = vrot.lane.b32.xlu1 %v8364_v30, %s8861_s6  ;;  %6758 = vrot.lane.b32.xlu0 %v8317_v55, %s8860_s30  ;;  %v4895_v31 = vrot.slane %v4894_v21, 4  ;;  %v4911_v41 = vshll.u32 %v12249_v23, 16  ;;  %v4915_v45 = vshrl.u32 %v12249_v23, 16  ;;  %v4890_v6 = vsel %vm8972_vm13, %v4885_v0, %v4889_v5  ;;  %v12893_v30 = vld [vmem:[#allocation6_spill] sm:$0xff] }
 0x310   : > { %v5735_v63 = vsel %vm8943_vm9, %v5733_v25, %v5734_v16  ;;  %v4904_v11 = vrot.slane %v4902_v26, 4  ;;  %v4921_v57 = vshll.u32 %v12251_v47, 16  ;;  %v4907_v20 = vrot.slane %v4905_v56, 5  ;;  %v12281_v25 = vpop.permute.xlu0 %6670  ;;  %v8830_v56 = vld [vmem:[#allocation3 + $0x4c] sm:$0xf] }
 0x311   : > { %v4900_v27 = vsel %vm8972_vm13, %v4895_v31, %v4899_v28  ;;  %v8333_v29 = vcombine.low %v5732_v10, %v5735_v63  ;;  %v4913_v34 = vrot.slane %v4911_v41, 5  ;;  %v7191_v5 = vsel %vm3454_vm2, %v12050_v9, %v11816_v46  ;;  %v4986_v10 = vld [vmem:[#allocation3 + $0x9c] sm:$0xe]  ;;  %v8831_v46 = vld [vmem:[#allocation3 + $0x48] sm:$0xf] }
 0x312   : > { %v8269_v2 = vcombine.low %v4890_v6, %v4900_v27  ;;  %v4917_v16 = vrot.slane %v4915_v45, 4  ;;  %v7189_v55 = vsel %vm3454_vm2, %v12158_v38, %v12893_v30  ;;  %v4908_v21 = vor.u32 %v4907_v20, %v4904_v11  ;;  %v5802_v30 = vld [vmem:[#allocation3 + $0xb0] sm:$0x1] }
 0x313   : > { %6838 = vrot.lane.b32.xlu0 %v8333_v29, %s8858_s28  ;;  %v6095_v0 = vshrl.u32 %v5782_v48, 16  ;;  %v6098_v28 = vshll.u32 %v5782_v48, 16  ;;  %v4923_v31 = vrot.slane %v4921_v57, 5  ;;  %v8247_v9 = vcombine.low %v8831_v46, %v8830_v56  ;;  %v12306_v46 = vld [vmem:[#allocation3 + $0xac] sm:$0xf] }
 0x314   : > { %6502 = vrot.lane.b32.xlu1 %v8269_v2, %s8855_s25  ;;  %v4918_v26 = vor.u32 %v4917_v16, %v4913_v34  ;;  %v6108_v41 = vshrl.u32 %v12272_v61, 16  ;;  %v4909_v45 = vrot.slane %v4908_v21, 4  ;;  %v8349_v63 = vcombine.low %v5782_v48, %v12272_v61  ;;  %v12291_v2 = vpop.permute.xlu1 %6924 }
 0x315   : > { %v6097_v6 = vrot.slane %v6095_v0, 4  ;;  %v6100_v38 = vrot.slane %v6098_v28, 5  ;;  %v12288_v27 = vsel %vm3372_vm15, %v8247_v9, %v12043_v35  ;;  %v8206_v29 = vrot.slane %v4986_v10, 9  ;;  %v5175_v0 = vld [vmem:[#allocation3 + $0xa8] sm:$0xf]  ;;  %v12308_v9 = vpop.permute.xlu0 %6746 }
 0x316   : > { %v4919_v11 = vrot.slane %v4918_v26, 4  ;;  %v5130_v20 = vrot.slane %v12249_v23, 5  ;;  %v5133_v57 = vrot.slane %v12251_v47, 5  ;;  %v7223_v16 = vsel %vm3487_vm6, %v7191_v5, %v12081_v52 }
 0x317   : > { %6934 = vrot.lane.b32.xlu0 %v8349_v63, %s8857_s27  ;;  %v6101_v21 = vor.u32 %v6100_v38, %v6097_v6  ;;  %v6104_v48 = vshll.u32 %v12272_v61, 16  ;;  %v4914_v35 = vsel %vm8972_vm13, %v4909_v45, %v4913_v34  ;;  %v7255_v26 = vsel %vm3520_vm7, %v7223_v16, %v11955_v62 }
 0x318   : > { %v4924_v28 = vsel %vm8972_vm13, %v4919_v11, %v4923_v31  ;;  %v5132_v10 = vrot.slane %v5130_v20, 4  ;;  %v5131_v47 = vsel %vm8943_vm9, %v8206_v29, %v5130_v20  ;;  %v6110_v45 = vrot.slane %v6108_v41, 4  ;;  %v6202_v29 = vld [vmem:[#allocation3 + $0xa8] sm:$0xe] }
 0x319   : > { %v8270_v56 = vcombine.low %v4914_v35, %v4924_v28  ;;  %v6102_v52 = vrot.slane %v6101_v21, 4  ;;  %v6106_v5 = vrot.slane %v6104_v48, 5  ;;  %v6114_v6 = vshll.u32 %v5802_v30, 16 }
 0x31a   : > { %v5134_v34 = vsel %vm8943_vm9, %v5132_v10, %v5133_v57  ;;  %v5510_v31 = vshrl.u32 %v5175_v0, 16  ;;  %v7287_v62 = vsel %vm3553_vm8, %v7255_v26, %v11741_v51  ;;  %v5513_v11 = vshll.u32 %v5175_v0, 16  ;;  %v12318_v57 = vpop.permute.xlu1 %7000  ;;  %v12894_v26 = vld [vmem:[#allocation9_spill] sm:$0xff] }
 0x31b   : > { %6504 = vrot.lane.b32.xlu1 %v8270_v56, %s8855_s25  ;;  %v8286_v38 = vcombine.low %v5131_v47, %v5134_v34  ;;  %v6107_v63 = vsel %vm8972_vm13, %v6102_v52, %v6106_v5  ;;  %v6111_v20 = vor.u32 %v6110_v45, %v6106_v5  ;;  %v6116_v16 = vrot.slane %v6114_v6, 5  ;;  %v12326_v52 = vld [vmem:[#allocation3 + $0xb0] sm:$0x1] }
 0x31c   : > { %v5512_v21 = vrot.slane %v5510_v31, 4  ;;  %v5523_v48 = vshrl.u32 %v12306_v46, 16  ;;  %v5515_v41 = vrot.slane %v5513_v11, 5  ;;  %v8302_v35 = vcombine.low %v5175_v0, %v12306_v46 }
 0x31d   : > { %v7221_v28 = vsel %vm3487_vm6, %v7189_v55, %v11768_v40  ;;  %v6340_v51 = vrot.slane %v12272_v61, 5  ;;  %v6112_v10 = vrot.slane %v6111_v20, 4  ;;  %v8237_v47 = vrot.slane %v6202_v29, 9  ;;  %v12332_v40 = vpop.permute.xlu0 %7086 }
 0x31e   : > { %v7253_v56 = vsel %vm3520_vm7, %v7221_v28, %v12894_v26  ;;  %v5519_v5 = vshll.u32 %v12306_v46, 16  ;;  %v6343_v45 = vrot.slane %v5802_v30, 5  ;;  %v5516_v6 = vor.u32 %v5515_v41, %v5512_v21  ;;  %v12341_v28 = vld [vmem:[#allocation3 + $0xb8] sm:$0xf]  ;;  %v8832_v41 = vld [vmem:[#allocation3 + $0x40] sm:$0xf] }
 0x31f   : > { %6584 = vrot.lane.b32.xlu1 %v8286_v38, %s8854_s24  ;;  %v7285_v34 = vsel %vm3553_vm8, %v7253_v56, %v11826_v7  ;;  %v6342_v0 = vrot.slane %v6340_v51, 4  ;;  %v6117_v61 = vsel %vm8972_vm13, %v6112_v10, %v6116_v16  ;;  %v5525_v11 = vrot.slane %v5523_v48, 4  ;;  %v6203_v48 = vld [vmem:[#allocation3 + $0xb4] sm:$0xe] }
 0x320   : > { %v7317_v55 = vsel %vm3586_vm10, %v7285_v34, %v12102_v43  ;;  %v5521_v31 = vrot.slane %v5519_v5, 5  ;;  %v8365_v29 = vcombine.low %v6107_v63, %v6117_v61  ;;  %v5517_v20 = vrot.slane %v5516_v6, 4  ;;  %v8833_v43 = vld [vmem:[#allocation3 + $0x3c] sm:$0xf]  ;;  %v12347_v63 = vpop.permute.xlu1 %6492  ;;  %v5594_v5 = vld [vmem:[#allocation3 + $0xa8] sm:$0xe] }
 0x321   : > { %v6344_v38 = vsel %vm8943_vm9, %v6342_v0, %v6343_v45  ;;  %v5529_v7 = vshll.u32 %v12326_v52, 16  ;;  %v6341_v30 = vsel %vm8943_vm9, %v8237_v47, %v6340_v51  ;;  %v7349_v16 = vsel %vm3619_vm11, %v7317_v55, %v11934_v49  ;;  %v12358_v47 = vld [vmem:[#allocation3 + $0xbc] sm:$0x1]  ;;  %v4987_v61 = vld [vmem:[#allocation3 + $0xa8] sm:$0xe] }
 0x322   : > { %v5526_v21 = vor.u32 %v5525_v11, %v5521_v31  ;;  %v8246_v10 = vcombine.low %v8833_v43, %v8832_v41  ;;  %v12352_v26 = vsel %vm3421_vm1, %v12288_v27, %v11909_v59  ;;  %7014 = vrot.lane.b32.xlu0 %v8365_v29, %s8861_s6  ;;  %v8381_v51 = vcombine.low %v6341_v30, %v6344_v38  ;;  %v5784_v38 = vld [vmem:[#allocation3 + $0xb4] sm:$0xf] }
 0x323   : > { %6680 = vrot.lane.b32.xlu1 %v8302_v35, %s8856_s26  ;;  %v5531_v56 = vrot.slane %v5529_v7, 5  ;;  %v7319_v49 = vsel %vm3586_vm10, %v7287_v62, %v12026_v44  ;;  %8671 = vmatmul.mubr.msk.bf16.gmra.mxu1 %vm12895_vm3, %v7349_v16  ;;  %v6347_v27 = vrot.slane %v12341_v28, 5  ;;  %v12366_v35 = vld [vmem:[#allocation3 + $0xac] sm:$0xf]  ;;  %v5522_v45 = vsel %vm8972_vm13, %v5517_v20, %v5521_v31  ;;  %v5177_v43 = vld [vmem:[#allocation3 + $0xb4] sm:$0xf] }
 0x324   : > { %v5527_v34 = vrot.slane %v5526_v21, 4  ;;  %v7119_v0 = vsel %vm3372_vm15, %v8246_v10, %v12128_v19  ;;  %v7351_v59 = vsel %vm3619_vm11, %v7319_v49, %v11880_v17  ;;  %v8238_v62 = vrot.slane %v6203_v48, 9  ;;  %v12376_v19 = vld [vmem:[#allocation3 + $0xb0] sm:$0x1]  ;;  %v12378_v17 = vpop.permute.xlu0 %6578  ;;  %v12392_v10 = vld [vmem:[#allocation3 + $0xb8] sm:$0xf]  ;;  %v12394_v48 = vpop.permute.xlu1 %6832 }
 0x325   : > { %v12372_v44 = vsel %vm3421_vm1, %v7119_v0, %v11942_v3  ;;  %8674 = vmatprep.mubr.msk.bf16.mxu1 %vm12896_vm5, %v7351_v59  ;;  %v5738_v6 = vrot.slane %v12306_v46, 5  ;;  %v6349_v11 = vrot.slane %v6347_v27, 4  ;;  %v6350_v31 = vrot.slane %v12358_v47, 5  ;;  %vm12903_vm5 = vmmov %vm12895_vm3 }
 0x326   : > { %v5532_v55 = vsel %vm8972_vm13, %v5527_v34, %v5531_v56  ;;  %v8222_v29 = vrot.slane %v5594_v5, 9  ;;  %7094 = vrot.lane.b32.xlu0 %v8381_v51, %s8859_s29  ;;  %v6348_v20 = vsel %vm8943_vm9, %v8238_v62, %v6347_v27  ;;  %v5741_v7 = vrot.slane %v12326_v52, 5 }
 0x327   : > { %v8318_v3 = vcombine.low %v5522_v45, %v5532_v55  ;;  %v5740_v46 = vrot.slane %v5738_v6, 4  ;;  %v6351_v30 = vsel %vm8943_vm9, %v6349_v11, %v6350_v31  ;;  %v8207_v16 = vrot.slane %v4987_v61, 9 }
 0x328   : > { %v5739_v21 = vsel %vm8943_vm9, %v8222_v29, %v5738_v6  ;;  %v5137_v41 = vrot.slane %v12366_v35, 5  ;;  %v8382_v51 = vcombine.low %v6348_v20, %v6351_v30  ;;  %v5140_v56 = vrot.slane %v12376_v19, 5  ;;  %v12403_v61 = vpop.permute.xlu0 %7084  ;;  %v12414_v30 = vld [vmem:[#allocation3 + $0xa8] sm:$0xf] }
 0x329   : > { %6760 = vrot.lane.b32.xlu1 %v8318_v3, %s8860_s30  ;;  %v5742_v52 = vsel %vm8943_vm9, %v5740_v46, %v5741_v7  ;;  %v6119_v49 = vshrl.u32 %v5784_v38, 16  ;;  %v8350_v0 = vcombine.low %v5784_v38, %v12341_v28  ;;  %v6122_v59 = vshll.u32 %v5784_v38, 16  ;;  %v12410_v3 = vld [vmem:[#allocation3 + $0xbc] sm:$0x1] }
 0x32a   : > { %v8334_v5 = vcombine.low %v5739_v21, %v5742_v52  ;;  %v5139_v34 = vrot.slane %v5137_v41, 4  ;;  %7096 = vrot.lane.b32.xlu0 %v8382_v51, %s8859_s29  ;;  %v5534_v45 = vshrl.u32 %v5177_v43, 16  ;;  %v5537_v62 = vshll.u32 %v5177_v43, 16  ;;  %v12418_v52 = vpop.permute.xlu1 %6576 }
 0x32b   : > { %v6121_v27 = vrot.slane %v6119_v49, 4  ;;  %v5547_v6 = vshrl.u32 %v12392_v10, 16  ;;  %v5138_v55 = vsel %vm8943_vm9, %v8207_v16, %v5137_v41  ;;  %v6124_v31 = vrot.slane %v6122_v59, 5 }
 0x32c   : > { %v5141_v11 = vsel %vm8943_vm9, %v5139_v34, %v5140_v56  ;;  %v6128_v29 = vshll.u32 %v12341_v28, 16  ;;  %v5536_v20 = vrot.slane %v5534_v45, 4  ;;  %v5539_v46 = vrot.slane %v5537_v62, 5 }
 0x32d   : > { %6840 = vrot.lane.b32.xlu1 %v8334_v5, %s8858_s28  ;;  %v8287_v38 = vcombine.low %v5138_v55, %v5141_v11  ;;  %v6132_v7 = vshrl.u32 %v12341_v28, 16  ;;  %v6125_v21 = vor.u32 %v6124_v31, %v6121_v27  ;;  %v6138_v16 = vshll.u32 %v12358_v47, 16  ;;  %v12426_v31 = vpop.permute.xlu0 %6830 }
 0x32e   : > { %v6130_v51 = vrot.slane %v6128_v29, 5  ;;  %v5543_v41 = vshll.u32 %v12392_v10, 16  ;;  %v5540_v49 = vor.u32 %v5539_v46, %v5536_v20  ;;  %v5549_v5 = vrot.slane %v5547_v6, 4 }
 0x32f   : > { %6586 = vrot.lane.b32.xlu0 %v8287_v38, %s8854_s24  ;;  %v6134_v56 = vrot.slane %v6132_v7, 4  ;;  %v5553_v34 = vshll.u32 %v12410_v3, 16  ;;  %v8303_v59 = vcombine.low %v5177_v43, %v12392_v10  ;;  %v6126_v28 = vrot.slane %v6125_v21, 4  ;;  %v5595_v21 = vld [vmem:[#allocation3 + $0xb4] sm:$0xe] }
 0x330   : > { %v5545_v45 = vrot.slane %v5543_v41, 5  ;;  %v4926_v27 = vshrl.u32 %v12414_v30, 16  ;;  %v6140_v62 = vrot.slane %v6138_v16, 5  ;;  %v5541_v55 = vrot.slane %v5540_v49, 4 }
 0x331   : > { %6936 = vrot.lane.b32.xlu1 %v8350_v0, %s8857_s27  ;;  %v6135_v47 = vor.u32 %v6134_v56, %v6130_v51  ;;  %v4929_v11 = vshll.u32 %v12414_v30, 16  ;;  %v5555_v38 = vrot.slane %v5553_v34, 5  ;;  %v4935_v20 = vshll.u32 %v12366_v35, 16 }
 0x332   : > { %v5550_v29 = vor.u32 %v5549_v5, %v5545_v45  ;;  %v4928_v6 = vrot.slane %v4926_v27, 4  ;;  %v6131_v43 = vsel %vm8972_vm13, %v6126_v28, %v6130_v51  ;;  %v4939_v0 = vshrl.u32 %v12366_v35, 16  ;;  %v12436_v5 = vpop.permute.xlu1 %6752  ;;  %v12441_v28 = vld [vmem:[#allocation3 + $0xb4] sm:$0xf] }
 0x333   : > { %6682 = vrot.lane.b32.xlu0 %v8303_v59, %s8856_s26  ;;  %v6136_v46 = vrot.slane %v6135_v47, 4  ;;  %v4931_v7 = vrot.slane %v4929_v11, 5  ;;  %v5546_v16 = vsel %vm8972_vm13, %v5541_v55, %v5545_v45  ;;  %v4937_v56 = vrot.slane %v4935_v20, 5  ;;  %v12443_v47 = vld [vmem:[#allocation3 + $0xb8] sm:$0xf] }
 0x334   : > { %v5551_v41 = vrot.slane %v5550_v29, 4  ;;  %v4945_v49 = vshll.u32 %v12376_v19, 16  ;;  %v4941_v27 = vrot.slane %v4939_v0, 4  ;;  %v5745_v51 = vrot.slane %v12392_v10, 5  ;;  %v12447_v19 = vld [vmem:[#allocation3 + $0xbc] sm:$0x1] }
 0x335   : > { %v6141_v34 = vsel %vm8972_vm13, %v6136_v46, %v6140_v62  ;;  %v4932_v59 = vor.u32 %v4931_v7, %v4928_v6  ;;  %v8223_v29 = vrot.slane %v5595_v21, 9  ;;  %v5748_v62 = vrot.slane %v12410_v3, 5  ;;  %v12450_v6 = vpop.permute.xlu0 %7006 }
 0x336   : > { %v8366_v11 = vcombine.low %v6131_v43, %v6141_v34  ;;  %v5556_v45 = vsel %vm8972_vm13, %v5551_v41, %v5555_v38  ;;  %v4947_v55 = vrot.slane %v4945_v49, 5  ;;  %v4942_v23 = vor.u32 %v4941_v27, %v4937_v56  ;;  %v12463_v27 = vpop.permute.xlu1 %6498 }
 0x337   : > { %v8319_v20 = vcombine.low %v5546_v16, %v5556_v45  ;;  %v4933_v39 = vrot.slane %v4932_v59, 4  ;;  %v5747_v10 = vrot.slane %v5745_v51, 4  ;;  %v4950_v46 = vshrl.u32 %v12441_v28, 16  ;;  %v5786_v16 = vld [vmem:[#allocation3 + $0xc0] sm:$0xf] }
 0x338   : > { %7016 = vrot.lane.b32.xlu1 %v8366_v11, %s8861_s6  ;;  %v4953_v43 = vshll.u32 %v12441_v28, 16  ;;  %v4959_v38 = vshll.u32 %v12443_v47, 16  ;;  %v4943_v7 = vrot.slane %v4942_v23, 4  ;;  %v5746_v0 = vsel %vm8943_vm9, %v8223_v29, %v5745_v51  ;;  %v12469_v29 = vld [vmem:[#allocation3 + $0xc4] sm:$0xf] }
 0x339   : > { %6762 = vrot.lane.b32.xlu0 %v8319_v20, %s8860_s30  ;;  %v4963_v21 = vshrl.u32 %v12443_v47, 16  ;;  %v4969_v3 = vshll.u32 %v12447_v19, 16  ;;  %v5749_v41 = vsel %vm8943_vm9, %v5747_v10, %v5748_v62  ;;  %v4952_v49 = vrot.slane %v4950_v46, 4 }
 0x33a   : > { %v4955_v34 = vrot.slane %v4953_v43, 5  ;;  %v4961_v59 = vrot.slane %v4959_v38, 5  ;;  %v4938_v11 = vsel %vm8972_vm13, %v4933_v39, %v4937_v56  ;;  %v4948_v23 = vsel %vm8972_vm13, %v4943_v7, %v4947_v55  ;;  %v12897_v43 = vld [vmem:[#allocation11_spill] sm:$0xff] }
 0x33b   : > { %v8335_v51 = vcombine.low %v5746_v0, %v5749_v41  ;;  %v4965_v45 = vrot.slane %v4963_v21, 4  ;;  %v7195_v20 = vsel %vm3454_vm2, %v12352_v26, %v12061_v42  ;;  %v8271_v62 = vcombine.low %v4938_v11, %v4948_v23  ;;  %v4988_v7 = vld [vmem:[#allocation3 + $0xb4] sm:$0xe]  ;;  %v12478_v0 = vpop.permute.xlu0 %6750  ;;  %v8834_v41 = vld [vmem:[#allocation3 + $0x64] sm:$0xf] }
 0x33c   : > { %v4956_v10 = vor.u32 %v4955_v34, %v4952_v49  ;;  %v6143_v46 = vshrl.u32 %v5786_v16, 16  ;;  %v7193_v38 = vsel %vm3454_vm2, %v12372_v44, %v12897_v43  ;;  %v4971_v56 = vrot.slane %v4969_v3, 5  ;;  %v8835_v42 = vld [vmem:[#allocation3 + $0x60] sm:$0xf]  ;;  %v5804_v43 = vld [vmem:[#allocation3 + $0xc8] sm:$0x1] }
 0x33d   : > { %6842 = vrot.lane.b32.xlu0 %v8335_v51, %s8858_s28  ;;  %v4966_v39 = vor.u32 %v4965_v45, %v4961_v59  ;;  %v6146_v55 = vshll.u32 %v5786_v16, 16  ;;  %6506 = vrot.lane.b32.xlu1 %v8271_v62, %s8855_s25  ;;  %v8249_v26 = vcombine.low %v8835_v42, %v8834_v41  ;;  %v6156_v34 = vshrl.u32 %v12469_v29, 16  ;;  %v12490_v41 = vpop.permute.xlu1 %6928 }
 0x33e   : > { %v4957_v21 = vrot.slane %v4956_v10, 4  ;;  %v6145_v49 = vrot.slane %v6143_v46, 4  ;;  %v8351_v44 = vcombine.low %v5786_v16, %v12469_v29  ;;  %v5144_v51 = vrot.slane %v12443_v47, 5  ;;  %v5179_v46 = vld [vmem:[#allocation3 + $0xc0] sm:$0xf] }
 0x33f   : > { %v4967_v11 = vrot.slane %v4966_v39, 4  ;;  %v6148_v23 = vrot.slane %v6146_v55, 5  ;;  %v7128_v45 = vsel %vm3372_vm15, %v8249_v26, %v12268_v12  ;;  %v8208_v62 = vrot.slane %v4988_v7, 9 }
 0x340   : > { %v4962_v3 = vsel %vm8972_vm13, %v4957_v21, %v4961_v59  ;;  %v7227_v10 = vsel %vm3487_vm6, %v7195_v20, %v12308_v9  ;;  %v5146_v16 = vrot.slane %v5144_v51, 4  ;;  %v5147_v55 = vrot.slane %v12447_v19, 5  ;;  %v12501_v21 = vld [vmem:[#allocation3 + $0xc4] sm:$0xf] }
 0x341   : > { %v4972_v39 = vsel %vm8972_vm13, %v4967_v11, %v4971_v56  ;;  %6938 = vrot.lane.b32.xlu0 %v8351_v44, %s8857_s27  ;;  %v7259_v59 = vsel %vm3520_vm7, %v7227_v10, %v12204_v15  ;;  %v5145_v7 = vsel %vm8943_vm9, %v8208_v62, %v5144_v51  ;;  %v6149_v9 = vor.u32 %v6148_v23, %v6145_v49  ;;  %v12505_v44 = vpop.permute.xlu0 %7088  ;;  %v6204_v23 = vld [vmem:[#allocation3 + $0xc0] sm:$0xe] }
 0x342   : > { %v8272_v12 = vcombine.low %v4962_v3, %v4972_v39  ;;  %v6152_v20 = vshll.u32 %v12469_v29, 16  ;;  %v5148_v56 = vsel %vm8943_vm9, %v5146_v16, %v5147_v55  ;;  %v6158_v42 = vrot.slane %v6156_v34, 4 }
 0x343   : > { %v6162_v26 = vshll.u32 %v5804_v43, 16  ;;  %v5558_v11 = vshrl.u32 %v5179_v46, 16  ;;  %v7291_v15 = vsel %vm3553_vm8, %v7259_v59, %v11990_v13  ;;  %v6150_v19 = vrot.slane %v6149_v9, 4 }
 0x344   : > { %6508 = vrot.lane.b32.xlu1 %v8272_v12, %s8855_s25  ;;  %v6154_v51 = vrot.slane %v6152_v20, 5  ;;  %v5561_v49 = vshll.u32 %v5179_v46, 16  ;;  %v8288_v3 = vcombine.low %v5145_v7, %v5148_v56  ;;  %v5571_v39 = vshrl.u32 %v12501_v21, 16  ;;  %v12514_v12 = vpop.permute.xlu1 %7004  ;;  %v5196_v20 = vld [vmem:[#allocation3 + $0xc8] sm:$0x1] }
 0x345   : > { %v6164_v62 = vrot.slane %v6162_v26, 5  ;;  %v5560_v10 = vrot.slane %v5558_v11, 4  ;;  %v8304_v55 = vcombine.low %v5179_v46, %v12501_v21  ;;  %v7225_v24 = vsel %vm3487_vm6, %v7193_v38, %v12006_v36 }
 0x346   : > { %v6159_v16 = vor.u32 %v6158_v42, %v6154_v51  ;;  %v5563_v34 = vrot.slane %v5561_v49, 5  ;;  %v6155_v13 = vsel %vm8972_vm13, %v6150_v19, %v6154_v51  ;;  %v7257_v59 = vsel %vm3520_vm7, %v7225_v24, %v11921_v4  ;;  %v12527_v4 = vpop.permute.xlu0 %6674 }
 0x347   : > { %v8239_v7 = vrot.slane %v6204_v23, 9  ;;  %v6354_v9 = vrot.slane %v12469_v29, 5  ;;  %v7289_v46 = vsel %vm3553_vm8, %v7257_v59, %v12071_v22  ;;  %v5567_v36 = vshll.u32 %v12501_v21, 16 }
 0x348   : > { %6588 = vrot.lane.b32.xlu1 %v8288_v3, %s8854_s24  ;;  %v6160_v56 = vrot.slane %v6159_v16, 4  ;;  %v5564_v42 = vor.u32 %v5563_v34, %v5560_v10  ;;  %v7321_v38 = vsel %vm3586_vm10, %v7289_v46, %v12318_v57  ;;  %v6357_v11 = vrot.slane %v5804_v43, 5  ;;  %v8836_v10 = vld [vmem:[#allocation3 + $0x58] sm:$0xf]  ;;  %v8837_v57 = vld [vmem:[#allocation3 + $0x54] sm:$0xf] }
 0x349   : > { %v6356_v26 = vrot.slane %v6354_v9, 4  ;;  %v5573_v19 = vrot.slane %v5571_v39, 4  ;;  %v5569_v51 = vrot.slane %v5567_v36, 5  ;;  %v5577_v49 = vshll.u32 %v5196_v20, 16  ;;  %v5596_v36 = vld [vmem:[#allocation3 + $0xc0] sm:$0xe] }
 0x34a   : > { %v6165_v24 = vsel %vm8972_vm13, %v6160_v56, %v6164_v62  ;;  %v5565_v29 = vrot.slane %v5564_v42, 4  ;;  %v7353_v3 = vsel %vm3619_vm11, %v7321_v38, %v12177_v8  ;;  %v8248_v16 = vcombine.low %v8837_v57, %v8836_v10  ;;  %v12539_v62 = vld [vmem:[#allocation3 + $0xcc] sm:$0xf] }
 0x34b   : > { %v8367_v23 = vcombine.low %v6155_v13, %v6165_v24  ;;  %v6358_v22 = vsel %vm8943_vm9, %v6356_v26, %v6357_v11  ;;  %v7167_v43 = vsel %vm3421_vm1, %v7128_v45, %v12144_v58  ;;  %v5574_v39 = vor.u32 %v5573_v19, %v5569_v51  ;;  %8675 = vmatmul.mubr.msk.bf16.gmra.mxu1 %vm12898_vm12, %v7353_v3  ;;  %v12541_v34 = vpop.permute.xlu1 %6496  ;;  %vm12905_vm12 = vmmov %vm12895_vm3 }
 0x34c   : > { %6684 = vrot.lane.b32.xlu1 %v8304_v55, %s8856_s26  ;;  %v6355_v8 = vsel %vm8943_vm9, %v8239_v7, %v6354_v9  ;;  %v7125_v13 = vsel %vm3372_vm15, %v8248_v16, %v12347_v63  ;;  %v7323_v58 = vsel %vm3586_vm10, %v7291_v15, %v12253_v54  ;;  %v5752_v45 = vrot.slane %v12501_v21, 5  ;;  %v12551_v55 = vld [vmem:[#allocation3 + $0xd0] sm:$0xf]  ;;  %v12561_v15 = vld [vmem:[#allocation3 + $0xd4] sm:$0x1] }
 0x34d   : > { %7018 = vrot.lane.b32.xlu0 %v8367_v23, %s8861_s6  ;;  %v8383_v59 = vcombine.low %v6355_v8, %v6358_v22  ;;  %v5575_v56 = vrot.slane %v5574_v39, 4  ;;  %v5579_v46 = vrot.slane %v5577_v49, 5  ;;  %v7355_v42 = vsel %vm3619_vm11, %v7323_v58, %v12117_v18  ;;  %v6205_v58 = vld [vmem:[#allocation3 + $0xcc] sm:$0xe] }
 0x34e   : > { %v5570_v7 = vsel %vm8972_vm13, %v5565_v29, %v5569_v51  ;;  %v7165_v63 = vsel %vm3421_vm1, %v7125_v13, %v12194_v53  ;;  %8678 = vmatprep.mubr.msk.bf16.mxu1 %vm12899_vm14, %v7355_v42  ;;  %v5754_v54 = vrot.slane %v5752_v45, 4  ;;  %v6167_v21 = vshrl.u32 %v12539_v62, 16  ;;  %v12563_v9 = vpop.permute.xlu0 %6754  ;;  %vm12908_vm14 = vmmov %vm12895_vm3 }
 0x34f   : > { %v5580_v38 = vsel %vm8972_vm13, %v5575_v56, %v5579_v46  ;;  %v5755_v18 = vrot.slane %v5196_v20, 5  ;;  %v6170_v26 = vshll.u32 %v12539_v62, 16  ;;  %v6180_v11 = vshrl.u32 %v12551_v55, 16  ;;  %v12574_v3 = vpop.permute.xlu1 %6676 }
 0x350   : > { %v8320_v53 = vcombine.low %v5570_v7, %v5580_v38  ;;  %v8224_v19 = vrot.slane %v5596_v36, 9  ;;  %v6169_v24 = vrot.slane %v6167_v21, 4  ;;  %v6176_v29 = vshll.u32 %v12551_v55, 16  ;;  %v8839_v36 = vld [vmem:[#allocation3 + $0x78] sm:$0xf] }
 0x351   : > { %7098 = vrot.lane.b32.xlu0 %v8383_v59, %s8859_s29  ;;  %v5756_v51 = vsel %vm8943_vm9, %v5754_v54, %v5755_v18  ;;  %v6172_v49 = vrot.slane %v6170_v26, 5  ;;  %v6182_v23 = vrot.slane %v6180_v11, 4  ;;  %v6186_v22 = vshll.u32 %v12561_v15, 16 }
 0x352   : > { %v7199_v20 = vsel %vm3454_vm2, %v7167_v43, %v12281_v25  ;;  %6764 = vrot.lane.b32.xlu1 %v8320_v53, %s8860_s30  ;;  %v7197_v10 = vsel %vm3454_vm2, %v7165_v63, %v11969_v37  ;;  %v5753_v57 = vsel %vm8943_vm9, %v8224_v19, %v5752_v45  ;;  %v6178_v16 = vrot.slane %v6176_v29, 5  ;;  %v6835_v39 = vpop.permute.xlu0 %6834  ;;  %v8838_v45 = vld [vmem:[#allocation3 + $0x7c] sm:$0xf]  ;;  %v8840_v53 = vld [vmem:[#allocation3 + $0x70] sm:$0xf] }
 0x353   : > { %v8352_v8 = vcombine.low %v12539_v62, %v12551_v55  ;;  %v6173_v13 = vor.u32 %v6172_v49, %v6169_v24  ;;  %v6361_v59 = vrot.slane %v12551_v55, 5  ;;  %v7231_v25 = vsel %vm3487_vm6, %v7199_v20, %v12478_v0  ;;  %v6581_v26 = vpop.permute.xlu1 %6580 }
 0x354   : > { %v8336_v43 = vcombine.low %v5753_v57, %v5756_v51  ;;  %v6183_v56 = vor.u32 %v6182_v23, %v6178_v16  ;;  %v6188_v46 = vrot.slane %v6186_v22, 5  ;;  %v7263_v37 = vsel %vm3520_vm7, %v7231_v25, %v12426_v31 }
 0x355   : > { %v6174_v42 = vrot.slane %v6173_v13, 4  ;;  %v8251_v7 = vcombine.low %v8839_v36, %v8838_v45  ;;  %v7295_v62 = vsel %vm3553_vm8, %v7263_v37, %v12228_v33  ;;  %v7229_v63 = vsel %vm3487_vm6, %v7197_v10, %v12238_v1 }
 0x356   : > { %6844 = vrot.lane.b32.xlu1 %v8336_v43, %s8858_s28  ;;  %v6184_v55 = vrot.slane %v6183_v56, 4  ;;  %v8240_v0 = vrot.slane %v6205_v58, 9  ;;  %v6364_v54 = vrot.slane %v12561_v15, 5  ;;  %v7261_v21 = vsel %vm3520_vm7, %v7229_v63, %v12164_v60  ;;  %v6931_v31 = vpop.permute.xlu0 %6930  ;;  %v8841_v60 = vld [vmem:[#allocation3 + $0x6c] sm:$0xf]  ;;  %s12705_s28 = scalar_lea.vmem %s12841_s5, %s8439_s20 }
 0x357   : > { %v6179_v38 = vsel %vm8972_vm13, %v6174_v42, %v6178_v16  ;;  %v6363_v18 = vrot.slane %v6361_v59, 4  ;;  %v7134_v33 = vsel %vm3372_vm15, %v8251_v7, %v12463_v27  ;;  %v7293_v1 = vsel %vm3553_vm8, %v7261_v21, %v12291_v2 }
 0x358   : > { %v6189_v11 = vsel %vm8972_vm13, %v6184_v55, %v6188_v46  ;;  %v7325_v15 = vsel %vm3586_vm10, %v7293_v1, %v12514_v12  ;;  %v8250_v19 = vcombine.low %v8841_v60, %v8840_v53  ;;  %v7327_v24 = vsel %vm3586_vm10, %v7295_v62, %v12450_v6  ;;  %vm12901_vm13 = vmmov %vm12895_vm3 }
 0x359   : > { %v7357_v29 = vsel %vm3619_vm11, %v7325_v15, %v12403_v61  ;;  %v8368_v27 = vcombine.low %v6179_v38, %v6189_v11  ;;  %v7359_v2 = vsel %vm3619_vm11, %v7327_v24, %v12332_v40  ;;  %v6362_v12 = vsel %vm8943_vm9, %v8240_v0, %v6361_v59  ;;  %v8843_v59 = vld [vmem:[#allocation3 + $0x84] sm:$0xf]  ;;  %v12904_v38 = vld [vmem:[#allocation4_spill] sm:$0xff] }
 0x35a   : > { %6940 = vrot.lane.b32.xlu1 %v8352_v8, %s8857_s27  ;;  %8679 = vmatmul.mubr.msk.bf16.gmra.mxu1 %vm12900_vm4, %v7357_v29  ;;  %v7131_v50 = vsel %vm3372_vm15, %v8250_v19, %v12541_v34  ;;  %v6365_v6 = vsel %vm8943_vm9, %v6363_v18, %v6364_v54  ;;  %v7171_v61 = vsel %vm3421_vm1, %v7134_v33, %v12378_v17  ;;  %v7009_v22 = vpop.permute.xlu1 %7008  ;;  %vm12902_vm9 = vmmov %vm12895_vm3 }
 0x35b   : > { %v7169_v51 = vsel %vm3421_vm1, %v7131_v50, %v12418_v52  ;;  %8682 = vmatprep.mubr.msk.bf16.mxu1 %vm12901_vm13, %v7359_v2  ;;  %v7011_v49 = vpop.permute.xlu0 %7010  ;;  %v7203_v34 = vsel %vm3454_vm2, %v7171_v61, %v12527_v4  ;;  %v8255_v23 = vcombine.low %v12414_v30, %v12366_v35  ;;  %v8256_v14 = vcombine.low %v12441_v28, %v12443_v47  ;;  %vm12909_vm4 = vmmov %vm12895_vm3  ;;  %v8571_v28 = vld [vmem:[%s8952_s23 + $0x18] sm:$0xff]   ;;  %v8570_v47 = vld [vmem:[%s8952_s23 + $0x10] sm:$0xff]  }
 0x35c   : > { %v7201_v40 = vsel %vm3454_vm2, %v7169_v51, %v12223_v32  ;;  %v7235_v17 = vsel %vm3487_vm6, %v7203_v34, %v12563_v9  ;;  %v8384_v20 = vcombine.low %v6362_v12, %v6365_v6  ;;  %v12906_v34 = vld [vmem:[#allocation5_spill] sm:$0xff]  ;;  %vm12910_vm13 = vmmov %vm12895_vm3 }
 0x35d   : > { %v7233_v52 = vsel %vm3487_vm6, %v7201_v40, %v12436_v5  ;;  %v7267_v4 = vsel %vm3520_vm7, %v7235_v17, %v6835_v39  ;;  %v12907_v40 = vld [vmem:[#allocation7_spill] sm:$0xff] }
 0x35e   : > { %7020 = vrot.lane.b32.xlu1 %v8368_v27, %s8861_s6  ;;  %v7265_v32 = vsel %vm3520_vm7, %v7233_v52, %v12394_v48  ;;  %v7299_v10 = vsel %vm3553_vm8, %v7267_v4, %v6931_v31  ;;  %v8844_v31 = vld [vmem:[#allocation3 + $0x94] sm:$0xf]  ;;  %v8254_v17 = vcombine.low %v12907_v40, %v12906_v34 }
 0x35f   : > { %v7297_v57 = vsel %vm3553_vm8, %v7265_v32, %v12490_v41  ;;  %v7331_v9 = vsel %vm3586_vm10, %v7299_v10, %v7011_v49  ;;  %v7091_v8 = vpop.permute.xlu0 %7090  ;;  %v8842_v41 = vld [vmem:[#allocation3 + $0x88] sm:$0xf]  ;;  %v8253_v18 = vcombine.low %v12904_v38, %v8844_v31 }
 0x360   : > { %v7329_v16 = vsel %vm3586_vm10, %v7297_v57, %v7009_v22  ;;  %v7363_v13 = vsel %vm3619_vm11, %v7331_v9, %v7091_v8  ;;  %v8252_v25 = vcombine.low %v8843_v59, %v8842_v41  ;;  %v8506_v41 = vld [vmem:[%s8952_s23] sm:$0xff]  }
 0x361   : > { %v7361_v5 = vsel %vm3619_vm11, %v7329_v16, %v12505_v44  ;;  %v6501_v48 = vpop.permute.xlu1 %6500 }
 0x362   : > { %7100 = vrot.lane.b32.xlu1 %v8384_v20, %s8859_s29  ;;  %8683 = vmatmul.mubr.msk.bf16.gmra.mxu1 %vm12902_vm9, %v7361_v5  ;;  %v7137_v56 = vsel %vm3372_vm15, %v8252_v25, %v6501_v48  ;;  %v8569_v48 = vld [vmem:[%s8952_s23 + $0x8] sm:$0xff]  }
 0x363   : > { %8686 = vmatprep.mubr.msk.bf16.mxu1 %vm12895_vm3, %v7363_v13  ;;  %v7173_v44 = vsel %vm3421_vm1, %v7137_v56, %v6581_v26  ;;  %v8511_v59 = vunpack.c.l.bf16 %v8569_v48 }
 0x364   : > { %v7205_v42 = vsel %vm3454_vm2, %v7173_v44, %v12574_v3 }
 0x36b   : > { %v6757_v39 = vpop.permute.xlu1 %6756 }
 0x36c   : > { %v7237_v36 = vsel %vm3487_vm6, %v7205_v42, %v6757_v39 }
 0x372   : > { %v7093_v58 = vpop.permute.xlu0 %7092 }
 0x373   : > { %v6837_v43 = vpop.permute.xlu1 %6836 }
 0x374   : > { %v7269_v7 = vsel %vm3520_vm7, %v7237_v36, %v6837_v43  ;;  %v8512_v36 = vunpack.c.h.bf16 %v8569_v48 }
 0x376   : > { %v6583_v46 = vpop.permute.xlu0 %6582 }
 0x377   : > { %v6933_v37 = vpop.permute.xlu1 %6932 }
 0x378   : > { %v7301_v62 = vsel %vm3553_vm8, %v7269_v7, %v6933_v37 }
 0x37a   : > { %v6679_v45 = vpop.permute.xlu0 %6678 }
 0x381   : > { %v7013_v63 = vpop.permute.xlu1 %7012  ;;  %v6759_v54 = vpop.permute.xlu0 %6758 }
 0x382   : > { %v7333_v55 = vsel %vm3586_vm10, %v7301_v62, %v7013_v63 }
 0x383   : > { %v7365_v0 = vsel %vm3619_vm11, %v7333_v55, %v7093_v58  ;;  %v12689_v58 = vld [vmem:[%s12840_s4] ss:$0 sm:$0xff] }
 0x384   : > { %8687 = vmatmul.mubr.msk.bf16.gmra.mxu1 %vm12903_vm5, %v7365_v0 }
 0x385   : > { %v6839_v3 = vpop.permute.xlu0 %6838 }
 0x386   : > { %v6503_v21 = vpop.permute.xlu1 %6502 }
 0x387   : > { %v7140_v33 = vsel %vm3372_vm15, %v8253_v18, %v6503_v21 }
 0x388   : > { %v7175_v26 = vsel %vm3421_vm1, %v7140_v33, %v6583_v46  ;;  %v8507_v46 = vunpack.c.l.bf16 %v8506_v41 }
 0x389   : > { %v6935_v11 = vpop.permute.xlu0 %6934  ;;  %v7207_v15 = vsel %vm3454_vm2, %v7175_v26, %v6679_v45 }
 0x38a   : > { %v7239_v60 = vsel %vm3487_vm6, %v7207_v15, %v6759_v54  ;;  %v8508_v54 = vunpack.c.h.bf16 %v8506_v41 }
 0x38b   : > { %v7271_v29 = vsel %vm3520_vm7, %v7239_v60, %v6839_v3 }
 0x38c   : > { %v7303_v27 = vsel %vm3553_vm8, %v7271_v29, %v6935_v11 }
 0x38d   : > { %v6505_v1 = vpop.permute.xlu1 %6504 }
 0x38e   : > { %v7143_v22 = vsel %vm3372_vm15, %v8254_v17, %v6505_v1 }
 0x391   : > { %v6585_v53 = vpop.permute.xlu1 %6584 }
 0x392   : > { %v7177_v20 = vsel %vm3421_vm1, %v7143_v22, %v6585_v53 }
 0x394   : > { %v7015_v19 = vpop.permute.xlu0 %7014 }
 0x395   : > { %v6681_v24 = vpop.permute.xlu1 %6680  ;;  %v7335_v50 = vsel %vm3586_vm10, %v7303_v27, %v7015_v19 }
 0x396   : > { %v7209_v4 = vsel %vm3454_vm2, %v7177_v20, %v6681_v24 }
 0x398   : > { %v7095_v2 = vpop.permute.xlu0 %7094 }
 0x399   : > { %v7367_v12 = vsel %vm3619_vm11, %v7335_v50, %v7095_v2 }
 0x39a   : > { %8690 = vmatprep.mubr.msk.bf16.mxu1 %vm12905_vm12, %v7367_v12 }
 0x39b   : > { %v6761_v6 = vpop.permute.xlu1 %6760 }
 0x39c   : > { %v7097_v61 = vpop.permute.xlu0 %7096  ;;  %v7241_v10 = vsel %vm3487_vm6, %v7209_v4, %v6761_v6 }
 0x39f   : > { %v6841_v51 = vpop.permute.xlu1 %6840 }
 0x3a0   : > { %v7273_v57 = vsel %vm3520_vm7, %v7241_v10, %v6841_v51 }
 0x3a1   : > { %v6587_v49 = vpop.permute.xlu0 %6586 }
 0x3a3   : > { %v6937_v52 = vpop.permute.xlu1 %6936 }
 0x3a4   : > { %v7305_v16 = vsel %vm3553_vm8, %v7273_v57, %v6937_v52 }
 0x3a5   : > { %v6683_v32 = vpop.permute.xlu0 %6682 }
 0x3aa   : > { %v7017_v9 = vpop.permute.xlu1 %7016 }
 0x3ab   : > { %v7337_v8 = vsel %vm3586_vm10, %v7305_v16, %v7017_v9  ;;  %v6763_v13 = vpop.permute.xlu0 %6762 }
 0x3ac   : > { %v7369_v5 = vsel %vm3619_vm11, %v7337_v8, %v7097_v61  ;;  %v8515_v8 = vunpack.c.l.bf16 %v8570_v47 }
 0x3ad   : > { %8691 = vmatmul.mubr.msk.bf16.gmra.mxu1 %vm12908_vm14, %v7369_v5 }
 0x3af   : > { %v6507_v39 = vpop.permute.xlu1 %6506  ;;  %v6843_v43 = vpop.permute.xlu0 %6842 }
 0x3b0   : > { %v7146_v37 = vsel %vm3372_vm15, %v8255_v23, %v6507_v39  ;;  %v8520_v39 = vunpack.c.h.bf16 %v8571_v28 }
 0x3b1   : > { %v7179_v21 = vsel %vm3421_vm1, %v7146_v37, %v6587_v49 }
 0x3b2   : > { %v8668_v25 = vpop.f32.mrf.mxu1  ;;  %v7211_v33 = vsel %vm3454_vm2, %v7179_v21, %v6683_v32  ;;  %v8572_v21 = vld [vmem:[%s8952_s23 + $0x20] sm:$0xff]  }
 0x3b3   : > { %v7479_v56 = vadd.f32 %v8668_v25, %v12689_v58  ;;  %v6939_v30 = vpop.permute.xlu0 %6938  ;;  %v7243_v60 = vsel %vm3487_vm6, %v7211_v33, %v6763_v13 }
 0x3b4   : > { %v7470_v44 = vpop.f32.mrf.mxu1  ;;  %v7275_v27 = vsel %vm3520_vm7, %v7243_v60, %v6843_v43 }
 0x3b5   : > { %v7663_v42 = vadd.f32 %v8511_v59, %v7479_v56  ;;  %v7471_v45 = vadd.f32 %v12689_v58, %v7470_v44  ;;  %v7307_v50 = vsel %vm3553_vm8, %v7275_v27, %v6939_v30  ;;  %v8516_v56 = vunpack.c.h.bf16 %v8570_v47 }
 0x3b6   : > { %v6509_v7 = vpop.permute.xlu1 %6508  ;;  %v8669_v62 = vpop.f32.mrf.mxu1 }
 0x3b7   : > { %v7695_v63 = vmax.f32 %v7663_v42, 0.0  ;;  %v7661_v55 = vadd.f32 %v8507_v46, %v7471_v45  ;;  %v7482_v0 = vadd.f32 %v8669_v62, %v12689_v58  ;;  %v7149_v34 = vsel %vm3372_vm15, %v8256_v14, %v6509_v7 }
 0x3b8   : > { %v7473_v35 = vpop.f32.mrf.mxu1  ;;  %v8519_v14 = vunpack.c.l.bf16 %v8571_v28 }
 0x3b9   : > { %v8475_v23 = vpack.c.bf16 %v7695_v63, %v7695_v63  ;;  %v7693_v31 = vmax.f32 %v7661_v55, 0.0  ;;  %v7664_v38 = vadd.f32 %v8512_v36, %v7482_v0  ;;  %v7474_v18 = vadd.f32 %v12689_v58, %v7473_v35 }
 0x3ba   : > { %v6589_v3 = vpop.permute.xlu1 %6588 }
 0x3bb   : > { %7855 = vst.msk [vmem:[%s12705_s28 + $0x8] sm:$0xf] %vm258_vm0, %v8475_v23  ;;  %v8473_v1 = vpack.c.bf16 %v7693_v31, %v7693_v31  ;;  %v7696_v26 = vmax.f32 %v7664_v38, 0.0  ;;  %v7662_v11 = vadd.f32 %v8508_v54, %v7474_v18  ;;  %v7181_v40 = vsel %vm3421_vm1, %v7149_v34, %v6589_v3  ;;  %v8573_v54 = vld [vmem:[%s8952_s23 + $0x28] sm:$0xff]   ;;  %v8574_v34 = vld [vmem:[%s8952_s23 + $0x30] sm:$0xff]  }
 0x3bc   : > { %v8527_v35 = vunpack.c.l.bf16 %v8573_v54  ;;  %v8523_v31 = vunpack.c.l.bf16 %v8572_v21  ;;  %v8528_v33 = vunpack.c.h.bf16 %v8573_v54 }
 0x3bd   : > { %7853 = vst.msk [vmem:[%s12705_s28] sm:$0xf] %vm258_vm0, %v8473_v1  ;;  %v8476_v15 = vpack.c.bf16 %v7696_v26, %v7696_v26  ;;  %v7694_v53 = vmax.f32 %v7662_v11, 0.0 }
 0x3be   : > { %v6685_v24 = vpop.permute.xlu1 %6684 }
 0x3bf   : > { %v7019_v19 = vpop.permute.xlu0 %7018  ;;  %7856 = vst.msk [vmem:[%s12705_s28 + $0xc] sm:$0xf] %vm258_vm0, %v8476_v15  ;;  %v8474_v29 = vpack.c.bf16 %v7694_v53, %v7694_v53  ;;  %v7213_v17 = vsel %vm3454_vm2, %v7181_v40, %v6685_v24  ;;  %v8524_v53 = vunpack.c.h.bf16 %v8572_v21 }
 0x3c0   : > { %v7339_v2 = vsel %vm3586_vm10, %v7307_v50, %v7019_v19 }
 0x3c1   : > { %7854 = vst.msk [vmem:[%s12705_s28 + $0x4] sm:$0xf] %vm258_vm0, %v8474_v29 }
 0x3c3   : > { %v7099_v12 = vpop.permute.xlu0 %7098 }
 0x3c4   : > { %v7371_v6 = vsel %vm3619_vm11, %v7339_v2, %v7099_v12  ;;  %v6765_v61 = vpop.permute.xlu1 %6764 }
 0x3c5   : > { %8694 = vmatprep.mubr.msk.bf16.mxu1 %vm12909_vm4, %v7371_v6  ;;  %v7245_v22 = vsel %vm3487_vm6, %v7213_v17, %v6765_v61 }
 0x3c8   : > { %v6845_v51 = vpop.permute.xlu1 %6844 }
 0x3c9   : > { %v7277_v20 = vsel %vm3520_vm7, %v7245_v22, %v6845_v51  ;;  %v8575_v51 = vld [vmem:[%s8952_s23 + $0x38] sm:$0xff]   ;;  %v8531_v22 = vunpack.c.l.bf16 %v8574_v34 }
 0x3ca   : > { %v8535_v40 = vunpack.c.l.bf16 %v8575_v51 }
 0x3cc   : > { %v6941_v49 = vpop.permute.xlu1 %6940 }
 0x3cd   : > { %v7309_v4 = vsel %vm3553_vm8, %v7277_v20, %v6941_v49 }
 0x3d0   : > { %v7021_v52 = vpop.permute.xlu1 %7020 }
 0x3d1   : > { %v7341_v32 = vsel %vm3586_vm10, %v7309_v4, %v7021_v52 }
 0x3d4   : > { %v7101_v10 = vpop.permute.xlu1 %7100 }
 0x3d5   : > { %v7373_v57 = vsel %vm3619_vm11, %v7341_v32, %v7101_v10  ;;  %v8536_v10 = vunpack.c.h.bf16 %v8575_v51 }
 0x3d6   : > { %8695 = vmatmul.mubr.msk.bf16.gmra.mxu1 %vm12910_vm13, %v7373_v57  ;;  %v8577_v57 = vld [vmem:[%s8952_s23 + $0x48] sm:$0xff]  }
 0x3e3   : > { %v8672_v16 = vpop.f32.mrf.mxu1 }
 0x3e4   : > { %v7495_v9 = vadd.f32 %v8672_v16, %v12689_v58 }
 0x3e5   : > { %v7486_v5 = vpop.f32.mrf.mxu1 }
 0x3e6   : > { %v7667_v13 = vadd.f32 %v8519_v14, %v7495_v9  ;;  %v7487_v48 = vadd.f32 %v12689_v58, %v7486_v5  ;;  %v8532_v9 = vunpack.c.h.bf16 %v8574_v34 }
 0x3e7   : > { %v8673_v41 = vpop.f32.mrf.mxu1 }
 0x3e8   : > { %v7699_v59 = vmax.f32 %v7667_v13, 0.0  ;;  %v7665_v25 = vadd.f32 %v8515_v8, %v7487_v48  ;;  %v7498_v43 = vadd.f32 %v8673_v41, %v12689_v58  ;;  %v8576_v8 = vld [vmem:[%s8952_s23 + $0x40] sm:$0xff]   ;;  %v8543_v13 = vunpack.c.l.bf16 %v8577_v57 }
 0x3e9   : > { %v7489_v46 = vpop.f32.mrf.mxu1 }
 0x3ea   : > { %v8479_v44 = vpack.c.bf16 %v7699_v59, %v7699_v59  ;;  %v7697_v37 = vmax.f32 %v7665_v25, 0.0  ;;  %v7668_v42 = vadd.f32 %v8520_v39, %v7498_v43  ;;  %v7490_v45 = vadd.f32 %v12689_v58, %v7489_v46 }
 0x3eb   : > { %v8539_v43 = vunpack.c.l.bf16 %v8576_v8 }
 0x3ec   : > { %7859 = vst.msk [vmem:[%s12705_s28 + $0x18] sm:$0xf] %vm258_vm0, %v8479_v44  ;;  %v8477_v36 = vpack.c.bf16 %v7697_v37, %v7697_v37  ;;  %v7700_v7 = vmax.f32 %v7668_v42, 0.0  ;;  %v7666_v62 = vadd.f32 %v8516_v56, %v7490_v45  ;;  %v8544_v45 = vunpack.c.h.bf16 %v8577_v57 }
 0x3ee   : > { %7857 = vst.msk [vmem:[%s12705_s28 + $0x10] sm:$0xf] %vm258_vm0, %v8477_v36  ;;  %v8480_v63 = vpack.c.bf16 %v7700_v7, %v7700_v7  ;;  %v7698_v55 = vmax.f32 %v7666_v62, 0.0 }
 0x3f0   : > { %7860 = vst.msk [vmem:[%s12705_s28 + $0x1c] sm:$0xf] %vm258_vm0, %v8480_v63  ;;  %v8478_v0 = vpack.c.bf16 %v7698_v55, %v7698_v55 }
 0x3f2   : > { %7858 = vst.msk [vmem:[%s12705_s28 + $0x14] sm:$0xf] %vm258_vm0, %v8478_v0  ;;  %v8540_v0 = vunpack.c.h.bf16 %v8576_v8  ;;  %v8580_v8 = vld [vmem:[%s8952_s23 + $0x60] sm:$0xff]  }
 0x40b   : > { %v8676_v30 = vpop.f32.mrf.mxu1 }
 0x40c   : > { %v7511_v23 = vadd.f32 %v8676_v30, %v12689_v58 }
 0x40d   : > { %v7502_v38 = vpop.f32.mrf.mxu1 }
 0x40e   : > { %v7671_v18 = vadd.f32 %v8527_v35, %v7511_v23  ;;  %v7503_v3 = vadd.f32 %v12689_v58, %v7502_v38 }
 0x40f   : > { %v8677_v1 = vpop.f32.mrf.mxu1 }
 0x410   : > { %v7703_v26 = vmax.f32 %v7671_v18, 0.0  ;;  %v7669_v11 = vadd.f32 %v8523_v31, %v7503_v3  ;;  %v7514_v15 = vadd.f32 %v8677_v1, %v12689_v58 }
 0x411   : > { %v7505_v60 = vpop.f32.mrf.mxu1 }
 0x412   : > { %v8483_v19 = vpack.c.bf16 %v7703_v26, %v7703_v26  ;;  %v7701_v24 = vmax.f32 %v7669_v11, 0.0  ;;  %v7672_v29 = vadd.f32 %v8528_v33, %v7514_v15  ;;  %v7506_v27 = vadd.f32 %v12689_v58, %v7505_v60  ;;  %v8579_v60 = vld [vmem:[%s8952_s23 + $0x58] sm:$0xff]  }
 0x414   : > { %7863 = vst.msk [vmem:[%s12705_s28 + $0x28] sm:$0xf] %vm258_vm0, %v8483_v19  ;;  %v8481_v50 = vpack.c.bf16 %v7701_v24, %v7701_v24  ;;  %v7704_v2 = vmax.f32 %v7672_v29, 0.0  ;;  %v7670_v12 = vadd.f32 %v8524_v53, %v7506_v27  ;;  %v8578_v19 = vld [vmem:[%s8952_s23 + $0x50] sm:$0xff]   ;;  %v8551_v24 = vunpack.c.l.bf16 %v8579_v60 }
 0x416   : > { %7861 = vst.msk [vmem:[%s12705_s28 + $0x20] sm:$0xf] %vm258_vm0, %v8481_v50  ;;  %v8484_v6 = vpack.c.bf16 %v7704_v2, %v7704_v2  ;;  %v7702_v61 = vmax.f32 %v7670_v12, 0.0  ;;  %v8547_v50 = vunpack.c.l.bf16 %v8578_v19 }
 0x418   : > { %7864 = vst.msk [vmem:[%s12705_s28 + $0x2c] sm:$0xf] %vm258_vm0, %v8484_v6  ;;  %v8482_v49 = vpack.c.bf16 %v7702_v61, %v7702_v61  ;;  %v8552_v61 = vunpack.c.h.bf16 %v8579_v60 }
 0x41a   : > { %7862 = vst.msk [vmem:[%s12705_s28 + $0x24] sm:$0xf] %vm258_vm0, %v8482_v49  ;;  %v8680_v17 = vpop.f32.mrf.mxu1 }
 0x41b   : > { %v7527_v52 = vadd.f32 %v8680_v17, %v12689_v58  ;;  %v8548_v17 = vunpack.c.h.bf16 %v8578_v19 }
 0x41c   : > { %v7518_v20 = vpop.f32.mrf.mxu1 }
 0x41d   : > { %v7675_v4 = vadd.f32 %v8535_v40, %v7527_v52  ;;  %v7519_v32 = vadd.f32 %v12689_v58, %v7518_v20 }
 0x41e   : > { %v8681_v28 = vpop.f32.mrf.mxu1 }
 0x41f   : > { %v7707_v47 = vmax.f32 %v7675_v4, 0.0  ;;  %v7673_v14 = vadd.f32 %v8531_v22, %v7519_v32  ;;  %v7530_v16 = vadd.f32 %v8681_v28, %v12689_v58 }
 0x420   : > { %v7521_v5 = vpop.f32.mrf.mxu1 }
 0x421   : > { %v8487_v48 = vpack.c.bf16 %v7707_v47, %v7707_v47  ;;  %v7705_v39 = vmax.f32 %v7673_v14, 0.0  ;;  %v7676_v41 = vadd.f32 %v8536_v10, %v7530_v16  ;;  %v7522_v59 = vadd.f32 %v12689_v58, %v7521_v5 }
 0x422   : > { %v8684_v25 = vpop.f32.mrf.mxu1 }
 0x423   : > { %7867 = vst.msk [vmem:[%s12705_s28 + $0x38] sm:$0xf] %vm258_vm0, %v8487_v48  ;;  %v8485_v56 = vpack.c.bf16 %v7705_v39, %v7705_v39  ;;  %v7708_v46 = vmax.f32 %v7676_v41, 0.0  ;;  %v7674_v44 = vadd.f32 %v8532_v9, %v7522_v59  ;;  %v7543_v37 = vadd.f32 %v8684_v25, %v12689_v58  ;;  %v8581_v9 = vld [vmem:[%s8952_s23 + $0x68] sm:$0xff]  }
 0x424   : > { %v7534_v42 = vpop.f32.mrf.mxu1  ;;  %v8559_v5 = vunpack.c.l.bf16 %v8581_v9  ;;  %v8555_v39 = vunpack.c.l.bf16 %v8580_v8 }
 0x425   : > { %7865 = vst.msk [vmem:[%s12705_s28 + $0x30] sm:$0xf] %vm258_vm0, %v8485_v56  ;;  %v8488_v36 = vpack.c.bf16 %v7708_v46, %v7708_v46  ;;  %v7706_v7 = vmax.f32 %v7674_v44, 0.0  ;;  %v7679_v62 = vadd.f32 %v8543_v13, %v7543_v37  ;;  %v7535_v63 = vadd.f32 %v12689_v58, %v7534_v42 }
 0x426   : > { %v8685_v55 = vpop.f32.mrf.mxu1  ;;  %v8556_v42 = vunpack.c.h.bf16 %v8580_v8 }
 0x427   : > { %7868 = vst.msk [vmem:[%s12705_s28 + $0x3c] sm:$0xf] %vm258_vm0, %v8488_v36  ;;  %v8486_v54 = vpack.c.bf16 %v7706_v7, %v7706_v7  ;;  %v7711_v21 = vmax.f32 %v7679_v62, 0.0  ;;  %v7677_v35 = vadd.f32 %v8539_v43, %v7535_v63  ;;  %v7546_v30 = vadd.f32 %v8685_v55, %v12689_v58 }
 0x428   : > { %v7537_v23 = vpop.f32.mrf.mxu1  ;;  %v8560_v43 = vunpack.c.h.bf16 %v8581_v9 }
 0x429   : > { %7866 = vst.msk [vmem:[%s12705_s28 + $0x34] sm:$0xf] %vm258_vm0, %v8486_v54  ;;  %v8491_v31 = vpack.c.bf16 %v7711_v21, %v7711_v21  ;;  %v7709_v38 = vmax.f32 %v7677_v35, 0.0  ;;  %v7680_v18 = vadd.f32 %v8544_v45, %v7546_v30  ;;  %v7538_v3 = vadd.f32 %v12689_v58, %v7537_v23  ;;  %v8583_v23 = vld [vmem:[%s8952_s23 + $0x78] sm:$0xff]  }
 0x42b   : > { %7871 = vst.msk [vmem:[%s12705_s28 + $0x48] sm:$0xf] %vm258_vm0, %v8491_v31  ;;  %v8489_v33 = vpack.c.bf16 %v7709_v38, %v7709_v38  ;;  %v7712_v1 = vmax.f32 %v7680_v18, 0.0  ;;  %v7678_v26 = vadd.f32 %v8540_v0, %v7538_v3  ;;  %v8582_v31 = vld [vmem:[%s8952_s23 + $0x70] sm:$0xff]   ;;  %v8567_v38 = vunpack.c.l.bf16 %v8583_v23 }
 0x42d   : > { %7869 = vst.msk [vmem:[%s12705_s28 + $0x40] sm:$0xf] %vm258_vm0, %v8489_v33  ;;  %v8492_v11 = vpack.c.bf16 %v7712_v1, %v7712_v1  ;;  %v7710_v15 = vmax.f32 %v7678_v26, 0.0  ;;  %v8563_v33 = vunpack.c.l.bf16 %v8582_v31 }
 0x42f   : > { %7872 = vst.msk [vmem:[%s12705_s28 + $0x4c] sm:$0xf] %vm258_vm0, %v8492_v11  ;;  %v8490_v53 = vpack.c.bf16 %v7710_v15, %v7710_v15  ;;  %v8568_v15 = vunpack.c.h.bf16 %v8583_v23 }
 0x431   : > { %7870 = vst.msk [vmem:[%s12705_s28 + $0x44] sm:$0xf] %vm258_vm0, %v8490_v53 }
 0x444   : > { %v8688_v29 = vpop.f32.mrf.mxu1 }
 0x445   : > { %v7559_v27 = vadd.f32 %v8688_v29, %v12689_v58  ;;  %v8564_v29 = vunpack.c.h.bf16 %v8582_v31 }
 0x446   : > { %v7550_v2 = vpop.f32.mrf.mxu1 }
 0x447   : > { %v7683_v12 = vadd.f32 %v8551_v24, %v7559_v27  ;;  %v7551_v6 = vadd.f32 %v12689_v58, %v7550_v2 }
 0x448   : > { %v8689_v51 = vpop.f32.mrf.mxu1 }
 0x449   : > { %v7715_v49 = vmax.f32 %v7683_v12, 0.0  ;;  %v7681_v34 = vadd.f32 %v8547_v50, %v7551_v6  ;;  %v7562_v40 = vadd.f32 %v8689_v51, %v12689_v58 }
 0x44a   : > { %v7553_v52 = vpop.f32.mrf.mxu1 }
 0x44b   : > { %v8495_v22 = vpack.c.bf16 %v7715_v49, %v7715_v49  ;;  %v7713_v20 = vmax.f32 %v7681_v34, 0.0  ;;  %v7684_v4 = vadd.f32 %v8552_v61, %v7562_v40  ;;  %v7554_v32 = vadd.f32 %v12689_v58, %v7553_v52 }
 0x44d   : > { %7875 = vst.msk [vmem:[%s12705_s28 + $0x58] sm:$0xf] %vm258_vm0, %v8495_v22  ;;  %v8493_v10 = vpack.c.bf16 %v7713_v20, %v7713_v20  ;;  %v7716_v57 = vmax.f32 %v7684_v4, 0.0  ;;  %v7682_v28 = vadd.f32 %v8548_v17, %v7554_v32 }
 0x44f   : > { %7873 = vst.msk [vmem:[%s12705_s28 + $0x50] sm:$0xf] %vm258_vm0, %v8493_v10  ;;  %v8496_v47 = vpack.c.bf16 %v7716_v57, %v7716_v57  ;;  %v7714_v14 = vmax.f32 %v7682_v28, 0.0 }
 0x451   : > { %7876 = vst.msk [vmem:[%s12705_s28 + $0x5c] sm:$0xf] %vm258_vm0, %v8496_v47  ;;  %v8494_v16 = vpack.c.bf16 %v7714_v14, %v7714_v14 }
 0x453   : > { %7874 = vst.msk [vmem:[%s12705_s28 + $0x54] sm:$0xf] %vm258_vm0, %v8494_v16 }
 0x46d   : > { %v8692_v13 = vpop.f32.mrf.mxu1 }
 0x46e   : > { %v7575_v48 = vadd.f32 %v8692_v13, %v12689_v58 }
 0x46f   : > { %v7566_v41 = vpop.f32.mrf.mxu1 }
 0x470   : > { %v7687_v59 = vadd.f32 %v8559_v5, %v7575_v48  ;;  %v7567_v25 = vadd.f32 %v12689_v58, %v7566_v41 }
 0x471   : > { %v8693_v56 = vpop.f32.mrf.mxu1 }
 0x472   : > { %v7719_v46 = vmax.f32 %v7687_v59, 0.0  ;;  %v7685_v44 = vadd.f32 %v8555_v39, %v7567_v25  ;;  %v7578_v37 = vadd.f32 %v8693_v56, %v12689_v58 }
 0x473   : > { %v7569_v45 = vpop.f32.mrf.mxu1 }
 0x474   : > { %v8499_v36 = vpack.c.bf16 %v7719_v46, %v7719_v46  ;;  %v7717_v7 = vmax.f32 %v7685_v44, 0.0  ;;  %v7688_v62 = vadd.f32 %v8560_v43, %v7578_v37  ;;  %v7570_v63 = vadd.f32 %v12689_v58, %v7569_v45 }
 0x476   : > { %7879 = vst.msk [vmem:[%s12705_s28 + $0x68] sm:$0xf] %vm258_vm0, %v8499_v36  ;;  %v8497_v55 = vpack.c.bf16 %v7717_v7, %v7717_v7  ;;  %v7720_v0 = vmax.f32 %v7688_v62, 0.0  ;;  %v7686_v54 = vadd.f32 %v8556_v42, %v7570_v63 }
 0x478   : > { %7877 = vst.msk [vmem:[%s12705_s28 + $0x60] sm:$0xf] %vm258_vm0, %v8497_v55  ;;  %v8500_v21 = vpack.c.bf16 %v7720_v0, %v7720_v0  ;;  %v7718_v35 = vmax.f32 %v7686_v54, 0.0 }
 0x47a   : > { %7880 = vst.msk [vmem:[%s12705_s28 + $0x6c] sm:$0xf] %vm258_vm0, %v8500_v21  ;;  %v8498_v30 = vpack.c.bf16 %v7718_v35, %v7718_v35 }
 0x47c   : > { %7878 = vst.msk [vmem:[%s12705_s28 + $0x64] sm:$0xf] %vm258_vm0, %v8498_v30 }
 0x496   : > { %v8696_v18 = vpop.f32.mrf.mxu1 }
 0x497   : > { %v7591_v3 = vadd.f32 %v8696_v18, %v12689_v58 }
 0x498   : > { %v7582_v1 = vpop.f32.mrf.mxu1 }
 0x499   : > { %v7691_v26 = vadd.f32 %v8567_v38, %v7591_v3  ;;  %v7583_v11 = vadd.f32 %v12689_v58, %v7582_v1 }
 0x49a   : > { %v8697_v53 = vpop.f32.mrf.mxu1 }
 0x49b   : > { %v7723_v60 = vmax.f32 %v7691_v26, 0.0  ;;  %v7689_v19 = vadd.f32 %v8563_v33, %v7583_v11  ;;  %v7594_v24 = vadd.f32 %v8697_v53, %v12689_v58 }
 0x49c   : > { %v7585_v27 = vpop.f32.mrf.mxu1 }
 0x49d   : > { %v8503_v50 = vpack.c.bf16 %v7723_v60, %v7723_v60  ;;  %v7721_v2 = vmax.f32 %v7689_v19, 0.0  ;;  %v7692_v12 = vadd.f32 %v8568_v15, %v7594_v24  ;;  %v7586_v6 = vadd.f32 %v12689_v58, %v7585_v27 }
 0x49f   : > { %7883 = vst.msk [vmem:[%s12705_s28 + $0x78] sm:$0xf] %vm258_vm0, %v8503_v50  ;;  %v8501_v61 = vpack.c.bf16 %v7721_v2, %v7721_v2  ;;  %v7724_v51 = vmax.f32 %v7692_v12, 0.0  ;;  %v7690_v49 = vadd.f32 %v8564_v29, %v7586_v6 }
 0x4a1   : > { %7881 = vst.msk [vmem:[%s12705_s28 + $0x70] sm:$0xf] %vm258_vm0, %v8501_v61  ;;  %v8504_v34 = vpack.c.bf16 %v7724_v51, %v7724_v51  ;;  %v7722_v40 = vmax.f32 %v7690_v49, 0.0 }
 0x4a3   : > { %7884 = vst.msk [vmem:[%s12705_s28 + $0x7c] sm:$0xf] %vm258_vm0, %v8504_v34  ;;  %v8502_v17 = vpack.c.bf16 %v7722_v40, %v7722_v40 }
 0x4a5   : > { %7882 = vst.msk [vmem:[%s12705_s28 + $0x74] sm:$0xf] %vm258_vm0, %v8502_v17 }
 0x4a6 PF: > { %s15_s18 = sadd.s32 1, %s8851_s18  }
 0x4a7   : > { %p12_p4 = scmp.ge.s32.totalorder %s15_s18, 4  }
 0x4a9   :  { %14 = sbr.rel (!%p12_p4) target bundleno = 1 (0x1), region = 76 }

</bundles_post_ra>
